<compile_context>
chip_gen: v6e
topology: v6e:2x2x1
jax: 0.10.0
libtpu: 0.0.40
codegen_flags: <defaults>
</compile_context>

<pallas_src>
import functools

import jax
import jax.numpy as jnp
from jax import lax
from jax.experimental import pallas as pl
from jax.experimental.pallas import tpu as pltpu

LN_EPS = 1e-5   # torch.nn.LayerNorm default


# ---------------------------------------------------------------------------
# Helpers
# ---------------------------------------------------------------------------
def _vmem_limit_bytes():
    """Generation-aware scoped-VMEM limit (~80% of physical VMEM)."""
    try:
        info = pltpu.get_tpu_info()
        for name in ("vmem_capacity_bytes", "vmem_bytes", "vmem_size_bytes"):
            cap = getattr(info, name, None)
            if cap:
                return int(cap * 0.8)
    except Exception:
        pass
    return 48 * 1024 * 1024   # conservative fallback (leaves headroom on v7x)


def _pick_divisor(n, candidates):
    for c in candidates:
        if c <= n and n % c == 0:
            return c
    return n


def _mix_tiles(n, h, itemsize, vmem_limit):
    """Spatial tile t and channel block tc for the triangle-mix kernel."""
    t = _pick_divisor(n, (256, 128, 64, 32, 16, 8))
    budget = int(0.55 * vmem_limit)        # operands are double-buffered
    for tc in (32, 16, 8, 4, 2, 1):
        if h % tc:
            continue
        need = 2 * (2 * tc * t * n * itemsize + tc * t * t * 4)
        if need <= budget:
            return tc, t
    return 1, t


def _full_spec(shape):
    return pl.BlockSpec(shape, lambda *_: (0,) * len(shape))


def _layernorm(x, gamma, beta, eps=LN_EPS):
    # x: (..., dim); gamma, beta broadcastable to x
    mu = jnp.mean(x, axis=-1, keepdims=True)
    var = jnp.mean(jnp.square(x - mu), axis=-1, keepdims=True)
    return (x - mu) * lax.rsqrt(var + eps) * gamma + beta


# ---------------------------------------------------------------------------
# Kernel 1: PreLayerNorm + fused left/right GLU projection, written channel-major
#   left_cm[b, c, p, q] = left[b, p, q, c],  right_cm likewise.
#   Column mask m[q] is applied here (row/ij mask factors handled in the mix).
# ---------------------------------------------------------------------------
def _proj_kernel(x_ref, m_ref, g_ref, b_ref, w_ref, left_ref, right_ref,
                 *, h, compute_dtype):
    tr = x_ref.shape[1]
    mcol = m_ref[0]                                   # (1, n) float32 column mask

    def body(r, carry):
        x_row = x_ref[0, r].astype(jnp.float32)       # (n, d)
        xn = _layernorm(x_row, g_ref[...], b_ref[...]).astype(compute_dtype)
        # (4h, d) @ (n, d)^T -> (4h, n): channel-major projection, no transpose needed.
        proj = lax.dot_general(w_ref[...], xn, (((1,), (1,)), ((), ())),
                               preferred_element_type=jnp.float32)
        left = proj[0:h] * jax.nn.sigmoid(proj[h:2 * h]) * mcol
        right = proj[2 * h:3 * h] * jax.nn.sigmoid(proj[3 * h:4 * h]) * mcol
        left_ref[0, :, r, :] = left.astype(left_ref.dtype)
        right_ref[0, :, r, :] = right.astype(right_ref.dtype)
        return carry

    lax.fori_loop(0, tr, body, 0)


def _project(x, mlane, p, tr, compute_dtype, vmem_limit):
    b, n, _, d = x.shape
    h = p['w_lv'].shape[1]
    # Fused, pre-transposed projection weight (4h, d): lv | lg | rv | rg.
    w4t = jnp.concatenate([p['w_lv'], p['w_lg'], p['w_rv'], p['w_rg']],
                          axis=1).T.astype(compute_dtype)
    kernel = functools.partial(_proj_kernel, h=h, compute_dtype=compute_dtype)
    out_sdt = jax.ShapeDtypeStruct((b, h, n, n), compute_dtype)
    cm_spec = pl.BlockSpec((1, h, tr, n), lambda bi, ri: (bi, 0, ri, 0))
    return pl.pallas_call(
        kernel,
        out_shape=(out_sdt, out_sdt),
        grid=(b, n // tr),
        in_specs=[
            pl.BlockSpec((1, tr, n, d), lambda bi, ri: (bi, ri, 0, 0)),
            pl.BlockSpec((1, 1, n), lambda bi, ri: (bi, 0, 0)),
            _full_spec((1, d)), _full_spec((1, d)),
            _full_spec((4 * h, d)),
        ],
        out_specs=(cm_spec, cm_spec),
        compiler_params=pltpu.CompilerParams(
            dimension_semantics=("parallel", "parallel"),
            vmem_limit_bytes=vmem_limit),
    )(x, mlane, p['g_pre'], p['b_pre'], w4t)


# ---------------------------------------------------------------------------
# Kernel 2: triangle mix as a channel-blocked, leading-batch MXU matmul over the
#           full k extent.  The i-indexed operand ignores j -> resident across j.
#   outgoing: out[c,i,j] = sum_k L_cm[c,i,k] * R_cm[c,j,k]
#   incoming: out[c,i,j] = sum_k R_cm[c,k,i] * L_cm[c,k,j]
# ---------------------------------------------------------------------------
def _mix_kernel(a_ref, b_ref, *rest, incoming):
    if incoming:
        mk_ref, mi_ref, mj_ref, o_ref = rest
    else:
        mi_ref, mj_ref, o_ref = rest

    a = a_ref[0]
    bm = b_ref[0]
    if incoming:
        # k runs along the sublane axis of B: apply the k mask here (m[k]).
        bm = bm * mk_ref[0].astype(bm.dtype)
        dn = (((1,), (1,)), ((0,), (0,)))            # contract over k (dim 1)
    else:
        dn = (((2,), (2,)), ((0,), (0,)))            # contract over k (dim 2)

    out = lax.dot_general(a, bm, dimension_numbers=dn,
                          preferred_element_type=jnp.float32)   # (tc, ti, tj)
    # Remaining pairwise-mask factor m[i]*m[j] (exact for {0,1} masks).
    o_ref[0] = (out * mi_ref[0] * mj_ref[0]).astype(o_ref.dtype)


def _mix(l_cm, r_cm, mlane, msub, incoming, tc, t, vmem_limit):
    b, h, n, _ = l_cm.shape
    ti = tj = t
    if incoming:
        a, bm = r_cm, l_cm
        a_spec = pl.BlockSpec((1, tc, n, ti), lambda bi, ci, ii, jj: (bi, ci, 0, ii))
        b_spec = pl.BlockSpec((1, tc, n, tj), lambda bi, ci, ii, jj: (bi, ci, 0, jj))
        extra = [msub]
        extra_specs = [pl.BlockSpec((1, n, 1), lambda bi, ci, ii, jj: (bi, 0, 0))]
    else:
        a, bm = l_cm, r_cm
        a_spec = pl.BlockSpec((1, tc, ti, n), lambda bi, ci, ii, jj: (bi, ci, ii, 0))
        b_spec = pl.BlockSpec((1, tc, tj, n), lambda bi, ci, ii, jj: (bi, ci, jj, 0))
        extra = []
        extra_specs = []
    mi_spec = pl.BlockSpec((1, ti, 1), lambda bi, ci, ii, jj: (bi, ii, 0))
    mj_spec = pl.BlockSpec((1, 1, tj), lambda bi, ci, ii, jj: (bi, 0, jj))

    kernel = functools.partial(_mix_kernel, incoming=incoming)
    return pl.pallas_call(
        kernel,
        out_shape=jax.ShapeDtypeStruct((b, h, n, n), jnp.float32),
        grid=(b, h // tc, n // ti, n // tj),
        in_specs=[a_spec, b_spec, *extra_specs, mi_spec, mj_spec],
        out_specs=pl.BlockSpec((1, tc, ti, tj),
                               lambda bi, ci, ii, jj: (bi, ci, ii, jj)),
        compiler_params=pltpu.CompilerParams(
            dimension_semantics=("parallel",) * 4,
            vmem_limit_bytes=vmem_limit),
    )(a, bm, *extra, msub, mlane)


# ---------------------------------------------------------------------------
# Kernel 3: out-LayerNorm + gate + to_out + residual (+ optional fused Transition).
#           Reads the mix channel-major (strided per-row (h, n) slabs).
# ---------------------------------------------------------------------------
def _epi_kernel(x_ref, mix_ref, g_pre_ref, b_pre_ref, w_gate_ref,
                g_out_ref, b_out_ref, w_out_ref, *rest,
                fuse_transition, compute_dtype):
    if fuse_transition:
        gt_ref, bt_ref, wt_val_ref, wt_gate_ref, wt_out_ref, o_ref = rest
    else:
        (o_ref,) = rest

    tr = x_ref.shape[1]
    cdt = compute_dtype

    def body(r, carry):
        x_row = x_ref[0, r].astype(jnp.float32)                 # (n, d)
        xn = _layernorm(x_row, g_pre_ref[...], b_pre_ref[...]).astype(cdt)
        gate = jax.nn.sigmoid(jnp.dot(xn, w_gate_ref[...],
                                      preferred_element_type=jnp.float32))  # (n, h)

        mix_row = mix_ref[0, :, r, :].astype(jnp.float32)       # (h, n)
        mu = jnp.mean(mix_row, axis=0, keepdims=True)
        var = jnp.mean(jnp.square(mix_row - mu), axis=0, keepdims=True)
        mix_ln = ((mix_row - mu) * lax.rsqrt(var + LN_EPS)
                  * g_out_ref[...] + b_out_ref[...]).astype(cdt)  # (h, n)

        # (h, n)^T @ (h, d) -> (n, d)
        y = lax.dot_general(mix_ln, w_out_ref[...], (((0,), (0,)), ((), ())),
                            preferred_element_type=jnp.float32)
        res = x_row + y * gate                                   # tri-mult residual

        if fuse_transition:
            tn = _layernorm(res, gt_ref[...], bt_ref[...]).astype(cdt)
            val = jnp.dot(tn, wt_val_ref[...], preferred_element_type=jnp.float32)
            gts = jnp.dot(tn, wt_gate_ref[...], preferred_element_type=jnp.float32)
            hid = (jax.nn.silu(gts) * val).astype(cdt)
            res = res + jnp.dot(hid, wt_out_ref[...],
                                preferred_element_type=jnp.float32)

        o_ref[0, r] = res.astype(o_ref.dtype)
        return carry

    lax.fori_loop(0, tr, body, 0)


def _epilogue(x, mix_cm, p, tr, compute_dtype, vmem_limit, trans=None):
    b, n, _, d = x.shape
    h = mix_cm.shape[1]
    cdt = compute_dtype
    fuse = trans is not None

    g_out = p['g_out'].reshape(h, 1)
    b_out = p['b_out'].reshape(h, 1)

    inputs = [x, mix_cm, p['g_pre'], p['b_pre'], p['w_gate'].astype(cdt),
              g_out, b_out, p['w_out'].astype(cdt)]
    in_specs = [
        pl.BlockSpec((1, tr, n, d), lambda bi, ri: (bi, ri, 0, 0)),
        pl.BlockSpec((1, h, tr, n), lambda bi, ri: (bi, 0, ri, 0)),
        _full_spec((1, d)), _full_spec((1, d)), _full_spec((d, h)),
        _full_spec((h, 1)), _full_spec((h, 1)), _full_spec((h, d)),
    ]
    if fuse:
        inner = trans['w_val'].shape[1]
        inputs += [trans['g'], trans['b'], trans['w_val'].astype(cdt),
                   trans['w_gate'].astype(cdt), trans['w_out'].astype(cdt)]
        in_specs += [_full_spec((1, d)), _full_spec((1, d)),
                     _full_spec((d, inner)), _full_spec((d, inner)),
                     _full_spec((inner, d))]

    kernel = functools.partial(_epi_kernel, fuse_transition=fuse, compute_dtype=cdt)
    return pl.pallas_call(
        kernel,
        out_shape=jax.ShapeDtypeStruct(x.shape, x.dtype),
        grid=(b, n // tr),
        in_specs=in_specs,
        out_specs=pl.BlockSpec((1, tr, n, d), lambda bi, ri: (bi, ri, 0, 0)),
        compiler_params=pltpu.CompilerParams(
            dimension_semantics=("parallel", "parallel"),
            vmem_limit_bytes=vmem_limit),
    )(*inputs)


# ---------------------------------------------------------------------------
# Orchestration
# ---------------------------------------------------------------------------
def _tri_mult(x, mlane, msub, p, mix, tc, t, tr, compute_dtype, vmem_limit,
              trans=None):
    d = x.shape[-1]
    h = p['w_lv'].shape[1]
    assert h == d, "PairwiseBlock default config requires dim_hidden == dim_pairwise"

    l_cm, r_cm = _project(x, mlane, p, tr, compute_dtype, vmem_limit)
    mix_cm = _mix(l_cm, r_cm, mlane, msub, mix == 'incoming', tc, t, vmem_limit)
    return _epilogue(x, mix_cm, p, tr, compute_dtype, vmem_limit, trans=trans)


@functools.partial(jax.jit, static_argnames=("compute_dtype",))
def pairwise_block(x, mask, params, compute_dtype=jnp.bfloat16):
    b, n = mask.shape
    h = params['tri_out']['w_lv'].shape[1]
    mf = mask.astype(jnp.float32)
    mlane = mf.reshape(b, 1, n)        # lane-oriented 1-D mask
    msub = mf.reshape(b, n, 1)         # sublane-oriented 1-D mask
    vmem_limit = _vmem_limit_bytes()
    itemsize = jnp.dtype(compute_dtype).itemsize
    tr = _pick_divisor(n, (8, 4, 2))
    tc, t = _mix_tiles(n, h, itemsize, vmem_limit)

    x = _tri_mult(x, mlane, msub, params['tri_out'], 'outgoing',
                  tc, t, tr, compute_dtype, vmem_limit)
    # Transition (PreLN + SwiGLU + residual) fused into the incoming epilogue.
    x = _tri_mult(x, mlane, msub, params['tri_in'], 'incoming',
                  tc, t, tr, compute_dtype, vmem_limit,
                  trans=params['trans'])
    return x


# ---------------------------------------------------------------------------
# Pure-JAX reference (correctness check)
# ---------------------------------------------------------------------------
def _ln_ref(x, g, b):
    mu = x.mean(-1, keepdims=True)
    var = ((x - mu) ** 2).mean(-1, keepdims=True)
    return (x - mu) * lax.rsqrt(var + LN_EPS) * g + b


def _tri_mult_ref(x, pm, p, mix):
    hi = lambda a, w: jnp.einsum('bijd,dh->bijh', a, w, precision='highest')
    xn = _ln_ref(x, p['g_pre'], p['b_pre'])
    left = hi(xn, p['w_lv']) * jax.nn.sigmoid(hi(xn, p['w_lg'])) * pm[..., None]
    right = hi(xn, p['w_rv']) * jax.nn.sigmoid(hi(xn, p['w_rg'])) * pm[..., None]
    eq = 'bikd,bjkd->bijd' if mix == 'outgoing' else 'bkjd,bkid->bijd'
    out = _ln_ref(jnp.einsum(eq, left, right, precision='highest'),
                  p['g_out'], p['b_out'])
    gate = jax.nn.sigmoid(hi(xn, p['w_gate']))
    y = jnp.einsum('bijh,hd->bijd', out, p['w_out'], precision='highest') * gate
    return y + x


def _transition_ref(x, p):
    xn = _ln_ref(x, p['g'], p['b'])
    val = jnp.einsum('bijd,dh->bijh', xn, p['w_val'], precision='highest')
    gates = jnp.einsum('bijd,dh->bijh', xn, p['w_gate'], precision='highest')
    y = jnp.einsum('bijh,hd->bijd', jax.nn.silu(gates) * val, p['w_out'],
                   precision='highest')
    return y + x


def pairwise_block_ref(x, mask, params):
    pm = (mask[:, :, None] & mask[:, None, :]).astype(x.dtype)
    x = _tri_mult_ref(x, pm, params['tri_out'], 'outgoing')
    x = _tri_mult_ref(x, pm, params['tri_in'], 'incoming')
    x = _transition_ref(x, params['trans'])
    return x


# ---------------------------------------------------------------------------
# Deterministic parameter init (synthetic)
# ---------------------------------------------------------------------------
def _init_tri(key, d, h):
    ks = jax.random.split(key, 9)
    nrm = lambda k, s: 0.02 * jax.random.normal(k, s, jnp.float32)
    return dict(
        g_pre=1.0 + 0.05 * jax.random.normal(ks[0], (1, d), jnp.float32),
        b_pre=0.05 * jax.random.normal(ks[1], (1, d), jnp.float32),
        w_lv=nrm(ks[2], (d, h)), w_lg=nrm(ks[3], (d, h)),
        w_rv=nrm(ks[4], (d, h)), w_rg=nrm(ks[5], (d, h)),
        w_gate=nrm(ks[6], (d, h)),
        g_out=1.0 + 0.05 * jax.random.normal(ks[7], (1, h), jnp.float32),
        b_out=jnp.zeros((1, h), jnp.float32),
        w_out=nrm(ks[8], (h, d)),
    )


def _init_trans(key, d, inner):
    ks = jax.random.split(key, 5)
    nrm = lambda k, s: 0.02 * jax.random.normal(k, s, jnp.float32)
    return dict(
        g=1.0 + 0.05 * jax.random.normal(ks[0], (1, d), jnp.float32),
        b=0.05 * jax.random.normal(ks[1], (1, d), jnp.float32),
        w_val=nrm(ks[2], (d, inner)),
        w_gate=nrm(ks[3], (d, inner)),
        w_out=nrm(ks[4], (inner, d)),
    )


if __name__ == "__main__":
    B, N, D = 2, 16, 32       # batch, seq (pairwise n x n), dim_pairwise
    H = D                     # tri_mult_dim_hidden=None -> dim_hidden = dim_pairwise
    INNER = 4 * D             # Transition expansion_factor = 4

    key = jax.random.PRNGKey(0)
    kx, k1, k2, k3 = jax.random.split(key, 4)
    x = jax.random.normal(kx, (B, N, N, D), jnp.float32)
    # mask: batch 0 fully valid, batch 1 has the last three positions masked out
    mask = jnp.arange(N)[None, :] < jnp.array([[N], [N - 3]])

    params = dict(
        tri_out=_init_tri(k1, D, H),
        tri_in=_init_tri(k2, D, H),
        trans=_init_trans(k3, D, INNER),
    )

    ref = pairwise_block_ref(x, mask, params)

    # f32 compute path (strict check)
    out_f32 = jax.block_until_ready(
        pairwise_block(x, mask, params, compute_dtype=jnp.float32))
    assert out_f32.shape == x.shape and out_f32.dtype == x.dtype
    err_f32 = float(jnp.max(jnp.abs(out_f32 - ref)))
    assert err_f32 < 3e-3, f"f32 max abs error {err_f32}"

    # default bf16 MXU path (sanity check against the f32 reference)
    out_bf16 = jax.block_until_ready(pairwise_block(x, mask, params))
    assert out_bf16.shape == x.shape and out_bf16.dtype == x.dtype
    err_bf16 = float(jnp.max(jnp.abs(out_bf16 - ref)))
    assert err_bf16 < 5e-2, f"bf16 max abs error {err_bf16}"

    print("KERNEL_OK")
</pallas_src>

<mosaic_0001>
module attributes {stable_mosaic.version = 11 : i64} {
  func.func @_proj_kernel(%arg0: i32, %arg1: i32, %arg2: memref<1x8x16x32xf32, #tpu.memory_space<vmem>>, %arg3: memref<1x1x16xf32, #tpu.memory_space<vmem>>, %arg4: memref<1x32xf32, #tpu.memory_space<vmem>>, %arg5: memref<1x32xf32, #tpu.memory_space<vmem>>, %arg6: memref<128x32xf32, #tpu.memory_space<vmem>>, %arg7: memref<1x32x8x16xf32, #tpu.memory_space<vmem>>, %arg8: memref<1x32x8x16xf32, #tpu.memory_space<vmem>>) attributes {dimension_semantics = [#tpu.dimension_semantics<parallel>, #tpu.dimension_semantics<parallel>], iteration_bounds = array<i64: 2, 2>, scalar_prefetch = 0 : i64, scratch_operands = 0 : i64, tpu.core_type = #tpu.core_type<tc>, window_params = [{transform_indices = @transform_0, window_bounds = array<i64: 1, 8, 16, 32>}, {transform_indices = @transform_1, window_bounds = array<i64: 1, 1, 16>}, {pipeline_mode = #tpu.pipeline_mode<synchronous>, transform_indices = @transform_2, window_bounds = array<i64: 1, 32>}, {pipeline_mode = #tpu.pipeline_mode<synchronous>, transform_indices = @transform_3, window_bounds = array<i64: 1, 32>}, {pipeline_mode = #tpu.pipeline_mode<synchronous>, transform_indices = @transform_4, window_bounds = array<i64: 128, 32>}, {transform_indices = @transform_5, window_bounds = array<i64: 1, 32, 8, 16>}, {transform_indices = @transform_6, window_bounds = array<i64: 1, 32, 8, 16>}]} {
    %c0 = arith.constant 0 : index
    %c0_0 = arith.constant 0 : index
    %c0_1 = arith.constant 0 : index
    %0 = vector.load %arg3[%c0, %c0_0, %c0_1] : memref<1x1x16xf32, #tpu.memory_space<vmem>>, vector<1x1x16xf32>
    %1 = vector.shape_cast %0 : vector<1x1x16xf32> to vector<1x16xf32>
    %c0_i32 = arith.constant 0 : i32
    %c8_i32 = arith.constant 8 : i32
    %2 = arith.addi %c0_i32, %c8_i32 : i32
    %c1_i32 = arith.constant 1 : i32
    scf.for %arg9 = %c0_i32 to %2 step %c1_i32  : i32 {
      %c0_3 = arith.constant 0 : index
      %3 = arith.index_cast %arg9 : i32 to index
      %c0_4 = arith.constant 0 : index
      %c0_5 = arith.constant 0 : index
      %4 = vector.load %arg2[%c0_3, %3, %c0_4, %c0_5] : memref<1x8x16x32xf32, #tpu.memory_space<vmem>>, vector<1x1x16x32xf32>
      %5 = vector.shape_cast %4 : vector<1x1x16x32xf32> to vector<16x32xf32>
      %c0_6 = arith.constant 0 : index
      %c0_7 = arith.constant 0 : index
      %6 = vector.load %arg4[%c0_6, %c0_7] : memref<1x32xf32, #tpu.memory_space<vmem>>, vector<1x32xf32>
      %c0_8 = arith.constant 0 : index
      %c0_9 = arith.constant 0 : index
      %7 = vector.load %arg5[%c0_8, %c0_9] : memref<1x32xf32, #tpu.memory_space<vmem>>, vector<1x32xf32>
      %cst = arith.constant dense<0.000000e+00> : vector<16xf32>
      %8 = vector.multi_reduction <add>, %5, %cst [1] : vector<16x32xf32> to vector<16xf32>
      %9 = vector.shape_cast %8 : vector<16xf32> to vector<16x1xf32>
      %cst_10 = arith.constant 3.200000e+01 : f32
      %10 = vector.broadcast %cst_10 : f32 to vector<16x1xf32>
      %11 = arith.divf %9, %10 : vector<16x1xf32>
      %12 = vector.broadcast %11 : vector<16x1xf32> to vector<16x32xf32>
      %13 = arith.subf %5, %12 : vector<16x32xf32>
      %14 = arith.mulf %13, %13 : vector<16x32xf32>
      %cst_11 = arith.constant dense<0.000000e+00> : vector<16xf32>
      %15 = vector.multi_reduction <add>, %14, %cst_11 [1] : vector<16x32xf32> to vector<16xf32>
      %16 = vector.shape_cast %15 : vector<16xf32> to vector<16x1xf32>
      %cst_12 = arith.constant 3.200000e+01 : f32
      %17 = vector.broadcast %cst_12 : f32 to vector<16x1xf32>
      %18 = arith.divf %16, %17 : vector<16x1xf32>
      %19 = vector.broadcast %11 : vector<16x1xf32> to vector<16x32xf32>
      %20 = arith.subf %5, %19 : vector<16x32xf32>
      %cst_13 = arith.constant 9.99999974E-6 : f32
      %21 = vector.broadcast %cst_13 : f32 to vector<16x1xf32>
      %22 = arith.addf %18, %21 : vector<16x1xf32>
      %23 = math.rsqrt %22 : vector<16x1xf32>
      %24 = vector.broadcast %23 : vector<16x1xf32> to vector<16x32xf32>
      %25 = arith.mulf %20, %24 : vector<16x32xf32>
      %26 = vector.broadcast %6 : vector<1x32xf32> to vector<16x32xf32>
      %27 = arith.mulf %25, %26 : vector<16x32xf32>
      %28 = vector.broadcast %7 : vector<1x32xf32> to vector<16x32xf32>
      %29 = arith.addf %27, %28 : vector<16x32xf32>
      %c0_14 = arith.constant 0 : index
      %c0_15 = arith.constant 0 : index
      %30 = vector.load %arg6[%c0_14, %c0_15] : memref<128x32xf32, #tpu.memory_space<vmem>>, vector<128x32xf32>
      %cst_16 = arith.constant dense<0.000000e+00> : vector<128x16xf32>
      %31 = tpu.matmul %30, %29, %cst_16 {dimension_numbers = #tpu.dot_dimension_numbers<[1], [1], [0], [0], [0, 0, 1, 0], [], []>} : vector<128x32xf32>, vector<16x32xf32>, vector<128x16xf32> -> vector<128x16xf32>
      %32 = vector.extract_strided_slice %31 {offsets = [0, 0], sizes = [32, 16], strides = [1, 1]} : vector<128x16xf32> to vector<32x16xf32>
      %33 = vector.extract_strided_slice %31 {offsets = [32, 0], sizes = [32, 16], strides = [1, 1]} : vector<128x16xf32> to vector<32x16xf32>
      %34 = arith.negf %33 : vector<32x16xf32>
      %35 = math.exp %34 : vector<32x16xf32>
      %cst_17 = arith.constant 1.000000e+00 : f32
      %36 = vector.broadcast %cst_17 : f32 to vector<32x16xf32>
      %37 = arith.addf %36, %35 : vector<32x16xf32>
      %38 = arith.divf %36, %37 : vector<32x16xf32>
      %39 = arith.mulf %32, %38 : vector<32x16xf32>
      %40 = vector.broadcast %1 : vector<1x16xf32> to vector<32x16xf32>
      %41 = arith.mulf %39, %40 : vector<32x16xf32>
      %42 = vector.extract_strided_slice %31 {offsets = [64, 0], sizes = [32, 16], strides = [1, 1]} : vector<128x16xf32> to vector<32x16xf32>
      %43 = vector.extract_strided_slice %31 {offsets = [96, 0], sizes = [32, 16], strides = [1, 1]} : vector<128x16xf32> to vector<32x16xf32>
      %44 = arith.negf %43 : vector<32x16xf32>
      %45 = math.exp %44 : vector<32x16xf32>
      %cst_18 = arith.constant 1.000000e+00 : f32
      %46 = vector.broadcast %cst_18 : f32 to vector<32x16xf32>
      %47 = arith.addf %46, %45 : vector<32x16xf32>
      %48 = arith.divf %46, %47 : vector<32x16xf32>
      %49 = arith.mulf %42, %48 : vector<32x16xf32>
      %50 = vector.broadcast %1 : vector<1x16xf32> to vector<32x16xf32>
      %51 = arith.mulf %49, %50 : vector<32x16xf32>
      %c0_19 = arith.constant 0 : index
      %c0_20 = arith.constant 0 : index
      %52 = arith.index_cast %arg9 : i32 to index
      %c0_21 = arith.constant 0 : index
      %53 = vector.load %arg7[%c0_19, %c0_20, %52, %c0_21] : memref<1x32x8x16xf32, #tpu.memory_space<vmem>>, vector<1x32x1x16xf32>
      %54 = vector.shape_cast %53 : vector<1x32x1x16xf32> to vector<32x16xf32>
      %55 = vector.shape_cast %41 : vector<32x16xf32> to vector<1x32x1x16xf32>
      tpu.vector_store %arg7[%c0_19, %c0_20, %52, %c0_21], %55 {strides = array<i32>} : memref<1x32x8x16xf32, #tpu.memory_space<vmem>>, vector<1x32x1x16xf32>,
      %c0_22 = arith.constant 0 : index
      %c0_23 = arith.constant 0 : index
      %56 = arith.index_cast %arg9 : i32 to index
      %c0_24 = arith.constant 0 : index
      %57 = vector.load %arg8[%c0_22, %c0_23, %56, %c0_24] : memref<1x32x8x16xf32, #tpu.memory_space<vmem>>, vector<1x32x1x16xf32>
      %58 = vector.shape_cast %57 : vector<1x32x1x16xf32> to vector<32x16xf32>
      %59 = vector.shape_cast %51 : vector<32x16xf32> to vector<1x32x1x16xf32>
      tpu.vector_store %arg8[%c0_22, %c0_23, %56, %c0_24], %59 {strides = array<i32>} : memref<1x32x8x16xf32, #tpu.memory_space<vmem>>, vector<1x32x1x16xf32>,
    }
    %c8_i32_2 = arith.constant 8 : i32
    return
  }
  func.func @transform_0(%arg0: i32, %arg1: i32) -> (i32, i32, i32, i32) {
    %c0_i32 = arith.constant 0 : i32
    %c0_i32_0 = arith.constant 0 : i32
    %c0_i32_1 = arith.constant 0 : i32
    return %arg0, %arg1, %c0_i32, %c0_i32_0 : i32, i32, i32, i32
  }
  func.func @transform_1(%arg0: i32, %arg1: i32) -> (i32, i32, i32) {
    %c0_i32 = arith.constant 0 : i32
    %c0_i32_0 = arith.constant 0 : i32
    %c0_i32_1 = arith.constant 0 : i32
    return %arg0, %c0_i32, %c0_i32_0 : i32, i32, i32
  }
  func.func @transform_2(%arg0: i32, %arg1: i32) -> (i32, i32) {
    %c0_i32 = arith.constant 0 : i32
    %c0_i32_0 = arith.constant 0 : i32
    %c0_i32_1 = arith.constant 0 : i32
    return %c0_i32, %c0_i32_0 : i32, i32
  }
  func.func @transform_3(%arg0: i32, %arg1: i32) -> (i32, i32) {
    %c0_i32 = arith.constant 0 : i32
    %c0_i32_0 = arith.constant 0 : i32
    %c0_i32_1 = arith.constant 0 : i32
    return %c0_i32, %c0_i32_0 : i32, i32
  }
  func.func @transform_4(%arg0: i32, %arg1: i32) -> (i32, i32) {
    %c0_i32 = arith.constant 0 : i32
    %c0_i32_0 = arith.constant 0 : i32
    %c0_i32_1 = arith.constant 0 : i32
    return %c0_i32, %c0_i32_0 : i32, i32
  }
  func.func @transform_5(%arg0: i32, %arg1: i32) -> (i32, i32, i32, i32) {
    %c0_i32 = arith.constant 0 : i32
    %c0_i32_0 = arith.constant 0 : i32
    %c0_i32_1 = arith.constant 0 : i32
    return %arg0, %c0_i32, %arg1, %c0_i32_0 : i32, i32, i32, i32
  }
  func.func @transform_6(%arg0: i32, %arg1: i32) -> (i32, i32, i32, i32) {
    %c0_i32 = arith.constant 0 : i32
    %c0_i32_0 = arith.constant 0 : i32
    %c0_i32_1 = arith.constant 0 : i32
    return %arg0, %c0_i32, %arg1, %c0_i32_0 : i32, i32, i32, i32
  }
}

module attributes {stable_mosaic.version = 11 : i64} {
  func.func @_mix_kernel(%arg0: i32, %arg1: i32, %arg2: i32, %arg3: i32, %arg4: memref<1x32x16x16xf32, #tpu.memory_space<vmem>>, %arg5: memref<1x32x16x16xf32, #tpu.memory_space<vmem>>, %arg6: memref<1x16x1xf32, #tpu.memory_space<vmem>>, %arg7: memref<1x1x16xf32, #tpu.memory_space<vmem>>, %arg8: memref<1x32x16x16xf32, #tpu.memory_space<vmem>>) attributes {dimension_semantics = [#tpu.dimension_semantics<parallel>, #tpu.dimension_semantics<parallel>, #tpu.dimension_semantics<parallel>, #tpu.dimension_semantics<parallel>], iteration_bounds = array<i64: 2, 1, 1, 1>, scalar_prefetch = 0 : i64, scratch_operands = 0 : i64, tpu.core_type = #tpu.core_type<tc>, window_params = [{transform_indices = @transform_0, window_bounds = array<i64: 1, 32, 16, 16>}, {transform_indices = @transform_1, window_bounds = array<i64: 1, 32, 16, 16>}, {transform_indices = @transform_2, window_bounds = array<i64: 1, 16, 1>}, {transform_indices = @transform_3, window_bounds = array<i64: 1, 1, 16>}, {transform_indices = @transform_4, window_bounds = array<i64: 1, 32, 16, 16>}]} {
    %c0 = arith.constant 0 : index
    %c0_0 = arith.constant 0 : index
    %c0_1 = arith.constant 0 : index
    %c0_2 = arith.constant 0 : index
    %0 = vector.load %arg4[%c0, %c0_0, %c0_1, %c0_2] : memref<1x32x16x16xf32, #tpu.memory_space<vmem>>, vector<1x32x16x16xf32>
    %1 = vector.shape_cast %0 : vector<1x32x16x16xf32> to vector<32x16x16xf32>
    %c0_3 = arith.constant 0 : index
    %c0_4 = arith.constant 0 : index
    %c0_5 = arith.constant 0 : index
    %c0_6 = arith.constant 0 : index
    %2 = vector.load %arg5[%c0_3, %c0_4, %c0_5, %c0_6] : memref<1x32x16x16xf32, #tpu.memory_space<vmem>>, vector<1x32x16x16xf32>
    %3 = vector.shape_cast %2 : vector<1x32x16x16xf32> to vector<32x16x16xf32>
    %cst = arith.constant dense<0.000000e+00> : vector<32x16x16xf32>
    %4 = tpu.matmul %1, %3, %cst {dimension_numbers = #tpu.dot_dimension_numbers<[2], [2], [1], [1], [0, 0, 0, 1, 1, 1], [0], [0]>} : vector<32x16x16xf32>, vector<32x16x16xf32>, vector<32x16x16xf32> -> vector<32x16x16xf32>
    %c0_7 = arith.constant 0 : index
    %c0_8 = arith.constant 0 : index
    %c0_9 = arith.constant 0 : index
    %5 = vector.load %arg6[%c0_7, %c0_8, %c0_9] : memref<1x16x1xf32, #tpu.memory_space<vmem>>, vector<1x16x1xf32>
    %6 = vector.shape_cast %5 : vector<1x16x1xf32> to vector<16x1xf32>
    %7 = vector.shape_cast %6 : vector<16x1xf32> to vector<1x16x1xf32>
    %8 = vector.broadcast %7 : vector<1x16x1xf32> to vector<32x16x16xf32>
    %9 = arith.mulf %4, %8 : vector<32x16x16xf32>
    %c0_10 = arith.constant 0 : index
    %c0_11 = arith.constant 0 : index
    %c0_12 = arith.constant 0 : index
    %10 = vector.load %arg7[%c0_10, %c0_11, %c0_12] : memref<1x1x16xf32, #tpu.memory_space<vmem>>, vector<1x1x16xf32>
    %11 = vector.shape_cast %10 : vector<1x1x16xf32> to vector<1x16xf32>
    %12 = vector.shape_cast %11 : vector<1x16xf32> to vector<1x1x16xf32>
    %13 = vector.broadcast %12 : vector<1x1x16xf32> to vector<32x16x16xf32>
    %14 = arith.mulf %9, %13 : vector<32x16x16xf32>
    %c0_13 = arith.constant 0 : index
    %c0_14 = arith.constant 0 : index
    %c0_15 = arith.constant 0 : index
    %c0_16 = arith.constant 0 : index
    %15 = vector.load %arg8[%c0_13, %c0_14, %c0_15, %c0_16] : memref<1x32x16x16xf32, #tpu.memory_space<vmem>>, vector<1x32x16x16xf32>
    %16 = vector.shape_cast %15 : vector<1x32x16x16xf32> to vector<32x16x16xf32>
    %17 = vector.shape_cast %14 : vector<32x16x16xf32> to vector<1x32x16x16xf32>
    tpu.vector_store %arg8[%c0_13, %c0_14, %c0_15, %c0_16], %17 {strides = array<i32>} : memref<1x32x16x16xf32, #tpu.memory_space<vmem>>, vector<1x32x16x16xf32>,
    return
  }
  func.func @transform_0(%arg0: i32, %arg1: i32, %arg2: i32, %arg3: i32) -> (i32, i32, i32, i32) {
    %c0_i32 = arith.constant 0 : i32
    %c0_i32_0 = arith.constant 0 : i32
    return %arg0, %arg1, %arg2, %c0_i32 : i32, i32, i32, i32
  }
  func.func @transform_1(%arg0: i32, %arg1: i32, %arg2: i32, %arg3: i32) -> (i32, i32, i32, i32) {
    %c0_i32 = arith.constant 0 : i32
    %c0_i32_0 = arith.constant 0 : i32
    return %arg0, %arg1, %arg3, %c0_i32 : i32, i32, i32, i32
  }
  func.func @transform_2(%arg0: i32, %arg1: i32, %arg2: i32, %arg3: i32) -> (i32, i32, i32) {
    %c0_i32 = arith.constant 0 : i32
    %c0_i32_0 = arith.constant 0 : i32
    return %arg0, %arg2, %c0_i32 : i32, i32, i32
  }
  func.func @transform_3(%arg0: i32, %arg1: i32, %arg2: i32, %arg3: i32) -> (i32, i32, i32) {
    %c0_i32 = arith.constant 0 : i32
    %c0_i32_0 = arith.constant 0 : i32
    return %arg0, %c0_i32, %arg3 : i32, i32, i32
  }
  func.func @transform_4(%arg0: i32, %arg1: i32, %arg2: i32, %arg3: i32) -> (i32, i32, i32, i32) {
    %c0_i32 = arith.constant 0 : i32
    return %arg0, %arg1, %arg2, %arg3 : i32, i32, i32, i32
  }
}

module attributes {stable_mosaic.version = 11 : i64} {
  func.func @_epi_kernel(%arg0: i32, %arg1: i32, %arg2: memref<1x8x16x32xf32, #tpu.memory_space<vmem>>, %arg3: memref<1x32x8x16xf32, #tpu.memory_space<vmem>>, %arg4: memref<1x32xf32, #tpu.memory_space<vmem>>, %arg5: memref<1x32xf32, #tpu.memory_space<vmem>>, %arg6: memref<32x32xf32, #tpu.memory_space<vmem>>, %arg7: memref<32x1xf32, #tpu.memory_space<vmem>>, %arg8: memref<32x1xf32, #tpu.memory_space<vmem>>, %arg9: memref<32x32xf32, #tpu.memory_space<vmem>>, %arg10: memref<1x8x16x32xf32, #tpu.memory_space<vmem>>) attributes {dimension_semantics = [#tpu.dimension_semantics<parallel>, #tpu.dimension_semantics<parallel>], iteration_bounds = array<i64: 2, 2>, scalar_prefetch = 0 : i64, scratch_operands = 0 : i64, tpu.core_type = #tpu.core_type<tc>, window_params = [{transform_indices = @transform_0, window_bounds = array<i64: 1, 8, 16, 32>}, {transform_indices = @transform_1, window_bounds = array<i64: 1, 32, 8, 16>}, {pipeline_mode = #tpu.pipeline_mode<synchronous>, transform_indices = @transform_2, window_bounds = array<i64: 1, 32>}, {pipeline_mode = #tpu.pipeline_mode<synchronous>, transform_indices = @transform_3, window_bounds = array<i64: 1, 32>}, {pipeline_mode = #tpu.pipeline_mode<synchronous>, transform_indices = @transform_4, window_bounds = array<i64: 32, 32>}, {pipeline_mode = #tpu.pipeline_mode<synchronous>, transform_indices = @transform_5, window_bounds = array<i64: 32, 1>}, {pipeline_mode = #tpu.pipeline_mode<synchronous>, transform_indices = @transform_6, window_bounds = array<i64: 32, 1>}, {pipeline_mode = #tpu.pipeline_mode<synchronous>, transform_indices = @transform_7, window_bounds = array<i64: 32, 32>}, {transform_indices = @transform_8, window_bounds = array<i64: 1, 8, 16, 32>}]} {
    %c0_i32 = arith.constant 0 : i32
    %c8_i32 = arith.constant 8 : i32
    %0 = arith.addi %c0_i32, %c8_i32 : i32
    %c1_i32 = arith.constant 1 : i32
    scf.for %arg11 = %c0_i32 to %0 step %c1_i32  : i32 {
      %c0 = arith.constant 0 : index
      %1 = arith.index_cast %arg11 : i32 to index
      %c0_1 = arith.constant 0 : index
      %c0_2 = arith.constant 0 : index
      %2 = vector.load %arg2[%c0, %1, %c0_1, %c0_2] : memref<1x8x16x32xf32, #tpu.memory_space<vmem>>, vector<1x1x16x32xf32>
      %3 = vector.shape_cast %2 : vector<1x1x16x32xf32> to vector<16x32xf32>
      %c0_3 = arith.constant 0 : index
      %c0_4 = arith.constant 0 : index
      %4 = vector.load %arg4[%c0_3, %c0_4] : memref<1x32xf32, #tpu.memory_space<vmem>>, vector<1x32xf32>
      %c0_5 = arith.constant 0 : index
      %c0_6 = arith.constant 0 : index
      %5 = vector.load %arg5[%c0_5, %c0_6] : memref<1x32xf32, #tpu.memory_space<vmem>>, vector<1x32xf32>
      %cst = arith.constant dense<0.000000e+00> : vector<16xf32>
      %6 = vector.multi_reduction <add>, %3, %cst [1] : vector<16x32xf32> to vector<16xf32>
      %7 = vector.shape_cast %6 : vector<16xf32> to vector<16x1xf32>
      %cst_7 = arith.constant 3.200000e+01 : f32
      %8 = vector.broadcast %cst_7 : f32 to vector<16x1xf32>
      %9 = arith.divf %7, %8 : vector<16x1xf32>
      %10 = vector.broadcast %9 : vector<16x1xf32> to vector<16x32xf32>
      %11 = arith.subf %3, %10 : vector<16x32xf32>
      %12 = arith.mulf %11, %11 : vector<16x32xf32>
      %cst_8 = arith.constant dense<0.000000e+00> : vector<16xf32>
      %13 = vector.multi_reduction <add>, %12, %cst_8 [1] : vector<16x32xf32> to vector<16xf32>
      %14 = vector.shape_cast %13 : vector<16xf32> to vector<16x1xf32>
      %cst_9 = arith.constant 3.200000e+01 : f32
      %15 = vector.broadcast %cst_9 : f32 to vector<16x1xf32>
      %16 = arith.divf %14, %15 : vector<16x1xf32>
      %17 = vector.broadcast %9 : vector<16x1xf32> to vector<16x32xf32>
      %18 = arith.subf %3, %17 : vector<16x32xf32>
      %cst_10 = arith.constant 9.99999974E-6 : f32
      %19 = vector.broadcast %cst_10 : f32 to vector<16x1xf32>
      %20 = arith.addf %16, %19 : vector<16x1xf32>
      %21 = math.rsqrt %20 : vector<16x1xf32>
      %22 = vector.broadcast %21 : vector<16x1xf32> to vector<16x32xf32>
      %23 = arith.mulf %18, %22 : vector<16x32xf32>
      %24 = vector.broadcast %4 : vector<1x32xf32> to vector<16x32xf32>
      %25 = arith.mulf %23, %24 : vector<16x32xf32>
      %26 = vector.broadcast %5 : vector<1x32xf32> to vector<16x32xf32>
      %27 = arith.addf %25, %26 : vector<16x32xf32>
      %c0_11 = arith.constant 0 : index
      %c0_12 = arith.constant 0 : index
      %28 = vector.load %arg6[%c0_11, %c0_12] : memref<32x32xf32, #tpu.memory_space<vmem>>, vector<32x32xf32>
      %cst_13 = arith.constant dense<0.000000e+00> : vector<16x32xf32>
      %29 = tpu.matmul %27, %28, %cst_13 {dimension_numbers = #tpu.dot_dimension_numbers<[1], [0], [0], [1], [0, 0, 1, 1], [], []>} : vector<16x32xf32>, vector<32x32xf32>, vector<16x32xf32> -> vector<16x32xf32>
      %30 = arith.negf %29 : vector<16x32xf32>
      %31 = math.exp %30 : vector<16x32xf32>
      %cst_14 = arith.constant 1.000000e+00 : f32
      %32 = vector.broadcast %cst_14 : f32 to vector<16x32xf32>
      %33 = arith.addf %32, %31 : vector<16x32xf32>
      %34 = arith.divf %32, %33 : vector<16x32xf32>
      %c0_15 = arith.constant 0 : index
      %c0_16 = arith.constant 0 : index
      %35 = arith.index_cast %arg11 : i32 to index
      %c0_17 = arith.constant 0 : index
      %36 = vector.load %arg3[%c0_15, %c0_16, %35, %c0_17] : memref<1x32x8x16xf32, #tpu.memory_space<vmem>>, vector<1x32x1x16xf32>
      %37 = vector.shape_cast %36 : vector<1x32x1x16xf32> to vector<32x16xf32>
      %cst_18 = arith.constant dense<0.000000e+00> : vector<16xf32>
      %38 = vector.multi_reduction <add>, %37, %cst_18 [0] : vector<32x16xf32> to vector<16xf32>
      %39 = vector.shape_cast %38 : vector<16xf32> to vector<1x16xf32>
      %cst_19 = arith.constant 3.200000e+01 : f32
      %40 = vector.broadcast %cst_19 : f32 to vector<1x16xf32>
      %41 = arith.divf %39, %40 : vector<1x16xf32>
      %42 = vector.broadcast %41 : vector<1x16xf32> to vector<32x16xf32>
      %43 = arith.subf %37, %42 : vector<32x16xf32>
      %44 = arith.mulf %43, %43 : vector<32x16xf32>
      %cst_20 = arith.constant dense<0.000000e+00> : vector<16xf32>
      %45 = vector.multi_reduction <add>, %44, %cst_20 [0] : vector<32x16xf32> to vector<16xf32>
      %46 = vector.shape_cast %45 : vector<16xf32> to vector<1x16xf32>
      %cst_21 = arith.constant 3.200000e+01 : f32
      %47 = vector.broadcast %cst_21 : f32 to vector<1x16xf32>
      %48 = arith.divf %46, %47 : vector<1x16xf32>
      %49 = vector.broadcast %41 : vector<1x16xf32> to vector<32x16xf32>
      %50 = arith.subf %37, %49 : vector<32x16xf32>
      %cst_22 = arith.constant 9.99999974E-6 : f32
      %51 = vector.broadcast %cst_22 : f32 to vector<1x16xf32>
      %52 = arith.addf %48, %51 : vector<1x16xf32>
      %53 = math.rsqrt %52 : vector<1x16xf32>
      %54 = vector.broadcast %53 : vector<1x16xf32> to vector<32x16xf32>
      %55 = arith.mulf %50, %54 : vector<32x16xf32>
      %c0_23 = arith.constant 0 : index
      %c0_24 = arith.constant 0 : index
      %56 = vector.load %arg7[%c0_23, %c0_24] : memref<32x1xf32, #tpu.memory_space<vmem>>, vector<32x1xf32>
      %57 = vector.broadcast %56 : vector<32x1xf32> to vector<32x16xf32>
      %58 = arith.mulf %55, %57 : vector<32x16xf32>
      %c0_25 = arith.constant 0 : index
      %c0_26 = arith.constant 0 : index
      %59 = vector.load %arg8[%c0_25, %c0_26] : memref<32x1xf32, #tpu.memory_space<vmem>>, vector<32x1xf32>
      %60 = vector.broadcast %59 : vector<32x1xf32> to vector<32x16xf32>
      %61 = arith.addf %58, %60 : vector<32x16xf32>
      %c0_27 = arith.constant 0 : index
      %c0_28 = arith.constant 0 : index
      %62 = vector.load %arg9[%c0_27, %c0_28] : memref<32x32xf32, #tpu.memory_space<vmem>>, vector<32x32xf32>
      %cst_29 = arith.constant dense<0.000000e+00> : vector<16x32xf32>
      %63 = tpu.matmul %61, %62, %cst_29 {dimension_numbers = #tpu.dot_dimension_numbers<[0], [0], [1], [1], [0, 1, 1, 1], [], []>} : vector<32x16xf32>, vector<32x32xf32>, vector<16x32xf32> -> vector<16x32xf32>
      %64 = arith.mulf %63, %34 : vector<16x32xf32>
      %65 = arith.addf %3, %64 : vector<16x32xf32>
      %c0_30 = arith.constant 0 : index
      %66 = arith.index_cast %arg11 : i32 to index
      %c0_31 = arith.constant 0 : index
      %c0_32 = arith.constant 0 : index
      %67 = vector.load %arg10[%c0_30, %66, %c0_31, %c0_32] : memref<1x8x16x32xf32, #tpu.memory_space<vmem>>, vector<1x1x16x32xf32>
      %68 = vector.shape_cast %67 : vector<1x1x16x32xf32> to vector<16x32xf32>
      %69 = vector.shape_cast %65 : vector<16x32xf32> to vector<1x1x16x32xf32>
      tpu.vector_store %arg10[%c0_30, %66, %c0_31, %c0_32], %69 {strides = array<i32>} : memref<1x8x16x32xf32, #tpu.memory_space<vmem>>, vector<1x1x16x32xf32>,
    }
    %c8_i32_0 = arith.constant 8 : i32
    return
  }
  func.func @transform_0(%arg0: i32, %arg1: i32) -> (i32, i32, i32, i32) {
    %c0_i32 = arith.constant 0 : i32
    %c0_i32_0 = arith.constant 0 : i32
    %c0_i32_1 = arith.constant 0 : i32
    return %arg0, %arg1, %c0_i32, %c0_i32_0 : i32, i32, i32, i32
  }
  func.func @transform_1(%arg0: i32, %arg1: i32) -> (i32, i32, i32, i32) {
    %c0_i32 = arith.constant 0 : i32
    %c0_i32_0 = arith.constant 0 : i32
    %c0_i32_1 = arith.constant 0 : i32
    return %arg0, %c0_i32, %arg1, %c0_i32_0 : i32, i32, i32, i32
  }
  func.func @transform_2(%arg0: i32, %arg1: i32) -> (i32, i32) {
    %c0_i32 = arith.constant 0 : i32
    %c0_i32_0 = arith.constant 0 : i32
    %c0_i32_1 = arith.constant 0 : i32
    return %c0_i32, %c0_i32_0 : i32, i32
  }
  func.func @transform_3(%arg0: i32, %arg1: i32) -> (i32, i32) {
    %c0_i32 = arith.constant 0 : i32
    %c0_i32_0 = arith.constant 0 : i32
    %c0_i32_1 = arith.constant 0 : i32
    return %c0_i32, %c0_i32_0 : i32, i32
  }
  func.func @transform_4(%arg0: i32, %arg1: i32) -> (i32, i32) {
    %c0_i32 = arith.constant 0 : i32
    %c0_i32_0 = arith.constant 0 : i32
    %c0_i32_1 = arith.constant 0 : i32
    return %c0_i32, %c0_i32_0 : i32, i32
  }
  func.func @transform_5(%arg0: i32, %arg1: i32) -> (i32, i32) {
    %c0_i32 = arith.constant 0 : i32
    %c0_i32_0 = arith.constant 0 : i32
    %c0_i32_1 = arith.constant 0 : i32
    return %c0_i32, %c0_i32_0 : i32, i32
  }
  func.func @transform_6(%arg0: i32, %arg1: i32) -> (i32, i32) {
    %c0_i32 = arith.constant 0 : i32
    %c0_i32_0 = arith.constant 0 : i32
    %c0_i32_1 = arith.constant 0 : i32
    return %c0_i32, %c0_i32_0 : i32, i32
  }
  func.func @transform_7(%arg0: i32, %arg1: i32) -> (i32, i32) {
    %c0_i32 = arith.constant 0 : i32
    %c0_i32_0 = arith.constant 0 : i32
    %c0_i32_1 = arith.constant 0 : i32
    return %c0_i32, %c0_i32_0 : i32, i32
  }
  func.func @transform_8(%arg0: i32, %arg1: i32) -> (i32, i32, i32, i32) {
    %c0_i32 = arith.constant 0 : i32
    %c0_i32_0 = arith.constant 0 : i32
    %c0_i32_1 = arith.constant 0 : i32
    return %arg0, %arg1, %c0_i32, %c0_i32_0 : i32, i32, i32, i32
  }
}

module attributes {stable_mosaic.version = 11 : i64} {
  func.func @_proj_kernel(%arg0: i32, %arg1: i32, %arg2: memref<1x8x16x32xf32, #tpu.memory_space<vmem>>, %arg3: memref<1x1x16xf32, #tpu.memory_space<vmem>>, %arg4: memref<1x32xf32, #tpu.memory_space<vmem>>, %arg5: memref<1x32xf32, #tpu.memory_space<vmem>>, %arg6: memref<128x32xf32, #tpu.memory_space<vmem>>, %arg7: memref<1x32x8x16xf32, #tpu.memory_space<vmem>>, %arg8: memref<1x32x8x16xf32, #tpu.memory_space<vmem>>) attributes {dimension_semantics = [#tpu.dimension_semantics<parallel>, #tpu.dimension_semantics<parallel>], iteration_bounds = array<i64: 2, 2>, scalar_prefetch = 0 : i64, scratch_operands = 0 : i64, tpu.core_type = #tpu.core_type<tc>, window_params = [{transform_indices = @transform_0, window_bounds = array<i64: 1, 8, 16, 32>}, {transform_indices = @transform_1, window_bounds = array<i64: 1, 1, 16>}, {pipeline_mode = #tpu.pipeline_mode<synchronous>, transform_indices = @transform_2, window_bounds = array<i64: 1, 32>}, {pipeline_mode = #tpu.pipeline_mode<synchronous>, transform_indices = @transform_3, window_bounds = array<i64: 1, 32>}, {pipeline_mode = #tpu.pipeline_mode<synchronous>, transform_indices = @transform_4, window_bounds = array<i64: 128, 32>}, {transform_indices = @transform_5, window_bounds = array<i64: 1, 32, 8, 16>}, {transform_indices = @transform_6, window_bounds = array<i64: 1, 32, 8, 16>}]} {
    %c0 = arith.constant 0 : index
    %c0_0 = arith.constant 0 : index
    %c0_1 = arith.constant 0 : index
    %0 = vector.load %arg3[%c0, %c0_0, %c0_1] : memref<1x1x16xf32, #tpu.memory_space<vmem>>, vector<1x1x16xf32>
    %1 = vector.shape_cast %0 : vector<1x1x16xf32> to vector<1x16xf32>
    %c0_i32 = arith.constant 0 : i32
    %c8_i32 = arith.constant 8 : i32
    %2 = arith.addi %c0_i32, %c8_i32 : i32
    %c1_i32 = arith.constant 1 : i32
    scf.for %arg9 = %c0_i32 to %2 step %c1_i32  : i32 {
      %c0_3 = arith.constant 0 : index
      %3 = arith.index_cast %arg9 : i32 to index
      %c0_4 = arith.constant 0 : index
      %c0_5 = arith.constant 0 : index
      %4 = vector.load %arg2[%c0_3, %3, %c0_4, %c0_5] : memref<1x8x16x32xf32, #tpu.memory_space<vmem>>, vector<1x1x16x32xf32>
      %5 = vector.shape_cast %4 : vector<1x1x16x32xf32> to vector<16x32xf32>
      %c0_6 = arith.constant 0 : index
      %c0_7 = arith.constant 0 : index
      %6 = vector.load %arg4[%c0_6, %c0_7] : memref<1x32xf32, #tpu.memory_space<vmem>>, vector<1x32xf32>
      %c0_8 = arith.constant 0 : index
      %c0_9 = arith.constant 0 : index
      %7 = vector.load %arg5[%c0_8, %c0_9] : memref<1x32xf32, #tpu.memory_space<vmem>>, vector<1x32xf32>
      %cst = arith.constant dense<0.000000e+00> : vector<16xf32>
      %8 = vector.multi_reduction <add>, %5, %cst [1] : vector<16x32xf32> to vector<16xf32>
      %9 = vector.shape_cast %8 : vector<16xf32> to vector<16x1xf32>
      %cst_10 = arith.constant 3.200000e+01 : f32
      %10 = vector.broadcast %cst_10 : f32 to vector<16x1xf32>
      %11 = arith.divf %9, %10 : vector<16x1xf32>
      %12 = vector.broadcast %11 : vector<16x1xf32> to vector<16x32xf32>
      %13 = arith.subf %5, %12 : vector<16x32xf32>
      %14 = arith.mulf %13, %13 : vector<16x32xf32>
      %cst_11 = arith.constant dense<0.000000e+00> : vector<16xf32>
      %15 = vector.multi_reduction <add>, %14, %cst_11 [1] : vector<16x32xf32> to vector<16xf32>
      %16 = vector.shape_cast %15 : vector<16xf32> to vector<16x1xf32>
      %cst_12 = arith.constant 3.200000e+01 : f32
      %17 = vector.broadcast %cst_12 : f32 to vector<16x1xf32>
      %18 = arith.divf %16, %17 : vector<16x1xf32>
      %19 = vector.broadcast %11 : vector<16x1xf32> to vector<16x32xf32>
      %20 = arith.subf %5, %19 : vector<16x32xf32>
      %cst_13 = arith.constant 9.99999974E-6 : f32
      %21 = vector.broadcast %cst_13 : f32 to vector<16x1xf32>
      %22 = arith.addf %18, %21 : vector<16x1xf32>
      %23 = math.rsqrt %22 : vector<16x1xf32>
      %24 = vector.broadcast %23 : vector<16x1xf32> to vector<16x32xf32>
      %25 = arith.mulf %20, %24 : vector<16x32xf32>
      %26 = vector.broadcast %6 : vector<1x32xf32> to vector<16x32xf32>
      %27 = arith.mulf %25, %26 : vector<16x32xf32>
      %28 = vector.broadcast %7 : vector<1x32xf32> to vector<16x32xf32>
      %29 = arith.addf %27, %28 : vector<16x32xf32>
      %c0_14 = arith.constant 0 : index
      %c0_15 = arith.constant 0 : index
      %30 = vector.load %arg6[%c0_14, %c0_15] : memref<128x32xf32, #tpu.memory_space<vmem>>, vector<128x32xf32>
      %cst_16 = arith.constant dense<0.000000e+00> : vector<128x16xf32>
      %31 = tpu.matmul %30, %29, %cst_16 {dimension_numbers = #tpu.dot_dimension_numbers<[1], [1], [0], [0], [0, 0, 1, 0], [], []>} : vector<128x32xf32>, vector<16x32xf32>, vector<128x16xf32> -> vector<128x16xf32>
      %32 = vector.extract_strided_slice %31 {offsets = [0, 0], sizes = [32, 16], strides = [1, 1]} : vector<128x16xf32> to vector<32x16xf32>
      %33 = vector.extract_strided_slice %31 {offsets = [32, 0], sizes = [32, 16], strides = [1, 1]} : vector<128x16xf32> to vector<32x16xf32>
      %34 = arith.negf %33 : vector<32x16xf32>
      %35 = math.exp %34 : vector<32x16xf32>
      %cst_17 = arith.constant 1.000000e+00 : f32
      %36 = vector.broadcast %cst_17 : f32 to vector<32x16xf32>
      %37 = arith.addf %36, %35 : vector<32x16xf32>
      %38 = arith.divf %36, %37 : vector<32x16xf32>
      %39 = arith.mulf %32, %38 : vector<32x16xf32>
      %40 = vector.broadcast %1 : vector<1x16xf32> to vector<32x16xf32>
      %41 = arith.mulf %39, %40 : vector<32x16xf32>
      %42 = vector.extract_strided_slice %31 {offsets = [64, 0], sizes = [32, 16], strides = [1, 1]} : vector<128x16xf32> to vector<32x16xf32>
      %43 = vector.extract_strided_slice %31 {offsets = [96, 0], sizes = [32, 16], strides = [1, 1]} : vector<128x16xf32> to vector<32x16xf32>
      %44 = arith.negf %43 : vector<32x16xf32>
      %45 = math.exp %44 : vector<32x16xf32>
      %cst_18 = arith.constant 1.000000e+00 : f32
      %46 = vector.broadcast %cst_18 : f32 to vector<32x16xf32>
      %47 = arith.addf %46, %45 : vector<32x16xf32>
      %48 = arith.divf %46, %47 : vector<32x16xf32>
      %49 = arith.mulf %42, %48 : vector<32x16xf32>
      %50 = vector.broadcast %1 : vector<1x16xf32> to vector<32x16xf32>
      %51 = arith.mulf %49, %50 : vector<32x16xf32>
      %c0_19 = arith.constant 0 : index
      %c0_20 = arith.constant 0 : index
      %52 = arith.index_cast %arg9 : i32 to index
      %c0_21 = arith.constant 0 : index
      %53 = vector.load %arg7[%c0_19, %c0_20, %52, %c0_21] : memref<1x32x8x16xf32, #tpu.memory_space<vmem>>, vector<1x32x1x16xf32>
      %54 = vector.shape_cast %53 : vector<1x32x1x16xf32> to vector<32x16xf32>
      %55 = vector.shape_cast %41 : vector<32x16xf32> to vector<1x32x1x16xf32>
      tpu.vector_store %arg7[%c0_19, %c0_20, %52, %c0_21], %55 {strides = array<i32>} : memref<1x32x8x16xf32, #tpu.memory_space<vmem>>, vector<1x32x1x16xf32>,
      %c0_22 = arith.constant 0 : index
      %c0_23 = arith.constant 0 : index
      %56 = arith.index_cast %arg9 : i32 to index
      %c0_24 = arith.constant 0 : index
      %57 = vector.load %arg8[%c0_22, %c0_23, %56, %c0_24] : memref<1x32x8x16xf32, #tpu.memory_space<vmem>>, vector<1x32x1x16xf32>
      %58 = vector.shape_cast %57 : vector<1x32x1x16xf32> to vector<32x16xf32>
      %59 = vector.shape_cast %51 : vector<32x16xf32> to vector<1x32x1x16xf32>
      tpu.vector_store %arg8[%c0_22, %c0_23, %56, %c0_24], %59 {strides = array<i32>} : memref<1x32x8x16xf32, #tpu.memory_space<vmem>>, vector<1x32x1x16xf32>,
    }
    %c8_i32_2 = arith.constant 8 : i32
    return
  }
  func.func @transform_0(%arg0: i32, %arg1: i32) -> (i32, i32, i32, i32) {
    %c0_i32 = arith.constant 0 : i32
    %c0_i32_0 = arith.constant 0 : i32
    %c0_i32_1 = arith.constant 0 : i32
    return %arg0, %arg1, %c0_i32, %c0_i32_0 : i32, i32, i32, i32
  }
  func.func @transform_1(%arg0: i32, %arg1: i32) -> (i32, i32, i32) {
    %c0_i32 = arith.constant 0 : i32
    %c0_i32_0 = arith.constant 0 : i32
    %c0_i32_1 = arith.constant 0 : i32
    return %arg0, %c0_i32, %c0_i32_0 : i32, i32, i32
  }
  func.func @transform_2(%arg0: i32, %arg1: i32) -> (i32, i32) {
    %c0_i32 = arith.constant 0 : i32
    %c0_i32_0 = arith.constant 0 : i32
    %c0_i32_1 = arith.constant 0 : i32
    return %c0_i32, %c0_i32_0 : i32, i32
  }
  func.func @transform_3(%arg0: i32, %arg1: i32) -> (i32, i32) {
    %c0_i32 = arith.constant 0 : i32
    %c0_i32_0 = arith.constant 0 : i32
    %c0_i32_1 = arith.constant 0 : i32
    return %c0_i32, %c0_i32_0 : i32, i32
  }
  func.func @transform_4(%arg0: i32, %arg1: i32) -> (i32, i32) {
    %c0_i32 = arith.constant 0 : i32
    %c0_i32_0 = arith.constant 0 : i32
    %c0_i32_1 = arith.constant 0 : i32
    return %c0_i32, %c0_i32_0 : i32, i32
  }
  func.func @transform_5(%arg0: i32, %arg1: i32) -> (i32, i32, i32, i32) {
    %c0_i32 = arith.constant 0 : i32
    %c0_i32_0 = arith.constant 0 : i32
    %c0_i32_1 = arith.constant 0 : i32
    return %arg0, %c0_i32, %arg1, %c0_i32_0 : i32, i32, i32, i32
  }
  func.func @transform_6(%arg0: i32, %arg1: i32) -> (i32, i32, i32, i32) {
    %c0_i32 = arith.constant 0 : i32
    %c0_i32_0 = arith.constant 0 : i32
    %c0_i32_1 = arith.constant 0 : i32
    return %arg0, %c0_i32, %arg1, %c0_i32_0 : i32, i32, i32, i32
  }
}

module attributes {stable_mosaic.version = 11 : i64} {
  func.func @_epi_kernel(%arg0: i32, %arg1: i32, %arg2: memref<1x8x16x32xf32, #tpu.memory_space<vmem>>, %arg3: memref<1x32x8x16xf32, #tpu.memory_space<vmem>>, %arg4: memref<1x32xf32, #tpu.memory_space<vmem>>, %arg5: memref<1x32xf32, #tpu.memory_space<vmem>>, %arg6: memref<32x32xf32, #tpu.memory_space<vmem>>, %arg7: memref<32x1xf32, #tpu.memory_space<vmem>>, %arg8: memref<32x1xf32, #tpu.memory_space<vmem>>, %arg9: memref<32x32xf32, #tpu.memory_space<vmem>>, %arg10: memref<1x32xf32, #tpu.memory_space<vmem>>, %arg11: memref<1x32xf32, #tpu.memory_space<vmem>>, %arg12: memref<32x128xf32, #tpu.memory_space<vmem>>, %arg13: memref<32x128xf32, #tpu.memory_space<vmem>>, %arg14: memref<128x32xf32, #tpu.memory_space<vmem>>, %arg15: memref<1x8x16x32xf32, #tpu.memory_space<vmem>>) attributes {dimension_semantics = [#tpu.dimension_semantics<parallel>, #tpu.dimension_semantics<parallel>], iteration_bounds = array<i64: 2, 2>, scalar_prefetch = 0 : i64, scratch_operands = 0 : i64, tpu.core_type = #tpu.core_type<tc>, window_params = [{transform_indices = @transform_0, window_bounds = array<i64: 1, 8, 16, 32>}, {transform_indices = @transform_1, window_bounds = array<i64: 1, 32, 8, 16>}, {pipeline_mode = #tpu.pipeline_mode<synchronous>, transform_indices = @transform_2, window_bounds = array<i64: 1, 32>}, {pipeline_mode = #tpu.pipeline_mode<synchronous>, transform_indices = @transform_3, window_bounds = array<i64: 1, 32>}, {pipeline_mode = #tpu.pipeline_mode<synchronous>, transform_indices = @transform_4, window_bounds = array<i64: 32, 32>}, {pipeline_mode = #tpu.pipeline_mode<synchronous>, transform_indices = @transform_5, window_bounds = array<i64: 32, 1>}, {pipeline_mode = #tpu.pipeline_mode<synchronous>, transform_indices = @transform_6, window_bounds = array<i64: 32, 1>}, {pipeline_mode = #tpu.pipeline_mode<synchronous>, transform_indices = @transform_7, window_bounds = array<i64: 32, 32>}, {pipeline_mode = #tpu.pipeline_mode<synchronous>, transform_indices = @transform_8, window_bounds = array<i64: 1, 32>}, {pipeline_mode = #tpu.pipeline_mode<synchronous>, transform_indices = @transform_9, window_bounds = array<i64: 1, 32>}, {pipeline_mode = #tpu.pipeline_mode<synchronous>, transform_indices = @transform_10, window_bounds = array<i64: 32, 128>}, {pipeline_mode = #tpu.pipeline_mode<synchronous>, transform_indices = @transform_11, window_bounds = array<i64: 32, 128>}, {pipeline_mode = #tpu.pipeline_mode<synchronous>, transform_indices = @transform_12, window_bounds = array<i64: 128, 32>}, {transform_indices = @transform_13, window_bounds = array<i64: 1, 8, 16, 32>}]} {
    %c0_i32 = arith.constant 0 : i32
    %c8_i32 = arith.constant 8 : i32
    %0 = arith.addi %c0_i32, %c8_i32 : i32
    %c1_i32 = arith.constant 1 : i32
    scf.for %arg16 = %c0_i32 to %0 step %c1_i32  : i32 {
      %c0 = arith.constant 0 : index
      %1 = arith.index_cast %arg16 : i32 to index
      %c0_1 = arith.constant 0 : index
      %c0_2 = arith.constant 0 : index
      %2 = vector.load %arg2[%c0, %1, %c0_1, %c0_2] : memref<1x8x16x32xf32, #tpu.memory_space<vmem>>, vector<1x1x16x32xf32>
      %3 = vector.shape_cast %2 : vector<1x1x16x32xf32> to vector<16x32xf32>
      %c0_3 = arith.constant 0 : index
      %c0_4 = arith.constant 0 : index
      %4 = vector.load %arg4[%c0_3, %c0_4] : memref<1x32xf32, #tpu.memory_space<vmem>>, vector<1x32xf32>
      %c0_5 = arith.constant 0 : index
      %c0_6 = arith.constant 0 : index
      %5 = vector.load %arg5[%c0_5, %c0_6] : memref<1x32xf32, #tpu.memory_space<vmem>>, vector<1x32xf32>
      %cst = arith.constant dense<0.000000e+00> : vector<16xf32>
      %6 = vector.multi_reduction <add>, %3, %cst [1] : vector<16x32xf32> to vector<16xf32>
      %7 = vector.shape_cast %6 : vector<16xf32> to vector<16x1xf32>
      %cst_7 = arith.constant 3.200000e+01 : f32
      %8 = vector.broadcast %cst_7 : f32 to vector<16x1xf32>
      %9 = arith.divf %7, %8 : vector<16x1xf32>
      %10 = vector.broadcast %9 : vector<16x1xf32> to vector<16x32xf32>
      %11 = arith.subf %3, %10 : vector<16x32xf32>
      %12 = arith.mulf %11, %11 : vector<16x32xf32>
      %cst_8 = arith.constant dense<0.000000e+00> : vector<16xf32>
      %13 = vector.multi_reduction <add>, %12, %cst_8 [1] : vector<16x32xf32> to vector<16xf32>
      %14 = vector.shape_cast %13 : vector<16xf32> to vector<16x1xf32>
      %cst_9 = arith.constant 3.200000e+01 : f32
      %15 = vector.broadcast %cst_9 : f32 to vector<16x1xf32>
      %16 = arith.divf %14, %15 : vector<16x1xf32>
      %17 = vector.broadcast %9 : vector<16x1xf32> to vector<16x32xf32>
      %18 = arith.subf %3, %17 : vector<16x32xf32>
      %cst_10 = arith.constant 9.99999974E-6 : f32
      %19 = vector.broadcast %cst_10 : f32 to vector<16x1xf32>
      %20 = arith.addf %16, %19 : vector<16x1xf32>
      %21 = math.rsqrt %20 : vector<16x1xf32>
      %22 = vector.broadcast %21 : vector<16x1xf32> to vector<16x32xf32>
      %23 = arith.mulf %18, %22 : vector<16x32xf32>
      %24 = vector.broadcast %4 : vector<1x32xf32> to vector<16x32xf32>
      %25 = arith.mulf %23, %24 : vector<16x32xf32>
      %26 = vector.broadcast %5 : vector<1x32xf32> to vector<16x32xf32>
      %27 = arith.addf %25, %26 : vector<16x32xf32>
      %c0_11 = arith.constant 0 : index
      %c0_12 = arith.constant 0 : index
      %28 = vector.load %arg6[%c0_11, %c0_12] : memref<32x32xf32, #tpu.memory_space<vmem>>, vector<32x32xf32>
      %cst_13 = arith.constant dense<0.000000e+00> : vector<16x32xf32>
      %29 = tpu.matmul %27, %28, %cst_13 {dimension_numbers = #tpu.dot_dimension_numbers<[1], [0], [0], [1], [0, 0, 1, 1], [], []>} : vector<16x32xf32>, vector<32x32xf32>, vector<16x32xf32> -> vector<16x32xf32>
      %30 = arith.negf %29 : vector<16x32xf32>
      %31 = math.exp %30 : vector<16x32xf32>
      %cst_14 = arith.constant 1.000000e+00 : f32
      %32 = vector.broadcast %cst_14 : f32 to vector<16x32xf32>
      %33 = arith.addf %32, %31 : vector<16x32xf32>
      %34 = arith.divf %32, %33 : vector<16x32xf32>
      %c0_15 = arith.constant 0 : index
      %c0_16 = arith.constant 0 : index
      %35 = arith.index_cast %arg16 : i32 to index
      %c0_17 = arith.constant 0 : index
      %36 = vector.load %arg3[%c0_15, %c0_16, %35, %c0_17] : memref<1x32x8x16xf32, #tpu.memory_space<vmem>>, vector<1x32x1x16xf32>
      %37 = vector.shape_cast %36 : vector<1x32x1x16xf32> to vector<32x16xf32>
      %cst_18 = arith.constant dense<0.000000e+00> : vector<16xf32>
      %38 = vector.multi_reduction <add>, %37, %cst_18 [0] : vector<32x16xf32> to vector<16xf32>
      %39 = vector.shape_cast %38 : vector<16xf32> to vector<1x16xf32>
      %cst_19 = arith.constant 3.200000e+01 : f32
      %40 = vector.broadcast %cst_19 : f32 to vector<1x16xf32>
      %41 = arith.divf %39, %40 : vector<1x16xf32>
      %42 = vector.broadcast %41 : vector<1x16xf32> to vector<32x16xf32>
      %43 = arith.subf %37, %42 : vector<32x16xf32>
      %44 = arith.mulf %43, %43 : vector<32x16xf32>
      %cst_20 = arith.constant dense<0.000000e+00> : vector<16xf32>
      %45 = vector.multi_reduction <add>, %44, %cst_20 [0] : vector<32x16xf32> to vector<16xf32>
      %46 = vector.shape_cast %45 : vector<16xf32> to vector<1x16xf32>
      %cst_21 = arith.constant 3.200000e+01 : f32
      %47 = vector.broadcast %cst_21 : f32 to vector<1x16xf32>
      %48 = arith.divf %46, %47 : vector<1x16xf32>
      %49 = vector.broadcast %41 : vector<1x16xf32> to vector<32x16xf32>
      %50 = arith.subf %37, %49 : vector<32x16xf32>
      %cst_22 = arith.constant 9.99999974E-6 : f32
      %51 = vector.broadcast %cst_22 : f32 to vector<1x16xf32>
      %52 = arith.addf %48, %51 : vector<1x16xf32>
      %53 = math.rsqrt %52 : vector<1x16xf32>
      %54 = vector.broadcast %53 : vector<1x16xf32> to vector<32x16xf32>
      %55 = arith.mulf %50, %54 : vector<32x16xf32>
      %c0_23 = arith.constant 0 : index
      %c0_24 = arith.constant 0 : index
      %56 = vector.load %arg7[%c0_23, %c0_24] : memref<32x1xf32, #tpu.memory_space<vmem>>, vector<32x1xf32>
      %57 = vector.broadcast %56 : vector<32x1xf32> to vector<32x16xf32>
      %58 = arith.mulf %55, %57 : vector<32x16xf32>
      %c0_25 = arith.constant 0 : index
      %c0_26 = arith.constant 0 : index
      %59 = vector.load %arg8[%c0_25, %c0_26] : memref<32x1xf32, #tpu.memory_space<vmem>>, vector<32x1xf32>
      %60 = vector.broadcast %59 : vector<32x1xf32> to vector<32x16xf32>
      %61 = arith.addf %58, %60 : vector<32x16xf32>
      %c0_27 = arith.constant 0 : index
      %c0_28 = arith.constant 0 : index
      %62 = vector.load %arg9[%c0_27, %c0_28] : memref<32x32xf32, #tpu.memory_space<vmem>>, vector<32x32xf32>
      %cst_29 = arith.constant dense<0.000000e+00> : vector<16x32xf32>
      %63 = tpu.matmul %61, %62, %cst_29 {dimension_numbers = #tpu.dot_dimension_numbers<[0], [0], [1], [1], [0, 1, 1, 1], [], []>} : vector<32x16xf32>, vector<32x32xf32>, vector<16x32xf32> -> vector<16x32xf32>
      %64 = arith.mulf %63, %34 : vector<16x32xf32>
      %65 = arith.addf %3, %64 : vector<16x32xf32>
      %c0_30 = arith.constant 0 : index
      %c0_31 = arith.constant 0 : index
      %66 = vector.load %arg10[%c0_30, %c0_31] : memref<1x32xf32, #tpu.memory_space<vmem>>, vector<1x32xf32>
      %c0_32 = arith.constant 0 : index
      %c0_33 = arith.constant 0 : index
      %67 = vector.load %arg11[%c0_32, %c0_33] : memref<1x32xf32, #tpu.memory_space<vmem>>, vector<1x32xf32>
      %cst_34 = arith.constant dense<0.000000e+00> : vector<16xf32>
      %68 = vector.multi_reduction <add>, %65, %cst_34 [1] : vector<16x32xf32> to vector<16xf32>
      %69 = vector.shape_cast %68 : vector<16xf32> to vector<16x1xf32>
      %cst_35 = arith.constant 3.200000e+01 : f32
      %70 = vector.broadcast %cst_35 : f32 to vector<16x1xf32>
      %71 = arith.divf %69, %70 : vector<16x1xf32>
      %72 = vector.broadcast %71 : vector<16x1xf32> to vector<16x32xf32>
      %73 = arith.subf %65, %72 : vector<16x32xf32>
      %74 = arith.mulf %73, %73 : vector<16x32xf32>
      %cst_36 = arith.constant dense<0.000000e+00> : vector<16xf32>
      %75 = vector.multi_reduction <add>, %74, %cst_36 [1] : vector<16x32xf32> to vector<16xf32>
      %76 = vector.shape_cast %75 : vector<16xf32> to vector<16x1xf32>
      %cst_37 = arith.constant 3.200000e+01 : f32
      %77 = vector.broadcast %cst_37 : f32 to vector<16x1xf32>
      %78 = arith.divf %76, %77 : vector<16x1xf32>
      %79 = vector.broadcast %71 : vector<16x1xf32> to vector<16x32xf32>
      %80 = arith.subf %65, %79 : vector<16x32xf32>
      %cst_38 = arith.constant 9.99999974E-6 : f32
      %81 = vector.broadcast %cst_38 : f32 to vector<16x1xf32>
      %82 = arith.addf %78, %81 : vector<16x1xf32>
      %83 = math.rsqrt %82 : vector<16x1xf32>
      %84 = vector.broadcast %83 : vector<16x1xf32> to vector<16x32xf32>
      %85 = arith.mulf %80, %84 : vector<16x32xf32>
      %86 = vector.broadcast %66 : vector<1x32xf32> to vector<16x32xf32>
      %87 = arith.mulf %85, %86 : vector<16x32xf32>
      %88 = vector.broadcast %67 : vector<1x32xf32> to vector<16x32xf32>
      %89 = arith.addf %87, %88 : vector<16x32xf32>
      %c0_39 = arith.constant 0 : index
      %c0_40 = arith.constant 0 : index
      %90 = vector.load %arg12[%c0_39, %c0_40] : memref<32x128xf32, #tpu.memory_space<vmem>>, vector<32x128xf32>
      %cst_41 = arith.constant dense<0.000000e+00> : vector<16x128xf32>
      %91 = tpu.matmul %89, %90, %cst_41 {dimension_numbers = #tpu.dot_dimension_numbers<[1], [0], [0], [1], [0, 0, 1, 1], [], []>} : vector<16x32xf32>, vector<32x128xf32>, vector<16x128xf32> -> vector<16x128xf32>
      %c0_42 = arith.constant 0 : index
      %c0_43 = arith.constant 0 : index
      %92 = vector.load %arg13[%c0_42, %c0_43] : memref<32x128xf32, #tpu.memory_space<vmem>>, vector<32x128xf32>
      %cst_44 = arith.constant dense<0.000000e+00> : vector<16x128xf32>
      %93 = tpu.matmul %89, %92, %cst_44 {dimension_numbers = #tpu.dot_dimension_numbers<[1], [0], [0], [1], [0, 0, 1, 1], [], []>} : vector<16x32xf32>, vector<32x128xf32>, vector<16x128xf32> -> vector<16x128xf32>
      %94 = arith.negf %93 : vector<16x128xf32>
      %95 = math.exp %94 : vector<16x128xf32>
      %cst_45 = arith.constant 1.000000e+00 : f32
      %96 = vector.broadcast %cst_45 : f32 to vector<16x128xf32>
      %97 = arith.addf %96, %95 : vector<16x128xf32>
      %98 = arith.divf %96, %97 : vector<16x128xf32>
      %99 = arith.mulf %93, %98 : vector<16x128xf32>
      %100 = arith.mulf %99, %91 : vector<16x128xf32>
      %c0_46 = arith.constant 0 : index
      %c0_47 = arith.constant 0 : index
      %101 = vector.load %arg14[%c0_46, %c0_47] : memref<128x32xf32, #tpu.memory_space<vmem>>, vector<128x32xf32>
      %cst_48 = arith.constant dense<0.000000e+00> : vector<16x32xf32>
      %102 = tpu.matmul %100, %101, %cst_48 {dimension_numbers = #tpu.dot_dimension_numbers<[1], [0], [0], [1], [0, 0, 1, 1], [], []>} : vector<16x128xf32>, vector<128x32xf32>, vector<16x32xf32> -> vector<16x32xf32>
      %103 = arith.addf %65, %102 : vector<16x32xf32>
      %c0_49 = arith.constant 0 : index
      %104 = arith.index_cast %arg16 : i32 to index
      %c0_50 = arith.constant 0 : index
      %c0_51 = arith.constant 0 : index
      %105 = vector.load %arg15[%c0_49, %104, %c0_50, %c0_51] : memref<1x8x16x32xf32, #tpu.memory_space<vmem>>, vector<1x1x16x32xf32>
      %106 = vector.shape_cast %105 : vector<1x1x16x32xf32> to vector<16x32xf32>
      %107 = vector.shape_cast %103 : vector<16x32xf32> to vector<1x1x16x32xf32>
      tpu.vector_store %arg15[%c0_49, %104, %c0_50, %c0_51], %107 {strides = array<i32>} : memref<1x8x16x32xf32, #tpu.memory_space<vmem>>, vector<1x1x16x32xf32>,
    }
    %c8_i32_0 = arith.constant 8 : i32
    return
  }
  func.func @transform_0(%arg0: i32, %arg1: i32) -> (i32, i32, i32, i32) {
    %c0_i32 = arith.constant 0 : i32
    %c0_i32_0 = arith.constant 0 : i32
    %c0_i32_1 = arith.constant 0 : i32
    return %arg0, %arg1, %c0_i32, %c0_i32_0 : i32, i32, i32, i32
  }
  func.func @transform_1(%arg0: i32, %arg1: i32) -> (i32, i32, i32, i32) {
    %c0_i32 = arith.constant 0 : i32
    %c0_i32_0 = arith.constant 0 : i32
    %c0_i32_1 = arith.constant 0 : i32
    return %arg0, %c0_i32, %arg1, %c0_i32_0 : i32, i32, i32, i32
  }
  func.func @transform_2(%arg0: i32, %arg1: i32) -> (i32, i32) {
    %c0_i32 = arith.constant 0 : i32
    %c0_i32_0 = arith.constant 0 : i32
    %c0_i32_1 = arith.constant 0 : i32
    return %c0_i32, %c0_i32_0 : i32, i32
  }
  func.func @transform_3(%arg0: i32, %arg1: i32) -> (i32, i32) {
    %c0_i32 = arith.constant 0 : i32
    %c0_i32_0 = arith.constant 0 : i32
    %c0_i32_1 = arith.constant 0 : i32
    return %c0_i32, %c0_i32_0 : i32, i32
  }
  func.func @transform_4(%arg0: i32, %arg1: i32) -> (i32, i32) {
    %c0_i32 = arith.constant 0 : i32
    %c0_i32_0 = arith.constant 0 : i32
    %c0_i32_1 = arith.constant 0 : i32
    return %c0_i32, %c0_i32_0 : i32, i32
  }
  func.func @transform_5(%arg0: i32, %arg1: i32) -> (i32, i32) {
    %c0_i32 = arith.constant 0 : i32
    %c0_i32_0 = arith.constant 0 : i32
    %c0_i32_1 = arith.constant 0 : i32
    return %c0_i32, %c0_i32_0 : i32, i32
  }
  func.func @transform_6(%arg0: i32, %arg1: i32) -> (i32, i32) {
    %c0_i32 = arith.constant 0 : i32
    %c0_i32_0 = arith.constant 0 : i32
    %c0_i32_1 = arith.constant 0 : i32
    return %c0_i32, %c0_i32_0 : i32, i32
  }
  func.func @transform_7(%arg0: i32, %arg1: i32) -> (i32, i32) {
    %c0_i32 = arith.constant 0 : i32
    %c0_i32_0 = arith.constant 0 : i32
    %c0_i32_1 = arith.constant 0 : i32
    return %c0_i32, %c0_i32_0 : i32, i32
  }
  func.func @transform_8(%arg0: i32, %arg1: i32) -> (i32, i32) {
    %c0_i32 = arith.constant 0 : i32
    %c0_i32_0 = arith.constant 0 : i32
    %c0_i32_1 = arith.constant 0 : i32
    return %c0_i32, %c0_i32_0 : i32, i32
  }
  func.func @transform_9(%arg0: i32, %arg1: i32) -> (i32, i32) {
    %c0_i32 = arith.constant 0 : i32
    %c0_i32_0 = arith.constant 0 : i32
    %c0_i32_1 = arith.constant 0 : i32
    return %c0_i32, %c0_i32_0 : i32, i32
  }
  func.func @transform_10(%arg0: i32, %arg1: i32) -> (i32, i32) {
    %c0_i32 = arith.constant 0 : i32
    %c0_i32_0 = arith.constant 0 : i32
    %c0_i32_1 = arith.constant 0 : i32
    return %c0_i32, %c0_i32_0 : i32, i32
  }
  func.func @transform_11(%arg0: i32, %arg1: i32) -> (i32, i32) {
    %c0_i32 = arith.constant 0 : i32
    %c0_i32_0 = arith.constant 0 : i32
    %c0_i32_1 = arith.constant 0 : i32
    return %c0_i32, %c0_i32_0 : i32, i32
  }
  func.func @transform_12(%arg0: i32, %arg1: i32) -> (i32, i32) {
    %c0_i32 = arith.constant 0 : i32
    %c0_i32_0 = arith.constant 0 : i32
    %c0_i32_1 = arith.constant 0 : i32
    return %c0_i32, %c0_i32_0 : i32, i32
  }
  func.func @transform_13(%arg0: i32, %arg1: i32) -> (i32, i32, i32, i32) {
    %c0_i32 = arith.constant 0 : i32
    %c0_i32_0 = arith.constant 0 : i32
    %c0_i32_1 = arith.constant 0 : i32
    return %arg0, %arg1, %c0_i32, %c0_i32_0 : i32, i32, i32, i32
  }
}

module attributes {stable_mosaic.version = 11 : i64} {
  func.func @_mix_kernel(%arg0: i32, %arg1: i32, %arg2: i32, %arg3: i32, %arg4: memref<1x32x16x16xf32, #tpu.memory_space<vmem>>, %arg5: memref<1x32x16x16xf32, #tpu.memory_space<vmem>>, %arg6: memref<1x16x1xf32, #tpu.memory_space<vmem>>, %arg7: memref<1x16x1xf32, #tpu.memory_space<vmem>>, %arg8: memref<1x1x16xf32, #tpu.memory_space<vmem>>, %arg9: memref<1x32x16x16xf32, #tpu.memory_space<vmem>>) attributes {dimension_semantics = [#tpu.dimension_semantics<parallel>, #tpu.dimension_semantics<parallel>, #tpu.dimension_semantics<parallel>, #tpu.dimension_semantics<parallel>], iteration_bounds = array<i64: 2, 1, 1, 1>, scalar_prefetch = 0 : i64, scratch_operands = 0 : i64, tpu.core_type = #tpu.core_type<tc>, window_params = [{transform_indices = @transform_0, window_bounds = array<i64: 1, 32, 16, 16>}, {transform_indices = @transform_1, window_bounds = array<i64: 1, 32, 16, 16>}, {transform_indices = @transform_2, window_bounds = array<i64: 1, 16, 1>}, {transform_indices = @transform_3, window_bounds = array<i64: 1, 16, 1>}, {transform_indices = @transform_4, window_bounds = array<i64: 1, 1, 16>}, {transform_indices = @transform_5, window_bounds = array<i64: 1, 32, 16, 16>}]} {
    %c0 = arith.constant 0 : index
    %c0_0 = arith.constant 0 : index
    %c0_1 = arith.constant 0 : index
    %c0_2 = arith.constant 0 : index
    %0 = vector.load %arg4[%c0, %c0_0, %c0_1, %c0_2] : memref<1x32x16x16xf32, #tpu.memory_space<vmem>>, vector<1x32x16x16xf32>
    %1 = vector.shape_cast %0 : vector<1x32x16x16xf32> to vector<32x16x16xf32>
    %c0_3 = arith.constant 0 : index
    %c0_4 = arith.constant 0 : index
    %c0_5 = arith.constant 0 : index
    %c0_6 = arith.constant 0 : index
    %2 = vector.load %arg5[%c0_3, %c0_4, %c0_5, %c0_6] : memref<1x32x16x16xf32, #tpu.memory_space<vmem>>, vector<1x32x16x16xf32>
    %3 = vector.shape_cast %2 : vector<1x32x16x16xf32> to vector<32x16x16xf32>
    %c0_7 = arith.constant 0 : index
    %c0_8 = arith.constant 0 : index
    %c0_9 = arith.constant 0 : index
    %4 = vector.load %arg6[%c0_7, %c0_8, %c0_9] : memref<1x16x1xf32, #tpu.memory_space<vmem>>, vector<1x16x1xf32>
    %5 = vector.shape_cast %4 : vector<1x16x1xf32> to vector<16x1xf32>
    %6 = vector.shape_cast %5 : vector<16x1xf32> to vector<1x16x1xf32>
    %7 = vector.broadcast %6 : vector<1x16x1xf32> to vector<32x16x16xf32>
    %8 = arith.mulf %3, %7 : vector<32x16x16xf32>
    %cst = arith.constant dense<0.000000e+00> : vector<32x16x16xf32>
    %9 = tpu.matmul %1, %8, %cst {dimension_numbers = #tpu.dot_dimension_numbers<[1], [1], [2], [2], [0, 0, 0, 2, 1, 2], [0], [0]>} : vector<32x16x16xf32>, vector<32x16x16xf32>, vector<32x16x16xf32> -> vector<32x16x16xf32>
    %c0_10 = arith.constant 0 : index
    %c0_11 = arith.constant 0 : index
    %c0_12 = arith.constant 0 : index
    %10 = vector.load %arg7[%c0_10, %c0_11, %c0_12] : memref<1x16x1xf32, #tpu.memory_space<vmem>>, vector<1x16x1xf32>
    %11 = vector.shape_cast %10 : vector<1x16x1xf32> to vector<16x1xf32>
    %12 = vector.shape_cast %11 : vector<16x1xf32> to vector<1x16x1xf32>
    %13 = vector.broadcast %12 : vector<1x16x1xf32> to vector<32x16x16xf32>
    %14 = arith.mulf %9, %13 : vector<32x16x16xf32>
    %c0_13 = arith.constant 0 : index
    %c0_14 = arith.constant 0 : index
    %c0_15 = arith.constant 0 : index
    %15 = vector.load %arg8[%c0_13, %c0_14, %c0_15] : memref<1x1x16xf32, #tpu.memory_space<vmem>>, vector<1x1x16xf32>
    %16 = vector.shape_cast %15 : vector<1x1x16xf32> to vector<1x16xf32>
    %17 = vector.shape_cast %16 : vector<1x16xf32> to vector<1x1x16xf32>
    %18 = vector.broadcast %17 : vector<1x1x16xf32> to vector<32x16x16xf32>
    %19 = arith.mulf %14, %18 : vector<32x16x16xf32>
    %c0_16 = arith.constant 0 : index
    %c0_17 = arith.constant 0 : index
    %c0_18 = arith.constant 0 : index
    %c0_19 = arith.constant 0 : index
    %20 = vector.load %arg9[%c0_16, %c0_17, %c0_18, %c0_19] : memref<1x32x16x16xf32, #tpu.memory_space<vmem>>, vector<1x32x16x16xf32>
    %21 = vector.shape_cast %20 : vector<1x32x16x16xf32> to vector<32x16x16xf32>
    %22 = vector.shape_cast %19 : vector<32x16x16xf32> to vector<1x32x16x16xf32>
    tpu.vector_store %arg9[%c0_16, %c0_17, %c0_18, %c0_19], %22 {strides = array<i32>} : memref<1x32x16x16xf32, #tpu.memory_space<vmem>>, vector<1x32x16x16xf32>,
    return
  }
  func.func @transform_0(%arg0: i32, %arg1: i32, %arg2: i32, %arg3: i32) -> (i32, i32, i32, i32) {
    %c0_i32 = arith.constant 0 : i32
    %c0_i32_0 = arith.constant 0 : i32
    return %arg0, %arg1, %c0_i32, %arg2 : i32, i32, i32, i32
  }
  func.func @transform_1(%arg0: i32, %arg1: i32, %arg2: i32, %arg3: i32) -> (i32, i32, i32, i32) {
    %c0_i32 = arith.constant 0 : i32
    %c0_i32_0 = arith.constant 0 : i32
    return %arg0, %arg1, %c0_i32, %arg3 : i32, i32, i32, i32
  }
  func.func @transform_2(%arg0: i32, %arg1: i32, %arg2: i32, %arg3: i32) -> (i32, i32, i32) {
    %c0_i32 = arith.constant 0 : i32
    %c0_i32_0 = arith.constant 0 : i32
    %c0_i32_1 = arith.constant 0 : i32
    return %arg0, %c0_i32, %c0_i32_0 : i32, i32, i32
  }
  func.func @transform_3(%arg0: i32, %arg1: i32, %arg2: i32, %arg3: i32) -> (i32, i32, i32) {
    %c0_i32 = arith.constant 0 : i32
    %c0_i32_0 = arith.constant 0 : i32
    return %arg0, %arg2, %c0_i32 : i32, i32, i32
  }
  func.func @transform_4(%arg0: i32, %arg1: i32, %arg2: i32, %arg3: i32) -> (i32, i32, i32) {
    %c0_i32 = arith.constant 0 : i32
    %c0_i32_0 = arith.constant 0 : i32
    return %arg0, %c0_i32, %arg3 : i32, i32, i32
  }
  func.func @transform_5(%arg0: i32, %arg1: i32, %arg2: i32, %arg3: i32) -> (i32, i32, i32, i32) {
    %c0_i32 = arith.constant 0 : i32
    return %arg0, %arg1, %arg2, %arg3 : i32, i32, i32, i32
  }
}

</mosaic_0001>

<bundles_post_ra>
// kernel: pairwise_block.6
= control target key start
LH: loop header
LB: loop body
LE: loop exit
PB: predicated region body
PF: predicated region fallthrough
CT: control target
= control target key end

     0   :  { %s2602_s0 = inlined_call_operand.hbm [shape: f32[2,16,16,32], index: 0, kind: input, shape index: {}]   ;;  %s2603_s1 = inlined_call_operand.vmem [shape: f32[2,1,16], index: 1, kind: input, shape index: {}]   ;;  %s2604_s2 = inlined_call_operand.vmem [shape: f32[1,32], index: 2, kind: input, shape index: {}]   ;;  %s2605_s3 = inlined_call_operand.vmem [shape: f32[1,32], index: 3, kind: input, shape index: {}]   ;;  %s2606_s4 = inlined_call_operand.vmem [shape: f32[128,32], index: 4, kind: input, shape index: {}]   ;;  %s2607_s5 = inlined_call_operand.vmem [shape: f32[2,32,16,16], index: 5, kind: output, shape index: {0}]   ;;  %s2608_s6 = inlined_call_operand.vmem [shape: f32[2,32,16,16], index: 6, kind: output, shape index: {1}]  }
   0x1   :  { %2611 = sst [smem:[#allocation9_spill]] %s2608_s6 }
   0x2   :  { %12 = vsyncpa [#allocation3], 0 }
   0x3   :  { %14 = vsyncpa [#allocation3 + $0x1], 0  ;;  %s2007_s21 = smov 0   ;;  %s2009_s22 = smov 0  }
   0x4   :  { %s2011_s23 = smov 0   ;;  %s2013_s24 = smov 0  }
   0x5   :  { %s2015_s25 = smov 0   ;;  %s2017_s26 = smov 0  }
   0x6   :  { %s2019_s27 = smov 0   ;;  %s2021_s28 = smov 0  }
   0x7 LB: > { %s1644_s29 = sadd.s32 4294967295, %s1962_s28   ;;  %s29_s30 = sadd.s32 1, %s1954_s26  ;;  %s1962_s28 = sphi %s2021_s28, %s20_s28   ;;  %s1958_s27 = sphi %s2019_s27, %s2627_s27   ;;  %s1954_s26 = sphi %s2017_s26, %s2626_s26   ;;  %s1950_s25 = sphi %s2015_s25, %s2625_s25   ;;  %s1946_s24 = sphi %s2013_s24, %s2624_s24   ;;  %s1942_s23 = sphi %s2011_s23, %s2623_s23   ;;  %s1938_s22 = sphi %s2009_s22, %s2622_s22   ;;  %s1934_s21 = sphi %s2007_s21, %s2621_s21  }
   0x8   : > { %p30_p0 = scmp.ge.s32.totalorder %s29_s30, 2  ;;  %s32_s7 = sadd.s32 1, %s1958_s27 }
   0x9   : > { %s41_s8 = sadd.s32 1, %s1942_s23  ;;  %p48_p1 = scmp.ne.s32.totalorder %s1942_s23, %s1938_s22 }
   0xa   : > { %s2629_s30 = smov (%p30_p0, %s29_s30), 0  ;;  %s2631_s7 = smov (!%p30_p0, %s32_s7), %s1958_s27 }
   0xb   : > { %2612 = sst [smem:[#allocation7_spill]] %s2629_s30  ;;  %s37_s9 = ssub.s32 %s1954_s26, %s2629_s30 }
   0xc   : > { %p49_p2 = scmp.eq.s32.totalorder %s1962_s28, 0  ;;  %p34_p3 = scmp.ge.s32.totalorder %s2631_s7, 2 }
   0xd   : > { %p54_p4 = scmp.ne.s32.totalorder %s1938_s22, %s1934_s21  ;;  %p55_p6 = scmp.eq.s32.totalorder %s1644_s29, 0 }
   0xe   : > { %p2061_p5 = por %p49_p2, %p48_p1  ;;  %s2633_s7 = smov (%p34_p3, %s2631_s7), 0 }
   0xf   : > { %2614 = sst [smem:[#allocation8_spill]] %s2633_s7  ;;  %p2067_p7 = por %p55_p6, %p54_p4 }
  0x10   : > { %p169_p8 = scmp.eq.s32.totalorder %s1644_s29, 3  ;;  %s36_s12 = ssub.s32 %s1958_s27, %s2633_s7 }
  0x11   : > { %s38_s13 = sor.u32 %s37_s9, %s36_s12  ;;  %p1752_p11 = scmp.lt.s32.totalorder %s1962_s28, 4 }
  0x12   : > { %p2076_p9 = por %p169_p8, %p48_p1  ;;  %p39_p10 = scmp.eq.s32.totalorder %s38_s13, 0 }
  0x13   : > { %s232_s15 = sand.u32 1, %s1942_s23   ;;  %s1695_s16 = sshll.u32 %s1954_s26, 4 }
  0x14   : > { %s2084_s17 = scalar_select %p39_p10, %s1942_s23, %s41_s8  }
  0x15   : > { %s1648_s18 = sshll.u32 %s232_s15, 7  ;;  %s1651_s19 = sshll.u32 %s1958_s27, 5 }
  0x16   : > { %s243_s20 = sadd.s32 %s1695_s16, %s1651_s19  ;;  %s236_s21 = scalar_lea.vmem [#allocation2], %s1648_s18 }
  0x17   : > { %s246_s29 = sshll.u32 %s236_s21, 4  ;;  %s1652_s7 = sshll.u32 %s243_s20, 7  ;;  %s247_s29 = int_to_ptr.vmem [resolvable:$true] %s246_s29 }
  0x18   : > { %s245_s30 = scalar_lea.hbm %s2602_s0, %s1652_s7  ;;  %p2092_p12 = pnand %p1752_p11, %p2061_p5 }
  0x19   : > { %p1653_p13 = scmp.ge.s32.totalorder %s1962_s28, 1  ;;  %s233_s8 = scalar_lea.sflag [#allocation3], %s232_s15 }
  0x1a   : > { %p1866_p0 = pneg %p2092_p12  ;;  %s1877_s13 = scalar_lea.vmem %s247_s29, 2048 }
  0x1b   : > { %p1878_p1 = scmp.ne.s32.totalorder %s247_s29, %s1877_s13  ;;  %s1968_s16 = smov [#allocation2]  }
  0x1c   : > { %s1882_s18 = sshll.u32 %s1968_s16, 4  ;;  %s1883_s18 = int_to_ptr.vmem [resolvable:$false] %s1882_s18 }
  0x1d   : > { %p1880_p2 = pnand %p1878_p1, %p1866_p0  ;;  %s1884_s19 = scalar_lea.vmem %s1883_s18, 4096 }
  0x1e   : > { %p1885_p4 = scmp.lt.s32.totalorder %s247_s29, %s1883_s18  ;;  %p1886_p6 = scmp.lt.s32.totalorder %s1884_s19, %s1877_s13 }
  0x1f   : > { %p1881_p3 = pneg %p1880_p2 }
  0x20   : > { %p1887_p8 = por %p1886_p6, %p1885_p4 }
  0x22   : > { %p1888_p5 = pnand %p1887_p8, %p1881_p3 }
  0x24   : > { %1891 = shalt.err (!%p1888_p5)
}
  0x25   : > { %s1969_s7 = smov 128   ;;  %s1970_s10 = smov 8  }
  0x26   : > { %1751 = dma.hbm_to_vmem [thread:$0]  (!%p2092_p12), %s245_s30, 2048, %s247_s29, %s233_s8, %s1969_s7, %s1969_s7, %s1970_s10  }
  0x27   : > { %p260_p10 = scmp.lt.s32.totalorder %s1962_s28, 5 }
  0x29   : > { %p261_p11 = pnand %p1653_p13, %p260_p10 }
  0x2a   : > { %s266_s15 = sand.u32 (!%p261_p11), 1, %s1938_s22  }
  0x2b   : > { %264 = sbr.rel (%p261_p11) target bundleno = 698 (0x2ba), region = 40  ;;  %s1654_s20 = sshll.u32 (!%p261_p11), %s266_s15, 7 }
  0x2c   : > { %s267_s21 = scalar_lea.sflag (!%p261_p11), [#allocation3], %s266_s15  ;;  %s2105_s9 = scalar_lea.vmem (!%p261_p11), [#allocation2], %s1654_s20 }
  0x30   : > { %1929 = dma.done.wait (%p2067_p7), %s267_s21, 2048  }
  0x31   : > { %1931 = vsyncadd (%p2067_p7), %s267_s21, 4294965248  ;;  %p306_p0 = scmp.lt.s32.totalorder %s1950_s25, 1  ;;  %s1655_s6 = sshll.u32 %s266_s15, 8 }
  0x32   : > { %s2118_s13 = scalar_lea.vmem [#allocation4], %s1655_s6  ;;  %s2120_s16 = scalar_lea.vmem [#allocation5], %s1655_s6 }
  0x33   : > { %s307_s30 = scalar_select %p306_p0, %s1950_s25, 1 }
  0x34   : > { %s2122_s18 = smov 0  }
  0x35   : > { %s308_s8 = scalar_lea.vmem %s2603_s1, %s307_s30 }
  0x36   : > { %v2116_v0 = vld [vmem:[%s308_s8] ss:$0 sm:$0xff] }
  0x37 LB: >> { %s1657_s11 = sshll.u32 %s1966_s18, 4  ;;  %vm322_vm0 = vcmask 261120   ;;  %v366_v15 = vld [vmem:[%s2606_s4] sm:$0xff]  ;;  %v367_v33 = vld [vmem:[%s2606_s4 + $0x8] sm:$0xff]  ;;  %v368_v35 = vld [vmem:[%s2606_s4 + $0x10] sm:$0xff]  ;;  %vm884_vm1 = vcmask 122880   ;;  %s2237_s7 = scalar_lea.vmem %s2118_s13, %s1966_s18 [#allocation4]  ;;  %s1966_s18 = sphi %s2122_s18, %s315_s18  }
  0x38   : >> { %s317_s19 = scalar_lea.vmem %s2105_s9, %s1657_s11 [#allocation2]  ;;  %v374_v16 = vld [vmem:[%s2606_s4 + $0x40] sm:$0xff]  ;;  %1718 = vmatprep.mubr.msk.f32.mxu0 %vm322_vm0, %v366_v15  ;;  %v375_v34 = vld [vmem:[%s2606_s4 + $0x48] sm:$0xff]  ;;  %v376_v36 = vld [vmem:[%s2606_s4 + $0x50] sm:$0xff]  ;;  %s2246_s10 = scalar_lea.vmem %s2120_s16, %s1966_s18 [#allocation5] }
  0x39   : >> { %v319_v1 = vld [vmem:[%s317_s19 + $0x8] sm:$0xff]  ;;  %v318_v2 = vld [vmem:[%s317_s19] sm:$0xff]  ;;  %1730 = vmatprep.mubr.msk.f32.mxu1 %vm322_vm0, %v374_v16  ;;  %v369_v37 = vld [vmem:[%s2606_s4 + $0x18] sm:$0xff]  ;;  %s315_s18 = sadd.s32 1, %s1966_s18  }
  0x3a   : >> { %v326_v3 = vsel %vm322_vm0, %v319_v1, 0.0  ;;  %v323_v4 = vsel %vm322_vm0, %v318_v2, 0.0  ;;  %v1658_v24 = vld [vmem:[%s2604_s2] ss:$0 sm:$0xff]  ;;  %v377_v38 = vld [vmem:[%s2606_s4 + $0x58] sm:$0xff]  ;;  %v371_v41 = vld [vmem:[%s2606_s4 + $0x28] sm:$0xff] }
  0x3b   : >> { %327 = vadd.xlane.f32.xlu0 %v326_v3  ;;  %v1659_v26 = vld [vmem:[%s2605_s3] ss:$0 sm:$0xff]  ;;  %v379_v42 = vld [vmem:[%s2606_s4 + $0x68] sm:$0xff]  ;;  %v372_v43 = vld [vmem:[%s2606_s4 + $0x30] sm:$0xff]  ;;  %p312_p7 = scmp.ge.s32.totalorder %s315_s18, 8  }
  0x3c   : >> { %v370_v39 = vld [vmem:[%s2606_s4 + $0x20] sm:$0xff]  ;;  %v380_v44 = vld [vmem:[%s2606_s4 + $0x70] sm:$0xff]  ;;  %v373_v45 = vld [vmem:[%s2606_s4 + $0x38] sm:$0xff] }
  0x3d   : >> { %v378_v40 = vld [vmem:[%s2606_s4 + $0x60] sm:$0xff]  ;;  %v381_v46 = vld [vmem:[%s2606_s4 + $0x78] sm:$0xff] }
  0x3f   : >> { %324 = vadd.xlane.f32.xlu0 %v323_v4 }
  0xc4   : >> { %v328_v5 = vpop.xlane.xlu0 %327 }
  0xc5   : >> { %v331_v6 = vmul.f32 0.03125, %v328_v5 }
  0xc7   : >> { %v333_v7 = vsub.f32 %v319_v1, %v331_v6 }
  0xc8   : >> { %v325_v8 = vpop.xlane.xlu0 %324 }
  0xc9   : >> { %v330_v9 = vmul.f32 0.03125, %v325_v8  ;;  %v335_v10 = vmul.f32 %v333_v7, %v333_v7 }
  0xcb   : >> { %v332_v11 = vsub.f32 %v318_v2, %v330_v9  ;;  %v339_v12 = vsel %vm322_vm0, %v335_v10, 0.0 }
  0xcc   : >> { %340 = vadd.xlane.f32.xlu1 %v339_v12 }
  0xcd   : >> { %v334_v13 = vmul.f32 %v332_v11, %v332_v11 }
  0xcf   : >> { %v336_v14 = vsel %vm322_vm0, %v334_v13, 0.0 }
  0xd0   : >> { %337 = vadd.xlane.f32.xlu1 %v336_v14 }
 0x155   : >> { %v341_v17 = vpop.xlane.xlu1 %340 }
 0x156   : >> { %v343_v18 = vmul.f32 0.03125, %v341_v17 }
 0x158   : >> { %v345_v19 = vadd.f32 1e-05, %v343_v18 }
 0x159   : >> { %v338_v20 = vpop.xlane.xlu1 %337 }
 0x15a   : >> { %1828 = vrsqrt.f32 %v345_v19  ;;  %v342_v21 = vmul.f32 0.03125, %v338_v20  ;;  %v1971_v20 = vmov 1966171168  }
 0x15c   : >> { %v344_v22 = vadd.f32 1e-05, %v342_v21  ;;  %v657_v21 = vunpack.c.l.s4 %v1971_v20 }
 0x15e   : >> { %1830 = vrsqrt.f32 %v344_v22  ;;  %v659_v22 = vlaneseq }
 0x167   : >> { %v1829_v23 = vpop.eup %1828 }
 0x168   : >> { %v349_v25 = vmul.f32 %v1829_v23, %v333_v7 }
 0x16a   : >> { %v357_v27 = vmul.f32 %v1658_v24, %v349_v25  ;;  %v658_v25 = vunpack.c.0.s8 %v657_v21 }
 0x16b   : >> { %v1831_v28 = vpop.eup %1830 }
 0x16c   : >> { %v365_v29 = vadd.f32 %v1659_v26, %v357_v27  ;;  %v348_v30 = vmul.f32 %v1831_v28, %v332_v11 }
 0x16e   : >> { %1714 = vmatprep.subr.msk.mxu0 %vm322_vm0, %v365_v29  ;;  %1742 = vmatprep.subr.msk.mxu1 %vm322_vm0, %v365_v29  ;;  %v356_v31 = vmul.f32 %v1658_v24, %v348_v30 }
 0x16f   : >> { %1715 = vmatpush3.xpose.msk.msra.mxu0 %vm322_vm0, %v365_v29  ;;  %1744 = vmatpush3.xpose.msk.msra.mxu1 %vm322_vm0, %v365_v29 }
 0x170   : >> { %v364_v32 = vadd.f32 %v1659_v26, %v356_v31  ;;  %v660_v26 = vshrl.u32 %v659_v22, 7 }
 0x172   : >> { %1716 = vmatprep.subr.msk.mxu0 %vm322_vm0, %v364_v32  ;;  %1743 = vmatprep.subr.msk.mxu1 %vm322_vm0, %v364_v32 }
 0x173   : >> { %1717 = vmatpush3.xpose.msk.msra.mxu0 %vm322_vm0, %v364_v32  ;;  %1745 = vmatpush3.xpose.msk.msra.mxu1 %vm322_vm0, %v364_v32  ;;  %v2225_v32 = vsub.s32 %v658_v25, %v660_v26 }
 0x176   : >> { %1719 = vmatmul.mubr.msk.f32.vlgmr.msra.gmra.mxu0 %vm322_vm0, %v367_v33  ;;  %1731 = vmatmul.mubr.msk.f32.vlgmr.msra.gmra.mxu1 %vm322_vm0, %v375_v34 }
 0x177   : >> { %1721 = vmatprep.mubr.msk.f32.mxu0 %vm322_vm0, %v368_v35  ;;  %1733 = vmatprep.mubr.msk.f32.mxu1 %vm322_vm0, %v376_v36 }
 0x17a   : >> { %1722 = vmatmul.mubr.msk.f32.gmra.mxu0 %vm322_vm0, %v369_v37  ;;  %1734 = vmatmul.mubr.msk.f32.gmra.mxu1 %vm322_vm0, %v377_v38 }
 0x17b   : >> { %1724 = vmatprep.mubr.msk.f32.mxu0 %vm322_vm0, %v370_v39  ;;  %1736 = vmatprep.mubr.msk.f32.mxu1 %vm322_vm0, %v378_v40 }
 0x17e   : >> { %1725 = vmatmul.mubr.msk.f32.gmra.mxu0 %vm322_vm0, %v371_v41  ;;  %1737 = vmatmul.mubr.msk.f32.gmra.mxu1 %vm322_vm0, %v379_v42 }
 0x17f   : >> { %1727 = vmatprep.mubr.msk.f32.mxu0 %vm322_vm0, %v372_v43  ;;  %1739 = vmatprep.mubr.msk.f32.mxu1 %vm322_vm0, %v380_v44 }
 0x182   : >> { %1728 = vmatmul.mubr.msk.f32.gmra.mxu0 %vm322_vm0, %v373_v45  ;;  %1740 = vmatmul.mubr.msk.f32.gmra.mxu1 %vm322_vm0, %v381_v46 }
 0x236   : >> { %v1720_v47 = vpop.f32.mrf.mxu0  ;;  %v2211_v48 = vpop.f32.mrf.mxu1 }
 0x238   : >> { %v2213_v49 = vpop.f32.mrf.mxu0  ;;  %v2215_v50 = vpop.f32.mrf.mxu1 }
 0x23a   : >> { %v2217_v51 = vpop.f32.mrf.mxu0  ;;  %v2219_v52 = vpop.f32.mrf.mxu1 }
 0x23c   : >> { %v2221_v53 = vpop.f32.mrf.mxu0  ;;  %v2223_v54 = vpop.f32.mrf.mxu1 }
 0x23e   : >> { %v1726_v55 = vpop.f32.mrf.mxu0  ;;  %v1738_v56 = vpop.f32.mrf.mxu1 }
 0x23f   : >> { %v1679_v57 = vmul.f32 -1.442695, %v1726_v55  ;;  %v1684_v58 = vmul.f32 -1.442695, %v1738_v56 }
 0x240   : >> { %v522_v59 = vpop.f32.mrf.mxu0  ;;  %v562_v60 = vpop.f32.mrf.mxu1 }
 0x241   : >> { %1832 = vpow2.f32 %v1679_v57  ;;  %v1678_v61 = vmul.f32 -1.442695, %v522_v59  ;;  %v1683_v62 = vmul.f32 -1.442695, %v562_v60 }
 0x242   : >> { %1834 = vpow2.f32 %v1684_v58  ;;  %v1729_v63 = vpop.f32.mrf.mxu0  ;;  %v1741_v1 = vpop.f32.mrf.mxu1 }
 0x243   : >> { %1836 = vpow2.f32 %v1678_v61  ;;  %v1681_v2 = vmul.f32 -1.442695, %v1729_v63  ;;  %v1686_v3 = vmul.f32 -1.442695, %v1741_v1 }
 0x244   : >> { %1838 = vpow2.f32 %v1683_v62  ;;  %v532_v4 = vpop.f32.mrf.mxu0  ;;  %v572_v5 = vpop.f32.mrf.mxu1 }
 0x245   : >> { %1840 = vpow2.f32 %v1681_v2  ;;  %v1680_v6 = vmul.f32 -1.442695, %v532_v4  ;;  %v1685_v7 = vmul.f32 -1.442695, %v572_v5 }
 0x246   : >> { %1842 = vpow2.f32 %v1686_v3 }
 0x247   : >> { %1844 = vpow2.f32 %v1680_v6 }
 0x248   : >> { %1846 = vpow2.f32 %v1685_v7 }
 0x24e   : >> { %v1833_v8 = vpop.eup %1832 }
 0x24f   : >> { %v1835_v9 = vpop.eup %1834  ;;  %v594_v10 = vadd.f32 1.0, %v1833_v8 }
 0x250   : >> { %v1837_v11 = vpop.eup %1836  ;;  %v632_v12 = vadd.f32 1.0, %v1835_v9 }
 0x251   : >> { %v1839_v13 = vpop.eup %1838  ;;  %1848 = vrcp.f32 %v594_v10  ;;  %v593_v14 = vadd.f32 1.0, %v1837_v11 }
 0x252   : >> { %v1841_v15 = vpop.eup %1840  ;;  %1850 = vrcp.f32 %v632_v12  ;;  %v631_v16 = vadd.f32 1.0, %v1839_v13 }
 0x253   : >> { %v1843_v17 = vpop.eup %1842  ;;  %1852 = vrcp.f32 %v593_v14  ;;  %v596_v18 = vadd.f32 1.0, %v1841_v15 }
 0x254   : >> { %1854 = vrcp.f32 %v631_v16  ;;  %v634_v19 = vadd.f32 1.0, %v1843_v17  ;;  %v1845_v23 = vpop.eup %1844 }
 0x255   : >> { %1856 = vrcp.f32 %v596_v18  ;;  %v1847_v24 = vpop.eup %1846  ;;  %v595_v27 = vadd.f32 1.0, %v1845_v23 }
 0x256   : >> { %1858 = vrcp.f32 %v634_v19  ;;  %v633_v29 = vadd.f32 1.0, %v1847_v24 }
 0x257   : >> { %1860 = vrcp.f32 %v595_v27 }
 0x258   : >> { %1862 = vrcp.f32 %v633_v29 }
 0x25e   : >> { %v1849_v28 = vpop.eup %1848 }
 0x25f   : >> { %v1851_v30 = vpop.eup %1850  ;;  %v606_v31 = vmul.f32 %v1849_v28, %v1720_v47 }
 0x260   : >> { %v1853_v33 = vpop.eup %1852  ;;  %v644_v34 = vmul.f32 %v1851_v30, %v2211_v48 }
 0x261   : >> { %v1855_v35 = vpop.eup %1854  ;;  %v616_v36 = vmul.f32 %v2116_v0, %v606_v31  ;;  %v605_v37 = vmul.f32 %v1853_v33, %v2213_v49 }
 0x262   : >> { %v1857_v38 = vpop.eup %1856  ;;  %v648_v39 = vmul.f32 %v2116_v0, %v644_v34  ;;  %v643_v40 = vmul.f32 %v1855_v35, %v2215_v50 }
 0x263   : >> { %v1859_v41 = vpop.eup %1858  ;;  %v704_v42 = vcombine.high %v616_v36, %v616_v36  ;;  %v711_v43 = vrot.slane %v616_v36, %v2225_v32  ;;  %v615_v44 = vmul.f32 %v2116_v0, %v605_v37  ;;  %v608_v45 = vmul.f32 %v1857_v38, %v2217_v51 }
 0x264   : >> { %v970_v46 = vcombine.high %v648_v39, %v648_v39  ;;  %v977_v47 = vrot.slane %v648_v39, %v2225_v32  ;;  %v647_v48 = vmul.f32 %v2116_v0, %v643_v40  ;;  %v2242_v49 = vmul.f32 %v1859_v41, %v2219_v52  ;;  %v1861_v25 = vpop.eup %1860 }
 0x265   : >> { %v718_v50 = vrot.slane %v704_v42, %v2225_v32  ;;  %v719_v55 = vcombine.high %v711_v43, %v711_v43  ;;  %v727_v56 = vrot.slane %v711_v43, %v2225_v32  ;;  %v655_v51 = vcombine.high %v615_v44, %v615_v44  ;;  %v1863_v30 = vpop.eup %1862 }
 0x266   : >> { %v984_v57 = vrot.slane %v970_v46, %v2225_v32  ;;  %v985_v58 = vcombine.high %v977_v47, %v977_v47  ;;  %v993_v59 = vrot.slane %v977_v47, %v2225_v32  ;;  %v662_v60 = vrot.slane %v615_v44, %v2225_v32 }
 0x267   : >> { %v720_v52 = vcombine.high %v718_v50, %v718_v50  ;;  %v734_v61 = vrot.slane %v718_v50, %v2225_v32  ;;  %v741_v62 = vrot.slane %v719_v55, %v2225_v32  ;;  %v749_v63 = vcombine.high %v727_v56, %v727_v56  ;;  %893 = vst.msk [vmem:[%s2237_s7 + $0x40] sm:$0x1] %vm884_vm1, %v727_v56 }
 0x268   : >> { %v986_v1 = vcombine.high %v984_v57, %v984_v57  ;;  %v1000_v2 = vrot.slane %v984_v57, %v2225_v32  ;;  %v1007_v3 = vrot.slane %v985_v58, %v2225_v32  ;;  %v1015_v4 = vcombine.high %v993_v59, %v993_v59  ;;  %1158 = vst.msk [vmem:[%s2246_s10 + $0x40] sm:$0x1] %vm884_vm1, %v993_v59 }
 0x269   : >> { %v748_v5 = vrot.slane %v720_v52, %v2225_v32  ;;  %v750_v6 = vcombine.high %v734_v61, %v734_v61  ;;  %v751_v7 = vcombine.high %v741_v62, %v741_v62  ;;  %894 = vst.msk [vmem:[%s2237_s7 + $0x48] sm:$0x1] %vm884_vm1, %v741_v62  ;;  %895 = vst.msk [vmem:[%s2237_s7 + $0x50] sm:$0x1] %vm884_vm1, %v749_v63 }
 0x26a   : >> { %897 = vst.msk [vmem:[%s2237_s7 + $0x60] sm:$0x1] %vm884_vm1, %v734_v61  ;;  %v669_v8 = vrot.slane %v655_v51, %v2225_v32  ;;  %v1014_v9 = vrot.slane %v986_v1, %v2225_v32  ;;  %v1016_v10 = vcombine.high %v1000_v2, %v1000_v2  ;;  %v1017_v11 = vcombine.high %v1007_v3, %v1007_v3 }
 0x26b   : >> { %1159 = vst.msk [vmem:[%s2246_s10 + $0x48] sm:$0x1] %vm884_vm1, %v1007_v3  ;;  %1160 = vst.msk [vmem:[%s2246_s10 + $0x50] sm:$0x1] %vm884_vm1, %v1015_v4  ;;  %v670_v12 = vcombine.high %v662_v60, %v662_v60  ;;  %v752_v13 = vcombine.high %v748_v5, %v748_v5  ;;  %v678_v15 = vrot.slane %v662_v60, %v2225_v32 }
 0x26c   : >> { %1162 = vst.msk [vmem:[%s2246_s10 + $0x60] sm:$0x1] %vm884_vm1, %v1000_v2  ;;  %896 = vst.msk [vmem:[%s2237_s7 + $0x58] sm:$0x1] %vm884_vm1, %v751_v7  ;;  %v671_v14 = vcombine.high %v669_v8, %v669_v8  ;;  %v685_v16 = vrot.slane %v669_v8, %v2225_v32  ;;  %v1018_v17 = vcombine.high %v1014_v9, %v1014_v9 }
 0x26d   : >> { %898 = vst.msk [vmem:[%s2237_s7 + $0x68] sm:$0x1] %vm884_vm1, %v748_v5  ;;  %899 = vst.msk [vmem:[%s2237_s7 + $0x70] sm:$0x1] %vm884_vm1, %v750_v6  ;;  %v692_v18 = vrot.slane %v670_v12, %v2225_v32  ;;  %v921_v19 = vcombine.high %v647_v48, %v647_v48  ;;  %v928_v20 = vrot.slane %v647_v48, %v2225_v32 }
 0x26e   : >> { %1161 = vst.msk [vmem:[%s2246_s10 + $0x58] sm:$0x1] %vm884_vm1, %v1017_v11  ;;  %1163 = vst.msk [vmem:[%s2246_s10 + $0x68] sm:$0x1] %vm884_vm1, %v1014_v9  ;;  %v699_v21 = vrot.slane %v671_v14, %v2225_v32  ;;  %v700_v22 = vcombine.high %v678_v15, %v678_v15  ;;  %v701_v23 = vcombine.high %v685_v16, %v685_v16 }
 0x26f   : >> { %1164 = vst.msk [vmem:[%s2246_s10 + $0x70] sm:$0x1] %vm884_vm1, %v1016_v10  ;;  %900 = vst.msk [vmem:[%s2237_s7 + $0x78] sm:$0x1] %vm884_vm1, %v752_v13  ;;  %v618_v24 = vmul.f32 %v2116_v0, %v608_v45  ;;  %v702_v26 = vcombine.high %v692_v18, %v692_v18  ;;  %v935_v27 = vrot.slane %v921_v19, %v2225_v32 }
 0x270   : >> { %885 = vst.msk [vmem:[%s2237_s7] sm:$0x1] %vm884_vm1, %v678_v15  ;;  %889 = vst.msk [vmem:[%s2237_s7 + $0x20] sm:$0x1] %vm884_vm1, %v685_v16  ;;  %v936_v28 = vcombine.high %v928_v20, %v928_v20  ;;  %v944_v29 = vrot.slane %v928_v20, %v2225_v32  ;;  %v703_v31 = vcombine.high %v699_v21, %v699_v21 }
 0x271   : >> { %1165 = vst.msk [vmem:[%s2246_s10 + $0x78] sm:$0x1] %vm884_vm1, %v1018_v17  ;;  %886 = vst.msk [vmem:[%s2237_s7 + $0x8] sm:$0x1] %vm884_vm1, %v692_v18  ;;  %v802_v33 = vcombine.high %v618_v24, %v618_v24  ;;  %v809_v34 = vrot.slane %v618_v24, %v2225_v32  ;;  %v650_v35 = vmul.f32 %v2116_v0, %v2242_v49 }
 0x272   : >> { %887 = vst.msk [vmem:[%s2237_s7 + $0x10] sm:$0x1] %vm884_vm1, %v700_v22  ;;  %890 = vst.msk [vmem:[%s2237_s7 + $0x28] sm:$0x1] %vm884_vm1, %v699_v21  ;;  %v937_v36 = vcombine.high %v935_v27, %v935_v27  ;;  %v951_v37 = vrot.slane %v935_v27, %v2225_v32  ;;  %v958_v38 = vrot.slane %v936_v28, %v2225_v32 }
 0x273   : >> { %891 = vst.msk [vmem:[%s2237_s7 + $0x30] sm:$0x1] %vm884_vm1, %v701_v23  ;;  %888 = vst.msk [vmem:[%s2237_s7 + $0x18] sm:$0x1] %vm884_vm1, %v702_v26  ;;  %v966_v39 = vcombine.high %v944_v29, %v944_v29  ;;  %v816_v40 = vrot.slane %v802_v33, %v2225_v32  ;;  %v817_v41 = vcombine.high %v809_v34, %v809_v34 }
 0x274   : >> { %1150 = vst.msk [vmem:[%s2246_s10] sm:$0x1] %vm884_vm1, %v944_v29  ;;  %892 = vst.msk [vmem:[%s2237_s7 + $0x38] sm:$0x1] %vm884_vm1, %v703_v31  ;;  %v825_v42 = vrot.slane %v809_v34, %v2225_v32  ;;  %v1068_v43 = vcombine.high %v650_v35, %v650_v35  ;;  %v965_v44 = vrot.slane %v937_v36, %v2225_v32 }
 0x275   : >> { %v967_v45 = vcombine.high %v951_v37, %v951_v37  ;;  %v968_v46 = vcombine.high %v958_v38, %v958_v38  ;;  %1151 = vst.msk [vmem:[%s2246_s10 + $0x8] sm:$0x1] %vm884_vm1, %v958_v38  ;;  %1152 = vst.msk [vmem:[%s2246_s10 + $0x10] sm:$0x1] %vm884_vm1, %v966_v39  ;;  %v1075_v47 = vrot.slane %v650_v35, %v2225_v32 }
 0x276   : >> { %1154 = vst.msk [vmem:[%s2246_s10 + $0x20] sm:$0x1] %vm884_vm1, %v951_v37  ;;  %v818_v48 = vcombine.high %v816_v40, %v816_v40  ;;  %v832_v49 = vrot.slane %v816_v40, %v2225_v32  ;;  %v839_v50 = vrot.slane %v817_v41, %v2225_v32  ;;  %v847_v55 = vcombine.high %v825_v42, %v825_v42 }
 0x277   : >> { %909 = vst.msk [vmem:[%s2237_s7 + $0xc0] sm:$0x1] %vm884_vm1, %v825_v42  ;;  %v969_v56 = vcombine.high %v965_v44, %v965_v44  ;;  %1153 = vst.msk [vmem:[%s2246_s10 + $0x18] sm:$0x1] %vm884_vm1, %v968_v46  ;;  %v1082_v51 = vrot.slane %v1068_v43, %v2225_v32  ;;  %v1083_v57 = vcombine.high %v1075_v47, %v1075_v47 }
 0x278   : >> { %1155 = vst.msk [vmem:[%s2246_s10 + $0x28] sm:$0x1] %vm884_vm1, %v965_v44  ;;  %1156 = vst.msk [vmem:[%s2246_s10 + $0x30] sm:$0x1] %vm884_vm1, %v967_v45  ;;  %v1091_v58 = vrot.slane %v1075_v47, %v2225_v32  ;;  %v846_v59 = vrot.slane %v818_v48, %v2225_v32  ;;  %v848_v60 = vcombine.high %v832_v49, %v832_v49 }
 0x279   : >> { %v849_v52 = vcombine.high %v839_v50, %v839_v50  ;;  %910 = vst.msk [vmem:[%s2237_s7 + $0xc8] sm:$0x1] %vm884_vm1, %v839_v50  ;;  %911 = vst.msk [vmem:[%s2237_s7 + $0xd0] sm:$0x1] %vm884_vm1, %v847_v55  ;;  %v607_v61 = vmul.f32 %v1861_v25, %v2221_v53  ;;  %v1084_v62 = vcombine.high %v1082_v51, %v1082_v51 }
 0x27a   : >> { %913 = vst.msk [vmem:[%s2237_s7 + $0xe0] sm:$0x1] %vm884_vm1, %v832_v49  ;;  %1157 = vst.msk [vmem:[%s2246_s10 + $0x38] sm:$0x1] %vm884_vm1, %v969_v56  ;;  %v1098_v63 = vrot.slane %v1082_v51, %v2225_v32  ;;  %v1105_v1 = vrot.slane %v1083_v57, %v2225_v32  ;;  %v1113_v2 = vcombine.high %v1091_v58, %v1091_v58 }
 0x27b   : >> { %1174 = vst.msk [vmem:[%s2246_s10 + $0xc0] sm:$0x1] %vm884_vm1, %v1091_v58  ;;  %v850_v3 = vcombine.high %v846_v59, %v846_v59  ;;  %912 = vst.msk [vmem:[%s2237_s7 + $0xd8] sm:$0x1] %vm884_vm1, %v849_v52  ;;  %v617_v53 = vmul.f32 %v2116_v0, %v607_v61  ;;  %v645_v4 = vmul.f32 %v1863_v30, %v2223_v54 }
 0x27c   : >> { %914 = vst.msk [vmem:[%s2237_s7 + $0xe8] sm:$0x1] %vm884_vm1, %v846_v59  ;;  %915 = vst.msk [vmem:[%s2237_s7 + $0xf0] sm:$0x1] %vm884_vm1, %v848_v60  ;;  %v1112_v5 = vrot.slane %v1084_v62, %v2225_v32  ;;  %v1114_v6 = vcombine.high %v1098_v63, %v1098_v63  ;;  %v1115_v7 = vcombine.high %v1105_v1, %v1105_v1 }
 0x27d   : >> { %1175 = vst.msk [vmem:[%s2246_s10 + $0xc8] sm:$0x1] %vm884_vm1, %v1105_v1  ;;  %1176 = vst.msk [vmem:[%s2246_s10 + $0xd0] sm:$0x1] %vm884_vm1, %v1113_v2  ;;  %v753_v8 = vcombine.high %v617_v53, %v617_v53  ;;  %v760_v9 = vrot.slane %v617_v53, %v2225_v32  ;;  %v649_v10 = vmul.f32 %v2116_v0, %v645_v4 }
 0x27e   : >> { %1178 = vst.msk [vmem:[%s2246_s10 + $0xe0] sm:$0x1] %vm884_vm1, %v1098_v63  ;;  %916 = vst.msk [vmem:[%s2237_s7 + $0xf8] sm:$0x1] %vm884_vm1, %v850_v3  ;;  %v1116_v54 = vcombine.high %v1112_v5, %v1112_v5 }
 0x27f   : >> { %1177 = vst.msk [vmem:[%s2246_s10 + $0xd8] sm:$0x1] %vm884_vm1, %v1115_v7  ;;  %1179 = vst.msk [vmem:[%s2246_s10 + $0xe8] sm:$0x1] %vm884_vm1, %v1112_v5  ;;  %v767_v11 = vrot.slane %v753_v8, %v2225_v32  ;;  %v768_v12 = vcombine.high %v760_v9, %v760_v9  ;;  %v776_v13 = vrot.slane %v760_v9, %v2225_v32 }
 0x280   : >> { %1180 = vst.msk [vmem:[%s2246_s10 + $0xf0] sm:$0x1] %vm884_vm1, %v1114_v6  ;;  %v1019_v14 = vcombine.high %v649_v10, %v649_v10  ;;  %1181 = vst.msk [vmem:[%s2246_s10 + $0xf8] sm:$0x1] %vm884_vm1, %v1116_v54  ;;  %v1026_v15 = vrot.slane %v649_v10, %v2225_v32 }
 0x281   : >> { %v769_v16 = vcombine.high %v767_v11, %v767_v11  ;;  %v783_v17 = vrot.slane %v767_v11, %v2225_v32  ;;  %v790_v18 = vrot.slane %v768_v12, %v2225_v32  ;;  %v798_v19 = vcombine.high %v776_v13, %v776_v13  ;;  %901 = vst.msk [vmem:[%s2237_s7 + $0x80] sm:$0x1] %vm884_vm1, %v776_v13 }
 0x282   : >> { %v1033_v20 = vrot.slane %v1019_v14, %v2225_v32  ;;  %v1034_v21 = vcombine.high %v1026_v15, %v1026_v15  ;;  %v1042_v22 = vrot.slane %v1026_v15, %v2225_v32 }
 0x283   : >> { %v797_v23 = vrot.slane %v769_v16, %v2225_v32  ;;  %v799_v24 = vcombine.high %v783_v17, %v783_v17  ;;  %v800_v25 = vcombine.high %v790_v18, %v790_v18  ;;  %902 = vst.msk [vmem:[%s2237_s7 + $0x88] sm:$0x1] %vm884_vm1, %v790_v18  ;;  %903 = vst.msk [vmem:[%s2237_s7 + $0x90] sm:$0x1] %vm884_vm1, %v798_v19 }
 0x284   : >> { %905 = vst.msk [vmem:[%s2237_s7 + $0xa0] sm:$0x1] %vm884_vm1, %v783_v17  ;;  %v1035_v26 = vcombine.high %v1033_v20, %v1033_v20  ;;  %v1049_v27 = vrot.slane %v1033_v20, %v2225_v32  ;;  %v1056_v28 = vrot.slane %v1034_v21, %v2225_v32  ;;  %v1064_v29 = vcombine.high %v1042_v22, %v1042_v22 }
 0x285   : >> { %1166 = vst.msk [vmem:[%s2246_s10 + $0x80] sm:$0x1] %vm884_vm1, %v1042_v22  ;;  %v801_v30 = vcombine.high %v797_v23, %v797_v23  ;;  %904 = vst.msk [vmem:[%s2237_s7 + $0x98] sm:$0x1] %vm884_vm1, %v800_v25 }
 0x286   : >> { %906 = vst.msk [vmem:[%s2237_s7 + $0xa8] sm:$0x1] %vm884_vm1, %v797_v23  ;;  %907 = vst.msk [vmem:[%s2237_s7 + $0xb0] sm:$0x1] %vm884_vm1, %v799_v24  ;;  %v1063_v31 = vrot.slane %v1035_v26, %v2225_v32  ;;  %v1065_v33 = vcombine.high %v1049_v27, %v1049_v27  ;;  %v1066_v34 = vcombine.high %v1056_v28, %v1056_v28  ;;  %314 = sbr.rel (!%p312_p7) target bundleno = 55 (0x37), region = 181 }
 0x287   : >> { %1167 = vst.msk [vmem:[%s2246_s10 + $0x88] sm:$0x1] %vm884_vm1, %v1056_v28  ;;  %1168 = vst.msk [vmem:[%s2246_s10 + $0x90] sm:$0x1] %vm884_vm1, %v1064_v29 }
 0x288   : >> { %1170 = vst.msk [vmem:[%s2246_s10 + $0xa0] sm:$0x1] %vm884_vm1, %v1049_v27  ;;  %908 = vst.msk [vmem:[%s2237_s7 + $0xb8] sm:$0x1] %vm884_vm1, %v801_v30  ;;  %v1067_v35 = vcombine.high %v1063_v31, %v1063_v31 }
 0x289   : >> { %1169 = vst.msk [vmem:[%s2246_s10 + $0x98] sm:$0x1] %vm884_vm1, %v1066_v34  ;;  %1171 = vst.msk [vmem:[%s2246_s10 + $0xa8] sm:$0x1] %vm884_vm1, %v1063_v31 }
 0x28a   : >> { %1172 = vst.msk [vmem:[%s2246_s10 + $0xb0] sm:$0x1] %vm884_vm1, %v1065_v33  ;;  %1173 = vst.msk [vmem:[%s2246_s10 + $0xb8] sm:$0x1] %vm884_vm1, %v1067_v35 }
 0x28b   : > { %1192 = sbr.rel (!%p2076_p9) target bundleno = 674 (0x2a2), region = 55  ;;  %s1689_s15 = sshll.u32 (%p2076_p9), %s1950_s25, 6 }
 0x28c   : > { %s1194_s9 = sadd.s32 (%p2076_p9), %s1946_s24, %s1689_s15 }
 0x28d   : > { %s1690_s18 = sshll.u32 (%p2076_p9), %s1194_s9, 3 }
 0x28e   : > { %s2448_s6 = scalar_lea.vmem (%p2076_p9), %s2607_s5, %s1690_s18 }
 0x28f   : > { %v1287_v32 = vld [vmem:[%s2118_s13] sm:$0xff] (%p2076_p9)  ;;  %v1289_v36 = vld [vmem:[%s2118_s13 + $0x8] sm:$0xff] (%p2076_p9)  ;;  %v1291_v0 = vld [vmem:[%s2118_s13 + $0x10] sm:$0xff] (%p2076_p9) }
 0x290   : > { %v1293_v37 = vld [vmem:[%s2118_s13 + $0x18] sm:$0xff]  ;;  %v1295_v38 = vld [vmem:[%s2118_s13 + $0x20] sm:$0xff]  ;;  %v1297_v39 = vld [vmem:[%s2118_s13 + $0x28] sm:$0xff]  ;;  %1288 = vst [vmem:[%s2448_s6] sm:$0xff] %v1287_v32 }
 0x291   : > { %v1299_v40 = vld [vmem:[%s2118_s13 + $0x30] sm:$0xff]  ;;  %v1301_v41 = vld [vmem:[%s2118_s13 + $0x38] sm:$0xff]  ;;  %v1303_v42 = vld [vmem:[%s2118_s13 + $0x40] sm:$0xff]  ;;  %1290 = vst [vmem:[%s2448_s6 + $0x10] sm:$0xff] %v1289_v36 }
 0x292   : > { %v1305_v43 = vld [vmem:[%s2118_s13 + $0x48] sm:$0xff]  ;;  %v1307_v44 = vld [vmem:[%s2118_s13 + $0x50] sm:$0xff]  ;;  %v1309_v45 = vld [vmem:[%s2118_s13 + $0x58] sm:$0xff]  ;;  %1292 = vst [vmem:[%s2448_s6 + $0x20] sm:$0xff] %v1291_v0 }
 0x293   : > { %1294 = vst [vmem:[%s2448_s6 + $0x30] sm:$0xff] %v1293_v37  ;;  %1296 = vst [vmem:[%s2448_s6 + $0x40] sm:$0xff] %v1295_v38  ;;  %v1311_v46 = vld [vmem:[%s2118_s13 + $0x60] sm:$0xff]  ;;  %v1313_v47 = vld [vmem:[%s2118_s13 + $0x68] sm:$0xff] }
 0x294   : > { %1298 = vst [vmem:[%s2448_s6 + $0x50] sm:$0xff] %v1297_v39  ;;  %1300 = vst [vmem:[%s2448_s6 + $0x60] sm:$0xff] %v1299_v40  ;;  %v1315_v48 = vld [vmem:[%s2118_s13 + $0x70] sm:$0xff]  ;;  %v1317_v49 = vld [vmem:[%s2118_s13 + $0x78] sm:$0xff] }
 0x295   : > { %1302 = vst [vmem:[%s2448_s6 + $0x70] sm:$0xff] %v1301_v41  ;;  %1304 = vst [vmem:[%s2448_s6 + $0x80] sm:$0xff] %v1303_v42  ;;  %v1319_v50 = vld [vmem:[%s2118_s13 + $0x80] sm:$0xff]  ;;  %v1321_v55 = vld [vmem:[%s2118_s13 + $0x88] sm:$0xff] }
 0x296   : > { %1306 = vst [vmem:[%s2448_s6 + $0x90] sm:$0xff] %v1305_v43  ;;  %1308 = vst [vmem:[%s2448_s6 + $0xa0] sm:$0xff] %v1307_v44  ;;  %v1323_v56 = vld [vmem:[%s2118_s13 + $0x90] sm:$0xff]  ;;  %v1325_v51 = vld [vmem:[%s2118_s13 + $0x98] sm:$0xff] }
 0x297   : > { %1310 = vst [vmem:[%s2448_s6 + $0xb0] sm:$0xff] %v1309_v45  ;;  %1312 = vst [vmem:[%s2448_s6 + $0xc0] sm:$0xff] %v1311_v46  ;;  %v1327_v57 = vld [vmem:[%s2118_s13 + $0xa0] sm:$0xff]  ;;  %v1329_v58 = vld [vmem:[%s2118_s13 + $0xa8] sm:$0xff] }
 0x298   : > { %1314 = vst [vmem:[%s2448_s6 + $0xd0] sm:$0xff] %v1313_v47  ;;  %1316 = vst [vmem:[%s2448_s6 + $0xe0] sm:$0xff] %v1315_v48  ;;  %v1331_v59 = vld [vmem:[%s2118_s13 + $0xb0] sm:$0xff]  ;;  %v1333_v60 = vld [vmem:[%s2118_s13 + $0xb8] sm:$0xff] }
 0x299   : > { %1318 = vst [vmem:[%s2448_s6 + $0xf0] sm:$0xff] %v1317_v49  ;;  %1320 = vst [vmem:[%s2448_s6 + $0x100] sm:$0xff] %v1319_v50  ;;  %v1335_v52 = vld [vmem:[%s2118_s13 + $0xc0] sm:$0xff]  ;;  %v1337_v61 = vld [vmem:[%s2118_s13 + $0xc8] sm:$0xff] }
 0x29a   : > { %1322 = vst [vmem:[%s2448_s6 + $0x110] sm:$0xff] %v1321_v55  ;;  %1324 = vst [vmem:[%s2448_s6 + $0x120] sm:$0xff] %v1323_v56  ;;  %v1339_v62 = vld [vmem:[%s2118_s13 + $0xd0] sm:$0xff]  ;;  %v1341_v63 = vld [vmem:[%s2118_s13 + $0xd8] sm:$0xff] }
 0x29b   : > { %1326 = vst [vmem:[%s2448_s6 + $0x130] sm:$0xff] %v1325_v51  ;;  %1328 = vst [vmem:[%s2448_s6 + $0x140] sm:$0xff] %v1327_v57  ;;  %v1343_v1 = vld [vmem:[%s2118_s13 + $0xe0] sm:$0xff]  ;;  %v1345_v2 = vld [vmem:[%s2118_s13 + $0xe8] sm:$0xff] }
 0x29c   : > { %1330 = vst [vmem:[%s2448_s6 + $0x150] sm:$0xff] %v1329_v58  ;;  %1332 = vst [vmem:[%s2448_s6 + $0x160] sm:$0xff] %v1331_v59  ;;  %v1347_v3 = vld [vmem:[%s2118_s13 + $0xf0] sm:$0xff]  ;;  %v1349_v53 = vld [vmem:[%s2118_s13 + $0xf8] sm:$0xff] }
 0x29d   : > { %1334 = vst [vmem:[%s2448_s6 + $0x170] sm:$0xff] %v1333_v60  ;;  %1336 = vst [vmem:[%s2448_s6 + $0x180] sm:$0xff] %v1335_v52 }
 0x29e   : > { %1338 = vst [vmem:[%s2448_s6 + $0x190] sm:$0xff] %v1337_v61  ;;  %1340 = vst [vmem:[%s2448_s6 + $0x1a0] sm:$0xff] %v1339_v62 }
 0x29f   : > { %1342 = vst [vmem:[%s2448_s6 + $0x1b0] sm:$0xff] %v1341_v63  ;;  %1344 = vst [vmem:[%s2448_s6 + $0x1c0] sm:$0xff] %v1343_v1 }
 0x2a0   : > { %1346 = vst [vmem:[%s2448_s6 + $0x1d0] sm:$0xff] %v1345_v2  ;;  %1348 = vst [vmem:[%s2448_s6 + $0x1e0] sm:$0xff] %v1347_v3 }
 0x2a1   : > { %1350 = vst [vmem:[%s2448_s6 + $0x1f0] sm:$0xff] %v1349_v53 }
 0x2a2 PF: > { %1356 = sbr.rel (!%p2076_p9) target bundleno = 698 (0x2ba), region = 93  ;;  %s1691_s13 = sshll.u32 (%p2076_p9), %s1950_s25, 6 }
 0x2a3   : > { %v1451_v4 = vld [vmem:[%s2120_s16] sm:$0xff] (%p2076_p9)  ;;  %v1453_v5 = vld [vmem:[%s2120_s16 + $0x8] sm:$0xff] (%p2076_p9)  ;;  %v1455_v6 = vld [vmem:[%s2120_s16 + $0x10] sm:$0xff] (%p2076_p9)  ;;  %s1358_s14 = sadd.s32 (%p2076_p9), %s1946_s24, %s1691_s13  ;;  %s2618_s8 = sld [smem:[#allocation9_spill]] (%p2076_p9) }
 0x2a4   : > { %v1457_v7 = vld [vmem:[%s2120_s16 + $0x18] sm:$0xff] (%p2076_p9)  ;;  %v1459_v8 = vld [vmem:[%s2120_s16 + $0x20] sm:$0xff] (%p2076_p9)  ;;  %v1461_v9 = vld [vmem:[%s2120_s16 + $0x28] sm:$0xff] (%p2076_p9)  ;;  %s1692_s30 = sshll.u32 (%p2076_p9), %s1358_s14, 3 }
 0x2a5   : > { %v1463_v10 = vld [vmem:[%s2120_s16 + $0x30] sm:$0xff] (%p2076_p9)  ;;  %v1465_v54 = vld [vmem:[%s2120_s16 + $0x38] sm:$0xff] (%p2076_p9)  ;;  %v1467_v11 = vld [vmem:[%s2120_s16 + $0x40] sm:$0xff] (%p2076_p9) }
 0x2a6   : > { %v1469_v12 = vld [vmem:[%s2120_s16 + $0x48] sm:$0xff] (%p2076_p9)  ;;  %v1471_v13 = vld [vmem:[%s2120_s16 + $0x50] sm:$0xff] (%p2076_p9)  ;;  %v1473_v14 = vld [vmem:[%s2120_s16 + $0x58] sm:$0xff] (%p2076_p9) }
 0x2a7   : > { %v1475_v15 = vld [vmem:[%s2120_s16 + $0x60] sm:$0xff]  ;;  %v1477_v16 = vld [vmem:[%s2120_s16 + $0x68] sm:$0xff]  ;;  %v1479_v17 = vld [vmem:[%s2120_s16 + $0x70] sm:$0xff] }
 0x2a8   : > { %v1481_v18 = vld [vmem:[%s2120_s16 + $0x78] sm:$0xff]  ;;  %v1483_v19 = vld [vmem:[%s2120_s16 + $0x80] sm:$0xff]  ;;  %v1485_v20 = vld [vmem:[%s2120_s16 + $0x88] sm:$0xff] }
 0x2a9   : > { %s2521_s11 = scalar_lea.vmem %s2618_s8, %s1692_s30  ;;  %v1487_v21 = vld [vmem:[%s2120_s16 + $0x90] sm:$0xff]  ;;  %v1489_v22 = vld [vmem:[%s2120_s16 + $0x98] sm:$0xff]  ;;  %v1491_v23 = vld [vmem:[%s2120_s16 + $0xa0] sm:$0xff] }
 0x2aa   : > { %1452 = vst [vmem:[%s2521_s11] sm:$0xff] %v1451_v4  ;;  %1454 = vst [vmem:[%s2521_s11 + $0x10] sm:$0xff] %v1453_v5  ;;  %v1493_v24 = vld [vmem:[%s2120_s16 + $0xa8] sm:$0xff]  ;;  %v1495_v25 = vld [vmem:[%s2120_s16 + $0xb0] sm:$0xff] }
 0x2ab   : > { %1456 = vst [vmem:[%s2521_s11 + $0x20] sm:$0xff] %v1455_v6  ;;  %1458 = vst [vmem:[%s2521_s11 + $0x30] sm:$0xff] %v1457_v7  ;;  %v1497_v26 = vld [vmem:[%s2120_s16 + $0xb8] sm:$0xff]  ;;  %v1499_v27 = vld [vmem:[%s2120_s16 + $0xc0] sm:$0xff] }
 0x2ac   : > { %1460 = vst [vmem:[%s2521_s11 + $0x40] sm:$0xff] %v1459_v8  ;;  %1462 = vst [vmem:[%s2521_s11 + $0x50] sm:$0xff] %v1461_v9  ;;  %v1501_v28 = vld [vmem:[%s2120_s16 + $0xc8] sm:$0xff]  ;;  %v1503_v29 = vld [vmem:[%s2120_s16 + $0xd0] sm:$0xff] }
 0x2ad   : > { %1464 = vst [vmem:[%s2521_s11 + $0x60] sm:$0xff] %v1463_v10  ;;  %1466 = vst [vmem:[%s2521_s11 + $0x70] sm:$0xff] %v1465_v54  ;;  %v1505_v30 = vld [vmem:[%s2120_s16 + $0xd8] sm:$0xff]  ;;  %v1507_v31 = vld [vmem:[%s2120_s16 + $0xe0] sm:$0xff] }
 0x2ae   : > { %1468 = vst [vmem:[%s2521_s11 + $0x80] sm:$0xff] %v1467_v11  ;;  %1470 = vst [vmem:[%s2521_s11 + $0x90] sm:$0xff] %v1469_v12  ;;  %v1509_v33 = vld [vmem:[%s2120_s16 + $0xe8] sm:$0xff]  ;;  %v1511_v34 = vld [vmem:[%s2120_s16 + $0xf0] sm:$0xff] }
 0x2af   : > { %1472 = vst [vmem:[%s2521_s11 + $0xa0] sm:$0xff] %v1471_v13  ;;  %1474 = vst [vmem:[%s2521_s11 + $0xb0] sm:$0xff] %v1473_v14  ;;  %v1513_v35 = vld [vmem:[%s2120_s16 + $0xf8] sm:$0xff] }
 0x2b0   : > { %1476 = vst [vmem:[%s2521_s11 + $0xc0] sm:$0xff] %v1475_v15  ;;  %1478 = vst [vmem:[%s2521_s11 + $0xd0] sm:$0xff] %v1477_v16 }
 0x2b1   : > { %1480 = vst [vmem:[%s2521_s11 + $0xe0] sm:$0xff] %v1479_v17  ;;  %1482 = vst [vmem:[%s2521_s11 + $0xf0] sm:$0xff] %v1481_v18 }
 0x2b2   : > { %1484 = vst [vmem:[%s2521_s11 + $0x100] sm:$0xff] %v1483_v19  ;;  %1486 = vst [vmem:[%s2521_s11 + $0x110] sm:$0xff] %v1485_v20 }
 0x2b3   : > { %1488 = vst [vmem:[%s2521_s11 + $0x120] sm:$0xff] %v1487_v21  ;;  %1490 = vst [vmem:[%s2521_s11 + $0x130] sm:$0xff] %v1489_v22 }
 0x2b4   : > { %1492 = vst [vmem:[%s2521_s11 + $0x140] sm:$0xff] %v1491_v23  ;;  %1494 = vst [vmem:[%s2521_s11 + $0x150] sm:$0xff] %v1493_v24 }
 0x2b5   : > { %1496 = vst [vmem:[%s2521_s11 + $0x160] sm:$0xff] %v1495_v25  ;;  %1498 = vst [vmem:[%s2521_s11 + $0x170] sm:$0xff] %v1497_v26 }
 0x2b6   : > { %1500 = vst [vmem:[%s2521_s11 + $0x180] sm:$0xff] %v1499_v27  ;;  %1502 = vst [vmem:[%s2521_s11 + $0x190] sm:$0xff] %v1501_v28 }
 0x2b7   : > { %1504 = vst [vmem:[%s2521_s11 + $0x1a0] sm:$0xff] %v1503_v29  ;;  %1506 = vst [vmem:[%s2521_s11 + $0x1b0] sm:$0xff] %v1505_v30 }
 0x2b8   : > { %1508 = vst [vmem:[%s2521_s11 + $0x1c0] sm:$0xff] %v1507_v31  ;;  %1510 = vst [vmem:[%s2521_s11 + $0x1d0] sm:$0xff] %v1509_v33 }
 0x2b9   : > { %1512 = vst [vmem:[%s2521_s11 + $0x1e0] sm:$0xff] %v1511_v34  ;;  %1514 = vst [vmem:[%s2521_s11 + $0x1f0] sm:$0xff] %v1513_v35 }
 0x2ba PF: > { %s20_s28 = sadd.s32 1, %s1962_s28   ;;  %s2619_s19 = sld [smem:[#allocation7_spill]] }
 0x2bb   : > { %p17_p9 = scmp.ge.s32.totalorder %s20_s28, 6   ;;  %s2620_s7 = sld [smem:[#allocation8_spill]] }
 0x2bc   : > { %s2621_s21 = smov %s1938_s22  ;;  %s2622_s22 = smov %s1942_s23 }
 0x2bd   : > { %s2623_s23 = smov %s2084_s17  ;;  %s2624_s24 = smov %s1954_s26 }
 0x2be   : > { %s2625_s25 = smov %s1958_s27  ;;  %19 = sbr.rel (!%p17_p9) target bundleno = 7 (0x7), region = 192 }
 0x2c0   : > { %s2626_s26 = smov %s2619_s19 }
 0x2c1   : > { %s2627_s27 = smov %s2620_s7 }
 0x2c3   :  { %1537 = vsyncpa [#allocation3], 1 }
 0x2c4   :  { %1539 = vsyncpa [#allocation3 + $0x1], 1 }

// kernel: pairwise_block.8
= control target key start
LH: loop header
LB: loop body
LE: loop exit
PB: predicated region body
PF: predicated region fallthrough
CT: control target
= control target key end

     0   :  { %s1870_s27 = smov 0   ;;  %s1872_s28 = smov 0   ;;  %s2737_s0 = inlined_call_operand.vmem [shape: f32[2,16,16,32], index: 0, kind: input, shape index: {}]   ;;  %s2738_s1 = inlined_call_operand.vmem [shape: f32[2,32,16,16], index: 1, kind: input, shape index: {}]   ;;  %s2739_s2 = inlined_call_operand.vmem [shape: f32[1,32], index: 2, kind: input, shape index: {}]   ;;  %s2740_s3 = inlined_call_operand.vmem [shape: f32[1,32], index: 3, kind: input, shape index: {}]   ;;  %s2741_s4 = inlined_call_operand.vmem [shape: f32[32,32], index: 4, kind: input, shape index: {}]   ;;  %s2742_s5 = inlined_call_operand.vmem [shape: f32[32,1], index: 5, kind: input, shape index: {}]   ;;  %s2743_s6 = inlined_call_operand.vmem [shape: f32[32,1], index: 6, kind: input, shape index: {}]   ;;  %s2744_s7 = inlined_call_operand.vmem [shape: f32[32,32], index: 7, kind: input, shape index: {}]   ;;  %s2745_s8 = inlined_call_operand.vmem [shape: f32[2,16,16,32], index: 8, kind: output, shape index: {}]  }
   0x1   :  { %s1874_s29 = smov 0   ;;  %s1876_s30 = smov 0  }
   0x2   :  { %s1878_s9 = smov 0   ;;  %s1880_s10 = smov 0  }
   0x3   :  { %s1882_s11 = smov 0  }
   0x4 LB: > { %s27_s12 = sadd.s32 1, %s1810_s9  ;;  %s30_s13 = sadd.s32 1, %s1814_s10  ;;  %s1818_s11 = sphi %s1882_s11, %s18_s11   ;;  %s1814_s10 = sphi %s1880_s10, %s2812_s10   ;;  %s1810_s9 = sphi %s1878_s9, %s2811_s9   ;;  %s1806_s30 = sphi %s1876_s30, %s2810_s30   ;;  %s1802_s29 = sphi %s1874_s29, %s2809_s29   ;;  %s1798_s28 = sphi %s1872_s28, %s2808_s28   ;;  %s1794_s27 = sphi %s1870_s27, %s2807_s27  }
   0x5   : > { %p28_p0 = scmp.ge.s32.totalorder %s27_s12, 2  ;;  %p74_p1 = scmp.ne.s32.totalorder %s1798_s28, %s1794_s27 }
   0x6   : > { %p75_p2 = scmp.eq.s32.totalorder %s1818_s11, 0  ;;  %s67_s17 = sadd.s32 1, %s1798_s28 }
   0x7   : > { %s2814_s12 = smov (%p28_p0, %s27_s12), 0  ;;  %s2816_s13 = smov (!%p28_p0, %s30_s13), %s1814_s10 }
   0x8   : > { %p76_p3 = por %p75_p2, %p74_p1  ;;  %p32_p4 = scmp.ge.s32.totalorder %s2816_s13, 2 }
   0x9   : > { %s63_s14 = ssub.s32 %s1810_s9, %s2814_s12  ;;  %p1617_p6 = scmp.ge.s32.totalorder %s1818_s11, 4 }
   0xa   : > { %s2818_s13 = smov (%p32_p4, %s2816_s13), 0 }
   0xb   : > { %s62_s15 = ssub.s32 %s1814_s10, %s2818_s13  ;;  %272 = sbr.rel (%p1617_p6) target bundleno = 38 (0x26), region = 40 }
   0xc   : > { %s64_s16 = sor.u32 %s63_s14, %s62_s15 }
   0xd   : > { %p65_p5 = scmp.eq.s32.totalorder %s64_s16, 0 }
   0xf   : > { %s1921_s18 = scalar_select %p65_p5, %s1798_s28, %s67_s17  }
  0x10   : > { %289 = sbr.rel (!%p76_p3) target bundleno = 38 (0x26), region = 48  ;;  %s291_s19 = sand.u32 (%p76_p3), 1, %s1798_s28  }
  0x11   : > { %s1619_s20 = sshll.u32 (%p76_p3), %s1814_s10, 6  ;;  %s1618_s21 = sshll.u32 (%p76_p3), %s291_s19, 8 }
  0x12   : > { %s295_s22 = sadd.s32 (%p76_p3), %s1810_s9, %s1619_s20  ;;  %s1935_s14 = scalar_lea.vmem (%p76_p3), [#allocation2], %s1618_s21 }
  0x13   : > { %s1620_s23 = sshll.u32 (%p76_p3), %s295_s22, 3 }
  0x14   : > { %s1930_s26 = scalar_lea.vmem (%p76_p3), %s2738_s1, %s1620_s23 }
  0x15   : > { %v388_v0 = vld [vmem:[%s1930_s26] sm:$0xff]  ;;  %v390_v1 = vld [vmem:[%s1930_s26 + $0x10] sm:$0xff] }
  0x16   : > { %v392_v2 = vld [vmem:[%s1930_s26 + $0x20] sm:$0xff]  ;;  %389 = vst [vmem:[%s1935_s14] sm:$0xff] %v388_v0  ;;  %391 = vst [vmem:[%s1935_s14 + $0x8] sm:$0xff] %v390_v1  ;;  %v394_v3 = vld [vmem:[%s1930_s26 + $0x30] sm:$0xff] }
  0x17   : > { %393 = vst [vmem:[%s1935_s14 + $0x10] sm:$0xff] %v392_v2  ;;  %v396_v4 = vld [vmem:[%s1930_s26 + $0x40] sm:$0xff]  ;;  %v398_v5 = vld [vmem:[%s1930_s26 + $0x50] sm:$0xff]  ;;  %395 = vst [vmem:[%s1935_s14 + $0x18] sm:$0xff] %v394_v3 }
  0x18   : > { %397 = vst [vmem:[%s1935_s14 + $0x20] sm:$0xff] %v396_v4  ;;  %399 = vst [vmem:[%s1935_s14 + $0x28] sm:$0xff] %v398_v5  ;;  %v400_v6 = vld [vmem:[%s1930_s26 + $0x60] sm:$0xff]  ;;  %v402_v7 = vld [vmem:[%s1930_s26 + $0x70] sm:$0xff] }
  0x19   : > { %v404_v8 = vld [vmem:[%s1930_s26 + $0x80] sm:$0xff]  ;;  %401 = vst [vmem:[%s1935_s14 + $0x30] sm:$0xff] %v400_v6  ;;  %403 = vst [vmem:[%s1935_s14 + $0x38] sm:$0xff] %v402_v7  ;;  %v406_v9 = vld [vmem:[%s1930_s26 + $0x90] sm:$0xff] }
  0x1a   : > { %405 = vst [vmem:[%s1935_s14 + $0x40] sm:$0xff] %v404_v8  ;;  %v408_v10 = vld [vmem:[%s1930_s26 + $0xa0] sm:$0xff]  ;;  %v410_v11 = vld [vmem:[%s1930_s26 + $0xb0] sm:$0xff]  ;;  %407 = vst [vmem:[%s1935_s14 + $0x48] sm:$0xff] %v406_v9 }
  0x1b   : > { %409 = vst [vmem:[%s1935_s14 + $0x50] sm:$0xff] %v408_v10  ;;  %411 = vst [vmem:[%s1935_s14 + $0x58] sm:$0xff] %v410_v11  ;;  %v412_v12 = vld [vmem:[%s1930_s26 + $0xc0] sm:$0xff]  ;;  %v414_v13 = vld [vmem:[%s1930_s26 + $0xd0] sm:$0xff] }
  0x1c   : > { %v416_v14 = vld [vmem:[%s1930_s26 + $0xe0] sm:$0xff]  ;;  %413 = vst [vmem:[%s1935_s14 + $0x60] sm:$0xff] %v412_v12  ;;  %415 = vst [vmem:[%s1935_s14 + $0x68] sm:$0xff] %v414_v13  ;;  %v418_v15 = vld [vmem:[%s1930_s26 + $0xf0] sm:$0xff] }
  0x1d   : > { %417 = vst [vmem:[%s1935_s14 + $0x70] sm:$0xff] %v416_v14  ;;  %v420_v16 = vld [vmem:[%s1930_s26 + $0x100] sm:$0xff]  ;;  %v422_v17 = vld [vmem:[%s1930_s26 + $0x110] sm:$0xff]  ;;  %419 = vst [vmem:[%s1935_s14 + $0x78] sm:$0xff] %v418_v15 }
  0x1e   : > { %421 = vst [vmem:[%s1935_s14 + $0x80] sm:$0xff] %v420_v16  ;;  %423 = vst [vmem:[%s1935_s14 + $0x88] sm:$0xff] %v422_v17  ;;  %v424_v18 = vld [vmem:[%s1930_s26 + $0x120] sm:$0xff]  ;;  %v426_v19 = vld [vmem:[%s1930_s26 + $0x130] sm:$0xff] }
  0x1f   : > { %v428_v20 = vld [vmem:[%s1930_s26 + $0x140] sm:$0xff]  ;;  %425 = vst [vmem:[%s1935_s14 + $0x90] sm:$0xff] %v424_v18  ;;  %427 = vst [vmem:[%s1935_s14 + $0x98] sm:$0xff] %v426_v19  ;;  %v430_v21 = vld [vmem:[%s1930_s26 + $0x150] sm:$0xff] }
  0x20   : > { %429 = vst [vmem:[%s1935_s14 + $0xa0] sm:$0xff] %v428_v20  ;;  %v432_v22 = vld [vmem:[%s1930_s26 + $0x160] sm:$0xff]  ;;  %v434_v23 = vld [vmem:[%s1930_s26 + $0x170] sm:$0xff]  ;;  %431 = vst [vmem:[%s1935_s14 + $0xa8] sm:$0xff] %v430_v21 }
  0x21   : > { %433 = vst [vmem:[%s1935_s14 + $0xb0] sm:$0xff] %v432_v22  ;;  %435 = vst [vmem:[%s1935_s14 + $0xb8] sm:$0xff] %v434_v23  ;;  %v436_v24 = vld [vmem:[%s1930_s26 + $0x180] sm:$0xff]  ;;  %v438_v25 = vld [vmem:[%s1930_s26 + $0x190] sm:$0xff] }
  0x22   : > { %v440_v26 = vld [vmem:[%s1930_s26 + $0x1a0] sm:$0xff]  ;;  %437 = vst [vmem:[%s1935_s14 + $0xc0] sm:$0xff] %v436_v24  ;;  %439 = vst [vmem:[%s1935_s14 + $0xc8] sm:$0xff] %v438_v25  ;;  %v442_v27 = vld [vmem:[%s1930_s26 + $0x1b0] sm:$0xff] }
  0x23   : > { %441 = vst [vmem:[%s1935_s14 + $0xd0] sm:$0xff] %v440_v26  ;;  %v444_v28 = vld [vmem:[%s1930_s26 + $0x1c0] sm:$0xff]  ;;  %v446_v29 = vld [vmem:[%s1930_s26 + $0x1d0] sm:$0xff]  ;;  %443 = vst [vmem:[%s1935_s14 + $0xd8] sm:$0xff] %v442_v27 }
  0x24   : > { %445 = vst [vmem:[%s1935_s14 + $0xe0] sm:$0xff] %v444_v28  ;;  %447 = vst [vmem:[%s1935_s14 + $0xe8] sm:$0xff] %v446_v29  ;;  %v448_v30 = vld [vmem:[%s1930_s26 + $0x1e0] sm:$0xff]  ;;  %v450_v31 = vld [vmem:[%s1930_s26 + $0x1f0] sm:$0xff] }
  0x25   : > { %449 = vst [vmem:[%s1935_s14 + $0xf0] sm:$0xff] %v448_v30  ;;  %451 = vst [vmem:[%s1935_s14 + $0xf8] sm:$0xff] %v450_v31 }
  0x26 PF: > { %p1621_p7 = scmp.ge.s32.totalorder %s1818_s11, 1  ;;  %p456_p8 = scmp.lt.s32.totalorder %s1818_s11, 5 }
  0x28   : > { %p457_p9 = pnand %p1621_p7, %p456_p8 }
  0x29   : > { %s463_s15 = sand.u32 (!%p457_p9), 1, %s1794_s27   ;;  %s1623_s16 = sshll.u32 (!%p457_p9), %s1802_s29, 3 }
  0x2a   : > { %460 = sbr.rel (%p457_p9) target bundleno = 677 (0x2a5), region = 86  ;;  %s2002_s17 = sshll.u32 (!%p457_p9), %s463_s15, 8 }
  0x2b   : > { %p512_p10 = scmp.lt.s32.totalorder (!%p457_p9), %s1806_s30, 1  ;;  %p514_p11 = scmp.lt.s32.totalorder (!%p457_p9), %s1623_s16, 15 }
  0x2c   : > { %s465_s29 = scalar_lea.vmem (!%p457_p9), [#allocation2], %s2002_s17  ;;  %s2017_s15 = smov (!%p457_p9), 0  }
  0x2f   : > { %s2820_s30 = smov (!%p512_p10, %s1806_s30), 1  ;;  %s2822_s16 = smov (!%p514_p11, %s1623_s16), 15 }
  0x30   : > { %s1625_s19 = sshll.u32 %s2820_s30, 5  ;;  %s1624_s20 = sshll.u32 %s2822_s16, 1 }
  0x31   : > { %s518_s21 = sadd.s32 %s1625_s19, %s1624_s20 }
  0x32   : > { %s1626_s22 = sshll.u32 %s518_s21, 3 }
  0x33   : > { %s2009_s25 = scalar_lea.vmem %s2737_s0, %s1626_s22  ;;  %s2014_s27 = scalar_lea.vmem %s2745_s8, %s1626_s22 }
  0x34 LB: >> { %v1046_v32 = vld [vmem:[%s2742_s5 + $0x8] sm:$0xff]  ;;  %v1824_v33 = vmov 0   ;;  %s1631_s19 = sshll.u32 %s1822_s15, 4  ;;  %vm545_vm0 = vcmask 261120   ;;  %s2029_s20 = scalar_lea.vmem %s465_s29, %s1822_s15 [#allocation2]  ;;  %v1157_v34 = vld [vmem:[%s2743_s6] sm:$0xff]  ;;  %v1047_v42 = vld [vmem:[%s2742_s5 + $0x10] sm:$0xff]  ;;  %s1822_s15 = sphi %s2017_s15, %s538_s15  }
  0x35   : >> { %1743 = vset.pattern.permute.xlu1 %v1824_v33  ;;  %1742 = vset.pattern.permute.xlu0 %v1824_v33  ;;  %s2034_s21 = scalar_lea.vmem %s2009_s25, %s1631_s19  ;;  %v2040_v35 = vld [vmem:[%s2029_s20 + $0x8] sm:$0x1]  ;;  %v2051_v39 = vld [vmem:[%s2029_s20 + $0x10] sm:$0x1]  ;;  %v2060_v43 = vld [vmem:[%s2029_s20] sm:$0x1] }
  0x36   : >> { %1055 = vperm.xlu1 %1743, %v1046_v32   ;;  %v2043_v36 = vld [vmem:[%s2034_s21] sm:$0xff]  ;;  %v2046_v37 = vld [vmem:[%s2034_s21 + $0x8] sm:$0xff]  ;;  %v751_v40 = vrot.slane %v2040_v35, 7  ;;  %vm752_vm1 = vcmask 1041409   ;;  %vm755_vm2 = vcmask 1042434   ;;  %v754_v45 = vrot.slane %v2051_v39, 6 }
  0x37   : >> { %v546_v38 = vsel %vm545_vm0, %v2043_v36, 0.0  ;;  %v549_v41 = vsel %vm545_vm0, %v2046_v37, 0.0  ;;  %v1158_v44 = vld [vmem:[%s2743_s6 + $0x8] sm:$0xff]  ;;  %vm758_vm3 = vcmask 1043459   ;;  %vm761_vm4 = vcmask 1044484   ;;  %v1048_v56 = vld [vmem:[%s2742_s5 + $0x18] sm:$0xff] }
  0x38   : >> { %547 = vadd.xlane.f32.xlu0 %v546_v38  ;;  %vm764_vm5 = vcmask 1045509   ;;  %v2067_v46 = vld [vmem:[%s2029_s20 + $0x18] sm:$0x1]  ;;  %v2070_v47 = vld [vmem:[%s2029_s20 + $0x20] sm:$0x1]  ;;  %v753_v48 = vsel %vm752_vm1, %v751_v40, %v2060_v43  ;;  %vm767_vm6 = vcmask 1046534  }
  0x39   : >> { %vm770_vm7 = vcmask 1047559   ;;  %v2075_v49 = vld [vmem:[%s2029_s20 + $0x28] sm:$0x1]  ;;  %v2078_v50 = vld [vmem:[%s2029_s20 + $0x30] sm:$0x1]  ;;  %v756_v60 = vsel %vm755_vm2, %v754_v45, %v753_v48  ;;  %v757_v63 = vrot.slane %v2067_v46, 5 }
  0x3a   : >> { %1163 = vperm.xlu1 %1743, %v1157_v34   ;;  %v2081_v51 = vld [vmem:[%s2029_s20 + $0x38] sm:$0x1]  ;;  %v2084_v52 = vld [vmem:[%s2029_s20 + $0x40] sm:$0x1]  ;;  %v2087_v53 = vld [vmem:[%s2029_s20 + $0x48] sm:$0x1] }
  0x3b   : >> { %v2090_v54 = vld [vmem:[%s2029_s20 + $0x50] sm:$0x1]  ;;  %v2093_v55 = vld [vmem:[%s2029_s20 + $0x58] sm:$0x1]  ;;  %v2099_v57 = vld [vmem:[%s2029_s20 + $0x60] sm:$0x1]  ;;  %v759_v8 = vsel %vm758_vm3, %v757_v63, %v756_v60 }
  0x3c   : >> { %550 = vadd.xlane.f32.xlu0 %v549_v41  ;;  %v2102_v58 = vld [vmem:[%s2029_s20 + $0x68] sm:$0x1]  ;;  %v2105_v59 = vld [vmem:[%s2029_s20 + $0x70] sm:$0x1]  ;;  %v2109_v61 = vld [vmem:[%s2029_s20 + $0x78] sm:$0x1] }
  0x3d   : >> { %v2112_v62 = vld [vmem:[%s2029_s20 + $0x88] sm:$0x1]  ;;  %v760_v0 = vrot.slane %v2070_v47, 4  ;;  %v2117_v1 = vld [vmem:[%s2029_s20 + $0x80] sm:$0x1]  ;;  %v763_v3 = vrot.slane %v2075_v49, 3 }
  0x3e   : >> { %1059 = vperm.xlu1 %1743, %v1047_v42   ;;  %v2120_v2 = vld [vmem:[%s2029_s20 + $0x90] sm:$0x1]  ;;  %v766_v4 = vrot.slane %v2078_v50, 2  ;;  %v769_v5 = vrot.slane %v2081_v51, 1  ;;  %v772_v6 = vrot.slane %v2087_v53, 7  ;;  %vm818_vm8 = vcmask 130048  }
  0x3f   : >> { %v2127_v7 = vld [vmem:[%s2029_s20 + $0x98] sm:$0x1]  ;;  %v774_v9 = vrot.slane %v2090_v54, 6  ;;  %v776_v10 = vrot.slane %v2093_v55, 5  ;;  %v778_v11 = vrot.slane %v2099_v57, 4  ;;  %v1159_v12 = vld [vmem:[%s2743_s6 + $0x10] sm:$0xff]  ;;  %v762_v15 = vsel %vm761_vm4, %v760_v0, %v759_v8 }
  0x40   : >> { %v2137_v13 = vld [vmem:[%s2029_s20 + $0xa0] sm:$0x1]  ;;  %v2140_v14 = vld [vmem:[%s2029_s20 + $0xa8] sm:$0x1]  ;;  %v773_v16 = vsel %vm752_vm1, %v772_v6, %v2084_v52  ;;  %v780_v17 = vrot.slane %v2102_v58, 3  ;;  %v782_v18 = vrot.slane %v2105_v59, 2  ;;  %v765_v21 = vsel %vm764_vm5, %v763_v3, %v762_v15 }
  0x41   : >> { %v2148_v19 = vld [vmem:[%s2029_s20 + $0xb0] sm:$0x1]  ;;  %v2151_v20 = vld [vmem:[%s2029_s20 + $0xb8] sm:$0x1]  ;;  %v775_v22 = vsel %vm755_vm2, %v774_v9, %v773_v16  ;;  %v784_v23 = vrot.slane %v2109_v61, 1  ;;  %v786_v24 = vrot.slane %v2112_v62, 7  ;;  %v768_v27 = vsel %vm767_vm6, %v766_v4, %v765_v21 }
  0x42   : >> { %1167 = vperm.xlu1 %1743, %v1158_v44   ;;  %v2158_v25 = vld [vmem:[%s2029_s20 + $0xc0] sm:$0x1]  ;;  %v2161_v26 = vld [vmem:[%s2029_s20 + $0xc8] sm:$0x1]  ;;  %v777_v28 = vsel %vm758_vm3, %v776_v10, %v775_v22  ;;  %v788_v29 = vrot.slane %v2120_v2, 6  ;;  %v790_v30 = vrot.slane %v2127_v7, 5  ;;  %v771_v33 = vsel %vm770_vm7, %v769_v5, %v768_v27 }
  0x43   : >> { %v2168_v31 = vld [vmem:[%s2029_s20 + $0xd0] sm:$0x1]  ;;  %v2171_v32 = vld [vmem:[%s2029_s20 + $0xd8] sm:$0x1]  ;;  %v779_v34 = vsel %vm761_vm4, %v778_v11, %v777_v28  ;;  %v787_v38 = vsel %vm752_vm1, %v786_v24, %v2117_v1  ;;  %v792_v40 = vrot.slane %v2137_v13, 4  ;;  %v794_v48 = vrot.slane %v2140_v14, 3 }
  0x44   : >> { %v2179_v41 = vld [vmem:[%s2029_s20 + $0xe0] sm:$0x1]  ;;  %v2182_v42 = vld [vmem:[%s2029_s20 + $0xe8] sm:$0x1]  ;;  %v781_v44 = vsel %vm764_vm5, %v780_v17, %v779_v34  ;;  %v789_v45 = vsel %vm755_vm2, %v788_v29, %v787_v38  ;;  %v2189_v60 = vld [vmem:[%s2029_s20 + $0xf0] sm:$0x1] }
  0x45   : >> { %v2192_v63 = vld [vmem:[%s2029_s20 + $0xf8] sm:$0x1]  ;;  %v783_v0 = vsel %vm767_vm6, %v782_v18, %v781_v44  ;;  %v791_v3 = vsel %vm758_vm3, %v790_v30, %v789_v45  ;;  %v798_v4 = vrot.slane %v2151_v20, 1  ;;  %v800_v5 = vrot.slane %v2161_v26, 7  ;;  %s1482_s20 = scalar_lea.vmem %s2014_s27, %s1631_s19  ;;  %s538_s15 = sadd.s32 1, %s1822_s15  }
  0x46   : >> { %1063 = vperm.xlu1 %1743, %v1048_v56   ;;  %v796_v56 = vrot.slane %v2148_v19, 2  ;;  %v785_v6 = vsel %vm770_vm7, %v784_v23, %v783_v0  ;;  %v793_v8 = vsel %vm761_vm4, %v792_v40, %v791_v3  ;;  %v802_v9 = vrot.slane %v2168_v31, 6  ;;  %v1045_v40 = vld [vmem:[%s2742_s5] sm:$0xff]  ;;  %p535_p12 = scmp.ge.s32.totalorder %s538_s15, 8  }
  0x47   : >> { %v804_v10 = vrot.slane %v2171_v32, 5  ;;  %v795_v11 = vsel %vm764_vm5, %v794_v48, %v793_v8  ;;  %v806_v15 = vrot.slane %v2179_v41, 4  ;;  %v808_v16 = vrot.slane %v2182_v42, 3 }
  0x48   : >> { %v797_v17 = vsel %vm767_vm6, %v796_v56, %v795_v11  ;;  %v810_v21 = vrot.slane %v2189_v60, 2  ;;  %v812_v22 = vrot.slane %v2192_v63, 1  ;;  %v819_v27 = vsel %vm818_vm8, %v771_v33, 0.0 }
  0x49   : >> { %v799_v23 = vsel %vm770_vm7, %v798_v4, %v797_v17  ;;  %v820_v28 = vsel %vm818_vm8, %v785_v6, 0.0  ;;  %v833_v4 = vlaneseq }
  0x4a   : >> { %1171 = vperm.xlu1 %1743, %v1159_v12   ;;  %v801_v12 = vsel %vm752_vm1, %v800_v5, %v2158_v25  ;;  %v821_v30 = vadd.f32 %v820_v28, %v819_v27  ;;  %v822_v34 = vsel %vm818_vm8, %v799_v23, 0.0 }
  0x4b   : >> { %v803_v18 = vsel %vm755_vm2, %v802_v9, %v801_v12  ;;  %v2224_v8 = vshrl.u32 %v833_v4, 7 }
  0x4c   : >> { %v805_v24 = vsel %vm758_vm3, %v804_v10, %v803_v18  ;;  %v823_v45 = vadd.f32 %v822_v34, %v821_v30 }
  0x4d   : >> { %v807_v29 = vsel %vm761_vm4, %v806_v15, %v805_v24  ;;  %v2746_v11 = vsub.s32 0, %v2224_v8 }
  0x4e   : >> { %v809_v38 = vsel %vm764_vm5, %v808_v16, %v807_v29 }
  0x4f   : >> { %v811_v44 = vsel %vm767_vm6, %v810_v21, %v809_v38 }
  0x50   : >> { %v813_v48 = vsel %vm770_vm7, %v812_v22, %v811_v44 }
  0x51   : >> { %v824_v33 = vsel %vm818_vm8, %v813_v48, 0.0 }
  0x52   : >> { %1051 = vperm.xlu0 %1742, %v1045_v40   ;;  %v825_v56 = vadd.f32 %v824_v33, %v823_v45 }
  0x54   : >> { %v826_v0 = vrot.slane %v825_v56, 4 }
  0x56   : >> { %v827_v3 = vadd.f32 %v826_v0, %v825_v56 }
  0x58   : >> { %v828_v5 = vrot.slane %v827_v3, 2 }
  0x5a   : >> { %v829_v6 = vadd.f32 %v828_v5, %v827_v3 }
  0x5c   : >> { %v830_v9 = vrot.slane %v829_v6, 1 }
  0x5e   : >> { %v831_v10 = vadd.f32 %v830_v9, %v829_v6 }
  0x60   : >> { %v832_v12 = vmul.f32 0.03125, %v831_v10 }
  0x62   : >> { %v836_v15 = vrot.slane %v832_v12, %v2746_v11 }
  0x64   : >> { %v2230_v16 = vsub.f32 %v2060_v43, %v836_v15  ;;  %v2233_v17 = vsub.f32 %v2040_v35, %v836_v15  ;;  %v2236_v18 = vsub.f32 %v2051_v39, %v836_v15  ;;  %v2239_v21 = vsub.f32 %v2067_v46, %v836_v15 }
  0x65   : >> { %v2242_v22 = vsub.f32 %v2070_v47, %v836_v15  ;;  %v2245_v23 = vsub.f32 %v2075_v49, %v836_v15  ;;  %v2248_v24 = vsub.f32 %v2078_v50, %v836_v15  ;;  %v2251_v43 = vsub.f32 %v2081_v51, %v836_v15 }
  0x66   : >> { %2766 = vst [vmem:[#allocation3_spill] sm:$0xff] %v2233_v17  ;;  %2767 = vst [vmem:[#allocation4_spill] sm:$0xff] %v2236_v18  ;;  %v2254_v35 = vsub.f32 %v2084_v52, %v836_v15  ;;  %v2257_v39 = vsub.f32 %v2087_v53, %v836_v15  ;;  %v2260_v46 = vsub.f32 %v2090_v54, %v836_v15 }
  0x67   : >> { %2768 = vst [vmem:[#allocation5_spill] sm:$0xff] %v2239_v21  ;;  %2769 = vst [vmem:[#allocation6_spill] sm:$0xff] %v2242_v22  ;;  %v2263_v47 = vsub.f32 %v2093_v55, %v836_v15  ;;  %v2266_v49 = vsub.f32 %v2099_v57, %v836_v15  ;;  %v2269_v50 = vsub.f32 %v2102_v58, %v836_v15 }
  0x68   : >> { %2770 = vst [vmem:[#allocation7_spill] sm:$0xff] %v2245_v23  ;;  %2771 = vst [vmem:[#allocation8_spill] sm:$0xff] %v2248_v24  ;;  %v2272_v51 = vsub.f32 %v2105_v59, %v836_v15  ;;  %v2275_v52 = vsub.f32 %v2109_v61, %v836_v15  ;;  %v2278_v53 = vsub.f32 %v2117_v1, %v836_v15 }
  0x69   : >> { %2772 = vst [vmem:[#allocation9_spill] sm:$0xff] %v2251_v43  ;;  %2773 = vst [vmem:[#allocation10_spill] sm:$0xff] %v2260_v46  ;;  %v2281_v54 = vsub.f32 %v2112_v62, %v836_v15  ;;  %v2284_v55 = vsub.f32 %v2120_v2, %v836_v15  ;;  %v2287_v57 = vsub.f32 %v2127_v7, %v836_v15 }
  0x6a   : >> { %2774 = vst [vmem:[#allocation11_spill] sm:$0xff] %v2263_v47  ;;  %2775 = vst [vmem:[#allocation12_spill] sm:$0xff] %v2266_v49  ;;  %v2290_v58 = vsub.f32 %v2137_v13, %v836_v15  ;;  %v2293_v59 = vsub.f32 %v2140_v14, %v836_v15  ;;  %v2296_v61 = vsub.f32 %v2148_v19, %v836_v15 }
  0x6b   : >> { %2776 = vst [vmem:[#allocation13_spill] sm:$0xff] %v2269_v50  ;;  %2777 = vst [vmem:[#allocation14_spill] sm:$0xff] %v2272_v51  ;;  %v2299_v1 = vsub.f32 %v2151_v20, %v836_v15  ;;  %v2302_v62 = vsub.f32 %v2158_v25, %v836_v15  ;;  %v2305_v2 = vsub.f32 %v2161_v26, %v836_v15 }
  0x6c   : >> { %2778 = vst [vmem:[#allocation15_spill] sm:$0xff] %v2275_v52  ;;  %2779 = vst [vmem:[#allocation16_spill] sm:$0xff] %v2284_v55  ;;  %v2308_v7 = vsub.f32 %v2168_v31, %v836_v15  ;;  %v2311_v13 = vsub.f32 %v2171_v32, %v836_v15  ;;  %v2314_v14 = vsub.f32 %v2179_v41, %v836_v15 }
  0x6d   : >> { %2780 = vst [vmem:[#allocation17_spill] sm:$0xff] %v2287_v57  ;;  %2781 = vst [vmem:[#allocation18_spill] sm:$0xff] %v2290_v58  ;;  %v2317_v19 = vsub.f32 %v2182_v42, %v836_v15  ;;  %v2320_v20 = vsub.f32 %v2189_v60, %v836_v15  ;;  %v2323_v25 = vsub.f32 %v2192_v63, %v836_v15 }
  0x6e   : >> { %2782 = vst [vmem:[#allocation19_spill] sm:$0xff] %v2293_v59  ;;  %2783 = vst [vmem:[#allocation20_spill] sm:$0xff] %v2296_v61  ;;  %v869_v26 = vmul.f32 %v2230_v16, %v2230_v16  ;;  %v870_v31 = vmul.f32 %v2233_v17, %v2233_v17  ;;  %v871_v32 = vmul.f32 %v2236_v18, %v2236_v18 }
  0x6f   : >> { %2784 = vst [vmem:[#allocation21_spill] sm:$0xff] %v2299_v1  ;;  %v872_v41 = vmul.f32 %v2239_v21, %v2239_v21  ;;  %v873_v42 = vmul.f32 %v2242_v22, %v2242_v22  ;;  %v874_v60 = vmul.f32 %v2245_v23, %v2245_v23  ;;  %v875_v63 = vmul.f32 %v2248_v24, %v2248_v24 }
  0x70   : >> { %v876_v27 = vmul.f32 %v2251_v43, %v2251_v43  ;;  %v877_v28 = vmul.f32 %v2254_v35, %v2254_v35  ;;  %v878_v29 = vmul.f32 %v2257_v39, %v2257_v39  ;;  %v879_v30 = vmul.f32 %v2260_v46, %v2260_v46 }
  0x71   : >> { %v880_v34 = vmul.f32 %v2263_v47, %v2263_v47  ;;  %v881_v38 = vmul.f32 %v2266_v49, %v2266_v49  ;;  %v882_v40 = vmul.f32 %v2269_v50, %v2269_v50  ;;  %v883_v44 = vmul.f32 %v2272_v51, %v2272_v51 }
  0x72   : >> { %v884_v45 = vmul.f32 %v2275_v52, %v2275_v52  ;;  %v885_v48 = vmul.f32 %v2278_v53, %v2278_v53  ;;  %v886_v33 = vmul.f32 %v2281_v54, %v2281_v54  ;;  %v887_v56 = vmul.f32 %v2284_v55, %v2284_v55 }
  0x73   : >> { %v888_v0 = vmul.f32 %v2287_v57, %v2287_v57  ;;  %v889_v3 = vmul.f32 %v2290_v58, %v2290_v58  ;;  %v890_v4 = vmul.f32 %v2293_v59, %v2293_v59  ;;  %v891_v5 = vmul.f32 %v2296_v61, %v2296_v61 }
  0x74   : >> { %v892_v6 = vmul.f32 %v2299_v1, %v2299_v1  ;;  %v893_v9 = vmul.f32 %v2302_v62, %v2302_v62  ;;  %v894_v10 = vmul.f32 %v2305_v2, %v2305_v2  ;;  %v895_v12 = vmul.f32 %v2308_v7, %v2308_v7 }
  0x75   : >> { %v896_v15 = vmul.f32 %v2311_v13, %v2311_v13  ;;  %v897_v11 = vmul.f32 %v2314_v14, %v2314_v14  ;;  %v898_v61 = vmul.f32 %v2317_v19, %v2317_v19  ;;  %v899_v1 = vmul.f32 %v2320_v20, %v2320_v20 }
  0x76   : >> { %v2389_v59 = vmul.f32 %v2323_v25, %v2323_v25  ;;  %v933_v58 = vrot.slane %v870_v31, 7  ;;  %v935_v57 = vrot.slane %v871_v32, 6  ;;  %v937_v55 = vrot.slane %v872_v41, 5 }
  0x77   : >> { %v939_v52 = vrot.slane %v873_v42, 4  ;;  %v941_v51 = vrot.slane %v874_v60, 3  ;;  %v943_v50 = vrot.slane %v875_v63, 2  ;;  %v945_v49 = vrot.slane %v876_v27, 1 }
  0x78   : >> { %v947_v47 = vrot.slane %v878_v29, 7  ;;  %v934_v46 = vsel %vm752_vm1, %v933_v58, %v869_v26  ;;  %v949_v43 = vrot.slane %v879_v30, 6  ;;  %v951_v24 = vrot.slane %v880_v34, 5 }
  0x79   : >> { %v953_v23 = vrot.slane %v881_v38, 4  ;;  %v936_v22 = vsel %vm755_vm2, %v935_v57, %v934_v46  ;;  %v955_v18 = vrot.slane %v882_v40, 3  ;;  %v957_v17 = vrot.slane %v883_v44, 2 }
  0x7a   : >> { %v948_v21 = vsel %vm752_vm1, %v947_v47, %v877_v28  ;;  %v938_v31 = vsel %vm758_vm3, %v937_v55, %v936_v22  ;;  %v959_v41 = vrot.slane %v884_v45, 1  ;;  %v961_v42 = vrot.slane %v886_v33, 7 }
  0x7b   : >> { %v950_v32 = vsel %vm755_vm2, %v949_v43, %v948_v21  ;;  %v940_v60 = vsel %vm761_vm4, %v939_v52, %v938_v31  ;;  %v963_v58 = vrot.slane %v887_v56, 6  ;;  %v965_v26 = vrot.slane %v888_v0, 5 }
  0x7c   : >> { %v952_v63 = vsel %vm758_vm3, %v951_v24, %v950_v32  ;;  %v942_v27 = vsel %vm764_vm5, %v941_v51, %v940_v60  ;;  %v962_v47 = vsel %vm752_vm1, %v961_v42, %v885_v48  ;;  %v967_v57 = vrot.slane %v889_v3, 4 }
  0x7d   : >> { %v954_v46 = vsel %vm761_vm4, %v953_v23, %v952_v63  ;;  %v944_v28 = vsel %vm767_vm6, %v943_v50, %v942_v27  ;;  %v964_v21 = vsel %vm755_vm2, %v963_v58, %v962_v47  ;;  %v969_v43 = vrot.slane %v890_v4, 3 }
  0x7e   : >> { %v956_v22 = vsel %vm764_vm5, %v955_v18, %v954_v46  ;;  %v946_v52 = vsel %vm770_vm7, %v945_v49, %v944_v28  ;;  %v966_v55 = vsel %vm758_vm3, %v965_v26, %v964_v21  ;;  %v971_v29 = vrot.slane %v891_v5, 2 }
  0x7f   : >> { %v958_v24 = vsel %vm767_vm6, %v957_v17, %v956_v22  ;;  %v968_v23 = vsel %vm761_vm4, %v967_v57, %v966_v55  ;;  %v973_v30 = vrot.slane %v892_v6, 1  ;;  %v975_v34 = vrot.slane %v894_v10, 7 }
  0x80   : >> { %v960_v51 = vsel %vm770_vm7, %v959_v41, %v958_v24  ;;  %v970_v50 = vsel %vm764_vm5, %v969_v43, %v968_v23  ;;  %v977_v38 = vrot.slane %v895_v12, 6  ;;  %v979_v18 = vrot.slane %v896_v15, 5 }
  0x81   : >> { %v981_v40 = vrot.slane %v897_v11, 4  ;;  %v972_v44 = vsel %vm767_vm6, %v971_v29, %v970_v50  ;;  %v976_v49 = vsel %vm752_vm1, %v975_v34, %v893_v9  ;;  %v983_v45 = vrot.slane %v898_v61, 3 }
  0x82   : >> { %v974_v17 = vsel %vm770_vm7, %v973_v30, %v972_v44  ;;  %v978_v48 = vsel %vm755_vm2, %v977_v38, %v976_v49  ;;  %v985_v33 = vrot.slane %v899_v1, 2  ;;  %v993_v56 = vsel %vm818_vm8, %v946_v52, 0.0 }
  0x83   : >> { %v980_v0 = vsel %vm758_vm3, %v979_v18, %v978_v48  ;;  %v987_v3 = vrot.slane %v2389_v59, 1  ;;  %v994_v4 = vsel %vm818_vm8, %v960_v51, 0.0  ;;  %v996_v11 = vsel %vm818_vm8, %v974_v17, 0.0 }
  0x84   : >> { %v982_v5 = vsel %vm761_vm4, %v981_v40, %v980_v0  ;;  %v995_v6 = vadd.f32 %v994_v4, %v993_v56  ;;  %v2785_v27 = vsub.s32 0, %v2224_v8 }
  0x85   : >> { %v984_v61 = vsel %vm764_vm5, %v983_v45, %v982_v5 }
  0x86   : >> { %v986_v9 = vsel %vm767_vm6, %v985_v33, %v984_v61  ;;  %v997_v10 = vadd.f32 %v996_v11, %v995_v6  ;;  %v592_v61 = vld [vmem:[%s2741_s4 + $0x18] sm:$0xff] }
  0x87   : >> { %v988_v1 = vsel %vm770_vm7, %v987_v3, %v986_v9  ;;  %1654 = vmatprep.subr.mxu0 %v592_v61 }
  0x88   : >> { %v998_v12 = vsel %vm818_vm8, %v988_v1, 0.0  ;;  %1655 = vmatpush3.msra.mxu0 %v592_v61 }
  0x89   : >> { %v999_v15 = vadd.f32 %v998_v12, %v997_v10  ;;  %v2788_v12 = vld [vmem:[#allocation5_spill] sm:$0xff] }
  0x8b   : >> { %v1000_v31 = vrot.slane %v999_v15, 4 }
  0x8d   : >> { %v1001_v32 = vadd.f32 %v1000_v31, %v999_v15 }
  0x8f   : >> { %v1002_v59 = vrot.slane %v1001_v32, 2 }
  0x91   : >> { %v1003_v41 = vadd.f32 %v1002_v59, %v1001_v32  ;;  %v2789_v32 = vld [vmem:[#allocation6_spill] sm:$0xff] }
  0x93   : >> { %v1004_v42 = vrot.slane %v1003_v41, 1 }
  0x95   : >> { %v1005_v60 = vadd.f32 %v1004_v42, %v1003_v41 }
  0x97   : >> { %v1006_v63 = vmul.f32 0.03125, %v1005_v60  ;;  %v2792_v60 = vld [vmem:[#allocation9_spill] sm:$0xff] }
  0x99   : >> { %v1007_v58 = vadd.f32 1e-05, %v1006_v63 }
  0x9b   : >> { %1744 = vrsqrt.f32 %v1007_v58  ;;  %v2793_v58 = vld [vmem:[#allocation10_spill] sm:$0xff] }
  0xa8   : >> { %v1745_v26 = vpop.eup %1744 }
  0xa9   : >> { %v2426_v46 = vrot.slane %v1745_v26, %v2785_v27  ;;  %v2794_v27 = vld [vmem:[#allocation11_spill] sm:$0xff] }
  0xab   : >> { %v1037_v47 = vmul.f32 %v2426_v46, %v2302_v62  ;;  %v1038_v57 = vmul.f32 %v2426_v46, %v2305_v2  ;;  %v1039_v22 = vmul.f32 %v2426_v46, %v2308_v7  ;;  %v1040_v21 = vmul.f32 %v2426_v46, %v2311_v13 }
  0xac   : >> { %v1041_v43 = vmul.f32 %v2426_v46, %v2314_v14  ;;  %v1042_v45 = vmul.f32 %v2426_v46, %v2317_v19  ;;  %v1044_v33 = vmul.f32 %v2426_v46, %v2323_v25  ;;  %v1160_v19 = vld [vmem:[%s2743_s6 + $0x18] sm:$0xff]  ;;  %v1022_v25 = vmul.f32 %v2426_v46, %v2257_v39  ;;  %v2787_v39 = vld [vmem:[#allocation4_spill] sm:$0xff] }
  0xad   : >> { %v2489_v6 = vmul.f32 %v2426_v46, %v2278_v53  ;;  %v2496_v9 = vmul.f32 %v2426_v46, %v2281_v54  ;;  %v1013_v10 = vmul.f32 %v2426_v46, %v2230_v16  ;;  %v1015_v53 = vmul.f32 %v2426_v46, %v2787_v39  ;;  %v2790_v54 = vld [vmem:[#allocation7_spill] sm:$0xff]  ;;  %v2791_v16 = vld [vmem:[#allocation8_spill] sm:$0xff] }
  0xae   : >> { %v1016_v15 = vmul.f32 %v2426_v46, %v2788_v12  ;;  %v2510_v59 = vmul.f32 %v2426_v46, %v2789_v32  ;;  %v2514_v41 = vmul.f32 %v2426_v46, %v2790_v54  ;;  %v2518_v42 = vmul.f32 %v2426_v46, %v2791_v16  ;;  %v2803_v39 = vld [vmem:[#allocation20_spill] sm:$0xff]  ;;  %v2804_v32 = vld [vmem:[#allocation21_spill] sm:$0xff] }
  0xaf   : >> { %v2522_v63 = vmul.f32 %v2426_v46, %v2792_v60  ;;  %v1023_v26 = vmul.f32 %v2426_v46, %v2793_v58  ;;  %v2560_v12 = vmul.f32 %v2426_v46, %v2803_v39  ;;  %v2564_v54 = vmul.f32 %v2426_v46, %v2804_v32  ;;  %v589_v32 = vld [vmem:[%s2741_s4] sm:$0xff] }
  0xb1   : >> { %v2432_v28 = vpop.permute.xlu1 %1055 }
  0xb5   : >> { %v2440_v8 = vpop.permute.xlu1 %1163 }
  0xb6   : >> { %v1177_v60 = vrot.slane %v2440_v8, 1 }
  0xb9   : >> { %v2442_v52 = vpop.permute.xlu1 %1059 }
  0xbd   : >> { %v2444_v24 = vpop.permute.xlu1 %1167 }
  0xc1   : >> { %v1064_v62 = vpop.permute.xlu1 %1063  ;;  %v548_v29 = vpop.xlane.xlu0 %547 }
  0xc2   : >> { %v1086_v55 = vrot.slane %v1064_v62, 1  ;;  %v2446_v2 = vmul.f32 %v1064_v62, %v1037_v47  ;;  %v553_v51 = vmul.f32 0.03125, %v548_v29  ;;  %v1087_v38 = vrot.slane %v1064_v62, 2  ;;  %v2798_v29 = vld [vmem:[#allocation15_spill] sm:$0xff] }
  0xc3   : >> { %v1088_v44 = vrot.slane %v1064_v62, 3  ;;  %v1089_v49 = vrot.slane %v1064_v62, 4  ;;  %v1090_v17 = vrot.slane %v1064_v62, 5  ;;  %v1091_v48 = vrot.slane %v1064_v62, 6 }
  0xc4   : >> { %v2448_v23 = vmul.f32 %v1086_v55, %v1038_v57  ;;  %v2451_v7 = vsub.f32 %v2043_v36, %v553_v51  ;;  %v2462_v36 = vmul.f32 %v1087_v38, %v1039_v22  ;;  %v1092_v56 = vrot.slane %v1064_v62, 7  ;;  %v2795_v57 = vld [vmem:[#allocation12_spill] sm:$0xff]  ;;  %v2797_v62 = vld [vmem:[#allocation14_spill] sm:$0xff] }
  0xc5   : >> { %v551_v13 = vpop.xlane.xlu0 %550  ;;  %v2470_v0 = vmul.f32 %v1088_v44, %v1040_v21  ;;  %v2472_v3 = vmul.f32 %v1089_v49, %v1041_v43  ;;  %v2474_v4 = vmul.f32 %v1090_v17, %v1042_v45  ;;  %v1024_v47 = vmul.f32 %v2426_v46, %v2794_v27  ;;  %v2796_v21 = vld [vmem:[#allocation13_spill] sm:$0xff] }
  0xc6   : >> { %v554_v30 = vmul.f32 0.03125, %v551_v13  ;;  %v557_v14 = vmul.f32 %v2451_v7, %v2451_v7  ;;  %v2478_v5 = vmul.f32 %v1092_v56, %v1044_v33  ;;  %v1025_v22 = vmul.f32 %v2426_v46, %v2795_v57  ;;  %v2802_v56 = vld [vmem:[#allocation19_spill] sm:$0xff] }
  0xc7   : >> { %v1026_v43 = vmul.f32 %v2426_v46, %v2796_v21  ;;  %v1027_v55 = vmul.f32 %v2426_v46, %v2797_v62  ;;  %v1028_v51 = vmul.f32 %v2426_v46, %v2798_v29  ;;  %v1072_v13 = vrot.slane %v2432_v28, 1 }
  0xc8   : >> { %v2456_v34 = vsub.f32 %v2046_v37, %v554_v30  ;;  %v559_v50 = vsel %vm545_vm0, %v557_v14, 0.0  ;;  %v1043_v37 = vmul.f32 %v2426_v46, %v2320_v20  ;;  %v1021_v20 = vmul.f32 %v2426_v46, %v2254_v35  ;;  %v2786_v35 = vld [vmem:[#allocation3_spill] sm:$0xff] }
  0xc9   : >> { %560 = vadd.xlane.f32.xlu1 %v559_v50  ;;  %v1014_v1 = vmul.f32 %v2426_v46, %v2786_v35  ;;  %v1073_v30 = vrot.slane %v2432_v28, 2  ;;  %v2799_v50 = vld [vmem:[#allocation16_spill] sm:$0xff]  ;;  %v1076_v44 = vrot.slane %v2432_v28, 5  ;;  %v1077_v49 = vrot.slane %v2432_v28, 6 }
  0xca   : >> { %v558_v18 = vmul.f32 %v2456_v34, %v2456_v34  ;;  %v2476_v11 = vmul.f32 %v1091_v48, %v1043_v37  ;;  %v1031_v38 = vmul.f32 %v2426_v46, %v2799_v50  ;;  %v1078_v45 = vrot.slane %v2432_v28, 7  ;;  %v2800_v37 = vld [vmem:[#allocation17_spill] sm:$0xff]  ;;  %v2801_v48 = vld [vmem:[#allocation18_spill] sm:$0xff] }
  0xcb   : >> { %v1032_v17 = vmul.f32 %v2426_v46, %v2800_v37  ;;  %v2550_v33 = vmul.f32 %v2426_v46, %v2801_v48  ;;  %v1133_v61 = vmul.f32 %v2432_v28, %v1021_v20  ;;  %v1134_v16 = vmul.f32 %v1072_v13, %v1022_v25  ;;  %v591_v25 = vld [vmem:[%s2741_s4 + $0x10] sm:$0xff] }
  0xcc   : >> { %v562_v40 = vsel %vm545_vm0, %v558_v18, 0.0  ;;  %v1074_v18 = vrot.slane %v2432_v28, 3  ;;  %v1135_v27 = vmul.f32 %v1073_v30, %v1023_v26  ;;  %v2573_v20 = vmul.f32 %v1077_v49, %v1027_v55  ;;  %1656 = vmatprep.subr.mxu0 %v591_v25 }
  0xcd   : >> { %563 = vadd.xlane.f32.xlu1 %v562_v40  ;;  %v2506_v31 = vpop.permute.xlu0 %1051  ;;  %v1075_v40 = vrot.slane %v2432_v28, 4  ;;  %v2571_v28 = vmul.f32 %v1076_v44, %v1026_v43  ;;  %v1178_v62 = vrot.slane %v2440_v8, 2  ;;  %v2578_v50 = vmul.f32 %v1078_v45, %v1028_v51  ;;  %1657 = vmatpush3.msra.mxu0 %v591_v25 }
  0xce   : >> { %v1065_v14 = vrot.slane %v2506_v31, 1  ;;  %v1066_v35 = vrot.slane %v2506_v31, 2  ;;  %v2567_v57 = vmul.f32 %v1074_v18, %v1024_v47  ;;  %v1067_v29 = vrot.slane %v2506_v31, 3 }
  0xcf   : >> { %v2569_v21 = vmul.f32 %v1075_v40, %v1025_v22  ;;  %v1079_v26 = vrot.slane %v2442_v52, 1  ;;  %v1184_v22 = vrot.slane %v2444_v24, 1  ;;  %v1180_v43 = vrot.slane %v2440_v8, 4 }
  0xd0   : >> { %v1126_v58 = vmul.f32 %v1065_v14, %v1014_v1  ;;  %v590_v1 = vld [vmem:[%s2741_s4 + $0x8] sm:$0xff]  ;;  %v1127_v47 = vmul.f32 %v1066_v35, %v1015_v53  ;;  %v1125_v55 = vmul.f32 %v2506_v31, %v1013_v10  ;;  %v1181_v13 = vrot.slane %v2440_v8, 5  ;;  %v2595_v53 = vpop.permute.xlu1 %1171 }
  0xd1   : >> { %v1182_v30 = vrot.slane %v2440_v8, 6  ;;  %v1080_v14 = vrot.slane %v2442_v52, 2  ;;  %v1081_v18 = vrot.slane %v2442_v52, 3  ;;  %v1068_v40 = vrot.slane %v2506_v31, 4  ;;  %1658 = vmatprep.subr.mxu0 %v590_v1 }
  0xd2   : >> { %v1238_v51 = vadd.f32 %v1177_v60, %v1126_v58  ;;  %v1141_v10 = vmul.f32 %v2442_v52, %v2489_v6  ;;  %v1128_v49 = vmul.f32 %v1067_v29, %v1016_v15  ;;  %v1082_v45 = vrot.slane %v2442_v52, 4  ;;  %1659 = vmatpush3.msra.mxu0 %v590_v1  ;;  %v1271_v1 = vld [vmem:[%s2744_s7 + $0x10] sm:$0xff] }
  0xd3   : >> { %v1083_v37 = vrot.slane %v2442_v52, 5  ;;  %v1142_v48 = vmul.f32 %v1079_v26, %v2496_v9  ;;  %v1246_v35 = vadd.f32 %v1184_v22, %v1134_v16  ;;  %v1239_v39 = vadd.f32 %v1178_v62, %v1127_v47  ;;  %1660 = vmatprep.subr.mxu0 %v589_v32  ;;  %v1272_v62 = vld [vmem:[%s2744_s7 + $0x18] sm:$0xff] }
  0xd4   : >> { %v1237_v60 = vadd.f32 %v2440_v8, %v1125_v55  ;;  %v1191_v6 = vrot.slane %v2595_v53, 1  ;;  %v1069_v15 = vrot.slane %v2506_v31, 5  ;;  %v1305_v58 = vrot.slane %v1238_v51, 7  ;;  %1661 = vmatpush3.msra.mxu0 %v589_v32  ;;  %1665 = vmatprep.subr.mxu1 %v1272_v62 }
  0xd5   : >> { %v1129_v29 = vmul.f32 %v1068_v40, %v2510_v59  ;;  %v1084_v9 = vrot.slane %v2442_v52, 6  ;;  %v1143_v16 = vmul.f32 %v1080_v14, %v1031_v38  ;;  %v1245_v26 = vadd.f32 %v2444_v24, %v1133_v61  ;;  %1666 = vmatpush3.msra.mxu1 %v1272_v62 }
  0xd6   : >> { %v1186_v22 = vrot.slane %v2444_v24, 3  ;;  %v1144_v59 = vmul.f32 %v1081_v18, %v1032_v17  ;;  %v1192_v55 = vrot.slane %v2595_v53, 2  ;;  %v1070_v38 = vrot.slane %v2506_v31, 6  ;;  %1667 = vmatprep.subr.mxu1 %v1271_v1 }
  0xd7   : >> { %v1307_v51 = vrot.slane %v1239_v39, 6  ;;  %v1254_v40 = vadd.f32 %v1191_v6, %v1142_v48  ;;  %v1130_v32 = vmul.f32 %v1069_v15, %v2514_v41  ;;  %v1306_v25 = vsel %vm752_vm1, %v1305_v58, %v1237_v60  ;;  %1668 = vmatpush3.msra.mxu1 %v1271_v1 }
  0xd8   : >> { %v1319_v44 = vrot.slane %v1246_v35, 7  ;;  %v1241_v61 = vadd.f32 %v1180_v43, %v1129_v29  ;;  %v1188_v17 = vrot.slane %v2444_v24, 5  ;;  %v1145_v18 = vmul.f32 %v1082_v45, %v2550_v33 }
  0xd9   : >> { %v1193_v48 = vrot.slane %v2595_v53, 3  ;;  %v1131_v41 = vmul.f32 %v1070_v38, %v2518_v42  ;;  %v1255_v43 = vadd.f32 %v1192_v55, %v1143_v16  ;;  %v1253_v60 = vadd.f32 %v2595_v53, %v1141_v10 }
  0xda   : >> { %v1242_v6 = vadd.f32 %v1181_v13, %v1130_v32  ;;  %v1320_v15 = vsel %vm752_vm1, %v1319_v44, %v1245_v26  ;;  %v1333_v33 = vrot.slane %v1254_v40, 7  ;;  %v1311_v45 = vrot.slane %v1241_v61, 4 }
  0xdb   : >> { %v1256_v62 = vadd.f32 %v1193_v48, %v1144_v59  ;;  %v1243_v10 = vadd.f32 %v1182_v30, %v1131_v41  ;;  %v1189_v13 = vrot.slane %v2444_v24, 6  ;;  %v1335_v16 = vrot.slane %v1255_v43, 6 }
  0xdc   : >> { %v1313_v1 = vrot.slane %v1242_v6, 3  ;;  %v2805_v30 = vrot.slane %v2440_v8, 7  ;;  %v1190_v55 = vrot.slane %v2444_v24, 7  ;;  %v1196_v40 = vrot.slane %v2595_v53, 6 }
  0xde   : >> { %1175 = vperm.xlu1 %1743, %v1160_v19   ;;  %v2554_v19 = vmul.f32 %v2426_v46, %v2802_v56  ;;  %v1179_v46 = vrot.slane %v2440_v8, 3  ;;  %v1185_v56 = vrot.slane %v2444_v24, 2  ;;  %v2806_v8 = vrot.slane %v2442_v52, 7 }
  0xe0   : >> { %v1240_v47 = vadd.f32 %v1179_v46, %v1128_v49  ;;  %v1247_v14 = vadd.f32 %v1185_v56, %v1135_v27  ;;  %v1187_v46 = vrot.slane %v2444_v24, 4  ;;  %v1071_v49 = vrot.slane %v2506_v31, 7 }
  0xe1   : >> { %v1248_v27 = vadd.f32 %v1186_v22, %v2567_v57  ;;  %v1308_v56 = vsel %vm755_vm2, %v1307_v51, %v1306_v25  ;;  %v1146_v58 = vmul.f32 %v1083_v37, %v2554_v19  ;;  %v1194_v57 = vrot.slane %v2595_v53, 4 }
  0xe2   : >> { %v1309_v39 = vrot.slane %v1240_v47, 5  ;;  %v1321_v35 = vrot.slane %v1247_v14, 6  ;;  %v1249_v31 = vadd.f32 %v1187_v46, %v2569_v21  ;;  %v1132_v29 = vmul.f32 %v1071_v49, %v2522_v63 }
  0xe3   : >> { %v1323_v25 = vrot.slane %v1248_v27, 5  ;;  %v1250_v21 = vadd.f32 %v1188_v17, %v2571_v28  ;;  %v1195_v19 = vrot.slane %v2595_v53, 5  ;;  %v1334_v37 = vsel %vm752_vm1, %v1333_v33, %v1253_v60 }
  0xe4   : >> { %v1310_v42 = vsel %vm758_vm3, %v1309_v39, %v1308_v56  ;;  %v1322_v44 = vsel %vm755_vm2, %v1321_v35, %v1320_v15  ;;  %v1325_v26 = vrot.slane %v1249_v31, 4  ;;  %v1147_v47 = vmul.f32 %v1084_v9, %v2560_v12 }
  0xe5   : >> { %v1312_v63 = vsel %vm761_vm4, %v1311_v45, %v1310_v42  ;;  %v1257_v22 = vadd.f32 %v1194_v57, %v1145_v18  ;;  %v1244_v59 = vadd.f32 %v2805_v30, %v1132_v29  ;;  %v1324_v38 = vsel %vm758_vm3, %v1323_v25, %v1322_v44 }
  0xe6   : >> { %v1337_v51 = vrot.slane %v1256_v62, 5  ;;  %v1315_v14 = vrot.slane %v1243_v10, 2  ;;  %v1251_v28 = vadd.f32 %v1189_v13, %v2573_v20  ;;  %v1336_v32 = vsel %vm755_vm2, %v1335_v16, %v1334_v37  ;;  %v1270_v62 = vld [vmem:[%s2744_s7 + $0x8] sm:$0xff]  ;;  %v1269_v13 = vld [vmem:[%s2744_s7] sm:$0xff] }
  0xe7   : >> { %v1314_v61 = vsel %vm764_vm5, %v1313_v1, %v1312_v63  ;;  %v1327_v46 = vrot.slane %v1250_v21, 3  ;;  %v1258_v12 = vadd.f32 %v1195_v19, %v1146_v58  ;;  %v1326_v9 = vsel %vm761_vm4, %v1325_v26, %v1324_v38  ;;  %1669 = vmatprep.subr.mxu1 %v1270_v62 }
  0xe8   : >> { %v1148_v24 = vmul.f32 %v2806_v8, %v2564_v54  ;;  %v1339_v17 = vrot.slane %v1257_v22, 4  ;;  %v1317_v18 = vrot.slane %v1244_v59, 1  ;;  %v1252_v49 = vadd.f32 %v1190_v55, %v2578_v50  ;;  %1670 = vmatpush3.msra.mxu1 %v1270_v62 }
  0xe9   : >> { %v1197_v20 = vrot.slane %v2595_v53, 7  ;;  %v1338_v39 = vsel %vm758_vm3, %v1337_v51, %v1336_v32  ;;  %v1316_v27 = vsel %vm767_vm6, %v1315_v14, %v1314_v61  ;;  %v1329_v48 = vrot.slane %v1251_v28, 2  ;;  %1671 = vmatprep.subr.mxu1 %v1269_v13 }
  0xea   : >> { %v1259_v41 = vadd.f32 %v1196_v40, %v1147_v47  ;;  %v1328_v56 = vsel %vm764_vm5, %v1327_v46, %v1326_v9  ;;  %v1341_v35 = vrot.slane %v1258_v12, 3  ;;  %v1340_v43 = vsel %vm761_vm4, %v1339_v17, %v1338_v39  ;;  %1672 = vmatpush3.msra.mxu1 %v1269_v13 }
  0xeb   : >> { %v1318_v52 = vsel %vm770_vm7, %v1317_v18, %v1316_v27  ;;  %v1331_v54 = vrot.slane %v1252_v49, 1  ;;  %v1260_v60 = vadd.f32 %v1197_v20, %v1148_v24  ;;  %v1330_v6 = vsel %vm767_vm6, %v1329_v48, %v1328_v56  ;;  %v1633_v24 = vld [vmem:[%s2740_s3] ss:$0 sm:$0xff] }
  0xec   : >> { %v1343_v50 = vrot.slane %v1259_v41, 2  ;;  %v1342_v53 = vsel %vm764_vm5, %v1341_v35, %v1340_v43 }
  0xed   : >> { %v1332_v15 = vsel %vm770_vm7, %v1331_v54, %v1330_v6  ;;  %v1345_v33 = vrot.slane %v1260_v60, 1 }
  0xee   : >> { %v1344_v45 = vsel %vm767_vm6, %v1343_v50, %v1342_v53 }
  0xef   : >> { %v1346_v31 = vsel %vm770_vm7, %v1345_v33, %v1344_v45 }
 0x107   : >> { %1365 = vxpose.xlu1.b32.start [1/4] (short) (narrow) %v1318_v52, 16 }
 0x10b   : >> { %1366 = vxpose.xlu1.b32.cont [2/4] (short) (narrow) %v1332_v15, 16 }
 0x10f   : >> { %1367 = vxpose.xlu1.b32.cont [3/4] (short) (narrow) %v1346_v31, 16  ;;  %v1758_v31 = vld [vmem:[%s2034_s21 + $0x8] sm:$0xff] }
 0x152   : >> { %v561_v58 = vpop.xlane.xlu1 %560 }
 0x153   : >> { %v565_v57 = vmul.f32 0.03125, %v561_v58 }
 0x155   : >> { %v567_v29 = vadd.f32 1e-05, %v565_v57 }
 0x156   : >> { %v564_v42 = vpop.xlane.xlu1 %563 }
 0x157   : >> { %1746 = vrsqrt.f32 %v567_v29  ;;  %v566_v25 = vmul.f32 0.03125, %v564_v42  ;;  %v1759_v29 = vld [vmem:[%s2034_s21] sm:$0xff] }
 0x159   : >> { %v568_v10 = vadd.f32 1e-05, %v566_v25 }
 0x15a   : >> { %v1176_v44 = vpop.permute.xlu1 %1175 }
 0x15b   : >> { %1748 = vrsqrt.f32 %v568_v10  ;;  %v1198_v16 = vrot.slane %v1176_v44, 1  ;;  %v1199_v1 = vrot.slane %v1176_v44, 2  ;;  %v1200_v21 = vrot.slane %v1176_v44, 3 }
 0x15c   : >> { %v1201_v19 = vrot.slane %v1176_v44, 4  ;;  %v1202_v37 = vrot.slane %v1176_v44, 5  ;;  %v1203_v63 = vrot.slane %v1176_v44, 6  ;;  %v1204_v47 = vrot.slane %v1176_v44, 7 }
 0x15d   : >> { %v1262_v26 = vadd.f32 %v1198_v16, %v2448_v23  ;;  %v1263_v22 = vadd.f32 %v1199_v1, %v2462_v36  ;;  %v1264_v30 = vadd.f32 %v1200_v21, %v2470_v0  ;;  %v1261_v55 = vadd.f32 %v1176_v44, %v2446_v2 }
 0x15e   : >> { %v1265_v59 = vadd.f32 %v1201_v19, %v2472_v3  ;;  %v1266_v38 = vadd.f32 %v1202_v37, %v2474_v4  ;;  %v1267_v28 = vadd.f32 %v1203_v63, %v2476_v11  ;;  %v1268_v40 = vadd.f32 %v1204_v47, %v2478_v5  ;;  %v1632_v4 = vld [vmem:[%s2739_s2] ss:$0 sm:$0xff] }
 0x15f   : >> { %v1347_v51 = vrot.slane %v1262_v26, 7  ;;  %v1349_v14 = vrot.slane %v1263_v22, 6  ;;  %v1351_v23 = vrot.slane %v1264_v30, 5 }
 0x160   : >> { %v1353_v36 = vrot.slane %v1265_v59, 4  ;;  %v1355_v46 = vrot.slane %v1266_v38, 3  ;;  %v1357_v12 = vrot.slane %v1267_v28, 2  ;;  %v1359_v5 = vrot.slane %v1268_v40, 1 }
 0x161   : >> { %v1348_v32 = vsel %vm752_vm1, %v1347_v51, %v1261_v55 }
 0x162   : >> { %v1350_v61 = vsel %vm755_vm2, %v1349_v14, %v1348_v32 }
 0x163   : >> { %v1352_v0 = vsel %vm758_vm3, %v1351_v23, %v1350_v61 }
 0x164   : >> { %v1747_v3 = vpop.eup %1746  ;;  %v1354_v2 = vsel %vm761_vm4, %v1353_v36, %v1352_v0 }
 0x165   : >> { %v1356_v11 = vsel %vm764_vm5, %v1355_v46, %v1354_v2  ;;  %v571_v9 = vmul.f32 %v1747_v3, %v2451_v7 }
 0x166   : >> { %v1358_v8 = vsel %vm767_vm6, %v1357_v12, %v1356_v11 }
 0x167   : >> { %v1360_v17 = vsel %vm770_vm7, %v1359_v5, %v1358_v8  ;;  %v579_v18 = vmul.f32 %v1632_v4, %v571_v9 }
 0x168   : >> { %v1749_v49 = vpop.eup %1748  ;;  %1368 = vxpose.xlu1.b32.end [4/4] (short) (narrow) %v1360_v17, 16 }
 0x169   : >> { %v572_v20 = vmul.f32 %v1749_v49, %v2456_v34  ;;  %v587_v39 = vadd.f32 %v1633_v24, %v579_v18 }
 0x16b   : >> { %v580_v27 = vmul.f32 %v1632_v4, %v572_v20  ;;  %1662 = vmatprep.mubr.msk.f32.mxu0 %vm545_vm0, %v587_v39 }
 0x16d   : >> { %v588_v48 = vadd.f32 %v1633_v24, %v580_v27 }
 0x16f   : >> { %1663 = vmatmul.mubr.msk.f32.vlgmr.msra.gmra.mxu0 %vm545_vm0, %v588_v48 }
 0x1d8   : >> { %v1381_v7 = vpop.trf.xlu1 }
 0x1d9   : >> { %1673 = vmatprep.mubr.msk.f32.mxu1 %vm545_vm0, %v1381_v7 }
 0x1dc   : >> { %v1382_v41 = vpop.trf.xlu1 }
 0x1dd   : >> { %1674 = vmatmul.mubr.msk.f32.vlgmr.msra.gmra.mxu1 %vm545_vm0, %v1382_v41 }
 0x22f   : >> { %v1664_v56 = vpop.f32.mrf.mxu0 }
 0x230   : >> { %v1637_v43 = vmul.f32 -1.442695, %v1664_v56 }
 0x231   : >> { %v665_v35 = vpop.f32.mrf.mxu0 }
 0x232   : >> { %v1636_v34 = vmul.f32 -1.442695, %v665_v35  ;;  %1750 = vpow2.f32 %v1637_v43 }
 0x234   : >> { %1752 = vpow2.f32 %v1636_v34 }
 0x23f   : >> { %v1751_v52 = vpop.eup %1750 }
 0x240   : >> { %v681_v60 = vadd.f32 1.0, %v1751_v52 }
 0x241   : >> { %v1753_v54 = vpop.eup %1752 }
 0x242   : >> { %v680_v6 = vadd.f32 1.0, %v1753_v54  ;;  %1754 = vrcp.f32 %v681_v60 }
 0x244   : >> { %1756 = vrcp.f32 %v680_v6 }
 0x24f   : >> { %v1755_v50 = vpop.eup %1754 }
 0x251   : >> { %v1757_v33 = vpop.eup %1756 }
 0x29d   : >> { %v1675_v53 = vpop.f32.mrf.mxu1 }
 0x29e   : >> { %v1479_v15 = vmul.f32 %v1755_v50, %v1675_v53 }
 0x29f   : >> { %v1469_v45 = vpop.f32.mrf.mxu1 }
 0x2a0   : >> { %v1481_v58 = vadd.f32 %v1758_v31, %v1479_v15  ;;  %v1478_v57 = vmul.f32 %v1757_v33, %v1469_v45  ;;  %537 = sbr.rel (!%p535_p12) target bundleno = 52 (0x34), region = 138 }
 0x2a2   : >> { %1484 = vst.msk [vmem:[%s1482_s20 + $0x8] sm:$0xff] %vm545_vm0, %v1481_v58  ;;  %v1480_v42 = vadd.f32 %v1759_v29, %v1478_v57 }
 0x2a4   : >> { %1483 = vst.msk [vmem:[%s1482_s20] sm:$0xff] %vm545_vm0, %v1480_v42 }
 0x2a5 PF: > { %s18_s11 = sadd.s32 1, %s1818_s11   ;;  %s2807_s27 = smov %s1798_s28 }
 0x2a6   : > { %p15_p13 = scmp.ge.s32.totalorder %s18_s11, 6   ;;  %s2808_s28 = smov %s1921_s18 }
 0x2a7   : > { %s2809_s29 = smov %s1810_s9  ;;  %s2810_s30 = smov %s1814_s10 }
 0x2a8   : > { %s2811_s9 = smov %s2814_s12  ;;  %s2812_s10 = smov %s2818_s13 }
 0x2a9   :  { %17 = sbr.rel (!%p15_p13) target bundleno = 4 (0x4), region = 149 }

// kernel: pairwise_block.9
= control target key start
LH: loop header
LB: loop body
LE: loop exit
PB: predicated region body
PF: predicated region fallthrough
CT: control target
= control target key end

     0   :  { %s1932_s21 = smov 0   ;;  %s1934_s22 = smov 0   ;;  %s2486_s0 = inlined_call_operand.vmem [shape: f32[2,16,16,32], index: 0, kind: input, shape index: {}]   ;;  %s2487_s1 = inlined_call_operand.vmem [shape: f32[2,1,16], index: 1, kind: input, shape index: {}]   ;;  %s2488_s2 = inlined_call_operand.vmem [shape: f32[1,32], index: 2, kind: input, shape index: {}]   ;;  %s2489_s3 = inlined_call_operand.vmem [shape: f32[1,32], index: 3, kind: input, shape index: {}]   ;;  %s2490_s4 = inlined_call_operand.vmem [shape: f32[128,32], index: 4, kind: input, shape index: {}]   ;;  %s2491_s5 = inlined_call_operand.vmem [shape: f32[2,32,16,16], index: 5, kind: output, shape index: {0}]   ;;  %s2492_s6 = inlined_call_operand.vmem [shape: f32[2,32,16,16], index: 6, kind: output, shape index: {1}]  }
   0x1   :  { %s1936_s23 = smov 0   ;;  %s1938_s24 = smov 0  }
   0x2   :  { %s1940_s25 = smov 0   ;;  %s1942_s26 = smov 0  }
   0x3   :  { %s1944_s27 = smov 0  }
   0x4 LB: > { %s26_s28 = sadd.s32 1, %s1882_s25  ;;  %s29_s29 = sadd.s32 1, %s1886_s26  ;;  %s1890_s27 = sphi %s1944_s27, %s17_s27   ;;  %s1886_s26 = sphi %s1942_s26, %s2505_s26   ;;  %s1882_s25 = sphi %s1940_s25, %s2504_s25   ;;  %s1878_s24 = sphi %s1938_s24, %s2503_s24   ;;  %s1874_s23 = sphi %s1936_s23, %s2502_s23   ;;  %s1870_s22 = sphi %s1934_s22, %s2501_s22   ;;  %s1866_s21 = sphi %s1932_s21, %s2500_s21  }
   0x5   : > { %p27_p0 = scmp.ge.s32.totalorder %s26_s28, 2  ;;  %s1632_s30 = sadd.s32 4294967295, %s1890_s27  }
   0x6   : > { %p165_p1 = scmp.ne.s32.totalorder %s1870_s22, %s1866_s21  ;;  %p166_p2 = scmp.eq.s32.totalorder %s1632_s30, 3 }
   0x7   : > { %s2507_s28 = smov (%p27_p0, %s26_s28), 0  ;;  %s2509_s29 = smov (!%p27_p0, %s29_s29), %s1886_s26 }
   0x8   : > { %2495 = sst [smem:[#allocation4_spill]] %s2507_s28  ;;  %s151_s7 = ssub.s32 %s1882_s25, %s2507_s28 }
   0x9   : > { %p31_p3 = scmp.ge.s32.totalorder %s2509_s29, 2  ;;  %p1636_p4 = scmp.ge.s32.totalorder %s1890_s27, 1 }
   0xa   : > { %p1978_p5 = por %p166_p2, %p165_p1  ;;  %p247_p6 = scmp.lt.s32.totalorder %s1890_s27, 5 }
   0xb   : > { %s2511_s29 = smov (%p31_p3, %s2509_s29), 0  ;;  %s155_s11 = sadd.s32 1, %s1870_s22 }
   0xc   : > { %2497 = sst [smem:[#allocation5_spill]] %s2511_s29  ;;  %p248_p7 = pnand %p1636_p4, %p247_p6 }
   0xd   : > { %s150_s9 = ssub.s32 %s1886_s26, %s2511_s29  ;;  %s279_s13 = sand.u32 (!%p248_p7), 1, %s1866_s21  }
   0xe   : > { %s152_s10 = sor.u32 %s151_s7, %s150_s9  ;;  %251 = sbr.rel (%p248_p7) target bundleno = 666 (0x29a), region = 40 }
   0xf   : > { %p153_p8 = scmp.eq.s32.totalorder %s152_s10, 0  ;;  %s1639_s14 = sshll.u32 (!%p248_p7), %s1874_s23, 3 }
  0x10   : > { %s1637_s15 = sshll.u32 (!%p248_p7), %s279_s13, 8  ;;  %p289_p9 = scmp.lt.s32.totalorder (!%p248_p7), %s1878_s24, 1 }
  0x11   : > { %s1989_s12 = scalar_select %p153_p8, %s1870_s22, %s155_s11  }
  0x12   : > { %p291_p10 = scmp.lt.s32.totalorder (!%p248_p7), %s1639_s14, 15  ;;  %s2005_s13 = scalar_lea.vmem (!%p248_p7), [#allocation2], %s1637_s15 }
  0x13   : > { %s290_s16 = scalar_select %p289_p9, %s1878_s24, 1 }
  0x14   : > { %s2513_s14 = smov (!%p291_p10, %s1639_s14), 15  ;;  %s2007_s29 = scalar_lea.vmem [#allocation3], %s1637_s15 }
  0x15   : > { %s1641_s17 = sshll.u32 %s290_s16, 5  ;;  %s301_s20 = scalar_lea.vmem %s2487_s1, %s290_s16 }
  0x16   : > { %v1998_v0 = vld [vmem:[%s301_s20] ss:$0 sm:$0xff]  ;;  %s1640_s30 = sshll.u32 %s2513_s14, 1  ;;  %s2009_s28 = smov 0  }
  0x17   : > { %s295_s7 = sadd.s32 %s1641_s17, %s1640_s30 }
  0x18   : > { %s1642_s9 = sshll.u32 %s295_s7, 3 }
  0x19   : > { %s2003_s21 = scalar_lea.vmem %s2486_s0, %s1642_s9 }
  0x1a LB: >> { %s1643_s14 = sshll.u32 %s1894_s28, 4  ;;  %vm315_vm0 = vcmask 261120   ;;  %v359_v15 = vld [vmem:[%s2490_s4] sm:$0xff]  ;;  %v360_v33 = vld [vmem:[%s2490_s4 + $0x8] sm:$0xff]  ;;  %v361_v35 = vld [vmem:[%s2490_s4 + $0x10] sm:$0xff]  ;;  %vm877_vm1 = vcmask 122880   ;;  %s2124_s15 = scalar_lea.vmem %s2005_s13, %s1894_s28 [#allocation2]  ;;  %s1894_s28 = sphi %s2009_s28, %s308_s28  }
  0x1b   : >> { %s310_s16 = scalar_lea.vmem %s2003_s21, %s1643_s14  ;;  %v367_v16 = vld [vmem:[%s2490_s4 + $0x40] sm:$0xff]  ;;  %1703 = vmatprep.mubr.msk.f32.mxu0 %vm315_vm0, %v359_v15  ;;  %v368_v34 = vld [vmem:[%s2490_s4 + $0x48] sm:$0xff]  ;;  %v369_v36 = vld [vmem:[%s2490_s4 + $0x50] sm:$0xff]  ;;  %s2133_s17 = scalar_lea.vmem %s2007_s29, %s1894_s28 [#allocation3] }
  0x1c   : >> { %v312_v1 = vld [vmem:[%s310_s16 + $0x8] sm:$0xff]  ;;  %v311_v2 = vld [vmem:[%s310_s16] sm:$0xff]  ;;  %1715 = vmatprep.mubr.msk.f32.mxu1 %vm315_vm0, %v367_v16  ;;  %v362_v37 = vld [vmem:[%s2490_s4 + $0x18] sm:$0xff]  ;;  %s308_s28 = sadd.s32 1, %s1894_s28  }
  0x1d   : >> { %v319_v3 = vsel %vm315_vm0, %v312_v1, 0.0  ;;  %v316_v4 = vsel %vm315_vm0, %v311_v2, 0.0  ;;  %v1644_v24 = vld [vmem:[%s2488_s2] ss:$0 sm:$0xff]  ;;  %v370_v38 = vld [vmem:[%s2490_s4 + $0x58] sm:$0xff]  ;;  %v364_v41 = vld [vmem:[%s2490_s4 + $0x28] sm:$0xff] }
  0x1e   : >> { %320 = vadd.xlane.f32.xlu0 %v319_v3  ;;  %v1645_v26 = vld [vmem:[%s2489_s3] ss:$0 sm:$0xff]  ;;  %v372_v42 = vld [vmem:[%s2490_s4 + $0x68] sm:$0xff]  ;;  %v365_v43 = vld [vmem:[%s2490_s4 + $0x30] sm:$0xff]  ;;  %p305_p11 = scmp.ge.s32.totalorder %s308_s28, 8  }
  0x1f   : >> { %v363_v39 = vld [vmem:[%s2490_s4 + $0x20] sm:$0xff]  ;;  %v373_v44 = vld [vmem:[%s2490_s4 + $0x70] sm:$0xff]  ;;  %v366_v45 = vld [vmem:[%s2490_s4 + $0x38] sm:$0xff] }
  0x20   : >> { %v371_v40 = vld [vmem:[%s2490_s4 + $0x60] sm:$0xff]  ;;  %v374_v46 = vld [vmem:[%s2490_s4 + $0x78] sm:$0xff] }
  0x22   : >> { %317 = vadd.xlane.f32.xlu0 %v316_v4 }
  0xa7   : >> { %v321_v5 = vpop.xlane.xlu0 %320 }
  0xa8   : >> { %v324_v6 = vmul.f32 0.03125, %v321_v5 }
  0xaa   : >> { %v326_v7 = vsub.f32 %v312_v1, %v324_v6 }
  0xab   : >> { %v318_v8 = vpop.xlane.xlu0 %317 }
  0xac   : >> { %v323_v9 = vmul.f32 0.03125, %v318_v8  ;;  %v328_v10 = vmul.f32 %v326_v7, %v326_v7 }
  0xae   : >> { %v325_v11 = vsub.f32 %v311_v2, %v323_v9  ;;  %v332_v12 = vsel %vm315_vm0, %v328_v10, 0.0 }
  0xaf   : >> { %333 = vadd.xlane.f32.xlu1 %v332_v12 }
  0xb0   : >> { %v327_v13 = vmul.f32 %v325_v11, %v325_v11 }
  0xb2   : >> { %v329_v14 = vsel %vm315_vm0, %v327_v13, 0.0 }
  0xb3   : >> { %330 = vadd.xlane.f32.xlu1 %v329_v14 }
 0x138   : >> { %v334_v17 = vpop.xlane.xlu1 %333 }
 0x139   : >> { %v336_v18 = vmul.f32 0.03125, %v334_v17 }
 0x13b   : >> { %v338_v19 = vadd.f32 1e-05, %v336_v18 }
 0x13c   : >> { %v331_v20 = vpop.xlane.xlu1 %330 }
 0x13d   : >> { %1796 = vrsqrt.f32 %v338_v19  ;;  %v335_v21 = vmul.f32 0.03125, %v331_v20  ;;  %v1896_v20 = vmov 1966171168  }
 0x13f   : >> { %v337_v22 = vadd.f32 1e-05, %v335_v21  ;;  %v650_v21 = vunpack.c.l.s4 %v1896_v20 }
 0x141   : >> { %1798 = vrsqrt.f32 %v337_v22  ;;  %v652_v22 = vlaneseq }
 0x14a   : >> { %v1797_v23 = vpop.eup %1796 }
 0x14b   : >> { %v342_v25 = vmul.f32 %v1797_v23, %v326_v7 }
 0x14d   : >> { %v350_v27 = vmul.f32 %v1644_v24, %v342_v25  ;;  %v651_v25 = vunpack.c.0.s8 %v650_v21 }
 0x14e   : >> { %v1799_v28 = vpop.eup %1798 }
 0x14f   : >> { %v358_v29 = vadd.f32 %v1645_v26, %v350_v27  ;;  %v341_v30 = vmul.f32 %v1799_v28, %v325_v11 }
 0x151   : >> { %1699 = vmatprep.subr.msk.mxu0 %vm315_vm0, %v358_v29  ;;  %1727 = vmatprep.subr.msk.mxu1 %vm315_vm0, %v358_v29  ;;  %v349_v31 = vmul.f32 %v1644_v24, %v341_v30 }
 0x152   : >> { %1700 = vmatpush3.xpose.msk.msra.mxu0 %vm315_vm0, %v358_v29  ;;  %1729 = vmatpush3.xpose.msk.msra.mxu1 %vm315_vm0, %v358_v29 }
 0x153   : >> { %v357_v32 = vadd.f32 %v1645_v26, %v349_v31  ;;  %v653_v26 = vshrl.u32 %v652_v22, 7 }
 0x155   : >> { %1701 = vmatprep.subr.msk.mxu0 %vm315_vm0, %v357_v32  ;;  %1728 = vmatprep.subr.msk.mxu1 %vm315_vm0, %v357_v32 }
 0x156   : >> { %1702 = vmatpush3.xpose.msk.msra.mxu0 %vm315_vm0, %v357_v32  ;;  %1730 = vmatpush3.xpose.msk.msra.mxu1 %vm315_vm0, %v357_v32  ;;  %v2112_v32 = vsub.s32 %v651_v25, %v653_v26 }
 0x159   : >> { %1704 = vmatmul.mubr.msk.f32.vlgmr.msra.gmra.mxu0 %vm315_vm0, %v360_v33  ;;  %1716 = vmatmul.mubr.msk.f32.vlgmr.msra.gmra.mxu1 %vm315_vm0, %v368_v34 }
 0x15a   : >> { %1706 = vmatprep.mubr.msk.f32.mxu0 %vm315_vm0, %v361_v35  ;;  %1718 = vmatprep.mubr.msk.f32.mxu1 %vm315_vm0, %v369_v36 }
 0x15d   : >> { %1707 = vmatmul.mubr.msk.f32.gmra.mxu0 %vm315_vm0, %v362_v37  ;;  %1719 = vmatmul.mubr.msk.f32.gmra.mxu1 %vm315_vm0, %v370_v38 }
 0x15e   : >> { %1709 = vmatprep.mubr.msk.f32.mxu0 %vm315_vm0, %v363_v39  ;;  %1721 = vmatprep.mubr.msk.f32.mxu1 %vm315_vm0, %v371_v40 }
 0x161   : >> { %1710 = vmatmul.mubr.msk.f32.gmra.mxu0 %vm315_vm0, %v364_v41  ;;  %1722 = vmatmul.mubr.msk.f32.gmra.mxu1 %vm315_vm0, %v372_v42 }
 0x162   : >> { %1712 = vmatprep.mubr.msk.f32.mxu0 %vm315_vm0, %v365_v43  ;;  %1724 = vmatprep.mubr.msk.f32.mxu1 %vm315_vm0, %v373_v44 }
 0x165   : >> { %1713 = vmatmul.mubr.msk.f32.gmra.mxu0 %vm315_vm0, %v366_v45  ;;  %1725 = vmatmul.mubr.msk.f32.gmra.mxu1 %vm315_vm0, %v374_v46 }
 0x219   : >> { %v1705_v47 = vpop.f32.mrf.mxu0  ;;  %v2098_v48 = vpop.f32.mrf.mxu1 }
 0x21b   : >> { %v2100_v49 = vpop.f32.mrf.mxu0  ;;  %v2102_v50 = vpop.f32.mrf.mxu1 }
 0x21d   : >> { %v2104_v51 = vpop.f32.mrf.mxu0  ;;  %v2106_v52 = vpop.f32.mrf.mxu1 }
 0x21f   : >> { %v2108_v53 = vpop.f32.mrf.mxu0  ;;  %v2110_v54 = vpop.f32.mrf.mxu1 }
 0x221   : >> { %v1711_v55 = vpop.f32.mrf.mxu0  ;;  %v1723_v56 = vpop.f32.mrf.mxu1 }
 0x222   : >> { %v1665_v57 = vmul.f32 -1.442695, %v1711_v55  ;;  %v1670_v58 = vmul.f32 -1.442695, %v1723_v56 }
 0x223   : >> { %v515_v59 = vpop.f32.mrf.mxu0  ;;  %v555_v60 = vpop.f32.mrf.mxu1 }
 0x224   : >> { %1800 = vpow2.f32 %v1665_v57  ;;  %v1664_v61 = vmul.f32 -1.442695, %v515_v59  ;;  %v1669_v62 = vmul.f32 -1.442695, %v555_v60 }
 0x225   : >> { %1802 = vpow2.f32 %v1670_v58  ;;  %v1714_v63 = vpop.f32.mrf.mxu0  ;;  %v1726_v1 = vpop.f32.mrf.mxu1 }
 0x226   : >> { %1804 = vpow2.f32 %v1664_v61  ;;  %v1667_v2 = vmul.f32 -1.442695, %v1714_v63  ;;  %v1672_v3 = vmul.f32 -1.442695, %v1726_v1 }
 0x227   : >> { %1806 = vpow2.f32 %v1669_v62  ;;  %v525_v4 = vpop.f32.mrf.mxu0  ;;  %v565_v5 = vpop.f32.mrf.mxu1 }
 0x228   : >> { %1808 = vpow2.f32 %v1667_v2  ;;  %v1666_v6 = vmul.f32 -1.442695, %v525_v4  ;;  %v1671_v7 = vmul.f32 -1.442695, %v565_v5 }
 0x229   : >> { %1810 = vpow2.f32 %v1672_v3 }
 0x22a   : >> { %1812 = vpow2.f32 %v1666_v6 }
 0x22b   : >> { %1814 = vpow2.f32 %v1671_v7 }
 0x231   : >> { %v1801_v8 = vpop.eup %1800 }
 0x232   : >> { %v1803_v9 = vpop.eup %1802  ;;  %v587_v10 = vadd.f32 1.0, %v1801_v8 }
 0x233   : >> { %v1805_v11 = vpop.eup %1804  ;;  %v625_v12 = vadd.f32 1.0, %v1803_v9 }
 0x234   : >> { %v1807_v13 = vpop.eup %1806  ;;  %1816 = vrcp.f32 %v587_v10  ;;  %v586_v14 = vadd.f32 1.0, %v1805_v11 }
 0x235   : >> { %v1809_v15 = vpop.eup %1808  ;;  %1818 = vrcp.f32 %v625_v12  ;;  %v624_v16 = vadd.f32 1.0, %v1807_v13 }
 0x236   : >> { %v1811_v17 = vpop.eup %1810  ;;  %1820 = vrcp.f32 %v586_v14  ;;  %v589_v18 = vadd.f32 1.0, %v1809_v15 }
 0x237   : >> { %1822 = vrcp.f32 %v624_v16  ;;  %v627_v19 = vadd.f32 1.0, %v1811_v17  ;;  %v1813_v23 = vpop.eup %1812 }
 0x238   : >> { %1824 = vrcp.f32 %v589_v18  ;;  %v1815_v24 = vpop.eup %1814  ;;  %v588_v27 = vadd.f32 1.0, %v1813_v23 }
 0x239   : >> { %1826 = vrcp.f32 %v627_v19  ;;  %v626_v29 = vadd.f32 1.0, %v1815_v24 }
 0x23a   : >> { %1828 = vrcp.f32 %v588_v27 }
 0x23b   : >> { %1830 = vrcp.f32 %v626_v29 }
 0x241   : >> { %v1817_v28 = vpop.eup %1816 }
 0x242   : >> { %v1819_v30 = vpop.eup %1818  ;;  %v599_v31 = vmul.f32 %v1817_v28, %v1705_v47 }
 0x243   : >> { %v1821_v33 = vpop.eup %1820  ;;  %v637_v34 = vmul.f32 %v1819_v30, %v2098_v48 }
 0x244   : >> { %v1823_v35 = vpop.eup %1822  ;;  %v609_v36 = vmul.f32 %v1998_v0, %v599_v31  ;;  %v598_v37 = vmul.f32 %v1821_v33, %v2100_v49 }
 0x245   : >> { %v1825_v38 = vpop.eup %1824  ;;  %v641_v39 = vmul.f32 %v1998_v0, %v637_v34  ;;  %v636_v40 = vmul.f32 %v1823_v35, %v2102_v50 }
 0x246   : >> { %v1827_v41 = vpop.eup %1826  ;;  %v697_v42 = vcombine.high %v609_v36, %v609_v36  ;;  %v704_v43 = vrot.slane %v609_v36, %v2112_v32  ;;  %v608_v44 = vmul.f32 %v1998_v0, %v598_v37  ;;  %v601_v45 = vmul.f32 %v1825_v38, %v2104_v51 }
 0x247   : >> { %v963_v46 = vcombine.high %v641_v39, %v641_v39  ;;  %v970_v47 = vrot.slane %v641_v39, %v2112_v32  ;;  %v640_v48 = vmul.f32 %v1998_v0, %v636_v40  ;;  %v2129_v49 = vmul.f32 %v1827_v41, %v2106_v52  ;;  %v1829_v25 = vpop.eup %1828 }
 0x248   : >> { %v711_v50 = vrot.slane %v697_v42, %v2112_v32  ;;  %v712_v55 = vcombine.high %v704_v43, %v704_v43  ;;  %v720_v56 = vrot.slane %v704_v43, %v2112_v32  ;;  %v648_v51 = vcombine.high %v608_v44, %v608_v44  ;;  %v1831_v30 = vpop.eup %1830 }
 0x249   : >> { %v977_v57 = vrot.slane %v963_v46, %v2112_v32  ;;  %v978_v58 = vcombine.high %v970_v47, %v970_v47  ;;  %v986_v59 = vrot.slane %v970_v47, %v2112_v32  ;;  %v655_v60 = vrot.slane %v608_v44, %v2112_v32 }
 0x24a   : >> { %v713_v52 = vcombine.high %v711_v50, %v711_v50  ;;  %v727_v61 = vrot.slane %v711_v50, %v2112_v32  ;;  %v734_v62 = vrot.slane %v712_v55, %v2112_v32  ;;  %v742_v63 = vcombine.high %v720_v56, %v720_v56  ;;  %886 = vst.msk [vmem:[%s2124_s15 + $0x40] sm:$0x1] %vm877_vm1, %v720_v56 }
 0x24b   : >> { %v979_v1 = vcombine.high %v977_v57, %v977_v57  ;;  %v993_v2 = vrot.slane %v977_v57, %v2112_v32  ;;  %v1000_v3 = vrot.slane %v978_v58, %v2112_v32  ;;  %v1008_v4 = vcombine.high %v986_v59, %v986_v59  ;;  %1151 = vst.msk [vmem:[%s2133_s17 + $0x40] sm:$0x1] %vm877_vm1, %v986_v59 }
 0x24c   : >> { %v741_v5 = vrot.slane %v713_v52, %v2112_v32  ;;  %v743_v6 = vcombine.high %v727_v61, %v727_v61  ;;  %v744_v7 = vcombine.high %v734_v62, %v734_v62  ;;  %887 = vst.msk [vmem:[%s2124_s15 + $0x48] sm:$0x1] %vm877_vm1, %v734_v62  ;;  %888 = vst.msk [vmem:[%s2124_s15 + $0x50] sm:$0x1] %vm877_vm1, %v742_v63 }
 0x24d   : >> { %890 = vst.msk [vmem:[%s2124_s15 + $0x60] sm:$0x1] %vm877_vm1, %v727_v61  ;;  %v662_v8 = vrot.slane %v648_v51, %v2112_v32  ;;  %v1007_v9 = vrot.slane %v979_v1, %v2112_v32  ;;  %v1009_v10 = vcombine.high %v993_v2, %v993_v2  ;;  %v1010_v11 = vcombine.high %v1000_v3, %v1000_v3 }
 0x24e   : >> { %1152 = vst.msk [vmem:[%s2133_s17 + $0x48] sm:$0x1] %vm877_vm1, %v1000_v3  ;;  %1153 = vst.msk [vmem:[%s2133_s17 + $0x50] sm:$0x1] %vm877_vm1, %v1008_v4  ;;  %v663_v12 = vcombine.high %v655_v60, %v655_v60  ;;  %v745_v13 = vcombine.high %v741_v5, %v741_v5  ;;  %v671_v15 = vrot.slane %v655_v60, %v2112_v32 }
 0x24f   : >> { %1155 = vst.msk [vmem:[%s2133_s17 + $0x60] sm:$0x1] %vm877_vm1, %v993_v2  ;;  %889 = vst.msk [vmem:[%s2124_s15 + $0x58] sm:$0x1] %vm877_vm1, %v744_v7  ;;  %v664_v14 = vcombine.high %v662_v8, %v662_v8  ;;  %v678_v16 = vrot.slane %v662_v8, %v2112_v32  ;;  %v1011_v17 = vcombine.high %v1007_v9, %v1007_v9 }
 0x250   : >> { %891 = vst.msk [vmem:[%s2124_s15 + $0x68] sm:$0x1] %vm877_vm1, %v741_v5  ;;  %892 = vst.msk [vmem:[%s2124_s15 + $0x70] sm:$0x1] %vm877_vm1, %v743_v6  ;;  %v685_v18 = vrot.slane %v663_v12, %v2112_v32  ;;  %v914_v19 = vcombine.high %v640_v48, %v640_v48  ;;  %v921_v20 = vrot.slane %v640_v48, %v2112_v32 }
 0x251   : >> { %1154 = vst.msk [vmem:[%s2133_s17 + $0x58] sm:$0x1] %vm877_vm1, %v1010_v11  ;;  %1156 = vst.msk [vmem:[%s2133_s17 + $0x68] sm:$0x1] %vm877_vm1, %v1007_v9  ;;  %v692_v21 = vrot.slane %v664_v14, %v2112_v32  ;;  %v693_v22 = vcombine.high %v671_v15, %v671_v15  ;;  %v694_v23 = vcombine.high %v678_v16, %v678_v16 }
 0x252   : >> { %1157 = vst.msk [vmem:[%s2133_s17 + $0x70] sm:$0x1] %vm877_vm1, %v1009_v10  ;;  %893 = vst.msk [vmem:[%s2124_s15 + $0x78] sm:$0x1] %vm877_vm1, %v745_v13  ;;  %v611_v24 = vmul.f32 %v1998_v0, %v601_v45  ;;  %v695_v26 = vcombine.high %v685_v18, %v685_v18  ;;  %v928_v27 = vrot.slane %v914_v19, %v2112_v32 }
 0x253   : >> { %878 = vst.msk [vmem:[%s2124_s15] sm:$0x1] %vm877_vm1, %v671_v15  ;;  %882 = vst.msk [vmem:[%s2124_s15 + $0x20] sm:$0x1] %vm877_vm1, %v678_v16  ;;  %v929_v28 = vcombine.high %v921_v20, %v921_v20  ;;  %v937_v29 = vrot.slane %v921_v20, %v2112_v32  ;;  %v696_v31 = vcombine.high %v692_v21, %v692_v21 }
 0x254   : >> { %1158 = vst.msk [vmem:[%s2133_s17 + $0x78] sm:$0x1] %vm877_vm1, %v1011_v17  ;;  %879 = vst.msk [vmem:[%s2124_s15 + $0x8] sm:$0x1] %vm877_vm1, %v685_v18  ;;  %v795_v33 = vcombine.high %v611_v24, %v611_v24  ;;  %v802_v34 = vrot.slane %v611_v24, %v2112_v32  ;;  %v643_v35 = vmul.f32 %v1998_v0, %v2129_v49 }
 0x255   : >> { %880 = vst.msk [vmem:[%s2124_s15 + $0x10] sm:$0x1] %vm877_vm1, %v693_v22  ;;  %883 = vst.msk [vmem:[%s2124_s15 + $0x28] sm:$0x1] %vm877_vm1, %v692_v21  ;;  %v930_v36 = vcombine.high %v928_v27, %v928_v27  ;;  %v944_v37 = vrot.slane %v928_v27, %v2112_v32  ;;  %v951_v38 = vrot.slane %v929_v28, %v2112_v32 }
 0x256   : >> { %884 = vst.msk [vmem:[%s2124_s15 + $0x30] sm:$0x1] %vm877_vm1, %v694_v23  ;;  %881 = vst.msk [vmem:[%s2124_s15 + $0x18] sm:$0x1] %vm877_vm1, %v695_v26  ;;  %v959_v39 = vcombine.high %v937_v29, %v937_v29  ;;  %v809_v40 = vrot.slane %v795_v33, %v2112_v32  ;;  %v810_v41 = vcombine.high %v802_v34, %v802_v34 }
 0x257   : >> { %1143 = vst.msk [vmem:[%s2133_s17] sm:$0x1] %vm877_vm1, %v937_v29  ;;  %885 = vst.msk [vmem:[%s2124_s15 + $0x38] sm:$0x1] %vm877_vm1, %v696_v31  ;;  %v818_v42 = vrot.slane %v802_v34, %v2112_v32  ;;  %v1061_v43 = vcombine.high %v643_v35, %v643_v35  ;;  %v958_v44 = vrot.slane %v930_v36, %v2112_v32 }
 0x258   : >> { %v960_v45 = vcombine.high %v944_v37, %v944_v37  ;;  %v961_v46 = vcombine.high %v951_v38, %v951_v38  ;;  %1144 = vst.msk [vmem:[%s2133_s17 + $0x8] sm:$0x1] %vm877_vm1, %v951_v38  ;;  %1145 = vst.msk [vmem:[%s2133_s17 + $0x10] sm:$0x1] %vm877_vm1, %v959_v39  ;;  %v1068_v47 = vrot.slane %v643_v35, %v2112_v32 }
 0x259   : >> { %1147 = vst.msk [vmem:[%s2133_s17 + $0x20] sm:$0x1] %vm877_vm1, %v944_v37  ;;  %v811_v48 = vcombine.high %v809_v40, %v809_v40  ;;  %v825_v49 = vrot.slane %v809_v40, %v2112_v32  ;;  %v832_v50 = vrot.slane %v810_v41, %v2112_v32  ;;  %v840_v55 = vcombine.high %v818_v42, %v818_v42 }
 0x25a   : >> { %902 = vst.msk [vmem:[%s2124_s15 + $0xc0] sm:$0x1] %vm877_vm1, %v818_v42  ;;  %v962_v56 = vcombine.high %v958_v44, %v958_v44  ;;  %1146 = vst.msk [vmem:[%s2133_s17 + $0x18] sm:$0x1] %vm877_vm1, %v961_v46  ;;  %v1075_v51 = vrot.slane %v1061_v43, %v2112_v32  ;;  %v1076_v57 = vcombine.high %v1068_v47, %v1068_v47 }
 0x25b   : >> { %1148 = vst.msk [vmem:[%s2133_s17 + $0x28] sm:$0x1] %vm877_vm1, %v958_v44  ;;  %1149 = vst.msk [vmem:[%s2133_s17 + $0x30] sm:$0x1] %vm877_vm1, %v960_v45  ;;  %v1084_v58 = vrot.slane %v1068_v47, %v2112_v32  ;;  %v839_v59 = vrot.slane %v811_v48, %v2112_v32  ;;  %v841_v60 = vcombine.high %v825_v49, %v825_v49 }
 0x25c   : >> { %v842_v52 = vcombine.high %v832_v50, %v832_v50  ;;  %903 = vst.msk [vmem:[%s2124_s15 + $0xc8] sm:$0x1] %vm877_vm1, %v832_v50  ;;  %904 = vst.msk [vmem:[%s2124_s15 + $0xd0] sm:$0x1] %vm877_vm1, %v840_v55  ;;  %v600_v61 = vmul.f32 %v1829_v25, %v2108_v53  ;;  %v1077_v62 = vcombine.high %v1075_v51, %v1075_v51 }
 0x25d   : >> { %906 = vst.msk [vmem:[%s2124_s15 + $0xe0] sm:$0x1] %vm877_vm1, %v825_v49  ;;  %1150 = vst.msk [vmem:[%s2133_s17 + $0x38] sm:$0x1] %vm877_vm1, %v962_v56  ;;  %v1091_v63 = vrot.slane %v1075_v51, %v2112_v32  ;;  %v1098_v1 = vrot.slane %v1076_v57, %v2112_v32  ;;  %v1106_v2 = vcombine.high %v1084_v58, %v1084_v58 }
 0x25e   : >> { %1167 = vst.msk [vmem:[%s2133_s17 + $0xc0] sm:$0x1] %vm877_vm1, %v1084_v58  ;;  %v843_v3 = vcombine.high %v839_v59, %v839_v59  ;;  %905 = vst.msk [vmem:[%s2124_s15 + $0xd8] sm:$0x1] %vm877_vm1, %v842_v52  ;;  %v610_v53 = vmul.f32 %v1998_v0, %v600_v61  ;;  %v638_v4 = vmul.f32 %v1831_v30, %v2110_v54 }
 0x25f   : >> { %907 = vst.msk [vmem:[%s2124_s15 + $0xe8] sm:$0x1] %vm877_vm1, %v839_v59  ;;  %908 = vst.msk [vmem:[%s2124_s15 + $0xf0] sm:$0x1] %vm877_vm1, %v841_v60  ;;  %v1105_v5 = vrot.slane %v1077_v62, %v2112_v32  ;;  %v1107_v6 = vcombine.high %v1091_v63, %v1091_v63  ;;  %v1108_v7 = vcombine.high %v1098_v1, %v1098_v1 }
 0x260   : >> { %1168 = vst.msk [vmem:[%s2133_s17 + $0xc8] sm:$0x1] %vm877_vm1, %v1098_v1  ;;  %1169 = vst.msk [vmem:[%s2133_s17 + $0xd0] sm:$0x1] %vm877_vm1, %v1106_v2  ;;  %v746_v8 = vcombine.high %v610_v53, %v610_v53  ;;  %v753_v9 = vrot.slane %v610_v53, %v2112_v32  ;;  %v642_v10 = vmul.f32 %v1998_v0, %v638_v4 }
 0x261   : >> { %1171 = vst.msk [vmem:[%s2133_s17 + $0xe0] sm:$0x1] %vm877_vm1, %v1091_v63  ;;  %909 = vst.msk [vmem:[%s2124_s15 + $0xf8] sm:$0x1] %vm877_vm1, %v843_v3  ;;  %v1109_v54 = vcombine.high %v1105_v5, %v1105_v5 }
 0x262   : >> { %1170 = vst.msk [vmem:[%s2133_s17 + $0xd8] sm:$0x1] %vm877_vm1, %v1108_v7  ;;  %1172 = vst.msk [vmem:[%s2133_s17 + $0xe8] sm:$0x1] %vm877_vm1, %v1105_v5  ;;  %v760_v11 = vrot.slane %v746_v8, %v2112_v32  ;;  %v761_v12 = vcombine.high %v753_v9, %v753_v9  ;;  %v769_v13 = vrot.slane %v753_v9, %v2112_v32 }
 0x263   : >> { %1173 = vst.msk [vmem:[%s2133_s17 + $0xf0] sm:$0x1] %vm877_vm1, %v1107_v6  ;;  %v1012_v14 = vcombine.high %v642_v10, %v642_v10  ;;  %1174 = vst.msk [vmem:[%s2133_s17 + $0xf8] sm:$0x1] %vm877_vm1, %v1109_v54  ;;  %v1019_v15 = vrot.slane %v642_v10, %v2112_v32 }
 0x264   : >> { %v762_v16 = vcombine.high %v760_v11, %v760_v11  ;;  %v776_v17 = vrot.slane %v760_v11, %v2112_v32  ;;  %v783_v18 = vrot.slane %v761_v12, %v2112_v32  ;;  %v791_v19 = vcombine.high %v769_v13, %v769_v13  ;;  %894 = vst.msk [vmem:[%s2124_s15 + $0x80] sm:$0x1] %vm877_vm1, %v769_v13 }
 0x265   : >> { %v1026_v20 = vrot.slane %v1012_v14, %v2112_v32  ;;  %v1027_v21 = vcombine.high %v1019_v15, %v1019_v15  ;;  %v1035_v22 = vrot.slane %v1019_v15, %v2112_v32 }
 0x266   : >> { %v790_v23 = vrot.slane %v762_v16, %v2112_v32  ;;  %v792_v24 = vcombine.high %v776_v17, %v776_v17  ;;  %v793_v25 = vcombine.high %v783_v18, %v783_v18  ;;  %895 = vst.msk [vmem:[%s2124_s15 + $0x88] sm:$0x1] %vm877_vm1, %v783_v18  ;;  %896 = vst.msk [vmem:[%s2124_s15 + $0x90] sm:$0x1] %vm877_vm1, %v791_v19 }
 0x267   : >> { %898 = vst.msk [vmem:[%s2124_s15 + $0xa0] sm:$0x1] %vm877_vm1, %v776_v17  ;;  %v1028_v26 = vcombine.high %v1026_v20, %v1026_v20  ;;  %v1042_v27 = vrot.slane %v1026_v20, %v2112_v32  ;;  %v1049_v28 = vrot.slane %v1027_v21, %v2112_v32  ;;  %v1057_v29 = vcombine.high %v1035_v22, %v1035_v22 }
 0x268   : >> { %1159 = vst.msk [vmem:[%s2133_s17 + $0x80] sm:$0x1] %vm877_vm1, %v1035_v22  ;;  %v794_v30 = vcombine.high %v790_v23, %v790_v23  ;;  %897 = vst.msk [vmem:[%s2124_s15 + $0x98] sm:$0x1] %vm877_vm1, %v793_v25 }
 0x269   : >> { %899 = vst.msk [vmem:[%s2124_s15 + $0xa8] sm:$0x1] %vm877_vm1, %v790_v23  ;;  %900 = vst.msk [vmem:[%s2124_s15 + $0xb0] sm:$0x1] %vm877_vm1, %v792_v24  ;;  %v1056_v31 = vrot.slane %v1028_v26, %v2112_v32  ;;  %v1058_v33 = vcombine.high %v1042_v27, %v1042_v27  ;;  %v1059_v34 = vcombine.high %v1049_v28, %v1049_v28  ;;  %307 = sbr.rel (!%p305_p11) target bundleno = 26 (0x1a), region = 171 }
 0x26a   : >> { %1160 = vst.msk [vmem:[%s2133_s17 + $0x88] sm:$0x1] %vm877_vm1, %v1049_v28  ;;  %1161 = vst.msk [vmem:[%s2133_s17 + $0x90] sm:$0x1] %vm877_vm1, %v1057_v29 }
 0x26b   : >> { %1163 = vst.msk [vmem:[%s2133_s17 + $0xa0] sm:$0x1] %vm877_vm1, %v1042_v27  ;;  %901 = vst.msk [vmem:[%s2124_s15 + $0xb8] sm:$0x1] %vm877_vm1, %v794_v30  ;;  %v1060_v35 = vcombine.high %v1056_v31, %v1056_v31 }
 0x26c   : >> { %1162 = vst.msk [vmem:[%s2133_s17 + $0x98] sm:$0x1] %vm877_vm1, %v1059_v34  ;;  %1164 = vst.msk [vmem:[%s2133_s17 + $0xa8] sm:$0x1] %vm877_vm1, %v1056_v31 }
 0x26d   : >> { %1165 = vst.msk [vmem:[%s2133_s17 + $0xb0] sm:$0x1] %vm877_vm1, %v1058_v33  ;;  %1166 = vst.msk [vmem:[%s2133_s17 + $0xb8] sm:$0x1] %vm877_vm1, %v1060_v35 }
 0x26e   : > { %1185 = sbr.rel (!%p1978_p5) target bundleno = 645 (0x285), region = 51  ;;  %s1675_s18 = sshll.u32 (%p1978_p5), %s1878_s24, 6 }
 0x26f   : > { %s1187_s28 = sadd.s32 (%p1978_p5), %s1874_s23, %s1675_s18 }
 0x270   : > { %s1676_s21 = sshll.u32 (%p1978_p5), %s1187_s28, 3 }
 0x271   : > { %s2335_s30 = scalar_lea.vmem (%p1978_p5), %s2491_s5, %s1676_s21 }
 0x272   : > { %v1280_v32 = vld [vmem:[%s2005_s13] sm:$0xff] (%p1978_p5)  ;;  %v1282_v36 = vld [vmem:[%s2005_s13 + $0x8] sm:$0xff] (%p1978_p5)  ;;  %v1284_v0 = vld [vmem:[%s2005_s13 + $0x10] sm:$0xff] (%p1978_p5) }
 0x273   : > { %v1286_v37 = vld [vmem:[%s2005_s13 + $0x18] sm:$0xff]  ;;  %v1288_v38 = vld [vmem:[%s2005_s13 + $0x20] sm:$0xff]  ;;  %v1290_v39 = vld [vmem:[%s2005_s13 + $0x28] sm:$0xff]  ;;  %1281 = vst [vmem:[%s2335_s30] sm:$0xff] %v1280_v32 }
 0x274   : > { %v1292_v40 = vld [vmem:[%s2005_s13 + $0x30] sm:$0xff]  ;;  %v1294_v41 = vld [vmem:[%s2005_s13 + $0x38] sm:$0xff]  ;;  %v1296_v42 = vld [vmem:[%s2005_s13 + $0x40] sm:$0xff]  ;;  %1283 = vst [vmem:[%s2335_s30 + $0x10] sm:$0xff] %v1282_v36 }
 0x275   : > { %v1298_v43 = vld [vmem:[%s2005_s13 + $0x48] sm:$0xff]  ;;  %v1300_v44 = vld [vmem:[%s2005_s13 + $0x50] sm:$0xff]  ;;  %v1302_v45 = vld [vmem:[%s2005_s13 + $0x58] sm:$0xff]  ;;  %1285 = vst [vmem:[%s2335_s30 + $0x20] sm:$0xff] %v1284_v0 }
 0x276   : > { %1287 = vst [vmem:[%s2335_s30 + $0x30] sm:$0xff] %v1286_v37  ;;  %1289 = vst [vmem:[%s2335_s30 + $0x40] sm:$0xff] %v1288_v38  ;;  %v1304_v46 = vld [vmem:[%s2005_s13 + $0x60] sm:$0xff]  ;;  %v1306_v47 = vld [vmem:[%s2005_s13 + $0x68] sm:$0xff] }
 0x277   : > { %1291 = vst [vmem:[%s2335_s30 + $0x50] sm:$0xff] %v1290_v39  ;;  %1293 = vst [vmem:[%s2335_s30 + $0x60] sm:$0xff] %v1292_v40  ;;  %v1308_v48 = vld [vmem:[%s2005_s13 + $0x70] sm:$0xff]  ;;  %v1310_v49 = vld [vmem:[%s2005_s13 + $0x78] sm:$0xff] }
 0x278   : > { %1295 = vst [vmem:[%s2335_s30 + $0x70] sm:$0xff] %v1294_v41  ;;  %1297 = vst [vmem:[%s2335_s30 + $0x80] sm:$0xff] %v1296_v42  ;;  %v1312_v50 = vld [vmem:[%s2005_s13 + $0x80] sm:$0xff]  ;;  %v1314_v55 = vld [vmem:[%s2005_s13 + $0x88] sm:$0xff] }
 0x279   : > { %1299 = vst [vmem:[%s2335_s30 + $0x90] sm:$0xff] %v1298_v43  ;;  %1301 = vst [vmem:[%s2335_s30 + $0xa0] sm:$0xff] %v1300_v44  ;;  %v1316_v56 = vld [vmem:[%s2005_s13 + $0x90] sm:$0xff]  ;;  %v1318_v51 = vld [vmem:[%s2005_s13 + $0x98] sm:$0xff] }
 0x27a   : > { %1303 = vst [vmem:[%s2335_s30 + $0xb0] sm:$0xff] %v1302_v45  ;;  %1305 = vst [vmem:[%s2335_s30 + $0xc0] sm:$0xff] %v1304_v46  ;;  %v1320_v57 = vld [vmem:[%s2005_s13 + $0xa0] sm:$0xff]  ;;  %v1322_v58 = vld [vmem:[%s2005_s13 + $0xa8] sm:$0xff] }
 0x27b   : > { %1307 = vst [vmem:[%s2335_s30 + $0xd0] sm:$0xff] %v1306_v47  ;;  %1309 = vst [vmem:[%s2335_s30 + $0xe0] sm:$0xff] %v1308_v48  ;;  %v1324_v59 = vld [vmem:[%s2005_s13 + $0xb0] sm:$0xff]  ;;  %v1326_v60 = vld [vmem:[%s2005_s13 + $0xb8] sm:$0xff] }
 0x27c   : > { %1311 = vst [vmem:[%s2335_s30 + $0xf0] sm:$0xff] %v1310_v49  ;;  %1313 = vst [vmem:[%s2335_s30 + $0x100] sm:$0xff] %v1312_v50  ;;  %v1328_v52 = vld [vmem:[%s2005_s13 + $0xc0] sm:$0xff]  ;;  %v1330_v61 = vld [vmem:[%s2005_s13 + $0xc8] sm:$0xff] }
 0x27d   : > { %1315 = vst [vmem:[%s2335_s30 + $0x110] sm:$0xff] %v1314_v55  ;;  %1317 = vst [vmem:[%s2335_s30 + $0x120] sm:$0xff] %v1316_v56  ;;  %v1332_v62 = vld [vmem:[%s2005_s13 + $0xd0] sm:$0xff]  ;;  %v1334_v63 = vld [vmem:[%s2005_s13 + $0xd8] sm:$0xff] }
 0x27e   : > { %1319 = vst [vmem:[%s2335_s30 + $0x130] sm:$0xff] %v1318_v51  ;;  %1321 = vst [vmem:[%s2335_s30 + $0x140] sm:$0xff] %v1320_v57  ;;  %v1336_v1 = vld [vmem:[%s2005_s13 + $0xe0] sm:$0xff]  ;;  %v1338_v2 = vld [vmem:[%s2005_s13 + $0xe8] sm:$0xff] }
 0x27f   : > { %1323 = vst [vmem:[%s2335_s30 + $0x150] sm:$0xff] %v1322_v58  ;;  %1325 = vst [vmem:[%s2335_s30 + $0x160] sm:$0xff] %v1324_v59  ;;  %v1340_v3 = vld [vmem:[%s2005_s13 + $0xf0] sm:$0xff]  ;;  %v1342_v53 = vld [vmem:[%s2005_s13 + $0xf8] sm:$0xff] }
 0x280   : > { %1327 = vst [vmem:[%s2335_s30 + $0x170] sm:$0xff] %v1326_v60  ;;  %1329 = vst [vmem:[%s2335_s30 + $0x180] sm:$0xff] %v1328_v52 }
 0x281   : > { %1331 = vst [vmem:[%s2335_s30 + $0x190] sm:$0xff] %v1330_v61  ;;  %1333 = vst [vmem:[%s2335_s30 + $0x1a0] sm:$0xff] %v1332_v62 }
 0x282   : > { %1335 = vst [vmem:[%s2335_s30 + $0x1b0] sm:$0xff] %v1334_v63  ;;  %1337 = vst [vmem:[%s2335_s30 + $0x1c0] sm:$0xff] %v1336_v1 }
 0x283   : > { %1339 = vst [vmem:[%s2335_s30 + $0x1d0] sm:$0xff] %v1338_v2  ;;  %1341 = vst [vmem:[%s2335_s30 + $0x1e0] sm:$0xff] %v1340_v3 }
 0x284   : > { %1343 = vst [vmem:[%s2335_s30 + $0x1f0] sm:$0xff] %v1342_v53 }
 0x285 PF: > { %1349 = sbr.rel (!%p1978_p5) target bundleno = 666 (0x29a), region = 89  ;;  %s1677_s13 = sshll.u32 (%p1978_p5), %s1878_s24, 6 }
 0x286   : > { %v1444_v4 = vld [vmem:[%s2007_s29] sm:$0xff] (%p1978_p5)  ;;  %v1446_v5 = vld [vmem:[%s2007_s29 + $0x8] sm:$0xff] (%p1978_p5)  ;;  %v1448_v6 = vld [vmem:[%s2007_s29 + $0x10] sm:$0xff] (%p1978_p5)  ;;  %s1351_s8 = sadd.s32 (%p1978_p5), %s1874_s23, %s1677_s13 }
 0x287   : > { %v1450_v7 = vld [vmem:[%s2007_s29 + $0x18] sm:$0xff] (%p1978_p5)  ;;  %v1452_v8 = vld [vmem:[%s2007_s29 + $0x20] sm:$0xff] (%p1978_p5)  ;;  %v1454_v9 = vld [vmem:[%s2007_s29 + $0x28] sm:$0xff] (%p1978_p5)  ;;  %s1678_s7 = sshll.u32 (%p1978_p5), %s1351_s8, 3 }
 0x288   : > { %v1456_v10 = vld [vmem:[%s2007_s29 + $0x30] sm:$0xff] (%p1978_p5)  ;;  %v1458_v54 = vld [vmem:[%s2007_s29 + $0x38] sm:$0xff] (%p1978_p5)  ;;  %v1460_v11 = vld [vmem:[%s2007_s29 + $0x40] sm:$0xff] (%p1978_p5)  ;;  %s2408_s11 = scalar_lea.vmem (%p1978_p5), %s2492_s6, %s1678_s7 }
 0x289   : > { %v1462_v12 = vld [vmem:[%s2007_s29 + $0x48] sm:$0xff] (%p1978_p5)  ;;  %v1464_v13 = vld [vmem:[%s2007_s29 + $0x50] sm:$0xff] (%p1978_p5)  ;;  %v1466_v14 = vld [vmem:[%s2007_s29 + $0x58] sm:$0xff] (%p1978_p5)  ;;  %1445 = vst [vmem:[%s2408_s11] sm:$0xff] (%p1978_p5), %v1444_v4 }
 0x28a   : > { %1447 = vst [vmem:[%s2408_s11 + $0x10] sm:$0xff] %v1446_v5  ;;  %1449 = vst [vmem:[%s2408_s11 + $0x20] sm:$0xff] %v1448_v6  ;;  %v1468_v15 = vld [vmem:[%s2007_s29 + $0x60] sm:$0xff]  ;;  %v1470_v16 = vld [vmem:[%s2007_s29 + $0x68] sm:$0xff] }
 0x28b   : > { %1451 = vst [vmem:[%s2408_s11 + $0x30] sm:$0xff] %v1450_v7  ;;  %1453 = vst [vmem:[%s2408_s11 + $0x40] sm:$0xff] %v1452_v8  ;;  %v1472_v17 = vld [vmem:[%s2007_s29 + $0x70] sm:$0xff]  ;;  %v1474_v18 = vld [vmem:[%s2007_s29 + $0x78] sm:$0xff] }
 0x28c   : > { %1455 = vst [vmem:[%s2408_s11 + $0x50] sm:$0xff] %v1454_v9  ;;  %1457 = vst [vmem:[%s2408_s11 + $0x60] sm:$0xff] %v1456_v10  ;;  %v1476_v19 = vld [vmem:[%s2007_s29 + $0x80] sm:$0xff]  ;;  %v1478_v20 = vld [vmem:[%s2007_s29 + $0x88] sm:$0xff] }
 0x28d   : > { %1459 = vst [vmem:[%s2408_s11 + $0x70] sm:$0xff] %v1458_v54  ;;  %1461 = vst [vmem:[%s2408_s11 + $0x80] sm:$0xff] %v1460_v11  ;;  %v1480_v21 = vld [vmem:[%s2007_s29 + $0x90] sm:$0xff]  ;;  %v1482_v22 = vld [vmem:[%s2007_s29 + $0x98] sm:$0xff] }
 0x28e   : > { %1463 = vst [vmem:[%s2408_s11 + $0x90] sm:$0xff] %v1462_v12  ;;  %1465 = vst [vmem:[%s2408_s11 + $0xa0] sm:$0xff] %v1464_v13  ;;  %v1484_v23 = vld [vmem:[%s2007_s29 + $0xa0] sm:$0xff]  ;;  %v1486_v24 = vld [vmem:[%s2007_s29 + $0xa8] sm:$0xff] }
 0x28f   : > { %1467 = vst [vmem:[%s2408_s11 + $0xb0] sm:$0xff] %v1466_v14  ;;  %1469 = vst [vmem:[%s2408_s11 + $0xc0] sm:$0xff] %v1468_v15  ;;  %v1488_v25 = vld [vmem:[%s2007_s29 + $0xb0] sm:$0xff]  ;;  %v1490_v26 = vld [vmem:[%s2007_s29 + $0xb8] sm:$0xff] }
 0x290   : > { %1471 = vst [vmem:[%s2408_s11 + $0xd0] sm:$0xff] %v1470_v16  ;;  %1473 = vst [vmem:[%s2408_s11 + $0xe0] sm:$0xff] %v1472_v17  ;;  %v1492_v27 = vld [vmem:[%s2007_s29 + $0xc0] sm:$0xff]  ;;  %v1494_v28 = vld [vmem:[%s2007_s29 + $0xc8] sm:$0xff] }
 0x291   : > { %1475 = vst [vmem:[%s2408_s11 + $0xf0] sm:$0xff] %v1474_v18  ;;  %1477 = vst [vmem:[%s2408_s11 + $0x100] sm:$0xff] %v1476_v19  ;;  %v1496_v29 = vld [vmem:[%s2007_s29 + $0xd0] sm:$0xff]  ;;  %v1498_v30 = vld [vmem:[%s2007_s29 + $0xd8] sm:$0xff] }
 0x292   : > { %1479 = vst [vmem:[%s2408_s11 + $0x110] sm:$0xff] %v1478_v20  ;;  %1481 = vst [vmem:[%s2408_s11 + $0x120] sm:$0xff] %v1480_v21  ;;  %v1500_v31 = vld [vmem:[%s2007_s29 + $0xe0] sm:$0xff]  ;;  %v1502_v33 = vld [vmem:[%s2007_s29 + $0xe8] sm:$0xff] }
 0x293   : > { %1483 = vst [vmem:[%s2408_s11 + $0x130] sm:$0xff] %v1482_v22  ;;  %1485 = vst [vmem:[%s2408_s11 + $0x140] sm:$0xff] %v1484_v23  ;;  %v1504_v34 = vld [vmem:[%s2007_s29 + $0xf0] sm:$0xff]  ;;  %v1506_v35 = vld [vmem:[%s2007_s29 + $0xf8] sm:$0xff] }
 0x294   : > { %1487 = vst [vmem:[%s2408_s11 + $0x150] sm:$0xff] %v1486_v24  ;;  %1489 = vst [vmem:[%s2408_s11 + $0x160] sm:$0xff] %v1488_v25 }
 0x295   : > { %1491 = vst [vmem:[%s2408_s11 + $0x170] sm:$0xff] %v1490_v26  ;;  %1493 = vst [vmem:[%s2408_s11 + $0x180] sm:$0xff] %v1492_v27 }
 0x296   : > { %1495 = vst [vmem:[%s2408_s11 + $0x190] sm:$0xff] %v1494_v28  ;;  %1497 = vst [vmem:[%s2408_s11 + $0x1a0] sm:$0xff] %v1496_v29 }
 0x297   : > { %1499 = vst [vmem:[%s2408_s11 + $0x1b0] sm:$0xff] %v1498_v30  ;;  %1501 = vst [vmem:[%s2408_s11 + $0x1c0] sm:$0xff] %v1500_v31 }
 0x298   : > { %1503 = vst [vmem:[%s2408_s11 + $0x1d0] sm:$0xff] %v1502_v33  ;;  %1505 = vst [vmem:[%s2408_s11 + $0x1e0] sm:$0xff] %v1504_v34 }
 0x299   : > { %1507 = vst [vmem:[%s2408_s11 + $0x1f0] sm:$0xff] %v1506_v35 }
 0x29a PF: > { %s17_s27 = sadd.s32 1, %s1890_s27   ;;  %s2498_s14 = sld [smem:[#allocation4_spill]] }
 0x29b   : > { %p14_p12 = scmp.ge.s32.totalorder %s17_s27, 6   ;;  %s2499_s16 = sld [smem:[#allocation5_spill]] }
 0x29c   : > { %s2500_s21 = smov %s1870_s22  ;;  %s2501_s22 = smov %s1989_s12 }
 0x29d   : > { %s2502_s23 = smov %s1882_s25  ;;  %s2503_s24 = smov %s1886_s26 }
 0x29e   :  { %16 = sbr.rel (!%p14_p12) target bundleno = 4 (0x4), region = 182 }
 0x2a0   : > { %s2504_s25 = smov %s2498_s14 }
 0x2a1   : > { %s2505_s26 = smov %s2499_s16 }

// kernel: pairwise_block.7
= control target key start
LH: loop header
LB: loop body
LE: loop exit
PB: predicated region body
PF: predicated region fallthrough
CT: control target
= control target key end

     0   :  { %s4289_s15 = smov 0   ;;  %s4291_s16 = smov 0   ;;  %s4933_s0 = inlined_call_operand.vmem [shape: f32[2,32,16,16], index: 0, kind: input, shape index: {}]   ;;  %s4934_s1 = inlined_call_operand.vmem [shape: f32[2,32,16,16], index: 1, kind: input, shape index: {}]   ;;  %s4935_s2 = inlined_call_operand.vmem [shape: f32[2,16,1], index: 2, kind: input, shape index: {}]   ;;  %s4936_s3 = inlined_call_operand.vmem [shape: f32[2,1,16], index: 3, kind: input, shape index: {}]   ;;  %s4937_s4 = inlined_call_operand.vmem [shape: f32[2,32,16,16], index: 4, kind: output, shape index: {}]  }
   0x1   :  { %s4293_s17 = smov 0  }
   0x2 LB: > { %s40_s18 = sadd.s32 1, %s4257_s16  ;;  %p3717_p0 = scmp.ge.s32.totalorder %s4261_s17, 1  ;;  %s4261_s17 = sphi %s4293_s17, %s14_s17   ;;  %s4257_s16 = sphi %s4291_s16, %s4939_s16   ;;  %s4253_s15 = sphi %s4289_s15, %s4938_s15  }
   0x3   : > { %p42_p1 = scmp.ge.s32.totalorder %s40_s18, 2  ;;  %p264_p2 = scmp.lt.s32.totalorder %s4261_s17, 3 }
   0x5   : > { %s4941_s18 = smov (%p42_p1, %s40_s18), 0  ;;  %p265_p3 = pnand %p3717_p0, %p264_p2 }
   0x6   : > { %p342_p4 = scmp.lt.s32.totalorder (!%p265_p3), %s4253_s15, 1 }
   0x7   : > { %268 = sbr.rel (%p265_p3) target bundleno = 344 (0x158), region = 36 }
   0xc   : > { %v4263_v0 = vmov 0   ;;  %s4943_s15 = smov (!%p342_p4, %s4253_s15), 1  ;;  %vm535_vm0 = vcmask 130048  }
   0xd   : > { %4238 = vset.pattern.permute.xlu0 %v4263_v0  ;;  %s4310_s19 = sshll.u32 %s4943_s15, 9  ;;  %s3859_s26 = sshll.u32 %s4943_s15, 4 }
   0xe   : > { %s4316_s22 = scalar_lea.vmem %s4934_s1, %s4310_s19  ;;  %s4325_s25 = scalar_lea.vmem %s4933_s0, %s4310_s19 }
   0xf   : > { %v472_v1 = vld [vmem:[%s4316_s22 + $0x8] sm:$0xff]  ;;  %v474_v2 = vld [vmem:[%s4316_s22 + $0x18] sm:$0xff]  ;;  %v471_v3 = vld [vmem:[%s4316_s22] sm:$0xff]  ;;  %s4390_s29 = scalar_lea.vmem %s4935_s2, %s3859_s26  ;;  %s387_s6 = scalar_lea.vmem %s4936_s3, %s4943_s15 }
  0x10   : > { %3989 = vmatprep.subr.msk.mxu0 %vm535_vm0, %v472_v1  ;;  %3996 = vmatprep.subr.msk.mxu1 %vm535_vm0, %v474_v2  ;;  %v473_v4 = vld [vmem:[%s4316_s22 + $0x10] sm:$0xff]  ;;  %v407_v5 = vld [vmem:[%s4325_s25] sm:$0xff]  ;;  %v476_v7 = vld [vmem:[%s4316_s22 + $0x28] sm:$0xff]  ;;  %s4668_s9 = scalar_lea.vmem %s4937_s4, %s4310_s19 }
  0x11   : > { %v409_v6 = vld [vmem:[%s4325_s25 + $0x10] sm:$0xff]  ;;  %3990 = vmatpush3.xpose.msk.msra.mxu0 %vm535_vm0, %v472_v1  ;;  %3997 = vmatpush3.xpose.msk.msra.mxu1 %vm535_vm0, %v474_v2  ;;  %v478_v8 = vld [vmem:[%s4316_s22 + $0x38] sm:$0xff]  ;;  %v408_v9 = vld [vmem:[%s4325_s25 + $0x8] sm:$0xff] }
  0x12   : > { %3991 = vmatprep.subr.msk.mxu0 %vm535_vm0, %v471_v3  ;;  %3998 = vmatprep.subr.msk.mxu1 %vm535_vm0, %v473_v4  ;;  %v410_v10 = vld [vmem:[%s4325_s25 + $0x18] sm:$0xff]  ;;  %v475_v11 = vld [vmem:[%s4316_s22 + $0x20] sm:$0xff]  ;;  %v477_v12 = vld [vmem:[%s4316_s22 + $0x30] sm:$0xff] }
  0x13   : > { %3993 = vmatprep.mubr.msk.f32.mxu0 %vm535_vm0, %v407_v5  ;;  %4000 = vmatprep.mubr.msk.f32.mxu1 %vm535_vm0, %v409_v6  ;;  %v411_v13 = vld [vmem:[%s4325_s25 + $0x20] sm:$0xff]  ;;  %v413_v14 = vld [vmem:[%s4325_s25 + $0x30] sm:$0xff]  ;;  %v480_v15 = vld [vmem:[%s4316_s22 + $0x48] sm:$0xff] }
  0x14   : > { %v482_v16 = vld [vmem:[%s4316_s22 + $0x58] sm:$0xff]  ;;  %v412_v17 = vld [vmem:[%s4325_s25 + $0x28] sm:$0xff]  ;;  %v479_v19 = vld [vmem:[%s4316_s22 + $0x40] sm:$0xff] }
  0x15   : > { %3992 = vmatpush3.xpose.msk.msra.mxu0 %vm535_vm0, %v471_v3  ;;  %3999 = vmatpush3.xpose.msk.msra.mxu1 %vm535_vm0, %v473_v4  ;;  %v414_v18 = vld [vmem:[%s4325_s25 + $0x38] sm:$0xff]  ;;  %v481_v20 = vld [vmem:[%s4316_s22 + $0x50] sm:$0xff]  ;;  %v415_v21 = vld [vmem:[%s4325_s25 + $0x40] sm:$0xff] }
  0x16   : > { %4003 = vmatprep.subr.msk.mxu0 %vm535_vm0, %v476_v7  ;;  %4010 = vmatprep.subr.msk.mxu1 %vm535_vm0, %v478_v8  ;;  %v417_v22 = vld [vmem:[%s4325_s25 + $0x50] sm:$0xff]  ;;  %v484_v23 = vld [vmem:[%s4316_s22 + $0x68] sm:$0xff]  ;;  %v486_v24 = vld [vmem:[%s4316_s22 + $0x78] sm:$0xff] }
  0x17   : > { %v416_v25 = vld [vmem:[%s4325_s25 + $0x48] sm:$0xff]  ;;  %v418_v26 = vld [vmem:[%s4325_s25 + $0x58] sm:$0xff]  ;;  %v483_v27 = vld [vmem:[%s4316_s22 + $0x60] sm:$0xff] }
  0x18   : > { %3994 = vmatmul.mubr.msk.f32.vlgmr.msra.gmra.mxu0 %vm535_vm0, %v408_v9  ;;  %4001 = vmatmul.mubr.msk.f32.vlgmr.msra.gmra.mxu1 %vm535_vm0, %v410_v10  ;;  %v485_v28 = vld [vmem:[%s4316_s22 + $0x70] sm:$0xff]  ;;  %v419_v29 = vld [vmem:[%s4325_s25 + $0x60] sm:$0xff]  ;;  %v488_v32 = vld [vmem:[%s4316_s22 + $0x88] sm:$0xff] }
  0x19   : > { %4004 = vmatpush3.xpose.msk.msra.mxu0 %vm535_vm0, %v476_v7  ;;  %4011 = vmatpush3.xpose.msk.msra.mxu1 %vm535_vm0, %v478_v8  ;;  %v421_v30 = vld [vmem:[%s4325_s25 + $0x70] sm:$0xff]  ;;  %v3320_v31 = vld [vmem:[%s4390_s29] sm:$0xff]  ;;  %v490_v33 = vld [vmem:[%s4316_s22 + $0x98] sm:$0xff] }
  0x1a   : > { %4005 = vmatprep.subr.msk.mxu0 %vm535_vm0, %v475_v11  ;;  %4012 = vmatprep.subr.msk.mxu1 %vm535_vm0, %v477_v12  ;;  %v420_v34 = vld [vmem:[%s4325_s25 + $0x68] sm:$0xff]  ;;  %v422_v35 = vld [vmem:[%s4325_s25 + $0x78] sm:$0xff]  ;;  %v487_v36 = vld [vmem:[%s4316_s22 + $0x80] sm:$0xff] }
  0x1b   : > { %4007 = vmatprep.mubr.msk.f32.mxu0 %vm535_vm0, %v411_v13  ;;  %4014 = vmatprep.mubr.msk.f32.mxu1 %vm535_vm0, %v413_v14  ;;  %v489_v37 = vld [vmem:[%s4316_s22 + $0x90] sm:$0xff]  ;;  %v423_v38 = vld [vmem:[%s4325_s25 + $0x80] sm:$0xff]  ;;  %v3321_v40 = vld [vmem:[%s4390_s29 + $0x8] sm:$0xff] }
  0x1c   : > { %3324 = vperm.xlu0 %4238, %v3320_v31   ;;  %v425_v39 = vld [vmem:[%s4325_s25 + $0x90] sm:$0xff]  ;;  %v492_v41 = vld [vmem:[%s4316_s22 + $0xa8] sm:$0xff]  ;;  %v494_v42 = vld [vmem:[%s4316_s22 + $0xb8] sm:$0xff] }
  0x1d   : > { %4006 = vmatpush3.xpose.msk.msra.mxu0 %vm535_vm0, %v475_v11  ;;  %4013 = vmatpush3.xpose.msk.msra.mxu1 %vm535_vm0, %v477_v12  ;;  %v424_v43 = vld [vmem:[%s4325_s25 + $0x88] sm:$0xff]  ;;  %v426_v44 = vld [vmem:[%s4325_s25 + $0x98] sm:$0xff]  ;;  %v491_v45 = vld [vmem:[%s4316_s22 + $0xa0] sm:$0xff] }
  0x1e   : > { %4017 = vmatprep.subr.msk.mxu0 %vm535_vm0, %v480_v15  ;;  %4024 = vmatprep.subr.msk.mxu1 %vm535_vm0, %v482_v16  ;;  %v493_v46 = vld [vmem:[%s4316_s22 + $0xb0] sm:$0xff]  ;;  %v427_v47 = vld [vmem:[%s4325_s25 + $0xa0] sm:$0xff]  ;;  %v496_v49 = vld [vmem:[%s4316_s22 + $0xc8] sm:$0xff] }
  0x1f   : > { %v429_v48 = vld [vmem:[%s4325_s25 + $0xb0] sm:$0xff]  ;;  %v498_v50 = vld [vmem:[%s4316_s22 + $0xd8] sm:$0xff]  ;;  %v428_v51 = vld [vmem:[%s4325_s25 + $0xa8] sm:$0xff] }
  0x20   : > { %4008 = vmatmul.mubr.msk.f32.vlgmr.msra.gmra.mxu0 %vm535_vm0, %v412_v17  ;;  %4015 = vmatmul.mubr.msk.f32.vlgmr.msra.gmra.mxu1 %vm535_vm0, %v414_v18  ;;  %v430_v52 = vld [vmem:[%s4325_s25 + $0xb8] sm:$0xff]  ;;  %v495_v53 = vld [vmem:[%s4316_s22 + $0xc0] sm:$0xff]  ;;  %v497_v54 = vld [vmem:[%s4316_s22 + $0xd0] sm:$0xff] }
  0x21   : > { %4018 = vmatpush3.xpose.msk.msra.mxu0 %vm535_vm0, %v480_v15  ;;  %4025 = vmatpush3.xpose.msk.msra.mxu1 %vm535_vm0, %v482_v16  ;;  %v431_v55 = vld [vmem:[%s4325_s25 + $0xc0] sm:$0xff]  ;;  %v433_v56 = vld [vmem:[%s4325_s25 + $0xd0] sm:$0xff]  ;;  %v500_v57 = vld [vmem:[%s4316_s22 + $0xe8] sm:$0xff] }
  0x22   : > { %4019 = vmatprep.subr.msk.mxu0 %vm535_vm0, %v479_v19  ;;  %4026 = vmatprep.subr.msk.mxu1 %vm535_vm0, %v481_v20  ;;  %v502_v58 = vld [vmem:[%s4316_s22 + $0xf8] sm:$0xff]  ;;  %v432_v59 = vld [vmem:[%s4325_s25 + $0xc8] sm:$0xff]  ;;  %v499_v61 = vld [vmem:[%s4316_s22 + $0xe0] sm:$0xff] }
  0x23   : > { %4021 = vmatprep.mubr.msk.f32.mxu0 %vm535_vm0, %v415_v21  ;;  %4028 = vmatprep.mubr.msk.f32.mxu1 %vm535_vm0, %v417_v22  ;;  %v434_v60 = vld [vmem:[%s4325_s25 + $0xd8] sm:$0xff]  ;;  %v501_v62 = vld [vmem:[%s4316_s22 + $0xf0] sm:$0xff]  ;;  %v435_v63 = vld [vmem:[%s4325_s25 + $0xe0] sm:$0xff] }
  0x24   : > { %3329 = vperm.xlu0 %4238, %v3321_v40   ;;  %v437_v0 = vld [vmem:[%s4325_s25 + $0xf0] sm:$0xff]  ;;  %v504_v1 = vld [vmem:[%s4316_s22 + $0x108] sm:$0xff]  ;;  %v506_v2 = vld [vmem:[%s4316_s22 + $0x118] sm:$0xff] }
  0x25   : > { %4020 = vmatpush3.xpose.msk.msra.mxu0 %vm535_vm0, %v479_v19  ;;  %4027 = vmatpush3.xpose.msk.msra.mxu1 %vm535_vm0, %v481_v20  ;;  %v436_v3 = vld [vmem:[%s4325_s25 + $0xe8] sm:$0xff]  ;;  %v438_v4 = vld [vmem:[%s4325_s25 + $0xf8] sm:$0xff]  ;;  %v503_v5 = vld [vmem:[%s4316_s22 + $0x100] sm:$0xff] }
  0x26   : > { %4031 = vmatprep.subr.msk.mxu0 %vm535_vm0, %v484_v23  ;;  %4038 = vmatprep.subr.msk.mxu1 %vm535_vm0, %v486_v24  ;;  %v505_v6 = vld [vmem:[%s4316_s22 + $0x110] sm:$0xff]  ;;  %v439_v7 = vld [vmem:[%s4325_s25 + $0x100] sm:$0xff]  ;;  %v508_v9 = vld [vmem:[%s4316_s22 + $0x128] sm:$0xff] }
  0x27   : > { %v441_v8 = vld [vmem:[%s4325_s25 + $0x110] sm:$0xff]  ;;  %v510_v10 = vld [vmem:[%s4316_s22 + $0x138] sm:$0xff]  ;;  %v440_v11 = vld [vmem:[%s4325_s25 + $0x108] sm:$0xff] }
  0x28   : > { %4022 = vmatmul.mubr.msk.f32.vlgmr.msra.gmra.mxu0 %vm535_vm0, %v416_v25  ;;  %4029 = vmatmul.mubr.msk.f32.vlgmr.msra.gmra.mxu1 %vm535_vm0, %v418_v26  ;;  %v442_v12 = vld [vmem:[%s4325_s25 + $0x118] sm:$0xff]  ;;  %v507_v13 = vld [vmem:[%s4316_s22 + $0x120] sm:$0xff]  ;;  %v509_v14 = vld [vmem:[%s4316_s22 + $0x130] sm:$0xff] }
  0x29   : > { %4032 = vmatpush3.xpose.msk.msra.mxu0 %vm535_vm0, %v484_v23  ;;  %4039 = vmatpush3.xpose.msk.msra.mxu1 %vm535_vm0, %v486_v24  ;;  %v443_v15 = vld [vmem:[%s4325_s25 + $0x120] sm:$0xff]  ;;  %v445_v16 = vld [vmem:[%s4325_s25 + $0x130] sm:$0xff]  ;;  %v512_v17 = vld [vmem:[%s4316_s22 + $0x148] sm:$0xff] }
  0x2a   : > { %4033 = vmatprep.subr.msk.mxu0 %vm535_vm0, %v483_v27  ;;  %4040 = vmatprep.subr.msk.mxu1 %vm535_vm0, %v485_v28  ;;  %v514_v18 = vld [vmem:[%s4316_s22 + $0x158] sm:$0xff]  ;;  %v444_v19 = vld [vmem:[%s4325_s25 + $0x128] sm:$0xff]  ;;  %v511_v21 = vld [vmem:[%s4316_s22 + $0x140] sm:$0xff] }
  0x2b   : > { %4035 = vmatprep.mubr.msk.f32.mxu0 %vm535_vm0, %v419_v29  ;;  %4042 = vmatprep.mubr.msk.f32.mxu1 %vm535_vm0, %v421_v30  ;;  %v446_v20 = vld [vmem:[%s4325_s25 + $0x138] sm:$0xff]  ;;  %v513_v22 = vld [vmem:[%s4316_s22 + $0x150] sm:$0xff]  ;;  %v447_v23 = vld [vmem:[%s4325_s25 + $0x140] sm:$0xff] }
  0x2c   : > { %v449_v24 = vld [vmem:[%s4325_s25 + $0x150] sm:$0xff]  ;;  %v516_v25 = vld [vmem:[%s4316_s22 + $0x168] sm:$0xff]  ;;  %v518_v26 = vld [vmem:[%s4316_s22 + $0x178] sm:$0xff] }
  0x2d   : > { %4034 = vmatpush3.xpose.msk.msra.mxu0 %vm535_vm0, %v483_v27  ;;  %4041 = vmatpush3.xpose.msk.msra.mxu1 %vm535_vm0, %v485_v28  ;;  %v448_v27 = vld [vmem:[%s4325_s25 + $0x148] sm:$0xff]  ;;  %v450_v28 = vld [vmem:[%s4325_s25 + $0x158] sm:$0xff]  ;;  %v515_v29 = vld [vmem:[%s4316_s22 + $0x160] sm:$0xff] }
  0x2e   : > { %4045 = vmatprep.subr.msk.mxu0 %vm535_vm0, %v488_v32  ;;  %4052 = vmatprep.subr.msk.mxu1 %vm535_vm0, %v490_v33  ;;  %v517_v30 = vld [vmem:[%s4316_s22 + $0x170] sm:$0xff]  ;;  %v451_v31 = vld [vmem:[%s4325_s25 + $0x160] sm:$0xff] }
  0x2f   : > { %v457_v40 = vld [vmem:[%s4325_s25 + $0x190] sm:$0xff] }
  0x30   : > { %4036 = vmatmul.mubr.msk.f32.vlgmr.msra.gmra.mxu0 %vm535_vm0, %v420_v34  ;;  %4043 = vmatmul.mubr.msk.f32.vlgmr.msra.gmra.mxu1 %vm535_vm0, %v422_v35  ;;  %v522_v34 = vld [vmem:[%s4316_s22 + $0x198] sm:$0xff]  ;;  %v452_v35 = vld [vmem:[%s4325_s25 + $0x168] sm:$0xff] }
  0x31   : > { %4046 = vmatpush3.xpose.msk.msra.mxu0 %vm535_vm0, %v488_v32  ;;  %4053 = vmatpush3.xpose.msk.msra.mxu1 %vm535_vm0, %v490_v33  ;;  %v453_v32 = vld [vmem:[%s4325_s25 + $0x170] sm:$0xff]  ;;  %v520_v33 = vld [vmem:[%s4316_s22 + $0x188] sm:$0xff] }
  0x32   : > { %4047 = vmatprep.subr.msk.mxu0 %vm535_vm0, %v487_v36  ;;  %4054 = vmatprep.subr.msk.mxu1 %vm535_vm0, %v489_v37 }
  0x33   : > { %4049 = vmatprep.mubr.msk.f32.mxu0 %vm535_vm0, %v423_v38  ;;  %4056 = vmatprep.mubr.msk.f32.mxu1 %vm535_vm0, %v425_v39  ;;  %v521_v38 = vld [vmem:[%s4316_s22 + $0x190] sm:$0xff]  ;;  %v455_v39 = vld [vmem:[%s4325_s25 + $0x180] sm:$0xff] }
  0x35   : > { %4048 = vmatpush3.xpose.msk.msra.mxu0 %vm535_vm0, %v487_v36  ;;  %4055 = vmatpush3.xpose.msk.msra.mxu1 %vm535_vm0, %v489_v37  ;;  %v454_v36 = vld [vmem:[%s4325_s25 + $0x178] sm:$0xff]  ;;  %v519_v37 = vld [vmem:[%s4316_s22 + $0x180] sm:$0xff] }
  0x36   : > { %4059 = vmatprep.subr.msk.mxu0 %vm535_vm0, %v492_v41  ;;  %4066 = vmatprep.subr.msk.mxu1 %vm535_vm0, %v494_v42 }
  0x38   : > { %4050 = vmatmul.mubr.msk.f32.vlgmr.msra.gmra.mxu0 %vm535_vm0, %v424_v43  ;;  %4057 = vmatmul.mubr.msk.f32.vlgmr.msra.gmra.mxu1 %vm535_vm0, %v426_v44  ;;  %v456_v43 = vld [vmem:[%s4325_s25 + $0x188] sm:$0xff]  ;;  %v458_v44 = vld [vmem:[%s4325_s25 + $0x198] sm:$0xff] }
  0x39   : > { %4060 = vmatpush3.xpose.msk.msra.mxu0 %vm535_vm0, %v492_v41  ;;  %4067 = vmatpush3.xpose.msk.msra.mxu1 %vm535_vm0, %v494_v42  ;;  %v524_v41 = vld [vmem:[%s4316_s22 + $0x1a8] sm:$0xff]  ;;  %v526_v42 = vld [vmem:[%s4316_s22 + $0x1b8] sm:$0xff] }
  0x3a   : > { %4061 = vmatprep.subr.msk.mxu0 %vm535_vm0, %v491_v45  ;;  %4068 = vmatprep.subr.msk.mxu1 %vm535_vm0, %v493_v46 }
  0x3b   : > { %4063 = vmatprep.mubr.msk.f32.mxu0 %vm535_vm0, %v427_v47  ;;  %4070 = vmatprep.mubr.msk.f32.mxu1 %vm535_vm0, %v429_v48  ;;  %v459_v47 = vld [vmem:[%s4325_s25 + $0x1a0] sm:$0xff]  ;;  %v461_v48 = vld [vmem:[%s4325_s25 + $0x1b0] sm:$0xff] }
  0x3d   : > { %4062 = vmatpush3.xpose.msk.msra.mxu0 %vm535_vm0, %v491_v45  ;;  %4069 = vmatpush3.xpose.msk.msra.mxu1 %vm535_vm0, %v493_v46  ;;  %v523_v45 = vld [vmem:[%s4316_s22 + $0x1a0] sm:$0xff]  ;;  %v525_v46 = vld [vmem:[%s4316_s22 + $0x1b0] sm:$0xff] }
  0x3e   : > { %4073 = vmatprep.subr.msk.mxu0 %vm535_vm0, %v496_v49  ;;  %4080 = vmatprep.subr.msk.mxu1 %vm535_vm0, %v498_v50 }
  0x40   : > { %4064 = vmatmul.mubr.msk.f32.vlgmr.msra.gmra.mxu0 %vm535_vm0, %v428_v51  ;;  %4071 = vmatmul.mubr.msk.f32.vlgmr.msra.gmra.mxu1 %vm535_vm0, %v430_v52  ;;  %v460_v51 = vld [vmem:[%s4325_s25 + $0x1a8] sm:$0xff]  ;;  %v462_v52 = vld [vmem:[%s4325_s25 + $0x1b8] sm:$0xff] }
  0x41   : > { %4074 = vmatpush3.xpose.msk.msra.mxu0 %vm535_vm0, %v496_v49  ;;  %4081 = vmatpush3.xpose.msk.msra.mxu1 %vm535_vm0, %v498_v50  ;;  %v528_v49 = vld [vmem:[%s4316_s22 + $0x1c8] sm:$0xff]  ;;  %v530_v50 = vld [vmem:[%s4316_s22 + $0x1d8] sm:$0xff] }
  0x42   : > { %4075 = vmatprep.subr.msk.mxu0 %vm535_vm0, %v495_v53  ;;  %4082 = vmatprep.subr.msk.mxu1 %vm535_vm0, %v497_v54 }
  0x43   : > { %4077 = vmatprep.mubr.msk.f32.mxu0 %vm535_vm0, %v431_v55  ;;  %4084 = vmatprep.mubr.msk.f32.mxu1 %vm535_vm0, %v433_v56  ;;  %v463_v55 = vld [vmem:[%s4325_s25 + $0x1c0] sm:$0xff]  ;;  %v465_v56 = vld [vmem:[%s4325_s25 + $0x1d0] sm:$0xff] }
  0x45   : > { %4076 = vmatpush3.xpose.msk.msra.mxu0 %vm535_vm0, %v495_v53  ;;  %4083 = vmatpush3.xpose.msk.msra.mxu1 %vm535_vm0, %v497_v54  ;;  %v527_v53 = vld [vmem:[%s4316_s22 + $0x1c0] sm:$0xff]  ;;  %v529_v54 = vld [vmem:[%s4316_s22 + $0x1d0] sm:$0xff] }
  0x46   : > { %4087 = vmatprep.subr.msk.mxu0 %vm535_vm0, %v500_v57  ;;  %4094 = vmatprep.subr.msk.mxu1 %vm535_vm0, %v502_v58 }
  0x48   : > { %4078 = vmatmul.mubr.msk.f32.vlgmr.msra.gmra.mxu0 %vm535_vm0, %v432_v59  ;;  %4085 = vmatmul.mubr.msk.f32.vlgmr.msra.gmra.mxu1 %vm535_vm0, %v434_v60  ;;  %v464_v59 = vld [vmem:[%s4325_s25 + $0x1c8] sm:$0xff]  ;;  %v466_v60 = vld [vmem:[%s4325_s25 + $0x1d8] sm:$0xff] }
  0x49   : > { %4088 = vmatpush3.xpose.msk.msra.mxu0 %vm535_vm0, %v500_v57  ;;  %4095 = vmatpush3.xpose.msk.msra.mxu1 %vm535_vm0, %v502_v58  ;;  %v532_v57 = vld [vmem:[%s4316_s22 + $0x1e8] sm:$0xff]  ;;  %v534_v58 = vld [vmem:[%s4316_s22 + $0x1f8] sm:$0xff] }
  0x4a   : > { %4089 = vmatprep.subr.msk.mxu0 %vm535_vm0, %v499_v61  ;;  %4096 = vmatprep.subr.msk.mxu1 %vm535_vm0, %v501_v62 }
  0x4b   : > { %4091 = vmatprep.mubr.msk.f32.mxu0 %vm535_vm0, %v435_v63  ;;  %4098 = vmatprep.mubr.msk.f32.mxu1 %vm535_vm0, %v437_v0  ;;  %v467_v63 = vld [vmem:[%s4325_s25 + $0x1e0] sm:$0xff]  ;;  %v469_v0 = vld [vmem:[%s4325_s25 + $0x1f0] sm:$0xff] }
  0x4d   : > { %4090 = vmatpush3.xpose.msk.msra.mxu0 %vm535_vm0, %v499_v61  ;;  %4097 = vmatpush3.xpose.msk.msra.mxu1 %vm535_vm0, %v501_v62  ;;  %v531_v61 = vld [vmem:[%s4316_s22 + $0x1e0] sm:$0xff]  ;;  %v533_v62 = vld [vmem:[%s4316_s22 + $0x1f0] sm:$0xff] }
  0x4e   : > { %4101 = vmatprep.subr.msk.mxu0 %vm535_vm0, %v504_v1  ;;  %4108 = vmatprep.subr.msk.mxu1 %vm535_vm0, %v506_v2 }
  0x50   : > { %4092 = vmatmul.mubr.msk.f32.vlgmr.msra.gmra.mxu0 %vm535_vm0, %v436_v3  ;;  %4099 = vmatmul.mubr.msk.f32.vlgmr.msra.gmra.mxu1 %vm535_vm0, %v438_v4 }
  0x51   : > { %4102 = vmatpush3.xpose.msk.msra.mxu0 %vm535_vm0, %v504_v1  ;;  %4109 = vmatpush3.xpose.msk.msra.mxu1 %vm535_vm0, %v506_v2  ;;  %v468_v1 = vld [vmem:[%s4325_s25 + $0x1e8] sm:$0xff]  ;;  %v470_v2 = vld [vmem:[%s4325_s25 + $0x1f8] sm:$0xff] }
  0x52   : > { %4103 = vmatprep.subr.msk.mxu0 %vm535_vm0, %v503_v5  ;;  %4110 = vmatprep.subr.msk.mxu1 %vm535_vm0, %v505_v6 }
  0x53   : > { %4105 = vmatprep.mubr.msk.f32.mxu0 %vm535_vm0, %v439_v7  ;;  %4112 = vmatprep.mubr.msk.f32.mxu1 %vm535_vm0, %v441_v8  ;;  %v4660_v7 = vld [vmem:[%s387_s6] ss:$0 sm:$0xff] }
  0x55   : > { %4104 = vmatpush3.xpose.msk.msra.mxu0 %vm535_vm0, %v503_v5  ;;  %4111 = vmatpush3.xpose.msk.msra.mxu1 %vm535_vm0, %v505_v6 }
  0x56   : > { %4115 = vmatprep.subr.msk.mxu0 %vm535_vm0, %v508_v9  ;;  %4122 = vmatprep.subr.msk.mxu1 %vm535_vm0, %v510_v10 }
  0x58   : > { %4106 = vmatmul.mubr.msk.f32.vlgmr.msra.gmra.mxu0 %vm535_vm0, %v440_v11  ;;  %4113 = vmatmul.mubr.msk.f32.vlgmr.msra.gmra.mxu1 %vm535_vm0, %v442_v12 }
  0x59   : > { %4116 = vmatpush3.xpose.msk.msra.mxu0 %vm535_vm0, %v508_v9  ;;  %4123 = vmatpush3.xpose.msk.msra.mxu1 %vm535_vm0, %v510_v10 }
  0x5a   : > { %4117 = vmatprep.subr.msk.mxu0 %vm535_vm0, %v507_v13  ;;  %4124 = vmatprep.subr.msk.mxu1 %vm535_vm0, %v509_v14 }
  0x5b   : > { %4119 = vmatprep.mubr.msk.f32.mxu0 %vm535_vm0, %v443_v15  ;;  %4126 = vmatprep.mubr.msk.f32.mxu1 %vm535_vm0, %v445_v16 }
  0x5d   : > { %4118 = vmatpush3.xpose.msk.msra.mxu0 %vm535_vm0, %v507_v13  ;;  %4125 = vmatpush3.xpose.msk.msra.mxu1 %vm535_vm0, %v509_v14 }
  0x5e   : > { %4129 = vmatprep.subr.msk.mxu0 %vm535_vm0, %v512_v17  ;;  %4136 = vmatprep.subr.msk.mxu1 %vm535_vm0, %v514_v18 }
  0x60   : > { %4120 = vmatmul.mubr.msk.f32.vlgmr.msra.gmra.mxu0 %vm535_vm0, %v444_v19  ;;  %4127 = vmatmul.mubr.msk.f32.vlgmr.msra.gmra.mxu1 %vm535_vm0, %v446_v20 }
  0x61   : > { %4130 = vmatpush3.xpose.msk.msra.mxu0 %vm535_vm0, %v512_v17  ;;  %4137 = vmatpush3.xpose.msk.msra.mxu1 %vm535_vm0, %v514_v18 }
  0x62   : > { %4131 = vmatprep.subr.msk.mxu0 %vm535_vm0, %v511_v21  ;;  %4138 = vmatprep.subr.msk.mxu1 %vm535_vm0, %v513_v22 }
  0x63   : > { %4133 = vmatprep.mubr.msk.f32.mxu0 %vm535_vm0, %v447_v23  ;;  %4140 = vmatprep.mubr.msk.f32.mxu1 %vm535_vm0, %v449_v24 }
  0x65   : > { %4132 = vmatpush3.xpose.msk.msra.mxu0 %vm535_vm0, %v511_v21  ;;  %4139 = vmatpush3.xpose.msk.msra.mxu1 %vm535_vm0, %v513_v22 }
  0x66   : > { %4143 = vmatprep.subr.msk.mxu0 %vm535_vm0, %v516_v25  ;;  %4150 = vmatprep.subr.msk.mxu1 %vm535_vm0, %v518_v26 }
  0x68   : > { %4134 = vmatmul.mubr.msk.f32.vlgmr.msra.gmra.mxu0 %vm535_vm0, %v448_v27  ;;  %4141 = vmatmul.mubr.msk.f32.vlgmr.msra.gmra.mxu1 %vm535_vm0, %v450_v28 }
  0x69   : > { %4144 = vmatpush3.xpose.msk.msra.mxu0 %vm535_vm0, %v516_v25  ;;  %4151 = vmatpush3.xpose.msk.msra.mxu1 %vm535_vm0, %v518_v26 }
  0x6a   : > { %4145 = vmatprep.subr.msk.mxu0 %vm535_vm0, %v515_v29  ;;  %4152 = vmatprep.subr.msk.mxu1 %vm535_vm0, %v517_v30 }
  0x6b   : > { %4147 = vmatprep.mubr.msk.f32.mxu0 %vm535_vm0, %v451_v31  ;;  %4154 = vmatprep.mubr.msk.f32.mxu1 %vm535_vm0, %v453_v32 }
  0x6d   : > { %4146 = vmatpush3.xpose.msk.msra.mxu0 %vm535_vm0, %v515_v29  ;;  %4153 = vmatpush3.xpose.msk.msra.mxu1 %vm535_vm0, %v517_v30 }
  0x6e   : > { %4157 = vmatprep.subr.msk.mxu0 %vm535_vm0, %v520_v33  ;;  %4164 = vmatprep.subr.msk.mxu1 %vm535_vm0, %v522_v34 }
  0x70   : > { %4148 = vmatmul.mubr.msk.f32.vlgmr.msra.gmra.mxu0 %vm535_vm0, %v452_v35  ;;  %4155 = vmatmul.mubr.msk.f32.vlgmr.msra.gmra.mxu1 %vm535_vm0, %v454_v36 }
  0x71   : > { %4158 = vmatpush3.xpose.msk.msra.mxu0 %vm535_vm0, %v520_v33  ;;  %4165 = vmatpush3.xpose.msk.msra.mxu1 %vm535_vm0, %v522_v34 }
  0x72   : > { %4159 = vmatprep.subr.msk.mxu0 %vm535_vm0, %v519_v37  ;;  %4166 = vmatprep.subr.msk.mxu1 %vm535_vm0, %v521_v38 }
  0x73   : > { %4161 = vmatprep.mubr.msk.f32.mxu0 %vm535_vm0, %v455_v39  ;;  %4168 = vmatprep.mubr.msk.f32.mxu1 %vm535_vm0, %v457_v40 }
  0x75   : > { %4160 = vmatpush3.xpose.msk.msra.mxu0 %vm535_vm0, %v519_v37  ;;  %4167 = vmatpush3.xpose.msk.msra.mxu1 %vm535_vm0, %v521_v38 }
  0x76   : > { %4171 = vmatprep.subr.msk.mxu0 %vm535_vm0, %v524_v41  ;;  %4178 = vmatprep.subr.msk.mxu1 %vm535_vm0, %v526_v42 }
  0x78   : > { %4162 = vmatmul.mubr.msk.f32.vlgmr.msra.gmra.mxu0 %vm535_vm0, %v456_v43  ;;  %4169 = vmatmul.mubr.msk.f32.vlgmr.msra.gmra.mxu1 %vm535_vm0, %v458_v44 }
  0x79   : > { %4172 = vmatpush3.xpose.msk.msra.mxu0 %vm535_vm0, %v524_v41  ;;  %4179 = vmatpush3.xpose.msk.msra.mxu1 %vm535_vm0, %v526_v42 }
  0x7a   : > { %4173 = vmatprep.subr.msk.mxu0 %vm535_vm0, %v523_v45  ;;  %4180 = vmatprep.subr.msk.mxu1 %vm535_vm0, %v525_v46 }
  0x7b   : > { %4175 = vmatprep.mubr.msk.f32.mxu0 %vm535_vm0, %v459_v47  ;;  %4182 = vmatprep.mubr.msk.f32.mxu1 %vm535_vm0, %v461_v48 }
  0x7d   : > { %4174 = vmatpush3.xpose.msk.msra.mxu0 %vm535_vm0, %v523_v45  ;;  %4181 = vmatpush3.xpose.msk.msra.mxu1 %vm535_vm0, %v525_v46 }
  0x7e   : > { %4185 = vmatprep.subr.msk.mxu0 %vm535_vm0, %v528_v49  ;;  %4192 = vmatprep.subr.msk.mxu1 %vm535_vm0, %v530_v50 }
  0x80   : > { %4176 = vmatmul.mubr.msk.f32.vlgmr.msra.gmra.mxu0 %vm535_vm0, %v460_v51  ;;  %4183 = vmatmul.mubr.msk.f32.vlgmr.msra.gmra.mxu1 %vm535_vm0, %v462_v52 }
  0x81   : > { %4186 = vmatpush3.xpose.msk.msra.mxu0 %vm535_vm0, %v528_v49  ;;  %4193 = vmatpush3.xpose.msk.msra.mxu1 %vm535_vm0, %v530_v50 }
  0x82   : > { %4187 = vmatprep.subr.msk.mxu0 %vm535_vm0, %v527_v53  ;;  %4194 = vmatprep.subr.msk.mxu1 %vm535_vm0, %v529_v54 }
  0x83   : > { %4189 = vmatprep.mubr.msk.f32.mxu0 %vm535_vm0, %v463_v55  ;;  %4196 = vmatprep.mubr.msk.f32.mxu1 %vm535_vm0, %v465_v56 }
  0x85   : > { %4188 = vmatpush3.xpose.msk.msra.mxu0 %vm535_vm0, %v527_v53  ;;  %4195 = vmatpush3.xpose.msk.msra.mxu1 %vm535_vm0, %v529_v54 }
  0x86   : > { %4199 = vmatprep.subr.msk.mxu0 %vm535_vm0, %v532_v57  ;;  %4206 = vmatprep.subr.msk.mxu1 %vm535_vm0, %v534_v58 }
  0x88   : > { %4190 = vmatmul.mubr.msk.f32.vlgmr.msra.gmra.mxu0 %vm535_vm0, %v464_v59  ;;  %4197 = vmatmul.mubr.msk.f32.vlgmr.msra.gmra.mxu1 %vm535_vm0, %v466_v60 }
  0x89   : > { %4200 = vmatpush3.xpose.msk.msra.mxu0 %vm535_vm0, %v532_v57  ;;  %4207 = vmatpush3.xpose.msk.msra.mxu1 %vm535_vm0, %v534_v58 }
  0x8a   : > { %4201 = vmatprep.subr.msk.mxu0 %vm535_vm0, %v531_v61  ;;  %4208 = vmatprep.subr.msk.mxu1 %vm535_vm0, %v533_v62 }
  0x8b   : > { %4203 = vmatprep.mubr.msk.f32.mxu0 %vm535_vm0, %v467_v63  ;;  %4210 = vmatprep.mubr.msk.f32.mxu1 %vm535_vm0, %v469_v0 }
  0x8d   : > { %4202 = vmatpush3.xpose.msk.msra.mxu0 %vm535_vm0, %v531_v61  ;;  %4209 = vmatpush3.xpose.msk.msra.mxu1 %vm535_vm0, %v533_v62 }
  0x90   : > { %4204 = vmatmul.mubr.msk.f32.vlgmr.msra.gmra.mxu0 %vm535_vm0, %v468_v1  ;;  %4211 = vmatmul.mubr.msk.f32.vlgmr.msra.gmra.mxu1 %vm535_vm0, %v470_v2 }
  0x97   : > { %v4652_v3 = vpop.permute.xlu0 %3324 }
  0x9f   : > { %v4658_v4 = vpop.permute.xlu0 %3329 }
  0xd8   : > { %v3995_v5 = vpop.f32.mrf.mxu0  ;;  %v4002_v6 = vpop.f32.mrf.mxu1 }
  0xd9   : > { %v3333_v8 = vmul.f32 %v3995_v5, %v4658_v4  ;;  %v3335_v9 = vmul.f32 %v4002_v6, %v4658_v4 }
  0xda   : > { %v614_v10 = vpop.f32.mrf.mxu0  ;;  %v701_v11 = vpop.f32.mrf.mxu1 }
  0xdb   : > { %v3404_v12 = vmul.f32 %v4660_v7, %v3333_v8  ;;  %v3406_v13 = vmul.f32 %v4660_v7, %v3335_v9  ;;  %v3332_v14 = vmul.f32 %v4652_v3, %v614_v10  ;;  %v3334_v15 = vmul.f32 %v4652_v3, %v701_v11 }
  0xdd   : > { %3468 = vst.msk [vmem:[%s4668_s9 + $0x8] sm:$0xff] %vm535_vm0, %v3404_v12  ;;  %3470 = vst.msk [vmem:[%s4668_s9 + $0x18] sm:$0xff] %vm535_vm0, %v3406_v13  ;;  %v3403_v16 = vmul.f32 %v4660_v7, %v3332_v14  ;;  %v3405_v17 = vmul.f32 %v4660_v7, %v3334_v15 }
  0xdf   : > { %3467 = vst.msk [vmem:[%s4668_s9] sm:$0xff] %vm535_vm0, %v3403_v16  ;;  %3469 = vst.msk [vmem:[%s4668_s9 + $0x10] sm:$0xff] %vm535_vm0, %v3405_v17 }
  0xe0   : > { %v4009_v18 = vpop.f32.mrf.mxu0  ;;  %v4016_v19 = vpop.f32.mrf.mxu1 }
  0xe1   : > { %v3337_v20 = vmul.f32 %v4009_v18, %v4658_v4  ;;  %v3339_v21 = vmul.f32 %v4016_v19, %v4658_v4 }
  0xe2   : > { %v788_v22 = vpop.f32.mrf.mxu0  ;;  %v875_v23 = vpop.f32.mrf.mxu1 }
  0xe3   : > { %v3408_v24 = vmul.f32 %v4660_v7, %v3337_v20  ;;  %v3410_v25 = vmul.f32 %v4660_v7, %v3339_v21  ;;  %v3336_v26 = vmul.f32 %v4652_v3, %v788_v22  ;;  %v3338_v27 = vmul.f32 %v4652_v3, %v875_v23 }
  0xe5   : > { %3472 = vst.msk [vmem:[%s4668_s9 + $0x28] sm:$0xff] %vm535_vm0, %v3408_v24  ;;  %3474 = vst.msk [vmem:[%s4668_s9 + $0x38] sm:$0xff] %vm535_vm0, %v3410_v25  ;;  %v3407_v28 = vmul.f32 %v4660_v7, %v3336_v26  ;;  %v3409_v29 = vmul.f32 %v4660_v7, %v3338_v27 }
  0xe7   : > { %3471 = vst.msk [vmem:[%s4668_s9 + $0x20] sm:$0xff] %vm535_vm0, %v3407_v28  ;;  %3473 = vst.msk [vmem:[%s4668_s9 + $0x30] sm:$0xff] %vm535_vm0, %v3409_v29 }
  0xe8   : > { %v4023_v30 = vpop.f32.mrf.mxu0  ;;  %v4030_v31 = vpop.f32.mrf.mxu1 }
  0xe9   : > { %v3341_v32 = vmul.f32 %v4023_v30, %v4658_v4  ;;  %v3343_v33 = vmul.f32 %v4030_v31, %v4658_v4 }
  0xea   : > { %v962_v34 = vpop.f32.mrf.mxu0  ;;  %v1049_v35 = vpop.f32.mrf.mxu1 }
  0xeb   : > { %v3412_v36 = vmul.f32 %v4660_v7, %v3341_v32  ;;  %v3414_v37 = vmul.f32 %v4660_v7, %v3343_v33  ;;  %v3340_v38 = vmul.f32 %v4652_v3, %v962_v34  ;;  %v3342_v39 = vmul.f32 %v4652_v3, %v1049_v35 }
  0xed   : > { %3476 = vst.msk [vmem:[%s4668_s9 + $0x48] sm:$0xff] %vm535_vm0, %v3412_v36  ;;  %3478 = vst.msk [vmem:[%s4668_s9 + $0x58] sm:$0xff] %vm535_vm0, %v3414_v37  ;;  %v3411_v40 = vmul.f32 %v4660_v7, %v3340_v38  ;;  %v3413_v41 = vmul.f32 %v4660_v7, %v3342_v39 }
  0xef   : > { %3475 = vst.msk [vmem:[%s4668_s9 + $0x40] sm:$0xff] %vm535_vm0, %v3411_v40  ;;  %3477 = vst.msk [vmem:[%s4668_s9 + $0x50] sm:$0xff] %vm535_vm0, %v3413_v41 }
  0xf0   : > { %v4037_v42 = vpop.f32.mrf.mxu0  ;;  %v4044_v43 = vpop.f32.mrf.mxu1 }
  0xf1   : > { %v3345_v44 = vmul.f32 %v4037_v42, %v4658_v4  ;;  %v3347_v45 = vmul.f32 %v4044_v43, %v4658_v4 }
  0xf2   : > { %v1136_v46 = vpop.f32.mrf.mxu0  ;;  %v1223_v47 = vpop.f32.mrf.mxu1 }
  0xf3   : > { %v3416_v48 = vmul.f32 %v4660_v7, %v3345_v44  ;;  %v3418_v49 = vmul.f32 %v4660_v7, %v3347_v45  ;;  %v3344_v50 = vmul.f32 %v4652_v3, %v1136_v46  ;;  %v3346_v51 = vmul.f32 %v4652_v3, %v1223_v47 }
  0xf5   : > { %3480 = vst.msk [vmem:[%s4668_s9 + $0x68] sm:$0xff] %vm535_vm0, %v3416_v48  ;;  %3482 = vst.msk [vmem:[%s4668_s9 + $0x78] sm:$0xff] %vm535_vm0, %v3418_v49  ;;  %v3415_v52 = vmul.f32 %v4660_v7, %v3344_v50  ;;  %v3417_v53 = vmul.f32 %v4660_v7, %v3346_v51 }
  0xf7   : > { %3479 = vst.msk [vmem:[%s4668_s9 + $0x60] sm:$0xff] %vm535_vm0, %v3415_v52  ;;  %3481 = vst.msk [vmem:[%s4668_s9 + $0x70] sm:$0xff] %vm535_vm0, %v3417_v53 }
  0xf8   : > { %v4051_v54 = vpop.f32.mrf.mxu0  ;;  %v4058_v55 = vpop.f32.mrf.mxu1 }
  0xf9   : > { %v3349_v56 = vmul.f32 %v4051_v54, %v4658_v4  ;;  %v3351_v57 = vmul.f32 %v4058_v55, %v4658_v4 }
  0xfa   : > { %v1310_v58 = vpop.f32.mrf.mxu0  ;;  %v1397_v59 = vpop.f32.mrf.mxu1 }
  0xfb   : > { %v3420_v60 = vmul.f32 %v4660_v7, %v3349_v56  ;;  %v3422_v61 = vmul.f32 %v4660_v7, %v3351_v57  ;;  %v3348_v62 = vmul.f32 %v4652_v3, %v1310_v58  ;;  %v3350_v63 = vmul.f32 %v4652_v3, %v1397_v59 }
  0xfd   : > { %3484 = vst.msk [vmem:[%s4668_s9 + $0x88] sm:$0xff] %vm535_vm0, %v3420_v60  ;;  %3486 = vst.msk [vmem:[%s4668_s9 + $0x98] sm:$0xff] %vm535_vm0, %v3422_v61  ;;  %v3419_v0 = vmul.f32 %v4660_v7, %v3348_v62  ;;  %v3421_v1 = vmul.f32 %v4660_v7, %v3350_v63 }
  0xff   : > { %3483 = vst.msk [vmem:[%s4668_s9 + $0x80] sm:$0xff] %vm535_vm0, %v3419_v0  ;;  %3485 = vst.msk [vmem:[%s4668_s9 + $0x90] sm:$0xff] %vm535_vm0, %v3421_v1 }
 0x100   : > { %v4065_v2 = vpop.f32.mrf.mxu0  ;;  %v4072_v5 = vpop.f32.mrf.mxu1 }
 0x101   : > { %v3353_v6 = vmul.f32 %v4065_v2, %v4658_v4  ;;  %v3355_v8 = vmul.f32 %v4072_v5, %v4658_v4 }
 0x102   : > { %v1484_v9 = vpop.f32.mrf.mxu0  ;;  %v1571_v10 = vpop.f32.mrf.mxu1 }
 0x103   : > { %v3424_v11 = vmul.f32 %v4660_v7, %v3353_v6  ;;  %v3426_v12 = vmul.f32 %v4660_v7, %v3355_v8  ;;  %v3352_v13 = vmul.f32 %v4652_v3, %v1484_v9  ;;  %v3354_v14 = vmul.f32 %v4652_v3, %v1571_v10 }
 0x105   : > { %3488 = vst.msk [vmem:[%s4668_s9 + $0xa8] sm:$0xff] %vm535_vm0, %v3424_v11  ;;  %3490 = vst.msk [vmem:[%s4668_s9 + $0xb8] sm:$0xff] %vm535_vm0, %v3426_v12  ;;  %v3423_v15 = vmul.f32 %v4660_v7, %v3352_v13  ;;  %v3425_v16 = vmul.f32 %v4660_v7, %v3354_v14 }
 0x107   : > { %3487 = vst.msk [vmem:[%s4668_s9 + $0xa0] sm:$0xff] %vm535_vm0, %v3423_v15  ;;  %3489 = vst.msk [vmem:[%s4668_s9 + $0xb0] sm:$0xff] %vm535_vm0, %v3425_v16 }
 0x108   : > { %v4079_v17 = vpop.f32.mrf.mxu0  ;;  %v4086_v18 = vpop.f32.mrf.mxu1 }
 0x109   : > { %v3357_v19 = vmul.f32 %v4079_v17, %v4658_v4  ;;  %v3359_v20 = vmul.f32 %v4086_v18, %v4658_v4 }
 0x10a   : > { %v1658_v21 = vpop.f32.mrf.mxu0  ;;  %v1745_v22 = vpop.f32.mrf.mxu1 }
 0x10b   : > { %v3428_v23 = vmul.f32 %v4660_v7, %v3357_v19  ;;  %v3430_v24 = vmul.f32 %v4660_v7, %v3359_v20  ;;  %v3356_v25 = vmul.f32 %v4652_v3, %v1658_v21  ;;  %v3358_v26 = vmul.f32 %v4652_v3, %v1745_v22 }
 0x10d   : > { %3492 = vst.msk [vmem:[%s4668_s9 + $0xc8] sm:$0xff] %vm535_vm0, %v3428_v23  ;;  %3494 = vst.msk [vmem:[%s4668_s9 + $0xd8] sm:$0xff] %vm535_vm0, %v3430_v24  ;;  %v3427_v27 = vmul.f32 %v4660_v7, %v3356_v25  ;;  %v3429_v28 = vmul.f32 %v4660_v7, %v3358_v26 }
 0x10f   : > { %3491 = vst.msk [vmem:[%s4668_s9 + $0xc0] sm:$0xff] %vm535_vm0, %v3427_v27  ;;  %3493 = vst.msk [vmem:[%s4668_s9 + $0xd0] sm:$0xff] %vm535_vm0, %v3429_v28 }
 0x110   : > { %v4093_v29 = vpop.f32.mrf.mxu0  ;;  %v4100_v30 = vpop.f32.mrf.mxu1 }
 0x111   : > { %v3361_v31 = vmul.f32 %v4093_v29, %v4658_v4  ;;  %v3363_v32 = vmul.f32 %v4100_v30, %v4658_v4 }
 0x112   : > { %v1832_v33 = vpop.f32.mrf.mxu0  ;;  %v1919_v34 = vpop.f32.mrf.mxu1 }
 0x113   : > { %v3432_v35 = vmul.f32 %v4660_v7, %v3361_v31  ;;  %v3434_v36 = vmul.f32 %v4660_v7, %v3363_v32  ;;  %v3360_v37 = vmul.f32 %v4652_v3, %v1832_v33  ;;  %v3362_v38 = vmul.f32 %v4652_v3, %v1919_v34 }
 0x115   : > { %3496 = vst.msk [vmem:[%s4668_s9 + $0xe8] sm:$0xff] %vm535_vm0, %v3432_v35  ;;  %3498 = vst.msk [vmem:[%s4668_s9 + $0xf8] sm:$0xff] %vm535_vm0, %v3434_v36  ;;  %v3431_v39 = vmul.f32 %v4660_v7, %v3360_v37  ;;  %v3433_v40 = vmul.f32 %v4660_v7, %v3362_v38 }
 0x117   : > { %3495 = vst.msk [vmem:[%s4668_s9 + $0xe0] sm:$0xff] %vm535_vm0, %v3431_v39  ;;  %3497 = vst.msk [vmem:[%s4668_s9 + $0xf0] sm:$0xff] %vm535_vm0, %v3433_v40 }
 0x118   : > { %v4107_v41 = vpop.f32.mrf.mxu0  ;;  %v4114_v42 = vpop.f32.mrf.mxu1 }
 0x119   : > { %v3365_v43 = vmul.f32 %v4107_v41, %v4658_v4  ;;  %v3367_v44 = vmul.f32 %v4114_v42, %v4658_v4 }
 0x11a   : > { %v2006_v45 = vpop.f32.mrf.mxu0  ;;  %v2093_v46 = vpop.f32.mrf.mxu1 }
 0x11b   : > { %v3436_v47 = vmul.f32 %v4660_v7, %v3365_v43  ;;  %v3438_v48 = vmul.f32 %v4660_v7, %v3367_v44  ;;  %v3364_v49 = vmul.f32 %v4652_v3, %v2006_v45  ;;  %v3366_v50 = vmul.f32 %v4652_v3, %v2093_v46 }
 0x11d   : > { %3500 = vst.msk [vmem:[%s4668_s9 + $0x108] sm:$0xff] %vm535_vm0, %v3436_v47  ;;  %3502 = vst.msk [vmem:[%s4668_s9 + $0x118] sm:$0xff] %vm535_vm0, %v3438_v48  ;;  %v3435_v51 = vmul.f32 %v4660_v7, %v3364_v49  ;;  %v3437_v52 = vmul.f32 %v4660_v7, %v3366_v50 }
 0x11f   : > { %3499 = vst.msk [vmem:[%s4668_s9 + $0x100] sm:$0xff] %vm535_vm0, %v3435_v51  ;;  %3501 = vst.msk [vmem:[%s4668_s9 + $0x110] sm:$0xff] %vm535_vm0, %v3437_v52 }
 0x120   : > { %v4121_v53 = vpop.f32.mrf.mxu0  ;;  %v4128_v54 = vpop.f32.mrf.mxu1 }
 0x121   : > { %v3369_v55 = vmul.f32 %v4121_v53, %v4658_v4  ;;  %v3371_v56 = vmul.f32 %v4128_v54, %v4658_v4 }
 0x122   : > { %v2180_v57 = vpop.f32.mrf.mxu0  ;;  %v2267_v58 = vpop.f32.mrf.mxu1 }
 0x123   : > { %v3440_v59 = vmul.f32 %v4660_v7, %v3369_v55  ;;  %v3442_v60 = vmul.f32 %v4660_v7, %v3371_v56  ;;  %v3368_v61 = vmul.f32 %v4652_v3, %v2180_v57  ;;  %v3370_v62 = vmul.f32 %v4652_v3, %v2267_v58 }
 0x125   : > { %3504 = vst.msk [vmem:[%s4668_s9 + $0x128] sm:$0xff] %vm535_vm0, %v3440_v59  ;;  %3506 = vst.msk [vmem:[%s4668_s9 + $0x138] sm:$0xff] %vm535_vm0, %v3442_v60  ;;  %v3439_v63 = vmul.f32 %v4660_v7, %v3368_v61  ;;  %v3441_v0 = vmul.f32 %v4660_v7, %v3370_v62 }
 0x127   : > { %3503 = vst.msk [vmem:[%s4668_s9 + $0x120] sm:$0xff] %vm535_vm0, %v3439_v63  ;;  %3505 = vst.msk [vmem:[%s4668_s9 + $0x130] sm:$0xff] %vm535_vm0, %v3441_v0 }
 0x128   : > { %v4135_v1 = vpop.f32.mrf.mxu0  ;;  %v4142_v2 = vpop.f32.mrf.mxu1 }
 0x129   : > { %v3373_v5 = vmul.f32 %v4135_v1, %v4658_v4  ;;  %v3375_v6 = vmul.f32 %v4142_v2, %v4658_v4 }
 0x12a   : > { %v2354_v8 = vpop.f32.mrf.mxu0  ;;  %v2441_v9 = vpop.f32.mrf.mxu1 }
 0x12b   : > { %v3444_v10 = vmul.f32 %v4660_v7, %v3373_v5  ;;  %v3446_v11 = vmul.f32 %v4660_v7, %v3375_v6  ;;  %v3372_v12 = vmul.f32 %v4652_v3, %v2354_v8  ;;  %v3374_v13 = vmul.f32 %v4652_v3, %v2441_v9 }
 0x12d   : > { %3508 = vst.msk [vmem:[%s4668_s9 + $0x148] sm:$0xff] %vm535_vm0, %v3444_v10  ;;  %3510 = vst.msk [vmem:[%s4668_s9 + $0x158] sm:$0xff] %vm535_vm0, %v3446_v11  ;;  %v3443_v14 = vmul.f32 %v4660_v7, %v3372_v12  ;;  %v3445_v15 = vmul.f32 %v4660_v7, %v3374_v13 }
 0x12f   : > { %3507 = vst.msk [vmem:[%s4668_s9 + $0x140] sm:$0xff] %vm535_vm0, %v3443_v14  ;;  %3509 = vst.msk [vmem:[%s4668_s9 + $0x150] sm:$0xff] %vm535_vm0, %v3445_v15 }
 0x130   : > { %v4149_v16 = vpop.f32.mrf.mxu0  ;;  %v4156_v17 = vpop.f32.mrf.mxu1 }
 0x131   : > { %v3377_v18 = vmul.f32 %v4149_v16, %v4658_v4  ;;  %v3379_v19 = vmul.f32 %v4156_v17, %v4658_v4 }
 0x132   : > { %v2528_v20 = vpop.f32.mrf.mxu0  ;;  %v2615_v21 = vpop.f32.mrf.mxu1 }
 0x133   : > { %v3448_v22 = vmul.f32 %v4660_v7, %v3377_v18  ;;  %v3450_v23 = vmul.f32 %v4660_v7, %v3379_v19  ;;  %v3376_v24 = vmul.f32 %v4652_v3, %v2528_v20  ;;  %v3378_v25 = vmul.f32 %v4652_v3, %v2615_v21 }
 0x135   : > { %3512 = vst.msk [vmem:[%s4668_s9 + $0x168] sm:$0xff] %vm535_vm0, %v3448_v22  ;;  %3514 = vst.msk [vmem:[%s4668_s9 + $0x178] sm:$0xff] %vm535_vm0, %v3450_v23  ;;  %v3447_v26 = vmul.f32 %v4660_v7, %v3376_v24  ;;  %v3449_v27 = vmul.f32 %v4660_v7, %v3378_v25 }
 0x137   : > { %3511 = vst.msk [vmem:[%s4668_s9 + $0x160] sm:$0xff] %vm535_vm0, %v3447_v26  ;;  %3513 = vst.msk [vmem:[%s4668_s9 + $0x170] sm:$0xff] %vm535_vm0, %v3449_v27 }
 0x138   : > { %v4163_v28 = vpop.f32.mrf.mxu0  ;;  %v4170_v29 = vpop.f32.mrf.mxu1 }
 0x139   : > { %v3381_v30 = vmul.f32 %v4163_v28, %v4658_v4  ;;  %v3383_v31 = vmul.f32 %v4170_v29, %v4658_v4 }
 0x13a   : > { %v2702_v32 = vpop.f32.mrf.mxu0  ;;  %v2789_v33 = vpop.f32.mrf.mxu1 }
 0x13b   : > { %v3452_v34 = vmul.f32 %v4660_v7, %v3381_v30  ;;  %v3454_v35 = vmul.f32 %v4660_v7, %v3383_v31  ;;  %v3380_v36 = vmul.f32 %v4652_v3, %v2702_v32  ;;  %v3382_v37 = vmul.f32 %v4652_v3, %v2789_v33 }
 0x13d   : > { %3516 = vst.msk [vmem:[%s4668_s9 + $0x188] sm:$0xff] %vm535_vm0, %v3452_v34  ;;  %3518 = vst.msk [vmem:[%s4668_s9 + $0x198] sm:$0xff] %vm535_vm0, %v3454_v35  ;;  %v3451_v38 = vmul.f32 %v4660_v7, %v3380_v36  ;;  %v3453_v39 = vmul.f32 %v4660_v7, %v3382_v37 }
 0x13f   : > { %3515 = vst.msk [vmem:[%s4668_s9 + $0x180] sm:$0xff] %vm535_vm0, %v3451_v38  ;;  %3517 = vst.msk [vmem:[%s4668_s9 + $0x190] sm:$0xff] %vm535_vm0, %v3453_v39 }
 0x140   : > { %v4177_v40 = vpop.f32.mrf.mxu0  ;;  %v4184_v41 = vpop.f32.mrf.mxu1 }
 0x141   : > { %v3385_v42 = vmul.f32 %v4177_v40, %v4658_v4  ;;  %v3387_v43 = vmul.f32 %v4184_v41, %v4658_v4 }
 0x142   : > { %v2876_v44 = vpop.f32.mrf.mxu0  ;;  %v2963_v45 = vpop.f32.mrf.mxu1 }
 0x143   : > { %v3456_v46 = vmul.f32 %v4660_v7, %v3385_v42  ;;  %v3458_v47 = vmul.f32 %v4660_v7, %v3387_v43  ;;  %v3384_v48 = vmul.f32 %v4652_v3, %v2876_v44  ;;  %v3386_v49 = vmul.f32 %v4652_v3, %v2963_v45 }
 0x145   : > { %3520 = vst.msk [vmem:[%s4668_s9 + $0x1a8] sm:$0xff] %vm535_vm0, %v3456_v46  ;;  %3522 = vst.msk [vmem:[%s4668_s9 + $0x1b8] sm:$0xff] %vm535_vm0, %v3458_v47  ;;  %v3455_v50 = vmul.f32 %v4660_v7, %v3384_v48  ;;  %v3457_v51 = vmul.f32 %v4660_v7, %v3386_v49 }
 0x147   : > { %3519 = vst.msk [vmem:[%s4668_s9 + $0x1a0] sm:$0xff] %vm535_vm0, %v3455_v50  ;;  %3521 = vst.msk [vmem:[%s4668_s9 + $0x1b0] sm:$0xff] %vm535_vm0, %v3457_v51 }
 0x148   : > { %v4191_v52 = vpop.f32.mrf.mxu0  ;;  %v4198_v53 = vpop.f32.mrf.mxu1 }
 0x149   : > { %v3389_v54 = vmul.f32 %v4191_v52, %v4658_v4  ;;  %v3391_v55 = vmul.f32 %v4198_v53, %v4658_v4 }
 0x14a   : > { %v3050_v56 = vpop.f32.mrf.mxu0  ;;  %v3137_v57 = vpop.f32.mrf.mxu1 }
 0x14b   : > { %v3460_v58 = vmul.f32 %v4660_v7, %v3389_v54  ;;  %v3462_v59 = vmul.f32 %v4660_v7, %v3391_v55  ;;  %v3388_v60 = vmul.f32 %v4652_v3, %v3050_v56  ;;  %v3390_v61 = vmul.f32 %v4652_v3, %v3137_v57 }
 0x14d   : > { %3524 = vst.msk [vmem:[%s4668_s9 + $0x1c8] sm:$0xff] %vm535_vm0, %v3460_v58  ;;  %3526 = vst.msk [vmem:[%s4668_s9 + $0x1d8] sm:$0xff] %vm535_vm0, %v3462_v59  ;;  %v3459_v62 = vmul.f32 %v4660_v7, %v3388_v60  ;;  %v3461_v63 = vmul.f32 %v4660_v7, %v3390_v61 }
 0x14f   : > { %3523 = vst.msk [vmem:[%s4668_s9 + $0x1c0] sm:$0xff] %vm535_vm0, %v3459_v62  ;;  %3525 = vst.msk [vmem:[%s4668_s9 + $0x1d0] sm:$0xff] %vm535_vm0, %v3461_v63 }
 0x150   : > { %v4205_v0 = vpop.f32.mrf.mxu0  ;;  %v4212_v1 = vpop.f32.mrf.mxu1 }
 0x151   : > { %v3393_v2 = vmul.f32 %v4205_v0, %v4658_v4  ;;  %v3395_v5 = vmul.f32 %v4212_v1, %v4658_v4 }
 0x152   : > { %v3224_v6 = vpop.f32.mrf.mxu0  ;;  %v3311_v8 = vpop.f32.mrf.mxu1 }
 0x153   : > { %v3464_v9 = vmul.f32 %v4660_v7, %v3393_v2  ;;  %v3466_v10 = vmul.f32 %v4660_v7, %v3395_v5  ;;  %v3392_v11 = vmul.f32 %v4652_v3, %v3224_v6  ;;  %v3394_v12 = vmul.f32 %v4652_v3, %v3311_v8 }
 0x155   : > { %3528 = vst.msk [vmem:[%s4668_s9 + $0x1e8] sm:$0xff] %vm535_vm0, %v3464_v9  ;;  %3530 = vst.msk [vmem:[%s4668_s9 + $0x1f8] sm:$0xff] %vm535_vm0, %v3466_v10  ;;  %v3463_v13 = vmul.f32 %v4660_v7, %v3392_v11  ;;  %v3465_v14 = vmul.f32 %v4660_v7, %v3394_v12 }
 0x157   : > { %3527 = vst.msk [vmem:[%s4668_s9 + $0x1e0] sm:$0xff] %vm535_vm0, %v3463_v13  ;;  %3529 = vst.msk [vmem:[%s4668_s9 + $0x1f0] sm:$0xff] %vm535_vm0, %v3465_v14 }
 0x158 PF: > { %s14_s17 = sadd.s32 1, %s4261_s17   ;;  %s4938_s15 = smov %s4257_s16 }
 0x159   : > { %p11_p5 = scmp.ge.s32.totalorder %s14_s17, 4   ;;  %s4939_s16 = smov %s4941_s18 }
 0x15b   :  { %13 = sbr.rel (!%p11_p5) target bundleno = 2 (0x2), region = 75 }

// kernel: pairwise_block.11
= control target key start
LH: loop header
LB: loop body
LE: loop exit
PB: predicated region body
PF: predicated region fallthrough
CT: control target
= control target key end

     0   :  { %s3535_s0 = inlined_call_operand.vmem [shape: f32[2,16,16,32], index: 0, kind: input, shape index: {}]   ;;  %s3536_s1 = inlined_call_operand.vmem [shape: f32[2,32,16,16], index: 1, kind: input, shape index: {}]   ;;  %s3537_s2 = inlined_call_operand.vmem [shape: f32[1,32], index: 2, kind: input, shape index: {}]   ;;  %s3538_s3 = inlined_call_operand.vmem [shape: f32[1,32], index: 3, kind: input, shape index: {}]   ;;  %s3539_s4 = inlined_call_operand.vmem [shape: f32[32,32], index: 4, kind: input, shape index: {}]   ;;  %s3540_s5 = inlined_call_operand.vmem [shape: f32[32,1], index: 5, kind: input, shape index: {}]   ;;  %s3541_s6 = inlined_call_operand.vmem [shape: f32[32,1], index: 6, kind: input, shape index: {}]   ;;  %s3542_s7 = inlined_call_operand.vmem [shape: f32[32,32], index: 7, kind: input, shape index: {}]   ;;  %s3543_s8 = inlined_call_operand.vmem [shape: f32[1,32], index: 8, kind: input, shape index: {}]   ;;  %s3544_s9 = inlined_call_operand.vmem [shape: f32[1,32], index: 9, kind: input, shape index: {}]   ;;  %s3545_s10 = inlined_call_operand.vmem [shape: f32[32,128], index: 10, kind: input, shape index: {}]   ;;  %s3546_s11 = inlined_call_operand.vmem [shape: f32[32,128], index: 11, kind: input, shape index: {}]   ;;  %s3547_s12 = inlined_call_operand.vmem [shape: f32[128,32], index: 12, kind: input, shape index: {}]   ;;  %s3548_s13 = inlined_call_operand.hbm [shape: f32[2,16,16,32], index: 13, kind: output, shape index: {}]  }
   0x1   :  { %3579 = sst [smem:[#allocation33_spill]] %s3536_s1 }
   0x2   :  { %3580 = sst [smem:[#allocation34_spill]] %s3547_s12 }
   0x3   :  { %3581 = sst [smem:[#allocation35_spill]] %s3548_s13 }
   0x4   :  { %18 = vsyncpa [#allocation4], 0 }
   0x5   :  { %20 = vsyncpa [#allocation4 + $0x1], 0  ;;  %s2506_s25 = smov 0   ;;  %s2508_s26 = smov 0  }
   0x6   :  { %s2510_s27 = smov 0   ;;  %s2512_s28 = smov 0  }
   0x7   :  { %s2514_s29 = smov 0   ;;  %s2516_s30 = smov 0  }
   0x8   :  { %s2518_s14 = smov 0   ;;  %s2520_s15 = smov 0  }
   0x9 LB: > { %3582 = sst [smem:[#allocation6_spill]] %s2398_s25  ;;  %s2057_s16 = sadd.s32 4294967295, %s2426_s15   ;;  %s2426_s15 = sphi %s2520_s15, %s26_s15   ;;  %s2422_s14 = sphi %s2518_s14, %s3645_s14   ;;  %s2418_s30 = sphi %s2516_s30, %s3644_s30   ;;  %s2414_s29 = sphi %s2514_s29, %s3643_s29   ;;  %s2410_s28 = sphi %s2512_s28, %s3642_s28   ;;  %s2406_s27 = sphi %s2510_s27, %s3648_s27   ;;  %s2402_s26 = sphi %s2508_s26, %s3647_s26   ;;  %s2398_s25 = sphi %s2506_s25, %s3646_s25  }
   0xa   : > { %3583 = sst [smem:[#allocation7_spill]] %s2418_s30  ;;  %s2058_s17 = sadd.s32 4294967294, %s2426_s15  }
   0xb   : > { %3584 = sst [smem:[#allocation8_spill]] %s2422_s14  ;;  %s35_s18 = sadd.s32 1, %s2418_s30 }
   0xc   : > { %p36_p0 = scmp.ge.s32.totalorder %s35_s18, 2  ;;  %s38_s19 = sadd.s32 1, %s2422_s14 }
   0xd   : > { %p82_p1 = scmp.ne.s32.totalorder %s2406_s27, %s2402_s26  ;;  %p83_p2 = scmp.eq.s32.totalorder %s2426_s15, 0 }
   0xe   : > { %s3650_s18 = smov (%p36_p0, %s35_s18), 0  ;;  %s3652_s19 = smov (!%p36_p0, %s38_s19), %s2422_s14 }
   0xf   : > { %3585 = sst [smem:[#allocation9_spill]] %s3650_s18  ;;  %s71_s20 = ssub.s32 %s2418_s30, %s3650_s18 }
  0x10   : > { %p2558_p3 = por %p83_p2, %p82_p1  ;;  %p40_p4 = scmp.ge.s32.totalorder %s3652_s19, 2 }
  0x11   : > { %p345_p5 = scmp.eq.s32.totalorder %s2057_s16, 3  ;;  %p350_p6 = scmp.ne.s32.totalorder %s2402_s26, %s2398_s25 }
  0x12   : > { %p351_p7 = scmp.eq.s32.totalorder %s2058_s17, 3  ;;  %s3654_s19 = smov (%p40_p4, %s3652_s19), 0 }
  0x13   : > { %3587 = sst [smem:[#allocation10_spill]] %s3654_s19  ;;  %p2566_p8 = por %p345_p5, %p82_p1 }
  0x14   : > { %p2570_p9 = por %p351_p7, %p350_p6  ;;  %s70_s24 = ssub.s32 %s2422_s14, %s3654_s19 }
  0x15   : > { %s3588_s22 = scalar_select %p2566_p8, 1, 0 }
  0x16   : > { %s3590_s23 = scalar_select %p2570_p9, 1, 0 }
  0x17   : > { %3589 = sst [smem:[#allocation11_spill]] %s3588_s22  ;;  %s72_s18 = sor.u32 %s71_s20, %s70_s24 }
  0x18   : > { %3591 = sst [smem:[#allocation12_spill]] %s3590_s23  ;;  %s75_s13 = sadd.s32 1, %s2406_s27 }
  0x19   : > { %p73_p10 = scmp.eq.s32.totalorder %s72_s18, 0  ;;  %p2060_p11 = scmp.ge.s32.totalorder %s2426_s15, 4 }
  0x1b   : > { %s2578_s12 = scalar_select %p73_p10, %s2406_s27, %s75_s13  }
  0x1c   : > { %400 = sbr.rel (%p2060_p11) target bundleno = 59 (0x3b), region = 60 }
  0x1d   : > { %3592 = sst [smem:[#allocation13_spill]] %s2578_s12 }
  0x21   : > { %417 = sbr.rel (!%p2558_p3) target bundleno = 59 (0x3b), region = 68  ;;  %s419_s16 = sand.u32 (%p2558_p3), 1, %s2406_s27  }
  0x22   : > { %s2062_s17 = sshll.u32 (%p2558_p3), %s2422_s14, 6  ;;  %s2061_s25 = sshll.u32 (%p2558_p3), %s419_s16, 8 }
  0x23   : > { %s423_s22 = sadd.s32 (%p2558_p3), %s2418_s30, %s2062_s17  ;;  %s3593_s1 = sld [smem:[#allocation33_spill]] (%p2558_p3) }
  0x24   : > { %s2063_s23 = sshll.u32 (%p2558_p3), %s423_s22, 3  ;;  %s2594_s13 = scalar_lea.vmem (%p2558_p3), [#allocation2], %s2061_s25 }
  0x29   : > { %s2589_s18 = scalar_lea.vmem %s3593_s1, %s2063_s23 }
  0x2a   : > { %v516_v0 = vld [vmem:[%s2589_s18] sm:$0xff]  ;;  %v518_v1 = vld [vmem:[%s2589_s18 + $0x10] sm:$0xff] }
  0x2b   : > { %v520_v2 = vld [vmem:[%s2589_s18 + $0x20] sm:$0xff]  ;;  %517 = vst [vmem:[%s2594_s13] sm:$0xff] %v516_v0  ;;  %519 = vst [vmem:[%s2594_s13 + $0x8] sm:$0xff] %v518_v1  ;;  %v522_v3 = vld [vmem:[%s2589_s18 + $0x30] sm:$0xff] }
  0x2c   : > { %521 = vst [vmem:[%s2594_s13 + $0x10] sm:$0xff] %v520_v2  ;;  %v524_v4 = vld [vmem:[%s2589_s18 + $0x40] sm:$0xff]  ;;  %v526_v5 = vld [vmem:[%s2589_s18 + $0x50] sm:$0xff]  ;;  %523 = vst [vmem:[%s2594_s13 + $0x18] sm:$0xff] %v522_v3 }
  0x2d   : > { %525 = vst [vmem:[%s2594_s13 + $0x20] sm:$0xff] %v524_v4  ;;  %527 = vst [vmem:[%s2594_s13 + $0x28] sm:$0xff] %v526_v5  ;;  %v528_v6 = vld [vmem:[%s2589_s18 + $0x60] sm:$0xff]  ;;  %v530_v7 = vld [vmem:[%s2589_s18 + $0x70] sm:$0xff] }
  0x2e   : > { %v532_v8 = vld [vmem:[%s2589_s18 + $0x80] sm:$0xff]  ;;  %529 = vst [vmem:[%s2594_s13 + $0x30] sm:$0xff] %v528_v6  ;;  %531 = vst [vmem:[%s2594_s13 + $0x38] sm:$0xff] %v530_v7  ;;  %v534_v9 = vld [vmem:[%s2589_s18 + $0x90] sm:$0xff] }
  0x2f   : > { %533 = vst [vmem:[%s2594_s13 + $0x40] sm:$0xff] %v532_v8  ;;  %v536_v10 = vld [vmem:[%s2589_s18 + $0xa0] sm:$0xff]  ;;  %v538_v11 = vld [vmem:[%s2589_s18 + $0xb0] sm:$0xff]  ;;  %535 = vst [vmem:[%s2594_s13 + $0x48] sm:$0xff] %v534_v9 }
  0x30   : > { %537 = vst [vmem:[%s2594_s13 + $0x50] sm:$0xff] %v536_v10  ;;  %539 = vst [vmem:[%s2594_s13 + $0x58] sm:$0xff] %v538_v11  ;;  %v540_v12 = vld [vmem:[%s2589_s18 + $0xc0] sm:$0xff]  ;;  %v542_v13 = vld [vmem:[%s2589_s18 + $0xd0] sm:$0xff] }
  0x31   : > { %v544_v14 = vld [vmem:[%s2589_s18 + $0xe0] sm:$0xff]  ;;  %541 = vst [vmem:[%s2594_s13 + $0x60] sm:$0xff] %v540_v12  ;;  %543 = vst [vmem:[%s2594_s13 + $0x68] sm:$0xff] %v542_v13  ;;  %v546_v15 = vld [vmem:[%s2589_s18 + $0xf0] sm:$0xff] }
  0x32   : > { %545 = vst [vmem:[%s2594_s13 + $0x70] sm:$0xff] %v544_v14  ;;  %v548_v16 = vld [vmem:[%s2589_s18 + $0x100] sm:$0xff]  ;;  %v550_v17 = vld [vmem:[%s2589_s18 + $0x110] sm:$0xff]  ;;  %547 = vst [vmem:[%s2594_s13 + $0x78] sm:$0xff] %v546_v15 }
  0x33   : > { %549 = vst [vmem:[%s2594_s13 + $0x80] sm:$0xff] %v548_v16  ;;  %551 = vst [vmem:[%s2594_s13 + $0x88] sm:$0xff] %v550_v17  ;;  %v552_v18 = vld [vmem:[%s2589_s18 + $0x120] sm:$0xff]  ;;  %v554_v19 = vld [vmem:[%s2589_s18 + $0x130] sm:$0xff] }
  0x34   : > { %v556_v20 = vld [vmem:[%s2589_s18 + $0x140] sm:$0xff]  ;;  %553 = vst [vmem:[%s2594_s13 + $0x90] sm:$0xff] %v552_v18  ;;  %555 = vst [vmem:[%s2594_s13 + $0x98] sm:$0xff] %v554_v19  ;;  %v558_v21 = vld [vmem:[%s2589_s18 + $0x150] sm:$0xff] }
  0x35   : > { %557 = vst [vmem:[%s2594_s13 + $0xa0] sm:$0xff] %v556_v20  ;;  %v560_v22 = vld [vmem:[%s2589_s18 + $0x160] sm:$0xff]  ;;  %v562_v23 = vld [vmem:[%s2589_s18 + $0x170] sm:$0xff]  ;;  %559 = vst [vmem:[%s2594_s13 + $0xa8] sm:$0xff] %v558_v21 }
  0x36   : > { %561 = vst [vmem:[%s2594_s13 + $0xb0] sm:$0xff] %v560_v22  ;;  %563 = vst [vmem:[%s2594_s13 + $0xb8] sm:$0xff] %v562_v23  ;;  %v564_v24 = vld [vmem:[%s2589_s18 + $0x180] sm:$0xff]  ;;  %v566_v25 = vld [vmem:[%s2589_s18 + $0x190] sm:$0xff] }
  0x37   : > { %v568_v26 = vld [vmem:[%s2589_s18 + $0x1a0] sm:$0xff]  ;;  %565 = vst [vmem:[%s2594_s13 + $0xc0] sm:$0xff] %v564_v24  ;;  %567 = vst [vmem:[%s2594_s13 + $0xc8] sm:$0xff] %v566_v25  ;;  %v570_v27 = vld [vmem:[%s2589_s18 + $0x1b0] sm:$0xff] }
  0x38   : > { %569 = vst [vmem:[%s2594_s13 + $0xd0] sm:$0xff] %v568_v26  ;;  %v572_v28 = vld [vmem:[%s2589_s18 + $0x1c0] sm:$0xff]  ;;  %v574_v29 = vld [vmem:[%s2589_s18 + $0x1d0] sm:$0xff]  ;;  %571 = vst [vmem:[%s2594_s13 + $0xd8] sm:$0xff] %v570_v27 }
  0x39   : > { %573 = vst [vmem:[%s2594_s13 + $0xe0] sm:$0xff] %v572_v28  ;;  %575 = vst [vmem:[%s2594_s13 + $0xe8] sm:$0xff] %v574_v29  ;;  %v576_v30 = vld [vmem:[%s2589_s18 + $0x1e0] sm:$0xff]  ;;  %v578_v31 = vld [vmem:[%s2589_s18 + $0x1f0] sm:$0xff] }
  0x3a   : > { %577 = vst [vmem:[%s2594_s13 + $0xf0] sm:$0xff] %v576_v30  ;;  %579 = vst [vmem:[%s2594_s13 + $0xf8] sm:$0xff] %v578_v31 }
  0x3b PF: > { %p2064_p12 = scmp.ge.s32.totalorder %s2426_s15, 1  ;;  %p584_p13 = scmp.lt.s32.totalorder %s2426_s15, 5 }
  0x3d   : > { %p585_p0 = pnand %p2064_p12, %p584_p13 }
  0x3e   : > { %s2660_s25 = sand.u32 (!%p585_p0), 1, %s2402_s26   ;;  %s2067_s19 = sshll.u32 (!%p585_p0), %s2410_s28, 3 }
  0x3f   : > { %588 = sbr.rel (%p585_p0) target bundleno = 1467 (0x5bb), region = 106  ;;  %s2065_s21 = sshll.u32 (!%p585_p0), %s2660_s25, 8 }
  0x40   : > { %s2066_s22 = sshll.u32 (!%p585_p0), %s2660_s25, 7  ;;  %p645_p1 = scmp.lt.s32.totalorder (!%p585_p0), %s2414_s29, 1 }
  0x41   : > { %p647_p2 = scmp.lt.s32.totalorder (!%p585_p0), %s2067_s19, 15  ;;  %s2672_s14 = scalar_lea.vmem (!%p585_p0), [#allocation2], %s2065_s21 }
  0x42   : > { %s2674_s30 = scalar_lea.vmem (!%p585_p0), [#allocation3], %s2066_s22  ;;  %s2676_s12 = smov (!%p585_p0), 0  }
  0x44   : > { %s646_s23 = scalar_select %p645_p1, %s2414_s29, 1 }
  0x45   : > { %s3656_s19 = smov (!%p647_p2, %s2067_s19), 15 }
  0x46   : > { %s2069_s24 = sshll.u32 %s646_s23, 5  ;;  %s2068_s16 = sshll.u32 %s3656_s19, 1 }
  0x47   : > { %s651_s17 = sadd.s32 %s2069_s24, %s2068_s16 }
  0x48   : > { %s2070_s20 = sshll.u32 %s651_s17, 3 }
  0x49   : > { %s2670_s1 = scalar_lea.vmem %s3535_s0, %s2070_s20 }
  0x4a LB: >> { %v1169_v32 = vld [vmem:[%s3540_s5 + $0x8] sm:$0xff]  ;;  %v2432_v33 = vmov 0   ;;  %s2071_s21 = sshll.u32 %s2430_s12, 4  ;;  %vm668_vm0 = vcmask 261120   ;;  %s2687_s22 = scalar_lea.vmem %s2672_s14, %s2430_s12 [#allocation2]  ;;  %v1280_v34 = vld [vmem:[%s3541_s6] sm:$0xff]  ;;  %v1170_v42 = vld [vmem:[%s3540_s5 + $0x10] sm:$0xff]  ;;  %s2430_s12 = sphi %s2676_s12, %s661_s12  }
  0x4b   : >> { %2301 = vset.pattern.permute.xlu1 %v2432_v33  ;;  %2300 = vset.pattern.permute.xlu0 %v2432_v33  ;;  %s2692_s24 = scalar_lea.vmem %s2670_s1, %s2071_s21  ;;  %v2698_v35 = vld [vmem:[%s2687_s22 + $0x8] sm:$0x1]  ;;  %v2709_v39 = vld [vmem:[%s2687_s22 + $0x10] sm:$0x1]  ;;  %v2718_v43 = vld [vmem:[%s2687_s22] sm:$0x1]  ;;  %s1922_s18 = scalar_lea.vmem %s2674_s30, %s2071_s21 [#allocation3] }
  0x4c   : >> { %1178 = vperm.xlu1 %2301, %v1169_v32   ;;  %v2701_v36 = vld [vmem:[%s2692_s24] sm:$0xff]  ;;  %v2704_v37 = vld [vmem:[%s2692_s24 + $0x8] sm:$0xff]  ;;  %v874_v40 = vrot.slane %v2698_v35, 7  ;;  %vm875_vm1 = vcmask 1041409   ;;  %vm878_vm2 = vcmask 1042434   ;;  %v877_v45 = vrot.slane %v2709_v39, 6 }
  0x4d   : >> { %v669_v38 = vsel %vm668_vm0, %v2701_v36, 0.0  ;;  %v672_v41 = vsel %vm668_vm0, %v2704_v37, 0.0  ;;  %v1281_v44 = vld [vmem:[%s3541_s6 + $0x8] sm:$0xff]  ;;  %vm881_vm3 = vcmask 1043459   ;;  %vm884_vm4 = vcmask 1044484   ;;  %v1171_v56 = vld [vmem:[%s3540_s5 + $0x18] sm:$0xff] }
  0x4e   : >> { %670 = vadd.xlane.f32.xlu0 %v669_v38  ;;  %vm887_vm5 = vcmask 1045509   ;;  %v2725_v46 = vld [vmem:[%s2687_s22 + $0x18] sm:$0x1]  ;;  %v2728_v47 = vld [vmem:[%s2687_s22 + $0x20] sm:$0x1]  ;;  %v876_v48 = vsel %vm875_vm1, %v874_v40, %v2718_v43  ;;  %vm890_vm6 = vcmask 1046534  }
  0x4f   : >> { %vm893_vm7 = vcmask 1047559   ;;  %v2733_v49 = vld [vmem:[%s2687_s22 + $0x28] sm:$0x1]  ;;  %v2736_v50 = vld [vmem:[%s2687_s22 + $0x30] sm:$0x1]  ;;  %v879_v60 = vsel %vm878_vm2, %v877_v45, %v876_v48  ;;  %v880_v63 = vrot.slane %v2725_v46, 5 }
  0x50   : >> { %1286 = vperm.xlu1 %2301, %v1280_v34   ;;  %v2739_v51 = vld [vmem:[%s2687_s22 + $0x38] sm:$0x1]  ;;  %v2742_v52 = vld [vmem:[%s2687_s22 + $0x40] sm:$0x1]  ;;  %v2745_v53 = vld [vmem:[%s2687_s22 + $0x48] sm:$0x1] }
  0x51   : >> { %v2748_v54 = vld [vmem:[%s2687_s22 + $0x50] sm:$0x1]  ;;  %v2751_v55 = vld [vmem:[%s2687_s22 + $0x58] sm:$0x1]  ;;  %v2757_v57 = vld [vmem:[%s2687_s22 + $0x60] sm:$0x1]  ;;  %v882_v8 = vsel %vm881_vm3, %v880_v63, %v879_v60 }
  0x52   : >> { %673 = vadd.xlane.f32.xlu0 %v672_v41  ;;  %v2760_v58 = vld [vmem:[%s2687_s22 + $0x68] sm:$0x1]  ;;  %v2763_v59 = vld [vmem:[%s2687_s22 + $0x70] sm:$0x1]  ;;  %v2767_v61 = vld [vmem:[%s2687_s22 + $0x78] sm:$0x1] }
  0x53   : >> { %v2770_v62 = vld [vmem:[%s2687_s22 + $0x88] sm:$0x1]  ;;  %v883_v0 = vrot.slane %v2728_v47, 4  ;;  %v2775_v1 = vld [vmem:[%s2687_s22 + $0x80] sm:$0x1]  ;;  %v886_v3 = vrot.slane %v2733_v49, 3 }
  0x54   : >> { %1182 = vperm.xlu1 %2301, %v1170_v42   ;;  %v2778_v2 = vld [vmem:[%s2687_s22 + $0x90] sm:$0x1]  ;;  %v889_v4 = vrot.slane %v2736_v50, 2  ;;  %v892_v5 = vrot.slane %v2739_v51, 1  ;;  %v895_v6 = vrot.slane %v2745_v53, 7  ;;  %vm941_vm8 = vcmask 130048  }
  0x55   : >> { %v2785_v7 = vld [vmem:[%s2687_s22 + $0x98] sm:$0x1]  ;;  %v897_v9 = vrot.slane %v2748_v54, 6  ;;  %v899_v10 = vrot.slane %v2751_v55, 5  ;;  %v901_v11 = vrot.slane %v2757_v57, 4  ;;  %v1282_v12 = vld [vmem:[%s3541_s6 + $0x10] sm:$0xff]  ;;  %v885_v15 = vsel %vm884_vm4, %v883_v0, %v882_v8 }
  0x56   : >> { %v2795_v13 = vld [vmem:[%s2687_s22 + $0xa0] sm:$0x1]  ;;  %v2798_v14 = vld [vmem:[%s2687_s22 + $0xa8] sm:$0x1]  ;;  %v896_v16 = vsel %vm875_vm1, %v895_v6, %v2742_v52  ;;  %v903_v17 = vrot.slane %v2760_v58, 3  ;;  %v905_v18 = vrot.slane %v2763_v59, 2  ;;  %v888_v21 = vsel %vm887_vm5, %v886_v3, %v885_v15 }
  0x57   : >> { %v2806_v19 = vld [vmem:[%s2687_s22 + $0xb0] sm:$0x1]  ;;  %v2809_v20 = vld [vmem:[%s2687_s22 + $0xb8] sm:$0x1]  ;;  %v898_v22 = vsel %vm878_vm2, %v897_v9, %v896_v16  ;;  %v907_v23 = vrot.slane %v2767_v61, 1  ;;  %v909_v24 = vrot.slane %v2770_v62, 7  ;;  %v891_v27 = vsel %vm890_vm6, %v889_v4, %v888_v21 }
  0x58   : >> { %1290 = vperm.xlu1 %2301, %v1281_v44   ;;  %v2816_v25 = vld [vmem:[%s2687_s22 + $0xc0] sm:$0x1]  ;;  %v2819_v26 = vld [vmem:[%s2687_s22 + $0xc8] sm:$0x1]  ;;  %v900_v28 = vsel %vm881_vm3, %v899_v10, %v898_v22  ;;  %v911_v29 = vrot.slane %v2778_v2, 6  ;;  %v913_v30 = vrot.slane %v2785_v7, 5  ;;  %v894_v33 = vsel %vm893_vm7, %v892_v5, %v891_v27 }
  0x59   : >> { %v2826_v31 = vld [vmem:[%s2687_s22 + $0xd0] sm:$0x1]  ;;  %v2829_v32 = vld [vmem:[%s2687_s22 + $0xd8] sm:$0x1]  ;;  %v902_v34 = vsel %vm884_vm4, %v901_v11, %v900_v28  ;;  %v910_v38 = vsel %vm875_vm1, %v909_v24, %v2775_v1  ;;  %v915_v40 = vrot.slane %v2795_v13, 4  ;;  %v917_v48 = vrot.slane %v2798_v14, 3 }
  0x5a   : >> { %v2837_v41 = vld [vmem:[%s2687_s22 + $0xe0] sm:$0x1]  ;;  %v2840_v42 = vld [vmem:[%s2687_s22 + $0xe8] sm:$0x1]  ;;  %v904_v44 = vsel %vm887_vm5, %v903_v17, %v902_v34  ;;  %v912_v45 = vsel %vm878_vm2, %v911_v29, %v910_v38  ;;  %v2847_v60 = vld [vmem:[%s2687_s22 + $0xf0] sm:$0x1] }
  0x5b   : >> { %v2850_v63 = vld [vmem:[%s2687_s22 + $0xf8] sm:$0x1]  ;;  %v906_v0 = vsel %vm890_vm6, %v905_v18, %v904_v44  ;;  %v914_v3 = vsel %vm881_vm3, %v913_v30, %v912_v45  ;;  %v921_v4 = vrot.slane %v2809_v20, 1  ;;  %v923_v5 = vrot.slane %v2819_v26, 7  ;;  %s3636_s19 = sld [smem:[#allocation34_spill]]  ;;  %s661_s12 = sadd.s32 1, %s2430_s12  }
  0x5c   : >> { %1186 = vperm.xlu1 %2301, %v1171_v56   ;;  %v919_v56 = vrot.slane %v2806_v19, 2  ;;  %v908_v6 = vsel %vm893_vm7, %v907_v23, %v906_v0  ;;  %v916_v8 = vsel %vm884_vm4, %v915_v40, %v914_v3  ;;  %v925_v9 = vrot.slane %v2826_v31, 6  ;;  %v1168_v40 = vld [vmem:[%s3540_s5] sm:$0xff]  ;;  %p658_p3 = scmp.ge.s32.totalorder %s661_s12, 8  }
  0x5d   : >> { %v927_v10 = vrot.slane %v2829_v32, 5  ;;  %v918_v11 = vsel %vm887_vm5, %v917_v48, %v916_v8  ;;  %v929_v15 = vrot.slane %v2837_v41, 4  ;;  %v931_v16 = vrot.slane %v2840_v42, 3  ;;  %s2095_s13 = sshll.u32 (%p658_p3), %s2410_s28, 4  ;;  %s2091_s23 = sshll.u32 (%p658_p3), %s2414_s29, 5 }
  0x5e   : >> { %v920_v17 = vsel %vm890_vm6, %v919_v56, %v918_v11  ;;  %v933_v21 = vrot.slane %v2847_v60, 2  ;;  %v935_v22 = vrot.slane %v2850_v63, 1  ;;  %v942_v27 = vsel %vm941_vm8, %v894_v33, 0.0  ;;  %s1942_s16 = sshll.u32 (%p658_p3), %s2674_s30, 4  ;;  %s1939_s17 = sadd.s32 (%p658_p3), %s2095_s13, %s2091_s23  ;;  %s3477_s16 = int_to_ptr.vmem [resolvable:$true] %s1942_s16 }
  0x5f   : >> { %v922_v23 = vsel %vm893_vm7, %v921_v4, %v920_v17  ;;  %v943_v28 = vsel %vm941_vm8, %v908_v6, 0.0  ;;  %v956_v4 = vlaneseq  ;;  %s2092_s20 = sshll.u32 (%p658_p3), %s1939_s17, 7  ;;  %s1926_s1 = scalar_lea.sflag (%p658_p3), [#allocation4], %s2660_s25 }
  0x60   : >> { %1294 = vperm.xlu1 %2301, %v1282_v12   ;;  %v924_v12 = vsel %vm875_vm1, %v923_v5, %v2816_v25  ;;  %v944_v30 = vadd.f32 %v943_v28, %v942_v27  ;;  %v945_v34 = vsel %vm941_vm8, %v922_v23, 0.0  ;;  %s2330_s14 = scalar_lea.vmem (%p658_p3), %s3477_s16, 2048  ;;  %s2433_s28 = smov (%p658_p3), [#allocation3]  }
  0x61   : >> { %v926_v18 = vsel %vm878_vm2, %v925_v9, %v924_v12  ;;  %v2882_v8 = vshrl.u32 %v956_v4, 7  ;;  %p2331_p4 = scmp.ne.s32.totalorder (%p658_p3), %s3477_s16, %s2330_s14  ;;  %s2334_s29 = sshll.u32 (%p658_p3), %s2433_s28, 4  ;;  %s2335_s29 = int_to_ptr.vmem [resolvable:$false] %s2334_s29 }
  0x62   : >> { %v928_v24 = vsel %vm881_vm3, %v927_v10, %v926_v18  ;;  %v946_v45 = vadd.f32 %v945_v34, %v944_v30  ;;  %s2336_s30 = scalar_lea.vmem (%p658_p3), %s2335_s29, 4096  ;;  %p2337_p7 = scmp.lt.s32.totalorder (%p658_p3), %s3477_s16, %s2335_s29 }
  0x63   : >> { %v930_v29 = vsel %vm884_vm4, %v929_v15, %v928_v24  ;;  %v3559_v11 = vsub.s32 0, %v2882_v8  ;;  %p2332_p5 = pnand (%p658_p3), %p2331_p4, %p2566_p8  ;;  %p2338_p10 = scmp.lt.s32.totalorder (%p658_p3), %s2336_s30, %s2330_s14 }
  0x64   : >> { %v932_v38 = vsel %vm887_vm5, %v931_v16, %v930_v29 }
  0x65   : >> { %v934_v44 = vsel %vm890_vm6, %v933_v21, %v932_v38  ;;  %p2333_p6 = pneg (%p658_p3), %p2332_p5  ;;  %p2339_p11 = por (%p658_p3), %p2338_p10, %p2337_p7 }
  0x66   : >> { %v936_v48 = vsel %vm893_vm7, %v935_v22, %v934_v44 }
  0x67   : >> { %v947_v33 = vsel %vm941_vm8, %v936_v48, 0.0  ;;  %p2340_p12 = pnand (%p658_p3), %p2339_p11, %p2333_p6 }
  0x68   : >> { %1174 = vperm.xlu0 %2300, %v1168_v40   ;;  %v948_v56 = vadd.f32 %v947_v33, %v946_v45 }
  0x6a   : >> { %v949_v0 = vrot.slane %v948_v56, 4 }
  0x6c   : >> { %v950_v3 = vadd.f32 %v949_v0, %v948_v56 }
  0x6e   : >> { %v951_v5 = vrot.slane %v950_v3, 2 }
  0x70   : >> { %v952_v6 = vadd.f32 %v951_v5, %v950_v3 }
  0x72   : >> { %v953_v9 = vrot.slane %v952_v6, 1 }
  0x74   : >> { %v954_v10 = vadd.f32 %v953_v9, %v952_v6 }
  0x76   : >> { %v955_v12 = vmul.f32 0.03125, %v954_v10 }
  0x78   : >> { %v959_v15 = vrot.slane %v955_v12, %v3559_v11 }
  0x7a   : >> { %v2888_v16 = vsub.f32 %v2718_v43, %v959_v15  ;;  %v2891_v17 = vsub.f32 %v2698_v35, %v959_v15  ;;  %v2894_v18 = vsub.f32 %v2709_v39, %v959_v15  ;;  %v2897_v21 = vsub.f32 %v2725_v46, %v959_v15 }
  0x7b   : >> { %v2900_v22 = vsub.f32 %v2728_v47, %v959_v15  ;;  %v2903_v23 = vsub.f32 %v2733_v49, %v959_v15  ;;  %v2906_v24 = vsub.f32 %v2736_v50, %v959_v15  ;;  %v2909_v43 = vsub.f32 %v2739_v51, %v959_v15 }
  0x7c   : >> { %3594 = vst [vmem:[#allocation14_spill] sm:$0xff] %v2891_v17  ;;  %3595 = vst [vmem:[#allocation15_spill] sm:$0xff] %v2894_v18  ;;  %v2912_v35 = vsub.f32 %v2742_v52, %v959_v15  ;;  %v2915_v39 = vsub.f32 %v2745_v53, %v959_v15  ;;  %v2918_v46 = vsub.f32 %v2748_v54, %v959_v15 }
  0x7d   : >> { %3596 = vst [vmem:[#allocation16_spill] sm:$0xff] %v2897_v21  ;;  %3597 = vst [vmem:[#allocation17_spill] sm:$0xff] %v2900_v22  ;;  %v2921_v47 = vsub.f32 %v2751_v55, %v959_v15  ;;  %v2924_v49 = vsub.f32 %v2757_v57, %v959_v15  ;;  %v2927_v50 = vsub.f32 %v2760_v58, %v959_v15 }
  0x7e   : >> { %3598 = vst [vmem:[#allocation18_spill] sm:$0xff] %v2903_v23  ;;  %3599 = vst [vmem:[#allocation19_spill] sm:$0xff] %v2906_v24  ;;  %v2930_v51 = vsub.f32 %v2763_v59, %v959_v15  ;;  %v2933_v52 = vsub.f32 %v2767_v61, %v959_v15  ;;  %v2936_v53 = vsub.f32 %v2775_v1, %v959_v15 }
  0x7f   : >> { %3600 = vst [vmem:[#allocation20_spill] sm:$0xff] %v2909_v43  ;;  %3601 = vst [vmem:[#allocation21_spill] sm:$0xff] %v2918_v46  ;;  %v2939_v54 = vsub.f32 %v2770_v62, %v959_v15  ;;  %v2942_v55 = vsub.f32 %v2778_v2, %v959_v15  ;;  %v2945_v57 = vsub.f32 %v2785_v7, %v959_v15 }
  0x80   : >> { %3602 = vst [vmem:[#allocation22_spill] sm:$0xff] %v2921_v47  ;;  %3603 = vst [vmem:[#allocation23_spill] sm:$0xff] %v2924_v49  ;;  %v2948_v58 = vsub.f32 %v2795_v13, %v959_v15  ;;  %v2951_v59 = vsub.f32 %v2798_v14, %v959_v15  ;;  %v2954_v61 = vsub.f32 %v2806_v19, %v959_v15 }
  0x81   : >> { %3604 = vst [vmem:[#allocation24_spill] sm:$0xff] %v2927_v50  ;;  %3605 = vst [vmem:[#allocation25_spill] sm:$0xff] %v2930_v51  ;;  %v2957_v1 = vsub.f32 %v2809_v20, %v959_v15  ;;  %v2960_v62 = vsub.f32 %v2816_v25, %v959_v15  ;;  %v2963_v2 = vsub.f32 %v2819_v26, %v959_v15 }
  0x82   : >> { %3606 = vst [vmem:[#allocation26_spill] sm:$0xff] %v2933_v52  ;;  %3607 = vst [vmem:[#allocation27_spill] sm:$0xff] %v2942_v55  ;;  %v2966_v7 = vsub.f32 %v2826_v31, %v959_v15  ;;  %v2969_v13 = vsub.f32 %v2829_v32, %v959_v15  ;;  %v2972_v14 = vsub.f32 %v2837_v41, %v959_v15 }
  0x83   : >> { %3608 = vst [vmem:[#allocation28_spill] sm:$0xff] %v2945_v57  ;;  %3609 = vst [vmem:[#allocation29_spill] sm:$0xff] %v2948_v58  ;;  %v2975_v19 = vsub.f32 %v2840_v42, %v959_v15  ;;  %v2978_v20 = vsub.f32 %v2847_v60, %v959_v15  ;;  %v2981_v25 = vsub.f32 %v2850_v63, %v959_v15 }
  0x84   : >> { %3610 = vst [vmem:[#allocation30_spill] sm:$0xff] %v2951_v59  ;;  %3611 = vst [vmem:[#allocation31_spill] sm:$0xff] %v2954_v61  ;;  %v992_v26 = vmul.f32 %v2888_v16, %v2888_v16  ;;  %v993_v31 = vmul.f32 %v2891_v17, %v2891_v17  ;;  %v994_v32 = vmul.f32 %v2894_v18, %v2894_v18 }
  0x85   : >> { %3612 = vst [vmem:[#allocation32_spill] sm:$0xff] %v2957_v1  ;;  %v995_v41 = vmul.f32 %v2897_v21, %v2897_v21  ;;  %v996_v42 = vmul.f32 %v2900_v22, %v2900_v22  ;;  %v997_v60 = vmul.f32 %v2903_v23, %v2903_v23  ;;  %v998_v63 = vmul.f32 %v2906_v24, %v2906_v24 }
  0x86   : >> { %v999_v27 = vmul.f32 %v2909_v43, %v2909_v43  ;;  %v1000_v28 = vmul.f32 %v2912_v35, %v2912_v35  ;;  %v1001_v29 = vmul.f32 %v2915_v39, %v2915_v39  ;;  %v1002_v30 = vmul.f32 %v2918_v46, %v2918_v46 }
  0x87   : >> { %v1003_v34 = vmul.f32 %v2921_v47, %v2921_v47  ;;  %v1004_v38 = vmul.f32 %v2924_v49, %v2924_v49  ;;  %v1005_v40 = vmul.f32 %v2927_v50, %v2927_v50  ;;  %v1006_v44 = vmul.f32 %v2930_v51, %v2930_v51 }
  0x88   : >> { %v1007_v45 = vmul.f32 %v2933_v52, %v2933_v52  ;;  %v1008_v48 = vmul.f32 %v2936_v53, %v2936_v53  ;;  %v1009_v33 = vmul.f32 %v2939_v54, %v2939_v54  ;;  %v1010_v56 = vmul.f32 %v2942_v55, %v2942_v55 }
  0x89   : >> { %v1011_v0 = vmul.f32 %v2945_v57, %v2945_v57  ;;  %v1012_v3 = vmul.f32 %v2948_v58, %v2948_v58  ;;  %v1013_v4 = vmul.f32 %v2951_v59, %v2951_v59  ;;  %v1014_v5 = vmul.f32 %v2954_v61, %v2954_v61 }
  0x8a   : >> { %v1015_v6 = vmul.f32 %v2957_v1, %v2957_v1  ;;  %v1016_v9 = vmul.f32 %v2960_v62, %v2960_v62  ;;  %v1017_v10 = vmul.f32 %v2963_v2, %v2963_v2  ;;  %v1018_v12 = vmul.f32 %v2966_v7, %v2966_v7 }
  0x8b   : >> { %v1019_v15 = vmul.f32 %v2969_v13, %v2969_v13  ;;  %v1020_v11 = vmul.f32 %v2972_v14, %v2972_v14  ;;  %v1021_v61 = vmul.f32 %v2975_v19, %v2975_v19  ;;  %v1022_v1 = vmul.f32 %v2978_v20, %v2978_v20 }
  0x8c   : >> { %v3047_v59 = vmul.f32 %v2981_v25, %v2981_v25  ;;  %v1056_v58 = vrot.slane %v993_v31, 7  ;;  %v1058_v57 = vrot.slane %v994_v32, 6  ;;  %v1060_v55 = vrot.slane %v995_v41, 5 }
  0x8d   : >> { %v1062_v52 = vrot.slane %v996_v42, 4  ;;  %v1064_v51 = vrot.slane %v997_v60, 3  ;;  %v1066_v50 = vrot.slane %v998_v63, 2  ;;  %v1068_v49 = vrot.slane %v999_v27, 1 }
  0x8e   : >> { %v1070_v47 = vrot.slane %v1001_v29, 7  ;;  %v1057_v46 = vsel %vm875_vm1, %v1056_v58, %v992_v26  ;;  %v1072_v43 = vrot.slane %v1002_v30, 6  ;;  %v1074_v24 = vrot.slane %v1003_v34, 5 }
  0x8f   : >> { %v1076_v23 = vrot.slane %v1004_v38, 4  ;;  %v1059_v22 = vsel %vm878_vm2, %v1058_v57, %v1057_v46  ;;  %v1078_v18 = vrot.slane %v1005_v40, 3  ;;  %v1080_v17 = vrot.slane %v1006_v44, 2 }
  0x90   : >> { %v1071_v21 = vsel %vm875_vm1, %v1070_v47, %v1000_v28  ;;  %v1061_v31 = vsel %vm881_vm3, %v1060_v55, %v1059_v22  ;;  %v1082_v41 = vrot.slane %v1007_v45, 1  ;;  %v1084_v42 = vrot.slane %v1009_v33, 7 }
  0x91   : >> { %v1073_v32 = vsel %vm878_vm2, %v1072_v43, %v1071_v21  ;;  %v1063_v60 = vsel %vm884_vm4, %v1062_v52, %v1061_v31  ;;  %v1086_v58 = vrot.slane %v1010_v56, 6  ;;  %v1088_v26 = vrot.slane %v1011_v0, 5 }
  0x92   : >> { %v1075_v63 = vsel %vm881_vm3, %v1074_v24, %v1073_v32  ;;  %v1065_v27 = vsel %vm887_vm5, %v1064_v51, %v1063_v60  ;;  %v1085_v47 = vsel %vm875_vm1, %v1084_v42, %v1008_v48  ;;  %v1090_v57 = vrot.slane %v1012_v3, 4 }
  0x93   : >> { %v1077_v46 = vsel %vm884_vm4, %v1076_v23, %v1075_v63  ;;  %v1067_v28 = vsel %vm890_vm6, %v1066_v50, %v1065_v27  ;;  %v1087_v21 = vsel %vm878_vm2, %v1086_v58, %v1085_v47  ;;  %v1092_v43 = vrot.slane %v1013_v4, 3 }
  0x94   : >> { %v1079_v22 = vsel %vm887_vm5, %v1078_v18, %v1077_v46  ;;  %v1069_v52 = vsel %vm893_vm7, %v1068_v49, %v1067_v28  ;;  %v1089_v55 = vsel %vm881_vm3, %v1088_v26, %v1087_v21  ;;  %v1094_v29 = vrot.slane %v1014_v5, 2 }
  0x95   : >> { %v1081_v24 = vsel %vm890_vm6, %v1080_v17, %v1079_v22  ;;  %v1091_v23 = vsel %vm884_vm4, %v1090_v57, %v1089_v55  ;;  %v1096_v30 = vrot.slane %v1015_v6, 1  ;;  %v1098_v34 = vrot.slane %v1017_v10, 7 }
  0x96   : >> { %v1083_v51 = vsel %vm893_vm7, %v1082_v41, %v1081_v24  ;;  %v1093_v50 = vsel %vm887_vm5, %v1092_v43, %v1091_v23  ;;  %v1100_v38 = vrot.slane %v1018_v12, 6  ;;  %v1102_v18 = vrot.slane %v1019_v15, 5 }
  0x97   : >> { %v1104_v40 = vrot.slane %v1020_v11, 4  ;;  %v1095_v44 = vsel %vm890_vm6, %v1094_v29, %v1093_v50  ;;  %v1099_v49 = vsel %vm875_vm1, %v1098_v34, %v1016_v9  ;;  %v1106_v45 = vrot.slane %v1021_v61, 3 }
  0x98   : >> { %v1097_v17 = vsel %vm893_vm7, %v1096_v30, %v1095_v44  ;;  %v1101_v48 = vsel %vm878_vm2, %v1100_v38, %v1099_v49  ;;  %v1108_v33 = vrot.slane %v1022_v1, 2  ;;  %v1116_v56 = vsel %vm941_vm8, %v1069_v52, 0.0 }
  0x99   : >> { %v1103_v0 = vsel %vm881_vm3, %v1102_v18, %v1101_v48  ;;  %v1110_v3 = vrot.slane %v3047_v59, 1  ;;  %v1117_v4 = vsel %vm941_vm8, %v1083_v51, 0.0  ;;  %v1119_v11 = vsel %vm941_vm8, %v1097_v17, 0.0 }
  0x9a   : >> { %v1105_v5 = vsel %vm884_vm4, %v1104_v40, %v1103_v0  ;;  %v1118_v6 = vadd.f32 %v1117_v4, %v1116_v56  ;;  %v3613_v27 = vsub.s32 0, %v2882_v8 }
  0x9b   : >> { %v1107_v61 = vsel %vm887_vm5, %v1106_v45, %v1105_v5 }
  0x9c   : >> { %v1109_v9 = vsel %vm890_vm6, %v1108_v33, %v1107_v61  ;;  %v1120_v10 = vadd.f32 %v1119_v11, %v1118_v6  ;;  %v715_v61 = vld [vmem:[%s3539_s4 + $0x18] sm:$0xff] }
  0x9d   : >> { %v1111_v1 = vsel %vm893_vm7, %v1110_v3, %v1109_v9  ;;  %2138 = vmatprep.subr.mxu1 %v715_v61 }
  0x9e   : >> { %v1121_v12 = vsel %vm941_vm8, %v1111_v1, 0.0  ;;  %2139 = vmatpush3.msra.mxu1 %v715_v61 }
  0x9f   : >> { %v1122_v15 = vadd.f32 %v1121_v12, %v1120_v10 }
  0xa1   : >> { %v1123_v31 = vrot.slane %v1122_v15, 4 }
  0xa3   : >> { %v1124_v32 = vadd.f32 %v1123_v31, %v1122_v15  ;;  %v3616_v15 = vld [vmem:[#allocation16_spill] sm:$0xff] }
  0xa5   : >> { %v1125_v59 = vrot.slane %v1124_v32, 2 }
  0xa7   : >> { %v1126_v41 = vadd.f32 %v1125_v59, %v1124_v32  ;;  %v3617_v32 = vld [vmem:[#allocation17_spill] sm:$0xff] }
  0xa9   : >> { %v1127_v42 = vrot.slane %v1126_v41, 1 }
  0xab   : >> { %v1128_v60 = vadd.f32 %v1127_v42, %v1126_v41 }
  0xad   : >> { %v1129_v63 = vmul.f32 0.03125, %v1128_v60  ;;  %v3620_v60 = vld [vmem:[#allocation20_spill] sm:$0xff] }
  0xaf   : >> { %v1130_v58 = vadd.f32 1e-05, %v1129_v63 }
  0xb1   : >> { %2302 = vrsqrt.f32 %v1130_v58  ;;  %v3621_v58 = vld [vmem:[#allocation21_spill] sm:$0xff] }
  0xbe   : >> { %v2303_v26 = vpop.eup %2302 }
  0xbf   : >> { %v3084_v46 = vrot.slane %v2303_v26, %v3613_v27  ;;  %v3622_v27 = vld [vmem:[#allocation22_spill] sm:$0xff] }
  0xc1   : >> { %v1160_v47 = vmul.f32 %v3084_v46, %v2960_v62  ;;  %v1161_v57 = vmul.f32 %v3084_v46, %v2963_v2  ;;  %v1162_v22 = vmul.f32 %v3084_v46, %v2966_v7  ;;  %v1163_v21 = vmul.f32 %v3084_v46, %v2969_v13 }
  0xc2   : >> { %v1164_v43 = vmul.f32 %v3084_v46, %v2972_v14  ;;  %v1165_v45 = vmul.f32 %v3084_v46, %v2975_v19  ;;  %v1167_v33 = vmul.f32 %v3084_v46, %v2981_v25  ;;  %v1283_v19 = vld [vmem:[%s3541_s6 + $0x18] sm:$0xff]  ;;  %v1145_v25 = vmul.f32 %v3084_v46, %v2915_v39 }
  0xc3   : >> { %v3147_v6 = vmul.f32 %v3084_v46, %v2936_v53  ;;  %v3154_v9 = vmul.f32 %v3084_v46, %v2939_v54  ;;  %v1136_v10 = vmul.f32 %v3084_v46, %v2888_v16  ;;  %v3615_v53 = vld [vmem:[#allocation15_spill] sm:$0xff]  ;;  %v1139_v31 = vmul.f32 %v3084_v46, %v3616_v15  ;;  %v3618_v54 = vld [vmem:[#allocation18_spill] sm:$0xff] }
  0xc4   : >> { %v1138_v12 = vmul.f32 %v3084_v46, %v3615_v53  ;;  %v3168_v59 = vmul.f32 %v3084_v46, %v3617_v32  ;;  %v3172_v41 = vmul.f32 %v3084_v46, %v3618_v54  ;;  %v3619_v16 = vld [vmem:[#allocation19_spill] sm:$0xff]  ;;  %v3180_v63 = vmul.f32 %v3084_v46, %v3620_v60  ;;  %v3632_v32 = vld [vmem:[#allocation32_spill] sm:$0xff] }
  0xc5   : >> { %v3176_v42 = vmul.f32 %v3084_v46, %v3619_v16  ;;  %v1146_v26 = vmul.f32 %v3084_v46, %v3621_v58  ;;  %v3631_v53 = vld [vmem:[#allocation31_spill] sm:$0xff]  ;;  %v3222_v54 = vmul.f32 %v3084_v46, %v3632_v32  ;;  %v712_v32 = vld [vmem:[%s3539_s4] sm:$0xff] }
  0xc6   : >> { %v3218_v15 = vmul.f32 %v3084_v46, %v3631_v53 }
  0xc7   : >> { %v3090_v28 = vpop.permute.xlu1 %1178 }
  0xcb   : >> { %v3098_v8 = vpop.permute.xlu1 %1286 }
  0xcc   : >> { %v1300_v60 = vrot.slane %v3098_v8, 1 }
  0xcf   : >> { %v3100_v52 = vpop.permute.xlu1 %1182 }
  0xd3   : >> { %v3102_v24 = vpop.permute.xlu1 %1290 }
  0xd7   : >> { %v1187_v62 = vpop.permute.xlu1 %1186  ;;  %v671_v29 = vpop.xlane.xlu0 %670 }
  0xd8   : >> { %v1209_v55 = vrot.slane %v1187_v62, 1  ;;  %v3104_v2 = vmul.f32 %v1187_v62, %v1160_v47  ;;  %v676_v51 = vmul.f32 0.03125, %v671_v29  ;;  %v1210_v38 = vrot.slane %v1187_v62, 2  ;;  %v3626_v29 = vld [vmem:[#allocation26_spill] sm:$0xff] }
  0xd9   : >> { %v1211_v44 = vrot.slane %v1187_v62, 3  ;;  %v1212_v49 = vrot.slane %v1187_v62, 4  ;;  %v1213_v17 = vrot.slane %v1187_v62, 5  ;;  %v1214_v48 = vrot.slane %v1187_v62, 6 }
  0xda   : >> { %v3106_v23 = vmul.f32 %v1209_v55, %v1161_v57  ;;  %v3109_v7 = vsub.f32 %v2701_v36, %v676_v51  ;;  %v3120_v36 = vmul.f32 %v1210_v38, %v1162_v22  ;;  %v1215_v56 = vrot.slane %v1187_v62, 7  ;;  %v3623_v57 = vld [vmem:[#allocation23_spill] sm:$0xff]  ;;  %v3625_v62 = vld [vmem:[#allocation25_spill] sm:$0xff] }
  0xdb   : >> { %v674_v13 = vpop.xlane.xlu0 %673  ;;  %v3128_v0 = vmul.f32 %v1211_v44, %v1163_v21  ;;  %v3130_v3 = vmul.f32 %v1212_v49, %v1164_v43  ;;  %v3132_v4 = vmul.f32 %v1213_v17, %v1165_v45  ;;  %v1147_v47 = vmul.f32 %v3084_v46, %v3622_v27  ;;  %v3624_v21 = vld [vmem:[#allocation24_spill] sm:$0xff] }
  0xdc   : >> { %v677_v30 = vmul.f32 0.03125, %v674_v13  ;;  %v680_v14 = vmul.f32 %v3109_v7, %v3109_v7  ;;  %v3136_v5 = vmul.f32 %v1215_v56, %v1167_v33  ;;  %v1148_v22 = vmul.f32 %v3084_v46, %v3623_v57  ;;  %v3630_v56 = vld [vmem:[#allocation30_spill] sm:$0xff] }
  0xdd   : >> { %v1149_v43 = vmul.f32 %v3084_v46, %v3624_v21  ;;  %v1150_v55 = vmul.f32 %v3084_v46, %v3625_v62  ;;  %v1151_v51 = vmul.f32 %v3084_v46, %v3626_v29  ;;  %v1195_v13 = vrot.slane %v3090_v28, 1 }
  0xde   : >> { %v3114_v34 = vsub.f32 %v2704_v37, %v677_v30  ;;  %v682_v50 = vsel %vm668_vm0, %v680_v14, 0.0  ;;  %v1166_v37 = vmul.f32 %v3084_v46, %v2978_v20  ;;  %v1144_v20 = vmul.f32 %v3084_v46, %v2912_v35  ;;  %v3614_v35 = vld [vmem:[#allocation14_spill] sm:$0xff] }
  0xdf   : >> { %683 = vadd.xlane.f32.xlu1 %v682_v50  ;;  %v1137_v1 = vmul.f32 %v3084_v46, %v3614_v35  ;;  %v1196_v30 = vrot.slane %v3090_v28, 2  ;;  %v3627_v50 = vld [vmem:[#allocation27_spill] sm:$0xff]  ;;  %v1199_v44 = vrot.slane %v3090_v28, 5  ;;  %v1200_v49 = vrot.slane %v3090_v28, 6 }
  0xe0   : >> { %v681_v18 = vmul.f32 %v3114_v34, %v3114_v34  ;;  %v3134_v11 = vmul.f32 %v1214_v48, %v1166_v37  ;;  %v1154_v38 = vmul.f32 %v3084_v46, %v3627_v50  ;;  %v1201_v45 = vrot.slane %v3090_v28, 7  ;;  %v3628_v37 = vld [vmem:[#allocation28_spill] sm:$0xff]  ;;  %v3629_v48 = vld [vmem:[#allocation29_spill] sm:$0xff] }
  0xe1   : >> { %v1155_v17 = vmul.f32 %v3084_v46, %v3628_v37  ;;  %v3208_v33 = vmul.f32 %v3084_v46, %v3629_v48  ;;  %v1256_v61 = vmul.f32 %v3090_v28, %v1144_v20  ;;  %v1257_v16 = vmul.f32 %v1195_v13, %v1145_v25  ;;  %v714_v25 = vld [vmem:[%s3539_s4 + $0x10] sm:$0xff] }
  0xe2   : >> { %v685_v40 = vsel %vm668_vm0, %v681_v18, 0.0  ;;  %v1197_v18 = vrot.slane %v3090_v28, 3  ;;  %v1258_v27 = vmul.f32 %v1196_v30, %v1146_v26  ;;  %v3231_v20 = vmul.f32 %v1200_v49, %v1150_v55  ;;  %2140 = vmatprep.subr.mxu1 %v714_v25 }
  0xe3   : >> { %686 = vadd.xlane.f32.xlu1 %v685_v40  ;;  %v3160_v39 = vpop.permute.xlu0 %1174  ;;  %v1198_v40 = vrot.slane %v3090_v28, 4  ;;  %v3229_v28 = vmul.f32 %v1199_v44, %v1149_v43  ;;  %v1301_v62 = vrot.slane %v3098_v8, 2  ;;  %v3236_v50 = vmul.f32 %v1201_v45, %v1151_v51  ;;  %2141 = vmatpush3.msra.mxu1 %v714_v25 }
  0xe4   : >> { %v1188_v14 = vrot.slane %v3160_v39, 1  ;;  %v1189_v35 = vrot.slane %v3160_v39, 2  ;;  %v3225_v57 = vmul.f32 %v1197_v18, %v1147_v47  ;;  %v1190_v29 = vrot.slane %v3160_v39, 3 }
  0xe5   : >> { %v3227_v21 = vmul.f32 %v1198_v40, %v1148_v22  ;;  %v1202_v26 = vrot.slane %v3100_v52, 1  ;;  %v1307_v47 = vrot.slane %v3102_v24, 1  ;;  %v1303_v43 = vrot.slane %v3098_v8, 4  ;;  %v3252_v40 = vpop.permute.xlu1 %1294 }
  0xe6   : >> { %v1249_v58 = vmul.f32 %v1188_v14, %v1137_v1  ;;  %v713_v1 = vld [vmem:[%s3539_s4 + $0x8] sm:$0xff]  ;;  %v1250_v22 = vmul.f32 %v1189_v35, %v1138_v12  ;;  %v1248_v55 = vmul.f32 %v3160_v39, %v1136_v10  ;;  %v1304_v51 = vrot.slane %v3098_v8, 5 }
  0xe7   : >> { %v1203_v14 = vrot.slane %v3100_v52, 2  ;;  %v1204_v18 = vrot.slane %v3100_v52, 3  ;;  %v1191_v44 = vrot.slane %v3160_v39, 4  ;;  %2142 = vmatprep.subr.mxu1 %v713_v1  ;;  %v1264_v10 = vmul.f32 %v3100_v52, %v3147_v6 }
  0xe8   : >> { %v1361_v30 = vadd.f32 %v1300_v60, %v1249_v58  ;;  %v1251_v49 = vmul.f32 %v1190_v29, %v1139_v31  ;;  %v1205_v45 = vrot.slane %v3100_v52, 4  ;;  %v1206_v37 = vrot.slane %v3100_v52, 5  ;;  %2143 = vmatpush3.msra.mxu1 %v713_v1 }
  0xe9   : >> { %v1265_v48 = vmul.f32 %v1202_v26, %v3154_v9  ;;  %v1369_v35 = vadd.f32 %v1307_v47, %v1257_v16  ;;  %v1362_v53 = vadd.f32 %v1301_v62, %v1250_v22  ;;  %v1314_v60 = vrot.slane %v3252_v40, 1  ;;  %2144 = vmatprep.subr.mxu1 %v712_v32  ;;  %v3274_v62 = vld [vmem:[%s3542_s7 + $0x18] sm:$0xff] }
  0xea   : >> { %v1192_v6 = vrot.slane %v3160_v39, 5  ;;  %v1360_v31 = vadd.f32 %v3098_v8, %v1248_v55  ;;  %v1428_v58 = vrot.slane %v1361_v30, 7  ;;  %v1252_v29 = vmul.f32 %v1191_v44, %v3168_v59  ;;  %2145 = vmatpush3.msra.mxu1 %v712_v32 }
  0xeb   : >> { %v1207_v9 = vrot.slane %v3100_v52, 6  ;;  %v1266_v16 = vmul.f32 %v1203_v14, %v1154_v38  ;;  %v1368_v1 = vadd.f32 %v3102_v24, %v1256_v61  ;;  %v1309_v47 = vrot.slane %v3102_v24, 3  ;;  %2149 = vmatprep.subr.mxu1 %v3274_v62 }
  0xec   : >> { %v1267_v22 = vmul.f32 %v1204_v18, %v1155_v17  ;;  %v1315_v59 = vrot.slane %v3252_v40, 2  ;;  %v1193_v55 = vrot.slane %v3160_v39, 6  ;;  %v1430_v30 = vrot.slane %v1362_v53, 6 }
  0xed   : >> { %v1377_v14 = vadd.f32 %v1314_v60, %v1265_v48  ;;  %v1253_v44 = vmul.f32 %v1192_v6, %v3172_v41  ;;  %v1429_v32 = vsel %vm875_vm1, %v1428_v58, %v1360_v31  ;;  %v1442_v25 = vrot.slane %v1369_v35, 7 }
  0xee   : >> { %v1364_v12 = vadd.f32 %v1303_v43, %v1252_v29  ;;  %v1310_v61 = vrot.slane %v3102_v24, 4  ;;  %v1268_v17 = vmul.f32 %v1205_v45, %v3208_v33  ;;  %v1194_v18 = vrot.slane %v3160_v39, 7 }
  0xef   : >> { %v1371_v13 = vadd.f32 %v1309_v47, %v3225_v57  ;;  %v1254_v48 = vmul.f32 %v1193_v55, %v3176_v42  ;;  %v1431_v41 = vsel %vm878_vm2, %v1430_v30, %v1429_v32  ;;  %v1378_v35 = vadd.f32 %v1315_v59, %v1266_v16 }
  0xf0   : >> { %v1376_v43 = vadd.f32 %v3252_v40, %v1264_v10  ;;  %v1365_v53 = vadd.f32 %v1304_v51, %v1253_v44  ;;  %v1443_v60 = vsel %vm875_vm1, %v1442_v25, %v1368_v1  ;;  %v1456_v6 = vrot.slane %v1377_v14, 7 }
  0xf1   : >> { %v1434_v33 = vrot.slane %v1364_v12, 4  ;;  %v1372_v39 = vadd.f32 %v1310_v61, %v3227_v21  ;;  %v1317_v57 = vrot.slane %v3252_v40, 4  ;;  %v1255_v31 = vmul.f32 %v1194_v18, %v3180_v63 }
  0xf2   : >> { %v1446_v58 = vrot.slane %v1371_v13, 5  ;;  %v3633_v16 = vrot.slane %v3098_v8, 6  ;;  %v1312_v51 = vrot.slane %v3102_v24, 6  ;;  %v1458_v12 = vrot.slane %v1378_v35, 6 }
  0xf3   : >> { %v1436_v1 = vrot.slane %v1365_v53, 3  ;;  %v1270_v13 = vmul.f32 %v1207_v9, %v3218_v15  ;;  %v1380_v47 = vadd.f32 %v1317_v57, %v1268_v17  ;;  %v1313_v55 = vrot.slane %v3102_v24, 7 }
  0xf4   : >> { %1298 = vperm.xlu1 %2301, %v1283_v19   ;;  %v3212_v19 = vmul.f32 %v3084_v46, %v3630_v56  ;;  %v1302_v46 = vrot.slane %v3098_v8, 3  ;;  %v1308_v56 = vrot.slane %v3102_v24, 2  ;;  %v1366_v10 = vadd.f32 %v3633_v16, %v1254_v48 }
  0xf5   : >> { %v1319_v44 = vrot.slane %v3252_v40, 6  ;;  %v1462_v17 = vrot.slane %v1380_v47, 4 }
  0xf6   : >> { %v1363_v26 = vadd.f32 %v1302_v46, %v1251_v49  ;;  %v1370_v38 = vadd.f32 %v1308_v56, %v1258_v27  ;;  %v1311_v46 = vrot.slane %v3102_v24, 5  ;;  %v1316_v27 = vrot.slane %v3252_v40, 3 }
  0xf7   : >> { %v1269_v45 = vmul.f32 %v1206_v37, %v3212_v19  ;;  %v1318_v19 = vrot.slane %v3252_v40, 5  ;;  %v1457_v37 = vsel %vm875_vm1, %v1456_v6, %v1376_v43  ;;  %v1438_v14 = vrot.slane %v1366_v10, 2 }
  0xf8   : >> { %v1432_v49 = vrot.slane %v1363_v26, 5  ;;  %v1444_v56 = vrot.slane %v1370_v38, 6  ;;  %v1379_v29 = vadd.f32 %v1316_v27, %v1267_v22  ;;  %v1373_v21 = vadd.f32 %v1311_v46, %v3229_v28 }
  0xf9   : >> { %v1448_v26 = vrot.slane %v1372_v39, 4  ;;  %v3634_v22 = vrot.slane %v3098_v8, 7  ;;  %v1374_v28 = vadd.f32 %v1312_v51, %v3231_v20  ;;  %v1459_v32 = vsel %vm878_vm2, %v1458_v12, %v1457_v37 }
  0xfa   : >> { %v1433_v42 = vsel %vm881_vm3, %v1432_v49, %v1431_v41  ;;  %v1445_v25 = vsel %vm878_vm2, %v1444_v56, %v1443_v60  ;;  %v1460_v38 = vrot.slane %v1379_v29, 5  ;;  %v1450_v46 = vrot.slane %v1373_v21, 3 }
  0xfb   : >> { %v1435_v63 = vsel %vm884_vm4, %v1434_v33, %v1433_v42  ;;  %v1367_v59 = vadd.f32 %v3634_v22, %v1255_v31  ;;  %v1447_v30 = vsel %vm881_vm3, %v1446_v58, %v1445_v25  ;;  %v1381_v15 = vadd.f32 %v1318_v19, %v1269_v45 }
  0xfc   : >> { %v1437_v61 = vsel %vm887_vm5, %v1436_v1, %v1435_v63  ;;  %v1449_v9 = vsel %vm884_vm4, %v1448_v26, %v1447_v30  ;;  %v3635_v8 = vrot.slane %v3100_v52, 7  ;;  %v1375_v49 = vadd.f32 %v1313_v55, %v3236_v50 }
  0xfd   : >> { %v1440_v18 = vrot.slane %v1367_v59, 1  ;;  %v1320_v20 = vrot.slane %v3252_v40, 7  ;;  %v1461_v27 = vsel %vm881_vm3, %v1460_v38, %v1459_v32  ;;  %v1439_v48 = vsel %vm890_vm6, %v1438_v14, %v1437_v61 }
  0xfe   : >> { %v1271_v24 = vmul.f32 %v3635_v8, %v3222_v54  ;;  %v1452_v41 = vrot.slane %v1374_v28, 2  ;;  %v1382_v56 = vadd.f32 %v1319_v44, %v1270_v13  ;;  %v1451_v35 = vsel %vm887_vm5, %v1450_v46, %v1449_v9  ;;  %v2073_v8 = vld [vmem:[%s3538_s3] ss:$0 sm:$0xff] }
  0xff   : >> { %v1464_v43 = vrot.slane %v1381_v15, 3  ;;  %v1463_v53 = vsel %vm884_vm4, %v1462_v17, %v1461_v27  ;;  %v1441_v52 = vsel %vm893_vm7, %v1440_v18, %v1439_v48  ;;  %v1454_v54 = vrot.slane %v1375_v49, 1 }
 0x100   : >> { %v1383_v60 = vadd.f32 %v1320_v20, %v1271_v24  ;;  %v1453_v6 = vsel %vm890_vm6, %v1452_v41, %v1451_v35  ;;  %v1466_v50 = vrot.slane %v1382_v56, 2  ;;  %v1393_v41 = vld [vmem:[%s3542_s7 + $0x8] sm:$0xff] }
 0x101   : >> { %v1465_v40 = vsel %vm887_vm5, %v1464_v43, %v1463_v53  ;;  %v1455_v33 = vsel %vm893_vm7, %v1454_v54, %v1453_v6 }
 0x102   : >> { %v1468_v39 = vrot.slane %v1383_v60, 1  ;;  %v1467_v45 = vsel %vm890_vm6, %v1466_v50, %v1465_v40 }
 0x104   : >> { %v1469_v57 = vsel %vm893_vm7, %v1468_v39, %v1467_v45 }
 0x11d   : >> { %1488 = vxpose.xlu1.b32.start [1/4] (short) (narrow) %v1441_v52, 16 }
 0x121   : >> { %1489 = vxpose.xlu1.b32.cont [2/4] (short) (narrow) %v1455_v33, 16 }
 0x125   : >> { %1490 = vxpose.xlu1.b32.cont [3/4] (short) (narrow) %v1469_v57, 16 }
 0x168   : >> { %v684_v31 = vpop.xlane.xlu1 %683 }
 0x169   : >> { %v688_v42 = vmul.f32 0.03125, %v684_v31 }
 0x16b   : >> { %v690_v58 = vadd.f32 1e-05, %v688_v42  ;;  %v2328_v42 = vld [vmem:[%s2692_s24] sm:$0xff] }
 0x16c   : >> { %v687_v29 = vpop.xlane.xlu1 %686 }
 0x16d   : >> { %2304 = vrsqrt.f32 %v690_v58  ;;  %v689_v16 = vmul.f32 0.03125, %v687_v29  ;;  %v2329_v29 = vld [vmem:[%s2692_s24 + $0x8] sm:$0xff] }
 0x16f   : >> { %v691_v10 = vadd.f32 1e-05, %v689_v16 }
 0x170   : >> { %v1299_v51 = vpop.permute.xlu1 %1298 }
 0x171   : >> { %2306 = vrsqrt.f32 %v691_v10  ;;  %v1321_v25 = vrot.slane %v1299_v51, 1  ;;  %v1322_v12 = vrot.slane %v1299_v51, 2  ;;  %v1323_v1 = vrot.slane %v1299_v51, 3 }
 0x172   : >> { %v1324_v21 = vrot.slane %v1299_v51, 4  ;;  %v1325_v19 = vrot.slane %v1299_v51, 5  ;;  %v1326_v37 = vrot.slane %v1299_v51, 6  ;;  %v1327_v26 = vrot.slane %v1299_v51, 7 }
 0x173   : >> { %v1385_v63 = vadd.f32 %v1321_v25, %v3106_v23  ;;  %v1386_v13 = vadd.f32 %v1322_v12, %v3120_v36  ;;  %v1387_v47 = vadd.f32 %v1323_v1, %v3128_v0  ;;  %v1384_v59 = vadd.f32 %v1299_v51, %v3104_v2 }
 0x174   : >> { %v1388_v22 = vadd.f32 %v1324_v21, %v3130_v3  ;;  %v1389_v55 = vadd.f32 %v1325_v19, %v3132_v4  ;;  %v1390_v14 = vadd.f32 %v1326_v37, %v3134_v11  ;;  %v1391_v28 = vadd.f32 %v1327_v26, %v3136_v5  ;;  %v2072_v4 = vld [vmem:[%s3537_s2] ss:$0 sm:$0xff] }
 0x175   : >> { %v1470_v30 = vrot.slane %v1385_v63, 7  ;;  %v1472_v38 = vrot.slane %v1386_v13, 6  ;;  %v1474_v23 = vrot.slane %v1387_v47, 5 }
 0x176   : >> { %v1476_v36 = vrot.slane %v1388_v22, 4  ;;  %v1478_v61 = vrot.slane %v1389_v55, 3  ;;  %v1480_v46 = vrot.slane %v1390_v14, 2  ;;  %v1482_v5 = vrot.slane %v1391_v28, 1  ;;  %v1652_v22 = vld [vmem:[%s3545_s10 + $0x18] sm:$0xff]  ;;  %v1650_v55 = vld [vmem:[%s3545_s10 + $0x8] sm:$0xff] }
 0x177   : >> { %v1471_v44 = vsel %vm875_vm1, %v1470_v30, %v1384_v59  ;;  %v1651_v59 = vld [vmem:[%s3545_s10 + $0x10] sm:$0xff]  ;;  %v1649_v30 = vld [vmem:[%s3545_s10] sm:$0xff] }
 0x178   : >> { %v1473_v32 = vsel %vm878_vm2, %v1472_v38, %v1471_v44  ;;  %v1737_v38 = vld [vmem:[%s3546_s11 + $0x18] sm:$0xff] }
 0x179   : >> { %v1475_v0 = vsel %vm881_vm3, %v1474_v23, %v1473_v32 }
 0x17a   : >> { %v2305_v3 = vpop.eup %2304  ;;  %v1477_v2 = vsel %vm884_vm4, %v1476_v36, %v1475_v0 }
 0x17b   : >> { %v1479_v11 = vsel %vm887_vm5, %v1478_v61, %v1477_v2  ;;  %v694_v15 = vmul.f32 %v2305_v3, %v3109_v7  ;;  %v1394_v7 = vld [vmem:[%s3542_s7 + $0x10] sm:$0xff]  ;;  %v2080_v61 = vld [vmem:[%s3543_s8] ss:$0 sm:$0xff] }
 0x17c   : >> { %v1481_v9 = vsel %vm890_vm6, %v1480_v46, %v1479_v11  ;;  %v2081_v2 = vld [vmem:[%s3544_s9] ss:$0 sm:$0xff] }
 0x17d   : >> { %v1483_v24 = vsel %vm893_vm7, %v1482_v5, %v1481_v9  ;;  %v702_v17 = vmul.f32 %v2072_v4, %v694_v15 }
 0x17e   : >> { %v2307_v18 = vpop.eup %2306  ;;  %1491 = vxpose.xlu1.b32.end [4/4] (short) (narrow) %v1483_v24, 16  ;;  %v1735_v24 = vld [vmem:[%s3546_s11 + $0x8] sm:$0xff] }
 0x17f   : >> { %v695_v49 = vmul.f32 %v2307_v18, %v3114_v34  ;;  %v710_v20 = vadd.f32 %v2073_v8, %v702_v17  ;;  %v1392_v34 = vld [vmem:[%s3542_s7] sm:$0xff]  ;;  %v1844_v18 = vld [vmem:[%s3636_s19 + $0x78] sm:$0xff] }
 0x180   : >> { %v1734_v17 = vld [vmem:[%s3546_s11] sm:$0xff]  ;;  %2182 = vmatprep.subr.mxu0 %v1844_v18 }
 0x181   : >> { %v703_v27 = vmul.f32 %v2072_v4, %v695_v49  ;;  %2146 = vmatprep.mubr.msk.f32.mxu1 %vm668_vm0, %v710_v20  ;;  %2183 = vmatpush3.msra.mxu0 %v1844_v18  ;;  %v1843_v49 = vld [vmem:[%s3636_s19 + $0x70] sm:$0xff]  ;;  %v1842_v20 = vld [vmem:[%s3636_s19 + $0x68] sm:$0xff] }
 0x182   : >> { %2184 = vmatprep.subr.mxu0 %v1843_v49 }
 0x183   : >> { %v711_v48 = vadd.f32 %v2073_v8, %v703_v27  ;;  %v1736_v8 = vld [vmem:[%s3546_s11 + $0x10] sm:$0xff]  ;;  %2185 = vmatpush3.msra.mxu0 %v1843_v49  ;;  %v1841_v27 = vld [vmem:[%s3636_s19 + $0x60] sm:$0xff] }
 0x184   : >> { %2186 = vmatprep.subr.mxu0 %v1842_v20 }
 0x185   : >> { %2147 = vmatmul.mubr.msk.f32.vlgmr.msra.gmra.mxu1 %vm668_vm0, %v711_v48  ;;  %2187 = vmatpush3.msra.mxu0 %v1842_v20  ;;  %v1840_v48 = vld [vmem:[%s3636_s19 + $0x58] sm:$0xff] }
 0x186   : >> { %2150 = vmatpush3.msra.mxu1 %v3274_v62  ;;  %2188 = vmatprep.subr.mxu0 %v1841_v27 }
 0x187   : >> { %2151 = vmatprep.subr.mxu1 %v1394_v7  ;;  %2189 = vmatpush3.msra.mxu0 %v1841_v27 }
 0x188   : >> { %2152 = vmatpush3.msra.mxu1 %v1394_v7  ;;  %2190 = vmatprep.subr.mxu0 %v1840_v48  ;;  %v1839_v7 = vld [vmem:[%s3636_s19 + $0x50] sm:$0xff] }
 0x189   : >> { %2153 = vmatprep.subr.mxu1 %v1393_v41  ;;  %2191 = vmatpush3.msra.mxu0 %v1840_v48 }
 0x18a   : >> { %2154 = vmatpush3.msra.mxu1 %v1393_v41  ;;  %2192 = vmatprep.subr.mxu0 %v1839_v7  ;;  %v1838_v41 = vld [vmem:[%s3636_s19 + $0x48] sm:$0xff] }
 0x18b   : >> { %2155 = vmatprep.subr.mxu1 %v1392_v34  ;;  %2193 = vmatpush3.msra.mxu0 %v1839_v7 }
 0x18c   : >> { %2156 = vmatpush3.msra.mxu1 %v1392_v34  ;;  %2194 = vmatprep.subr.mxu0 %v1838_v41  ;;  %v1837_v34 = vld [vmem:[%s3636_s19 + $0x40] sm:$0xff] }
 0x18d   : >> { %2160 = vmatprep.subr.mxu1 %v1652_v22  ;;  %2195 = vmatpush3.msra.mxu0 %v1838_v41 }
 0x18e   : >> { %2196 = vmatprep.subr.mxu0 %v1837_v34 }
 0x18f   : >> { %2197 = vmatpush3.msra.mxu0 %v1837_v34 }
 0x1ee   : >> { %v1504_v56 = vpop.trf.xlu1 }
 0x1ef   : >> { %2157 = vmatprep.mubr.msk.f32.mxu1 %vm668_vm0, %v1504_v56  ;;  %v1836_v56 = vld [vmem:[%s3636_s19 + $0x38] sm:$0xff] }
 0x1f0   : >> { %2198 = vmatprep.subr.mxu0 %v1836_v56 }
 0x1f1   : >> { %2199 = vmatpush3.msra.mxu0 %v1836_v56 }
 0x1f2   : >> { %v1505_v35 = vpop.trf.xlu1 }
 0x1f3   : >> { %2158 = vmatmul.mubr.msk.f32.vlgmr.msra.gmra.mxu1 %vm668_vm0, %v1505_v35  ;;  %v1835_v35 = vld [vmem:[%s3636_s19 + $0x30] sm:$0xff] }
 0x1f4   : >> { %2161 = vmatpush3.msra.mxu1 %v1652_v22  ;;  %2200 = vmatprep.subr.mxu0 %v1835_v35 }
 0x1f5   : >> { %2162 = vmatprep.subr.mxu1 %v1651_v59  ;;  %2201 = vmatpush3.msra.mxu0 %v1835_v35 }
 0x1f6   : >> { %2163 = vmatpush3.msra.mxu1 %v1651_v59 }
 0x1f7   : >> { %2164 = vmatprep.subr.mxu1 %v1650_v55 }
 0x1f8   : >> { %2165 = vmatpush3.msra.mxu1 %v1650_v55 }
 0x1f9   : >> { %2166 = vmatprep.subr.mxu1 %v1649_v30 }
 0x1fa   : >> { %2167 = vmatpush3.msra.mxu1 %v1649_v30 }
 0x1fb   : >> { %2171 = vmatprep.subr.mxu1 %v1737_v38 }
 0x245   : >> { %v2148_v62 = vpop.f32.mrf.mxu1 }
 0x246   : >> { %v2077_v53 = vmul.f32 -1.442695, %v2148_v62  ;;  %v1834_v62 = vld [vmem:[%s3636_s19 + $0x28] sm:$0xff] }
 0x247   : >> { %v788_v43 = vpop.f32.mrf.mxu1  ;;  %2202 = vmatprep.subr.mxu0 %v1834_v62 }
 0x248   : >> { %v2076_v52 = vmul.f32 -1.442695, %v788_v43  ;;  %2308 = vpow2.f32 %v2077_v53  ;;  %2203 = vmatpush3.msra.mxu0 %v1834_v62  ;;  %v1833_v43 = vld [vmem:[%s3636_s19 + $0x20] sm:$0xff]  ;;  %v1832_v53 = vld [vmem:[%s3636_s19 + $0x18] sm:$0xff] }
 0x249   : >> { %2204 = vmatprep.subr.mxu0 %v1833_v43 }
 0x24a   : >> { %2310 = vpow2.f32 %v2076_v52  ;;  %2205 = vmatpush3.msra.mxu0 %v1833_v43  ;;  %v1831_v52 = vld [vmem:[%s3636_s19 + $0x10] sm:$0xff] }
 0x24b   : >> { %2206 = vmatprep.subr.mxu0 %v1832_v53 }
 0x24c   : >> { %2207 = vmatpush3.msra.mxu0 %v1832_v53 }
 0x24d   : >> { %2208 = vmatprep.subr.mxu0 %v1831_v52 }
 0x24e   : >> { %2209 = vmatpush3.msra.mxu0 %v1831_v52 }
 0x255   : >> { %v2309_v54 = vpop.eup %2308 }
 0x256   : >> { %v804_v6 = vadd.f32 1.0, %v2309_v54  ;;  %v1830_v54 = vld [vmem:[%s3636_s19 + $0x8] sm:$0xff] }
 0x257   : >> { %v2311_v60 = vpop.eup %2310  ;;  %2210 = vmatprep.subr.mxu0 %v1830_v54 }
 0x258   : >> { %v803_v50 = vadd.f32 1.0, %v2311_v60  ;;  %2312 = vrcp.f32 %v804_v6  ;;  %v1829_v60 = vld [vmem:[%s3636_s19] sm:$0xff]  ;;  %2211 = vmatpush3.msra.mxu0 %v1830_v54 }
 0x259   : >> { %2212 = vmatprep.subr.mxu0 %v1829_v60 }
 0x25a   : >> { %2314 = vrcp.f32 %v803_v50  ;;  %2213 = vmatpush3.msra.mxu0 %v1829_v60 }
 0x265   : >> { %v2313_v33 = vpop.eup %2312 }
 0x267   : >> { %v2315_v39 = vpop.eup %2314 }
 0x2b3   : >> { %v2159_v40 = vpop.f32.mrf.mxu1 }
 0x2b4   : >> { %v1602_v57 = vmul.f32 %v2313_v33, %v2159_v40 }
 0x2b5   : >> { %v1592_v45 = vpop.f32.mrf.mxu1 }
 0x2b6   : >> { %v1601_v31 = vmul.f32 %v2315_v39, %v1592_v45  ;;  %v3372_v16 = vadd.f32 %v2329_v29, %v1602_v57 }
 0x2b8   : >> { %v3369_v58 = vadd.f32 %v2328_v42, %v1601_v31  ;;  %v1610_v51 = vsel %vm668_vm0, %v3372_v16, 0.0 }
 0x2ba   : >> { %v1607_v10 = vsel %vm668_vm0, %v3369_v58, 0.0 }
 0x2bb   : >> { %1608 = vadd.xlane.f32.xlu0 %v1607_v10 }
 0x2bf   : >> { %1611 = vadd.xlane.f32.xlu0 %v1610_v51 }
 0x344   : >> { %v1609_v25 = vpop.xlane.xlu0 %1608 }
 0x345   : >> { %v1613_v12 = vmul.f32 0.03125, %v1609_v25 }
 0x347   : >> { %v1615_v1 = vsub.f32 %v3369_v58, %v1613_v12 }
 0x348   : >> { %v1612_v21 = vpop.xlane.xlu0 %1611 }
 0x349   : >> { %v1614_v19 = vmul.f32 0.03125, %v1612_v21  ;;  %v1617_v37 = vmul.f32 %v1615_v1, %v1615_v1 }
 0x34b   : >> { %v1616_v63 = vsub.f32 %v3372_v16, %v1614_v19  ;;  %v1619_v26 = vsel %vm668_vm0, %v1617_v37, 0.0 }
 0x34c   : >> { %1620 = vadd.xlane.f32.xlu0 %v1619_v26 }
 0x34d   : >> { %v1618_v13 = vmul.f32 %v1616_v63, %v1616_v63 }
 0x34f   : >> { %v1622_v47 = vsel %vm668_vm0, %v1618_v13, 0.0 }
 0x350   : >> { %1623 = vadd.xlane.f32.xlu0 %v1622_v47 }
 0x3d5   : >> { %v1621_v14 = vpop.xlane.xlu0 %1620 }
 0x3d6   : >> { %v1625_v28 = vmul.f32 0.03125, %v1621_v14 }
 0x3d8   : >> { %v1627_v44 = vadd.f32 1e-05, %v1625_v28 }
 0x3d9   : >> { %v1624_v23 = vpop.xlane.xlu0 %1623 }
 0x3da   : >> { %2316 = vrsqrt.f32 %v1627_v44  ;;  %v1626_v32 = vmul.f32 0.03125, %v1624_v23 }
 0x3dc   : >> { %v1628_v36 = vadd.f32 1e-05, %v1626_v32 }
 0x3de   : >> { %2318 = vrsqrt.f32 %v1628_v36 }
 0x3e7   : >> { %v2317_v0 = vpop.eup %2316 }
 0x3e8   : >> { %v1631_v3 = vmul.f32 %v2317_v0, %v1615_v1 }
 0x3ea   : >> { %v1639_v46 = vmul.f32 %v2080_v61, %v1631_v3 }
 0x3eb   : >> { %v2319_v4 = vpop.eup %2318 }
 0x3ec   : >> { %v1632_v11 = vmul.f32 %v2319_v4, %v1616_v63  ;;  %v1647_v5 = vadd.f32 %v2081_v2, %v1639_v46 }
 0x3ee   : >> { %v1640_v15 = vmul.f32 %v2080_v61, %v1632_v11  ;;  %2168 = vmatprep.mubr.msk.f32.mxu1 %vm668_vm0, %v1647_v5 }
 0x3f0   : >> { %v1648_v9 = vadd.f32 %v2081_v2, %v1640_v15 }
 0x3f2   : >> { %2169 = vmatmul.mubr.msk.f32.vlgmr.msra.gmra.mxu1 %vm668_vm0, %v1648_v9 }
 0x3f3   : >> { %2172 = vmatpush3.msra.mxu1 %v1737_v38  ;;  %2179 = vmatprep.mubr.msk.f32.mxu1 %vm668_vm0, %v1647_v5 }
 0x3f4   : >> { %2173 = vmatprep.subr.mxu1 %v1736_v8 }
 0x3f5   : >> { %2174 = vmatpush3.msra.mxu1 %v1736_v8 }
 0x3f6   : >> { %2175 = vmatprep.subr.mxu1 %v1735_v24 }
 0x3f7   : >> { %2176 = vmatpush3.msra.mxu1 %v1735_v24 }
 0x3f8   : >> { %2177 = vmatprep.subr.mxu1 %v1734_v17 }
 0x3f9   : >> { %2178 = vmatpush3.msra.mxu1 %v1734_v17 }
 0x3fa   : >> { %2180 = vmatmul.mubr.msk.f32.vlgmr.msra.gmra.mxu1 %vm668_vm0, %v1648_v9 }
 0x4b2   : >> { %v2170_v6 = vpop.f32.mrf.mxu1 }
 0x4b4   : >> { %v1725_v50 = vpop.f32.mrf.mxu1 }
 0x4ba   : >> { %v2181_v40 = vpop.f32.mrf.mxu1 }
 0x4bb   : >> { %v2087_v33 = vmul.f32 -1.442695, %v2181_v40 }
 0x4bc   : >> { %v1804_v39 = vpop.f32.mrf.mxu1 }
 0x4bd   : >> { %2320 = vpow2.f32 %v2087_v33  ;;  %v2086_v45 = vmul.f32 -1.442695, %v1804_v39 }
 0x4bf   : >> { %2322 = vpow2.f32 %v2086_v45 }
 0x4ca   : >> { %v2321_v57 = vpop.eup %2320 }
 0x4cb   : >> { %v1820_v31 = vadd.f32 1.0, %v2321_v57 }
 0x4cc   : >> { %v2323_v42 = vpop.eup %2322 }
 0x4cd   : >> { %2324 = vrcp.f32 %v1820_v31  ;;  %v1819_v29 = vadd.f32 1.0, %v2323_v42 }
 0x4cf   : >> { %2326 = vrcp.f32 %v1819_v29 }
 0x4da   : >> { %v2325_v10 = vpop.eup %2324 }
 0x4db   : >> { %v1826_v25 = vmul.f32 %v2325_v10, %v2181_v40 }
 0x4dc   : >> { %v2327_v51 = vpop.eup %2326 }
 0x4dd   : >> { %v1825_v12 = vmul.f32 %v2327_v51, %v1804_v39  ;;  %v1828_v21 = vmul.f32 %v2170_v6, %v1826_v25 }
 0x4df   : >> { %v1827_v1 = vmul.f32 %v1825_v12, %v1725_v50 }
 0x4e1   : >> { %2214 = vmatprep.mubr.f32.mxu0 %v1827_v1 }
 0x4e2   : >> { %2215 = vmatmul.mubr.f32.vlgmr.msra.gmra.mxu0 %v1828_v21 }
 0x5a2   : >> { %v2216_v19 = vpop.f32.mrf.mxu0 }
 0x5a3   : >> { %v1921_v37 = vadd.f32 %v2216_v19, %v3372_v16  ;;  %660 = sbr.rel (!%p658_p3) target bundleno = 74 (0x4a), region = 163 }
 0x5a4   : >> { %v1911_v63 = vpop.f32.mrf.mxu0 }
 0x5a5   : >> { %1924 = vst.msk [vmem:[%s1922_s18 + $0x8] sm:$0xff] %vm668_vm0, %v1921_v37  ;;  %v1920_v26 = vadd.f32 %v1911_v63, %v3369_v58 }
 0x5a7   : >> { %1923 = vst.msk [vmem:[%s1922_s18] sm:$0xff] %vm668_vm0, %v1920_v26  ;;  %s3638_s18 = sld [smem:[#allocation35_spill]] (%p658_p3) }
 0x5ad   : > { %s3482_s12 = scalar_lea.hbm %s3638_s18, %s2092_s20 }
 0x5ae   : > { %2343 = shalt.err (!%p2340_p12)
}
 0x5af   : > { %s2344_s13 = scalar_lea.hbm %s3482_s12, 2048  ;;  %s2348_s20 = scalar_lea.hbm %s3638_s18, 8192 }
 0x5b0   : > { %p2345_p13 = scmp.ne.s32.totalorder %s3482_s12, %s2344_s13  ;;  %p2349_p2 = scmp.lt.s32.totalorder %s3482_s12, %s3638_s18 }
 0x5b1   : > { %p2350_p3 = scmp.lt.s32.totalorder %s2348_s20, %s2344_s13 }
 0x5b2   : > { %p2346_p0 = pnand %p2345_p13, %p2566_p8 }
 0x5b3   : > { %p2351_p4 = por %p2350_p3, %p2349_p2 }
 0x5b4   : > { %p2347_p1 = pneg %p2346_p0 }
 0x5b6   : > { %p2352_p5 = pnand %p2351_p4, %p2347_p1 }
 0x5b8   : > { %2355 = shalt.err (!%p2352_p5)
}
 0x5b9   : > { %s2434_s14 = smov 128   ;;  %s2435_s28 = smov 8  }
 0x5ba   : > { %2217 = dma.vmem_to_hbm [thread:$0]  (%p2566_p8), %s3477_s16, 2048, %s3482_s12, %s1926_s1, %s2434_s14, %s2434_s14, %s2435_s28  }
 0x5bb PF: > { %s3639_s29 = sld [smem:[#allocation6_spill]]  ;;  %p2223_p6 = scmp.ge.s32.totalorder %s2426_s15, 2 }
 0x5bd   : > { %p2220_p7 = pnand %p2223_p6, %p2570_p9 }
 0x5bf   : > { %p2221_p10 = pneg %p2220_p7 }
 0x5c1   : > { %s1957_s23 = sand.u32 1, %s3639_s29  }
 0x5c2   : > { %s1958_s13 = scalar_lea.sflag [#allocation4], %s1957_s23 }
 0x5c3   : > { %2393 = dma.done.wait (%p2221_p10), %s1958_s13, 2048  }
 0x5c4   : > { %2395 = vsyncadd (%p2221_p10), %s1958_s13, 4294965248  ;;  %s26_s15 = sadd.s32 1, %s2426_s15   ;;  %s3641_s21 = sld [smem:[#allocation13_spill]] }
 0x5c5   : > { %p23_p11 = scmp.ge.s32.totalorder %s26_s15, 6   ;;  %s3642_s28 = sld [smem:[#allocation7_spill]] }
 0x5c6   : > { %s3643_s29 = sld [smem:[#allocation8_spill]]  ;;  %s3646_s25 = smov %s2402_s26 }
 0x5c7   : > { %s3644_s30 = sld [smem:[#allocation9_spill]]  ;;  %s3647_s26 = smov %s2406_s27 }
 0x5c8   : > { %s3645_s14 = sld [smem:[#allocation10_spill]]  ;;  %25 = sbr.rel (!%p23_p11) target bundleno = 9 (0x9), region = 174 }
 0x5ca   : > { %s3648_s27 = smov %s3641_s21 }
 0x5cd   :  { %1963 = vsyncpa [#allocation4], 1 }
 0x5ce   :  { %1965 = vsyncpa [#allocation4 + $0x1], 1 }

// kernel: pairwise_block.10
= control target key start
LH: loop header
LB: loop body
LE: loop exit
PB: predicated region body
PF: predicated region fallthrough
CT: control target
= control target key end

     0   :  { %s5192_s18 = smov 0   ;;  %s5194_s19 = smov 0   ;;  %s5945_s0 = inlined_call_operand.vmem [shape: f32[2,32,16,16], index: 0, kind: input, shape index: {}]   ;;  %s5946_s1 = inlined_call_operand.vmem [shape: f32[2,32,16,16], index: 1, kind: input, shape index: {}]   ;;  %s5947_s2 = inlined_call_operand.vmem [shape: f32[2,16,1], index: 2, kind: input, shape index: {}, may-alias: {2,3}]   ;;  %s5948_s3 = inlined_call_operand.vmem [shape: f32[2,16,1], index: 3, kind: input, shape index: {}, may-alias: {2,3}]   ;;  %s5949_s4 = inlined_call_operand.vmem [shape: f32[2,1,16], index: 4, kind: input, shape index: {}]   ;;  %s5950_s5 = inlined_call_operand.vmem [shape: f32[2,32,16,16], index: 5, kind: output, shape index: {}]  }
   0x1   :  { %s5196_s20 = smov 0  }
   0x2 LB: > { %s41_s21 = sadd.s32 1, %s5155_s19  ;;  %p4674_p0 = scmp.ge.s32.totalorder %s5159_s20, 1  ;;  %s5159_s20 = sphi %s5196_s20, %s15_s20   ;;  %s5155_s19 = sphi %s5194_s19, %s5952_s19   ;;  %s5151_s18 = sphi %s5192_s18, %s5951_s18  }
   0x3   : > { %p43_p1 = scmp.ge.s32.totalorder %s41_s21, 2  ;;  %p295_p2 = scmp.lt.s32.totalorder %s5159_s20, 3 }
   0x5   : > { %s5954_s21 = smov (%p43_p1, %s41_s21), 0  ;;  %p296_p3 = pnand %p4674_p0, %p295_p2 }
   0x6   : > { %p377_p4 = scmp.lt.s32.totalorder (!%p296_p3), %s5151_s18, 1 }
   0x7   : > { %299 = sbr.rel (%p296_p3) target bundleno = 484 (0x1e4), region = 40 }
   0xc   : > { %v5161_v0 = vmov 0   ;;  %s5956_s18 = smov (!%p377_p4, %s5151_s18), 1  ;;  %vm680_vm0 = vcmask 130048  }
   0xd   : > { %5135 = vset.pattern.permute.xlu0 %v5161_v0  ;;  %s4754_s22 = sshll.u32 %s5956_s18, 4  ;;  %s5220_s26 = sshll.u32 %s5956_s18, 9 }
   0xe   : > { %s408_s25 = scalar_lea.vmem %s5947_s2, %s4754_s22  ;;  %s5226_s29 = scalar_lea.vmem %s5945_s0, %s5220_s26 }
   0xf   : > { %v573_v1 = vld [vmem:[%s408_s25 + $0x8] sm:$0xff]  ;;  %v444_v2 = vld [vmem:[%s5226_s29] sm:$0xff]  ;;  %v450_v7 = vld [vmem:[%s5226_s29 + $0x30] sm:$0xff]  ;;  %s5284_s7 = scalar_lea.vmem %s5946_s1, %s5220_s26  ;;  %s5532_s10 = scalar_lea.vmem %s5948_s3, %s4754_s22 }
  0x10   : > { %581 = vperm.xlu0 %5135, %v573_v1   ;;  %648 = vxpose.xlu1.b32.start [1/2] (short) (narrow) %v444_v2, 16  ;;  %v572_v3 = vld [vmem:[%s408_s25] sm:$0xff]  ;;  %v445_v4 = vld [vmem:[%s5226_s29 + $0x8] sm:$0xff]  ;;  %v451_v8 = vld [vmem:[%s5226_s29 + $0x38] sm:$0xff]  ;;  %s424_s13 = scalar_lea.vmem %s5949_s4, %s5956_s18  ;;  %s5679_s16 = scalar_lea.vmem %s5950_s5, %s5220_s26 }
  0x11   : > { %v448_v5 = vld [vmem:[%s5226_s29 + $0x20] sm:$0xff]  ;;  %v449_v6 = vld [vmem:[%s5226_s29 + $0x28] sm:$0xff]  ;;  %v454_v11 = vld [vmem:[%s5226_s29 + $0x50] sm:$0xff] }
  0x12   : > { %v452_v9 = vld [vmem:[%s5226_s29 + $0x40] sm:$0xff]  ;;  %v453_v10 = vld [vmem:[%s5226_s29 + $0x48] sm:$0xff]  ;;  %v446_v12 = vld [vmem:[%s5226_s29 + $0x10] sm:$0xff] }
  0x13   : > { %v455_v13 = vld [vmem:[%s5226_s29 + $0x58] sm:$0xff]  ;;  %v456_v15 = vld [vmem:[%s5226_s29 + $0x60] sm:$0xff]  ;;  %v458_v16 = vld [vmem:[%s5226_s29 + $0x70] sm:$0xff] }
  0x14   : > { %576 = vperm.xlu0 %5135, %v572_v3   ;;  %649 = vxpose.xlu1.b32.end [2/2] (short) (narrow) %v445_v4, 16  ;;  %v447_v14 = vld [vmem:[%s5226_s29 + $0x18] sm:$0xff]  ;;  %v457_v17 = vld [vmem:[%s5226_s29 + $0x68] sm:$0xff]  ;;  %v460_v19 = vld [vmem:[%s5226_s29 + $0x80] sm:$0xff] }
  0x15   : > { %v459_v18 = vld [vmem:[%s5226_s29 + $0x78] sm:$0xff]  ;;  %v462_v20 = vld [vmem:[%s5226_s29 + $0x90] sm:$0xff]  ;;  %v461_v21 = vld [vmem:[%s5226_s29 + $0x88] sm:$0xff] }
  0x16   : > { %v463_v22 = vld [vmem:[%s5226_s29 + $0x98] sm:$0xff]  ;;  %v464_v23 = vld [vmem:[%s5226_s29 + $0xa0] sm:$0xff]  ;;  %v466_v24 = vld [vmem:[%s5226_s29 + $0xb0] sm:$0xff] }
  0x17   : > { %v465_v25 = vld [vmem:[%s5226_s29 + $0xa8] sm:$0xff]  ;;  %v467_v26 = vld [vmem:[%s5226_s29 + $0xb8] sm:$0xff]  ;;  %v468_v27 = vld [vmem:[%s5226_s29 + $0xc0] sm:$0xff] }
  0x18   : > { %875 = vxpose.xlu1.b32.start [1/2] (short) (narrow) %v448_v5, 16  ;;  %v470_v28 = vld [vmem:[%s5226_s29 + $0xd0] sm:$0xff]  ;;  %v469_v29 = vld [vmem:[%s5226_s29 + $0xc8] sm:$0xff]  ;;  %v471_v30 = vld [vmem:[%s5226_s29 + $0xd8] sm:$0xff] }
  0x19   : > { %v472_v31 = vld [vmem:[%s5226_s29 + $0xe0] sm:$0xff]  ;;  %v474_v32 = vld [vmem:[%s5226_s29 + $0xf0] sm:$0xff]  ;;  %v473_v33 = vld [vmem:[%s5226_s29 + $0xe8] sm:$0xff] }
  0x1a   : > { %v475_v34 = vld [vmem:[%s5226_s29 + $0xf8] sm:$0xff]  ;;  %v476_v35 = vld [vmem:[%s5226_s29 + $0x100] sm:$0xff]  ;;  %v478_v36 = vld [vmem:[%s5226_s29 + $0x110] sm:$0xff] }
  0x1b   : > { %v477_v37 = vld [vmem:[%s5226_s29 + $0x108] sm:$0xff]  ;;  %v479_v38 = vld [vmem:[%s5226_s29 + $0x118] sm:$0xff]  ;;  %v480_v39 = vld [vmem:[%s5226_s29 + $0x120] sm:$0xff] }
  0x1c   : > { %876 = vxpose.xlu1.b32.end [2/2] (short) (narrow) %v449_v6, 16  ;;  %v482_v40 = vld [vmem:[%s5226_s29 + $0x130] sm:$0xff]  ;;  %v481_v41 = vld [vmem:[%s5226_s29 + $0x128] sm:$0xff]  ;;  %v483_v42 = vld [vmem:[%s5226_s29 + $0x138] sm:$0xff] }
  0x1d   : > { %v484_v43 = vld [vmem:[%s5226_s29 + $0x140] sm:$0xff]  ;;  %v486_v44 = vld [vmem:[%s5226_s29 + $0x150] sm:$0xff]  ;;  %v485_v45 = vld [vmem:[%s5226_s29 + $0x148] sm:$0xff] }
  0x1e   : > { %v487_v46 = vld [vmem:[%s5226_s29 + $0x158] sm:$0xff]  ;;  %v488_v47 = vld [vmem:[%s5226_s29 + $0x160] sm:$0xff]  ;;  %v490_v48 = vld [vmem:[%s5226_s29 + $0x170] sm:$0xff] }
  0x1f   : > { %v489_v49 = vld [vmem:[%s5226_s29 + $0x168] sm:$0xff]  ;;  %v491_v50 = vld [vmem:[%s5226_s29 + $0x178] sm:$0xff]  ;;  %v492_v51 = vld [vmem:[%s5226_s29 + $0x180] sm:$0xff] }
  0x20   : > { %988 = vxpose.xlu1.b32.start [1/2] (short) (narrow) %v450_v7, 16  ;;  %v494_v52 = vld [vmem:[%s5226_s29 + $0x190] sm:$0xff]  ;;  %v493_v53 = vld [vmem:[%s5226_s29 + $0x188] sm:$0xff]  ;;  %v495_v54 = vld [vmem:[%s5226_s29 + $0x198] sm:$0xff] }
  0x21   : > { %v496_v55 = vld [vmem:[%s5226_s29 + $0x1a0] sm:$0xff]  ;;  %v498_v56 = vld [vmem:[%s5226_s29 + $0x1b0] sm:$0xff]  ;;  %v509_v57 = vld [vmem:[%s5284_s7 + $0x8] sm:$0xff] }
  0x22   : > { %v511_v58 = vld [vmem:[%s5284_s7 + $0x18] sm:$0xff]  ;;  %v497_v59 = vld [vmem:[%s5226_s29 + $0x1a8] sm:$0xff]  ;;  %v500_v2 = vld [vmem:[%s5226_s29 + $0x1c0] sm:$0xff] }
  0x23   : > { %v499_v63 = vld [vmem:[%s5226_s29 + $0x1b8] sm:$0xff]  ;;  %v508_v3 = vld [vmem:[%s5284_s7] sm:$0xff]  ;;  %v510_v4 = vld [vmem:[%s5284_s7 + $0x10] sm:$0xff] }
  0x24   : > { %989 = vxpose.xlu1.b32.end [2/2] (short) (narrow) %v451_v8, 16  ;;  %v502_v5 = vld [vmem:[%s5226_s29 + $0x1d0] sm:$0xff]  ;;  %v513_v6 = vld [vmem:[%s5284_s7 + $0x28] sm:$0xff]  ;;  %v515_v7 = vld [vmem:[%s5284_s7 + $0x38] sm:$0xff] }
  0x28   : > { %1101 = vxpose.xlu1.b32.start [1/2] (short) (narrow) %v452_v9, 16  ;;  %v512_v9 = vld [vmem:[%s5284_s7 + $0x20] sm:$0xff] }
  0x2c   : > { %1102 = vxpose.xlu1.b32.end [2/2] (short) (narrow) %v453_v10, 16  ;;  %v517_v10 = vld [vmem:[%s5284_s7 + $0x48] sm:$0xff] }
  0x30   : > { %1214 = vxpose.xlu1.b32.start [1/2] (short) (narrow) %v454_v11, 16  ;;  %v516_v11 = vld [vmem:[%s5284_s7 + $0x40] sm:$0xff] }
  0x32   : > { %762 = vxpose.xlu0.b32.start [1/2] (short) (narrow) %v446_v12, 16 }
  0x34   : > { %1215 = vxpose.xlu1.b32.end [2/2] (short) (narrow) %v455_v13, 16 }
  0x36   : > { %763 = vxpose.xlu0.b32.end [2/2] (short) (narrow) %v447_v14, 16  ;;  %v501_v14 = vld [vmem:[%s5226_s29 + $0x1c8] sm:$0xff] }
  0x38   : > { %1327 = vxpose.xlu1.b32.start [1/2] (short) (narrow) %v456_v15, 16  ;;  %v521_v15 = vld [vmem:[%s5284_s7 + $0x68] sm:$0xff] }
  0x3a   : > { %1440 = vxpose.xlu0.b32.start [1/2] (short) (narrow) %v458_v16, 16  ;;  %v537_v16 = vld [vmem:[%s5284_s7 + $0xe8] sm:$0xff] }
  0x3c   : > { %1328 = vxpose.xlu1.b32.end [2/2] (short) (narrow) %v457_v17, 16  ;;  %v539_v17 = vld [vmem:[%s5284_s7 + $0xf8] sm:$0xff] }
  0x3e   : > { %1441 = vxpose.xlu0.b32.end [2/2] (short) (narrow) %v459_v18, 16 }
  0x40   : > { %1553 = vxpose.xlu1.b32.start [1/2] (short) (narrow) %v460_v19, 16  ;;  %v536_v19 = vld [vmem:[%s5284_s7 + $0xe0] sm:$0xff] }
  0x42   : > { %1666 = vxpose.xlu0.b32.start [1/2] (short) (narrow) %v462_v20, 16  ;;  %v538_v20 = vld [vmem:[%s5284_s7 + $0xf0] sm:$0xff] }
  0x44   : > { %1554 = vxpose.xlu1.b32.end [2/2] (short) (narrow) %v461_v21, 16  ;;  %v541_v21 = vld [vmem:[%s5284_s7 + $0x108] sm:$0xff] }
  0x46   : > { %1667 = vxpose.xlu0.b32.end [2/2] (short) (narrow) %v463_v22, 16 }
  0x48   : > { %1779 = vxpose.xlu1.b32.start [1/2] (short) (narrow) %v464_v23, 16 }
  0x4a   : > { %1892 = vxpose.xlu0.b32.start [1/2] (short) (narrow) %v466_v24, 16  ;;  %v503_v24 = vld [vmem:[%s5226_s29 + $0x1d8] sm:$0xff] }
  0x4c   : > { %1780 = vxpose.xlu1.b32.end [2/2] (short) (narrow) %v465_v25, 16  ;;  %v543_v25 = vld [vmem:[%s5284_s7 + $0x118] sm:$0xff] }
  0x4e   : > { %1893 = vxpose.xlu0.b32.end [2/2] (short) (narrow) %v467_v26, 16  ;;  %v540_v26 = vld [vmem:[%s5284_s7 + $0x100] sm:$0xff] }
  0x50   : > { %2005 = vxpose.xlu1.b32.start [1/2] (short) (narrow) %v468_v27, 16  ;;  %v542_v27 = vld [vmem:[%s5284_s7 + $0x110] sm:$0xff] }
  0x52   : > { %2118 = vxpose.xlu0.b32.start [1/2] (short) (narrow) %v470_v28, 16 }
  0x54   : > { %2006 = vxpose.xlu1.b32.end [2/2] (short) (narrow) %v469_v29, 16 }
  0x56   : > { %2119 = vxpose.xlu0.b32.end [2/2] (short) (narrow) %v471_v30, 16 }
  0x58   : > { %2231 = vxpose.xlu1.b32.start [1/2] (short) (narrow) %v472_v31, 16  ;;  %v545_v31 = vld [vmem:[%s5284_s7 + $0x128] sm:$0xff] }
  0x5a   : > { %2344 = vxpose.xlu0.b32.start [1/2] (short) (narrow) %v474_v32, 16  ;;  %v547_v32 = vld [vmem:[%s5284_s7 + $0x138] sm:$0xff] }
  0x5c   : > { %2232 = vxpose.xlu1.b32.end [2/2] (short) (narrow) %v473_v33, 16  ;;  %v544_v33 = vld [vmem:[%s5284_s7 + $0x120] sm:$0xff] }
  0x5e   : > { %2345 = vxpose.xlu0.b32.end [2/2] (short) (narrow) %v475_v34, 16  ;;  %v504_v34 = vld [vmem:[%s5226_s29 + $0x1e0] sm:$0xff] }
  0x60   : > { %2457 = vxpose.xlu1.b32.start [1/2] (short) (narrow) %v476_v35, 16 }
  0x62   : > { %2570 = vxpose.xlu0.b32.start [1/2] (short) (narrow) %v478_v36, 16 }
  0x64   : > { %2458 = vxpose.xlu1.b32.end [2/2] (short) (narrow) %v477_v37, 16 }
  0x66   : > { %2571 = vxpose.xlu0.b32.end [2/2] (short) (narrow) %v479_v38, 16  ;;  %v546_v38 = vld [vmem:[%s5284_s7 + $0x130] sm:$0xff] }
  0x68   : > { %2683 = vxpose.xlu1.b32.start [1/2] (short) (narrow) %v480_v39, 16  ;;  %v549_v39 = vld [vmem:[%s5284_s7 + $0x148] sm:$0xff] }
  0x6a   : > { %2796 = vxpose.xlu0.b32.start [1/2] (short) (narrow) %v482_v40, 16  ;;  %v551_v40 = vld [vmem:[%s5284_s7 + $0x158] sm:$0xff] }
  0x6c   : > { %2684 = vxpose.xlu1.b32.end [2/2] (short) (narrow) %v481_v41, 16 }
  0x6e   : > { %2797 = vxpose.xlu0.b32.end [2/2] (short) (narrow) %v483_v42, 16 }
  0x70   : > { %2909 = vxpose.xlu1.b32.start [1/2] (short) (narrow) %v484_v43, 16 }
  0x72   : > { %3022 = vxpose.xlu0.b32.start [1/2] (short) (narrow) %v486_v44, 16 }
  0x74   : > { %2910 = vxpose.xlu1.b32.end [2/2] (short) (narrow) %v485_v45, 16  ;;  %v548_v45 = vld [vmem:[%s5284_s7 + $0x140] sm:$0xff] }
  0x76   : > { %3023 = vxpose.xlu0.b32.end [2/2] (short) (narrow) %v487_v46, 16  ;;  %v550_v46 = vld [vmem:[%s5284_s7 + $0x150] sm:$0xff] }
  0x78   : > { %3135 = vxpose.xlu1.b32.start [1/2] (short) (narrow) %v488_v47, 16  ;;  %v553_v47 = vld [vmem:[%s5284_s7 + $0x168] sm:$0xff] }
  0x7a   : > { %3248 = vxpose.xlu0.b32.start [1/2] (short) (narrow) %v490_v48, 16  ;;  %v506_v48 = vld [vmem:[%s5226_s29 + $0x1f0] sm:$0xff] }
  0x7c   : > { %3136 = vxpose.xlu1.b32.end [2/2] (short) (narrow) %v489_v49, 16 }
  0x7e   : > { %3249 = vxpose.xlu0.b32.end [2/2] (short) (narrow) %v491_v50, 16 }
  0x80   : > { %3361 = vxpose.xlu1.b32.start [1/2] (short) (narrow) %v492_v51, 16 }
  0x82   : > { %3474 = vxpose.xlu0.b32.start [1/2] (short) (narrow) %v494_v52, 16 }
  0x84   : > { %3362 = vxpose.xlu1.b32.end [2/2] (short) (narrow) %v493_v53, 16  ;;  %v555_v53 = vld [vmem:[%s5284_s7 + $0x178] sm:$0xff] }
  0x86   : > { %3475 = vxpose.xlu0.b32.end [2/2] (short) (narrow) %v495_v54, 16  ;;  %v552_v54 = vld [vmem:[%s5284_s7 + $0x160] sm:$0xff] }
  0x88   : > { %3587 = vxpose.xlu1.b32.start [1/2] (short) (narrow) %v496_v55, 16  ;;  %v554_v55 = vld [vmem:[%s5284_s7 + $0x170] sm:$0xff] }
  0x8a   : > { %3700 = vxpose.xlu0.b32.start [1/2] (short) (narrow) %v498_v56, 16 }
  0x8b   : > { %v5291_v60 = vpop.permute.xlu0 %581 }
  0x8c   : > { %v585_v61 = vmul.f32 %v5291_v60, %v509_v57  ;;  %v587_v62 = vmul.f32 %v5291_v60, %v511_v58  ;;  %3588 = vxpose.xlu1.b32.end [2/2] (short) (narrow) %v497_v59, 16  ;;  %v664_v1 = vpop.trf.xlu1  ;;  %v589_v22 = vmul.f32 %v5291_v60, %v513_v6  ;;  %v5319_v23 = vmul.f32 %v5291_v60, %v515_v7  ;;  %v557_v59 = vld [vmem:[%s5284_s7 + $0x188] sm:$0xff]  ;;  %v563_v6 = vld [vmem:[%s5284_s7 + $0x1b8] sm:$0xff] }
  0x8d   : > { %4889 = vmatprep.mubr.msk.f32.mxu0 %vm680_vm0, %v664_v1  ;;  %v5327_v29 = vmul.f32 %v5291_v60, %v517_v10  ;;  %v5330_v30 = vmul.f32 %v5291_v60, %v521_v15  ;;  %v5340_v36 = vmul.f32 %v5291_v60, %v537_v16  ;;  %v5343_v37 = vmul.f32 %v5291_v60, %v539_v17 }
  0x8e   : > { %4885 = vmatprep.subr.mxu0 %v585_v61  ;;  %4892 = vmatprep.subr.mxu1 %v587_v62  ;;  %v5356_v44 = vmul.f32 %v5291_v60, %v541_v21  ;;  %v5364_v49 = vmul.f32 %v5291_v60, %v543_v25  ;;  %v5373_v52 = vmul.f32 %v5291_v60, %v545_v31  ;;  %v569_v25 = vld [vmem:[%s5284_s7 + $0x1e8] sm:$0xff] }
  0x8f   : > { %3701 = vxpose.xlu0.b32.end [2/2] (short) (narrow) %v499_v63, 16  ;;  %v5302_v8 = vpop.permute.xlu0 %576  ;;  %4886 = vmatpush3.msra.mxu0 %v585_v61  ;;  %v5379_v56 = vmul.f32 %v5291_v60, %v547_v32  ;;  %v559_v61 = vld [vmem:[%s5284_s7 + $0x198] sm:$0xff]  ;;  %v505_v63 = vld [vmem:[%s5226_s29 + $0x1e8] sm:$0xff]  ;;  %v5393_v1 = vmul.f32 %v5291_v60, %v549_v39  ;;  %v5408_v10 = vmul.f32 %v5291_v60, %v553_v47 }
  0x90   : > { %4893 = vmatpush3.msra.mxu1 %v587_v62  ;;  %v584_v12 = vmul.f32 %v5302_v8, %v508_v3  ;;  %v586_v13 = vmul.f32 %v5302_v8, %v510_v4  ;;  %3813 = vxpose.xlu1.b32.start [1/2] (short) (narrow) %v500_v2, 16  ;;  %v665_v18 = vpop.trf.xlu1  ;;  %v588_v28 = vmul.f32 %v5302_v8, %v512_v9  ;;  %v556_v62 = vld [vmem:[%s5284_s7 + $0x180] sm:$0xff]  ;;  %v558_v4 = vld [vmem:[%s5284_s7 + $0x190] sm:$0xff] }
  0x91   : > { %v5337_v35 = vmul.f32 %v5302_v8, %v516_v11  ;;  %v5350_v42 = vmul.f32 %v5302_v8, %v536_v19  ;;  %v5353_v43 = vmul.f32 %v5302_v8, %v538_v20  ;;  %v5367_v50 = vmul.f32 %v5302_v8, %v540_v26  ;;  %v564_v19 = vld [vmem:[%s5284_s7 + $0x1c0] sm:$0xff]  ;;  %v566_v20 = vld [vmem:[%s5284_s7 + $0x1d0] sm:$0xff]  ;;  %v571_v26 = vld [vmem:[%s5284_s7 + $0x1f8] sm:$0xff] }
  0x92   : > { %4887 = vmatprep.subr.mxu0 %v584_v12  ;;  %4894 = vmatprep.subr.mxu1 %v586_v13  ;;  %v5370_v51 = vmul.f32 %v5302_v8, %v542_v27  ;;  %v5382_v57 = vmul.f32 %v5302_v8, %v544_v33  ;;  %v5385_v58 = vmul.f32 %v5302_v8, %v546_v38  ;;  %v568_v27 = vld [vmem:[%s5284_s7 + $0x1e0] sm:$0xff] }
  0x93   : > { %3926 = vxpose.xlu0.b32.start [1/2] (short) (narrow) %v502_v5, 16  ;;  %4888 = vmatpush3.msra.mxu0 %v584_v12  ;;  %v5396_v2 = vmul.f32 %v5291_v60, %v551_v40  ;;  %v5399_v3 = vmul.f32 %v5302_v8, %v548_v45  ;;  %v561_v5 = vld [vmem:[%s5284_s7 + $0x1a8] sm:$0xff]  ;;  %v5405_v9 = vmul.f32 %v5302_v8, %v550_v46  ;;  %v560_v12 = vld [vmem:[%s5284_s7 + $0x1a0] sm:$0xff] }
  0x94   : > { %4895 = vmatpush3.msra.mxu1 %v586_v13  ;;  %4899 = vmatprep.subr.mxu0 %v589_v22  ;;  %v891_v41 = vpop.trf.xlu1  ;;  %v5411_v11 = vmul.f32 %v5291_v60, %v555_v53  ;;  %v562_v13 = vld [vmem:[%s5284_s7 + $0x1b0] sm:$0xff]  ;;  %v5419_v15 = vmul.f32 %v5302_v8, %v552_v54  ;;  %v5422_v16 = vmul.f32 %v5302_v8, %v554_v55  ;;  %v520_v55 = vld [vmem:[%s5284_s7 + $0x60] sm:$0xff] }
  0x95   : > { %4906 = vmatprep.subr.mxu1 %v5319_v23  ;;  %3814 = vxpose.xlu1.b32.end [2/2] (short) (narrow) %v501_v14, 16  ;;  %v565_v14 = vld [vmem:[%s5284_s7 + $0x1c8] sm:$0xff]  ;;  %v5425_v17 = vmul.f32 %v5291_v60, %v557_v59  ;;  %v5432_v21 = vmul.f32 %v5291_v60, %v559_v61  ;;  %v5446_v31 = vmul.f32 %v5291_v60, %v561_v5 }
  0x96   : > { %4890 = vmatmul.mubr.msk.f32.vlgmr.msra.gmra.mxu0 %vm680_vm0, %v665_v18  ;;  %v567_v18 = vld [vmem:[%s5284_s7 + $0x1d8] sm:$0xff]  ;;  %v5452_v32 = vmul.f32 %v5302_v8, %v560_v12  ;;  %v5455_v33 = vmul.f32 %v5302_v8, %v562_v13  ;;  %v5460_v39 = vmul.f32 %v5291_v60, %v565_v14  ;;  %v5470_v45 = vmul.f32 %v5302_v8, %v566_v20  ;;  %v525_v61 = vld [vmem:[%s5284_s7 + $0x88] sm:$0xff]  ;;  %v518_v14 = vld [vmem:[%s5284_s7 + $0x50] sm:$0xff] }
  0x97   : > { %4900 = vmatpush3.msra.mxu0 %v589_v22  ;;  %3927 = vxpose.xlu0.b32.end [2/2] (short) (narrow) %v503_v24, 16  ;;  %v5435_v22 = vmul.f32 %v5302_v8, %v556_v62  ;;  %v5438_v24 = vmul.f32 %v5302_v8, %v558_v4  ;;  %v5463_v40 = vmul.f32 %v5291_v60, %v567_v18  ;;  %v519_v13 = vld [vmem:[%s5284_s7 + $0x58] sm:$0xff] }
  0x98   : > { %4901 = vmatprep.subr.mxu0 %v588_v28  ;;  %4903 = vmatprep.mubr.msk.f32.mxu0 %vm680_vm0, %v891_v41  ;;  %v892_v7 = vpop.trf.xlu1  ;;  %v5466_v41 = vmul.f32 %v5302_v8, %v564_v19  ;;  %v5476_v46 = vmul.f32 %v5291_v60, %v571_v26  ;;  %v5479_v47 = vmul.f32 %v5302_v8, %v568_v27  ;;  %v524_v26 = vld [vmem:[%s5284_s7 + $0x80] sm:$0xff] }
  0x99   : > { %4902 = vmatpush3.msra.mxu0 %v588_v28  ;;  %4039 = vxpose.xlu1.b32.start [1/2] (short) (narrow) %v504_v34, 16  ;;  %v507_v28 = vld [vmem:[%s5226_s29 + $0x1f8] sm:$0xff]  ;;  %v570_v34 = vld [vmem:[%s5284_s7 + $0x1f0] sm:$0xff]  ;;  %v596_v62 = vmul.f32 %v5302_v8, %v520_v55  ;;  %v595_v19 = vmul.f32 %v5291_v60, %v519_v13 }
  0x9a   : > { %4913 = vmatprep.subr.mxu0 %v5327_v29  ;;  %4904 = vmatmul.mubr.msk.f32.vlgmr.msra.gmra.mxu0 %vm680_vm0, %v892_v7  ;;  %v527_v55 = vld [vmem:[%s5284_s7 + $0x98] sm:$0xff] }
  0x9b   : > { %4914 = vmatpush3.msra.mxu0 %v5327_v29  ;;  %4152 = vxpose.xlu0.b32.start [1/2] (short) (narrow) %v506_v48, 16  ;;  %v5449_v29 = vmul.f32 %v5291_v60, %v563_v6  ;;  %v5482_v48 = vmul.f32 %v5302_v8, %v570_v34  ;;  %v514_v6 = vld [vmem:[%s5284_s7 + $0x30] sm:$0xff] }
  0x9c   : > { %4915 = vmatprep.subr.mxu0 %v5337_v35  ;;  %v1004_v38 = vpop.trf.xlu1  ;;  %v522_v34 = vld [vmem:[%s5284_s7 + $0x70] sm:$0xff] }
  0x9d   : > { %4916 = vmatpush3.msra.mxu0 %v5337_v35  ;;  %4040 = vxpose.xlu1.b32.end [2/2] (short) (narrow) %v505_v63, 16  ;;  %v5473_v35 = vmul.f32 %v5291_v60, %v569_v25  ;;  %v601_v63 = vmul.f32 %v5291_v60, %v525_v61  ;;  %v523_v25 = vld [vmem:[%s5284_s7 + $0x78] sm:$0xff] }
  0x9e   : > { %4927 = vmatprep.subr.mxu0 %v5330_v30 }
  0x9f   : > { %4153 = vxpose.xlu0.b32.end [2/2] (short) (narrow) %v507_v28, 16  ;;  %v599_v28 = vmul.f32 %v5291_v60, %v523_v25  ;;  %v535_v25 = vld [vmem:[%s5284_s7 + $0xd8] sm:$0xff] }
  0xa0   : > { %v1005_v53 = vpop.trf.xlu1 }
  0xa4   : > { %v1117_v54 = vpop.trf.xlu1 }
  0xa5   : > { %4917 = vmatprep.mubr.msk.f32.mxu0 %vm680_vm0, %v1117_v54  ;;  %v600_v54 = vmul.f32 %v5302_v8, %v524_v26 }
  0xa8   : > { %v1118_v59 = vpop.trf.xlu1 }
  0xa9   : > { %4918 = vmatmul.mubr.msk.f32.vlgmr.msra.gmra.mxu0 %vm680_vm0, %v1118_v59  ;;  %v598_v59 = vmul.f32 %v5302_v8, %v522_v34 }
  0xaa   : > { %4928 = vmatpush3.msra.mxu0 %v5330_v30  ;;  %v590_v30 = vmul.f32 %v5302_v8, %v514_v6  ;;  %v531_v6 = vld [vmem:[%s5284_s7 + $0xb8] sm:$0xff] }
  0xab   : > { %4929 = vmatprep.subr.mxu0 %v596_v62 }
  0xac   : > { %4930 = vmatpush3.msra.mxu0 %v596_v62  ;;  %v1230_v4 = vpop.trf.xlu1 }
  0xad   : > { %4941 = vmatprep.subr.mxu0 %v601_v63 }
  0xae   : > { %v778_v5 = vpop.trf.xlu0 }
  0xaf   : > { %4896 = vmatprep.mubr.msk.f32.mxu1 %vm680_vm0, %v778_v5 }
  0xb0   : > { %v1231_v7 = vpop.trf.xlu1 }
  0xb2   : > { %v779_v12 = vpop.trf.xlu0 }
  0xb3   : > { %4897 = vmatmul.mubr.msk.f32.vlgmr.msra.gmra.mxu1 %vm680_vm0, %v779_v12  ;;  %v528_v12 = vld [vmem:[%s5284_s7 + $0xa0] sm:$0xff] }
  0xb4   : > { %4907 = vmatpush3.msra.mxu1 %v5319_v23  ;;  %4910 = vmatprep.mubr.msk.f32.mxu1 %vm680_vm0, %v1004_v38  ;;  %v1343_v18 = vpop.trf.xlu1  ;;  %v594_v23 = vmul.f32 %v5302_v8, %v518_v14  ;;  %v607_v14 = vmul.f32 %v5291_v60, %v531_v6 }
  0xb5   : > { %4908 = vmatprep.subr.mxu1 %v590_v30  ;;  %4931 = vmatprep.mubr.msk.f32.mxu0 %vm680_vm0, %v1343_v18  ;;  %v530_v18 = vld [vmem:[%s5284_s7 + $0xb0] sm:$0xff] }
  0xb6   : > { %4909 = vmatpush3.msra.mxu1 %v590_v30  ;;  %v1456_v20 = vpop.trf.xlu0 }
  0xb7   : > { %4920 = vmatprep.subr.mxu1 %v595_v19  ;;  %4911 = vmatmul.mubr.msk.f32.vlgmr.msra.gmra.mxu1 %vm680_vm0, %v1005_v53  ;;  %v529_v53 = vld [vmem:[%s5284_s7 + $0xa8] sm:$0xff] }
  0xb8   : > { %4921 = vmatpush3.msra.mxu1 %v595_v19  ;;  %4924 = vmatprep.mubr.msk.f32.mxu1 %vm680_vm0, %v1230_v4  ;;  %v1344_v27 = vpop.trf.xlu1  ;;  %v605_v61 = vmul.f32 %v5291_v60, %v529_v53  ;;  %v526_v4 = vld [vmem:[%s5284_s7 + $0x90] sm:$0xff]  ;;  %v533_v19 = vld [vmem:[%s5284_s7 + $0xc8] sm:$0xff] }
  0xb9   : > { %4922 = vmatprep.subr.mxu1 %v594_v23  ;;  %4932 = vmatmul.mubr.msk.f32.vlgmr.msra.gmra.mxu0 %vm680_vm0, %v1344_v27  ;;  %v609_v26 = vmul.f32 %v5291_v60, %v533_v19  ;;  %v534_v53 = vld [vmem:[%s5284_s7 + $0xd0] sm:$0xff] }
  0xba   : > { %4923 = vmatpush3.msra.mxu1 %v594_v23  ;;  %v1457_v38 = vpop.trf.xlu0  ;;  %4942 = vmatpush3.msra.mxu0 %v601_v63  ;;  %v603_v63 = vmul.f32 %v5291_v60, %v527_v55  ;;  %v606_v23 = vmul.f32 %v5302_v8, %v530_v18 }
  0xbb   : > { %4934 = vmatprep.subr.mxu1 %v599_v28  ;;  %4943 = vmatprep.subr.mxu0 %v600_v54 }
  0xbc   : > { %4925 = vmatmul.mubr.msk.f32.vlgmr.msra.gmra.mxu1 %vm680_vm0, %v1231_v7  ;;  %4944 = vmatpush3.msra.mxu0 %v600_v54  ;;  %v1569_v62 = vpop.trf.xlu1  ;;  %v602_v7 = vmul.f32 %v5302_v8, %v526_v4  ;;  %v532_v54 = vld [vmem:[%s5284_s7 + $0xc0] sm:$0xff] }
  0xbd   : > { %4935 = vmatpush3.msra.mxu1 %v599_v28  ;;  %4938 = vmatprep.mubr.msk.f32.mxu1 %vm680_vm0, %v1456_v20  ;;  %v604_v20 = vmul.f32 %v5302_v8, %v528_v12  ;;  %v4266_v28 = vld [vmem:[%s5532_s10 + $0x8] sm:$0xff] }
  0xbe   : > { %4936 = vmatprep.subr.mxu1 %v598_v59  ;;  %v1682_v5 = vpop.trf.xlu0  ;;  %4955 = vmatprep.subr.mxu0 %v605_v61 }
  0xbf   : > { %4937 = vmatpush3.msra.mxu1 %v598_v59  ;;  %4945 = vmatprep.mubr.msk.f32.mxu0 %vm680_vm0, %v1569_v62 }
  0xc0   : > { %4948 = vmatprep.subr.mxu1 %v603_v63  ;;  %4939 = vmatmul.mubr.msk.f32.vlgmr.msra.gmra.mxu1 %vm680_vm0, %v1457_v38  ;;  %v1570_v13 = vpop.trf.xlu1  ;;  %v611_v38 = vmul.f32 %v5291_v60, %v535_v25  ;;  %v610_v60 = vmul.f32 %v5302_v8, %v534_v53 }
  0xc1   : > { %4949 = vmatpush3.msra.mxu1 %v603_v63  ;;  %4952 = vmatprep.mubr.msk.f32.mxu1 %vm680_vm0, %v1682_v5  ;;  %v4265_v5 = vld [vmem:[%s5532_s10] sm:$0xff] }
  0xc2   : > { %4950 = vmatprep.subr.mxu1 %v602_v7  ;;  %v1683_v30 = vpop.trf.xlu0  ;;  %4946 = vmatmul.mubr.msk.f32.vlgmr.msra.gmra.mxu0 %vm680_vm0, %v1570_v13 }
  0xc3   : > { %4951 = vmatpush3.msra.mxu1 %v602_v7  ;;  %4956 = vmatpush3.msra.mxu0 %v605_v61  ;;  %v608_v61 = vmul.f32 %v5302_v8, %v532_v54 }
  0xc4   : > { %4962 = vmatprep.subr.mxu1 %v607_v14  ;;  %4957 = vmatprep.subr.mxu0 %v604_v20  ;;  %v1795_v27 = vpop.trf.xlu1 }
  0xc5   : > { %4953 = vmatmul.mubr.msk.f32.vlgmr.msra.gmra.mxu1 %vm680_vm0, %v1683_v30  ;;  %4958 = vmatpush3.msra.mxu0 %v604_v20 }
  0xc6   : > { %4963 = vmatpush3.msra.mxu1 %v607_v14  ;;  %v1908_v34 = vpop.trf.xlu0  ;;  %4969 = vmatprep.subr.mxu0 %v609_v26 }
  0xc7   : > { %4964 = vmatprep.subr.mxu1 %v606_v23  ;;  %4959 = vmatprep.mubr.msk.f32.mxu0 %vm680_vm0, %v1795_v27 }
  0xc8   : > { %4965 = vmatpush3.msra.mxu1 %v606_v23  ;;  %4274 = vperm.xlu0 %5135, %v4266_v28   ;;  %v1796_v55 = vpop.trf.xlu1 }
  0xc9   : > { %4976 = vmatprep.subr.mxu1 %v611_v38  ;;  %4966 = vmatprep.mubr.msk.f32.mxu1 %vm680_vm0, %v1908_v34 }
  0xca   : > { %4960 = vmatmul.mubr.msk.f32.vlgmr.msra.gmra.mxu0 %vm680_vm0, %v1796_v55  ;;  %v1909_v59 = vpop.trf.xlu0  ;;  %5136 = vset.pattern.permute.xlu1 %v5161_v0 }
  0xcb   : > { %4970 = vmatpush3.msra.mxu0 %v609_v26  ;;  %4967 = vmatmul.mubr.msk.f32.vlgmr.msra.gmra.mxu1 %vm680_vm0, %v1909_v59 }
  0xcc   : > { %4971 = vmatprep.subr.mxu0 %v608_v61  ;;  %4977 = vmatpush3.msra.mxu1 %v611_v38  ;;  %v2021_v62 = vpop.trf.xlu1 }
  0xcd   : > { %4972 = vmatpush3.msra.mxu0 %v608_v61  ;;  %4978 = vmatprep.subr.mxu1 %v610_v60 }
  0xce   : > { %4983 = vmatprep.subr.mxu0 %v5340_v36  ;;  %4979 = vmatpush3.msra.mxu1 %v610_v60  ;;  %v2134_v4 = vpop.trf.xlu0 }
  0xcf   : > { %4990 = vmatprep.subr.mxu1 %v5343_v37  ;;  %4973 = vmatprep.mubr.msk.f32.mxu0 %vm680_vm0, %v2021_v62 }
  0xd0   : > { %4980 = vmatprep.mubr.msk.f32.mxu1 %vm680_vm0, %v2134_v4  ;;  %v2022_v63 = vpop.trf.xlu1  ;;  %4269 = vperm.xlu1 %5136, %v4265_v5  }
  0xd1   : > { %4974 = vmatmul.mubr.msk.f32.vlgmr.msra.gmra.mxu0 %vm680_vm0, %v2022_v63 }
  0xd2   : > { %v2135_v8 = vpop.trf.xlu0  ;;  %4984 = vmatpush3.msra.mxu0 %v5340_v36 }
  0xd3   : > { %4981 = vmatmul.mubr.msk.f32.vlgmr.msra.gmra.mxu1 %vm680_vm0, %v2135_v8  ;;  %4985 = vmatprep.subr.mxu0 %v5350_v42 }
  0xd4   : > { %4991 = vmatpush3.msra.mxu1 %v5343_v37  ;;  %4986 = vmatpush3.msra.mxu0 %v5350_v42  ;;  %v2247_v6 = vpop.trf.xlu1 }
  0xd5   : > { %4992 = vmatprep.subr.mxu1 %v5353_v43  ;;  %4997 = vmatprep.subr.mxu0 %v5356_v44 }
  0xd6   : > { %4993 = vmatpush3.msra.mxu1 %v5353_v43  ;;  %v2360_v0 = vpop.trf.xlu0  ;;  %4987 = vmatprep.mubr.msk.f32.mxu0 %vm680_vm0, %v2247_v6 }
  0xd7   : > { %5004 = vmatprep.subr.mxu1 %v5364_v49  ;;  %4994 = vmatprep.mubr.msk.f32.mxu1 %vm680_vm0, %v2360_v0 }
  0xd8   : > { %v2248_v36 = vpop.trf.xlu1 }
  0xd9   : > { %4988 = vmatmul.mubr.msk.f32.vlgmr.msra.gmra.mxu0 %vm680_vm0, %v2248_v36 }
  0xda   : > { %v2361_v37 = vpop.trf.xlu0  ;;  %4998 = vmatpush3.msra.mxu0 %v5356_v44 }
  0xdb   : > { %4995 = vmatmul.mubr.msk.f32.vlgmr.msra.gmra.mxu1 %vm680_vm0, %v2361_v37  ;;  %4999 = vmatprep.subr.mxu0 %v5367_v50 }
  0xdc   : > { %5005 = vmatpush3.msra.mxu1 %v5364_v49  ;;  %5000 = vmatpush3.msra.mxu0 %v5367_v50  ;;  %v2473_v42 = vpop.trf.xlu1 }
  0xdd   : > { %5006 = vmatprep.subr.mxu1 %v5370_v51  ;;  %5011 = vmatprep.subr.mxu0 %v5373_v52 }
  0xde   : > { %5007 = vmatpush3.msra.mxu1 %v5370_v51  ;;  %v2586_v43 = vpop.trf.xlu0  ;;  %5001 = vmatprep.mubr.msk.f32.mxu0 %vm680_vm0, %v2473_v42 }
  0xdf   : > { %5018 = vmatprep.subr.mxu1 %v5379_v56  ;;  %5008 = vmatprep.mubr.msk.f32.mxu1 %vm680_vm0, %v2586_v43 }
  0xe0   : > { %v2474_v44 = vpop.trf.xlu1 }
  0xe1   : > { %5002 = vmatmul.mubr.msk.f32.vlgmr.msra.gmra.mxu0 %vm680_vm0, %v2474_v44 }
  0xe2   : > { %v2587_v49 = vpop.trf.xlu0  ;;  %5012 = vmatpush3.msra.mxu0 %v5373_v52 }
  0xe3   : > { %5009 = vmatmul.mubr.msk.f32.vlgmr.msra.gmra.mxu1 %vm680_vm0, %v2587_v49  ;;  %5013 = vmatprep.subr.mxu0 %v5382_v57 }
  0xe4   : > { %5019 = vmatpush3.msra.mxu1 %v5379_v56  ;;  %5014 = vmatpush3.msra.mxu0 %v5382_v57  ;;  %v2699_v50 = vpop.trf.xlu1 }
  0xe5   : > { %5020 = vmatprep.subr.mxu1 %v5385_v58  ;;  %5025 = vmatprep.subr.mxu0 %v5393_v1 }
  0xe6   : > { %5021 = vmatpush3.msra.mxu1 %v5385_v58  ;;  %v2812_v51 = vpop.trf.xlu0  ;;  %5015 = vmatprep.mubr.msk.f32.mxu0 %vm680_vm0, %v2699_v50 }
  0xe7   : > { %5032 = vmatprep.subr.mxu1 %v5396_v2  ;;  %5022 = vmatprep.mubr.msk.f32.mxu1 %vm680_vm0, %v2812_v51 }
  0xe8   : > { %v2700_v52 = vpop.trf.xlu1 }
  0xe9   : > { %5016 = vmatmul.mubr.msk.f32.vlgmr.msra.gmra.mxu0 %vm680_vm0, %v2700_v52 }
  0xea   : > { %v2813_v56 = vpop.trf.xlu0  ;;  %5026 = vmatpush3.msra.mxu0 %v5393_v1 }
  0xeb   : > { %5023 = vmatmul.mubr.msk.f32.vlgmr.msra.gmra.mxu1 %vm680_vm0, %v2813_v56  ;;  %5027 = vmatprep.subr.mxu0 %v5399_v3 }
  0xec   : > { %5033 = vmatpush3.msra.mxu1 %v5396_v2  ;;  %5028 = vmatpush3.msra.mxu0 %v5399_v3  ;;  %v2925_v57 = vpop.trf.xlu1 }
  0xed   : > { %5034 = vmatprep.subr.mxu1 %v5405_v9  ;;  %5039 = vmatprep.subr.mxu0 %v5408_v10 }
  0xee   : > { %5035 = vmatpush3.msra.mxu1 %v5405_v9  ;;  %v3038_v58 = vpop.trf.xlu0  ;;  %5029 = vmatprep.mubr.msk.f32.mxu0 %vm680_vm0, %v2925_v57 }
  0xef   : > { %5046 = vmatprep.subr.mxu1 %v5411_v11  ;;  %5036 = vmatprep.mubr.msk.f32.mxu1 %vm680_vm0, %v3038_v58 }
  0xf0   : > { %v2926_v1 = vpop.trf.xlu1 }
  0xf1   : > { %5030 = vmatmul.mubr.msk.f32.vlgmr.msra.gmra.mxu0 %vm680_vm0, %v2926_v1 }
  0xf2   : > { %v3039_v2 = vpop.trf.xlu0  ;;  %5040 = vmatpush3.msra.mxu0 %v5408_v10 }
  0xf3   : > { %5037 = vmatmul.mubr.msk.f32.vlgmr.msra.gmra.mxu1 %vm680_vm0, %v3039_v2  ;;  %5041 = vmatprep.subr.mxu0 %v5419_v15 }
  0xf4   : > { %5047 = vmatpush3.msra.mxu1 %v5411_v11  ;;  %5042 = vmatpush3.msra.mxu0 %v5419_v15  ;;  %v3151_v3 = vpop.trf.xlu1 }
  0xf5   : > { %5048 = vmatprep.subr.mxu1 %v5422_v16  ;;  %5053 = vmatprep.subr.mxu0 %v5425_v17 }
  0xf6   : > { %5049 = vmatpush3.msra.mxu1 %v5422_v16  ;;  %v3264_v9 = vpop.trf.xlu0  ;;  %5043 = vmatprep.mubr.msk.f32.mxu0 %vm680_vm0, %v3151_v3 }
  0xf7   : > { %5060 = vmatprep.subr.mxu1 %v5432_v21  ;;  %5050 = vmatprep.mubr.msk.f32.mxu1 %vm680_vm0, %v3264_v9 }
  0xf8   : > { %v3152_v10 = vpop.trf.xlu1 }
  0xf9   : > { %5044 = vmatmul.mubr.msk.f32.vlgmr.msra.gmra.mxu0 %vm680_vm0, %v3152_v10 }
  0xfa   : > { %v3265_v11 = vpop.trf.xlu0  ;;  %5054 = vmatpush3.msra.mxu0 %v5425_v17 }
  0xfb   : > { %5051 = vmatmul.mubr.msk.f32.vlgmr.msra.gmra.mxu1 %vm680_vm0, %v3265_v11  ;;  %5055 = vmatprep.subr.mxu0 %v5435_v22 }
  0xfc   : > { %5061 = vmatpush3.msra.mxu1 %v5432_v21  ;;  %5056 = vmatpush3.msra.mxu0 %v5435_v22  ;;  %v3377_v15 = vpop.trf.xlu1 }
  0xfd   : > { %5062 = vmatprep.subr.mxu1 %v5438_v24  ;;  %5067 = vmatprep.subr.mxu0 %v5446_v31 }
  0xfe   : > { %5063 = vmatpush3.msra.mxu1 %v5438_v24  ;;  %v3490_v16 = vpop.trf.xlu0  ;;  %5057 = vmatprep.mubr.msk.f32.mxu0 %vm680_vm0, %v3377_v15 }
  0xff   : > { %5074 = vmatprep.subr.mxu1 %v5449_v29  ;;  %5064 = vmatprep.mubr.msk.f32.mxu1 %vm680_vm0, %v3490_v16 }
 0x100   : > { %v3378_v17 = vpop.trf.xlu1 }
 0x101   : > { %5058 = vmatmul.mubr.msk.f32.vlgmr.msra.gmra.mxu0 %vm680_vm0, %v3378_v17 }
 0x102   : > { %v3491_v21 = vpop.trf.xlu0  ;;  %5068 = vmatpush3.msra.mxu0 %v5446_v31 }
 0x103   : > { %5065 = vmatmul.mubr.msk.f32.vlgmr.msra.gmra.mxu1 %vm680_vm0, %v3491_v21  ;;  %5069 = vmatprep.subr.mxu0 %v5452_v32 }
 0x104   : > { %5075 = vmatpush3.msra.mxu1 %v5449_v29  ;;  %5070 = vmatpush3.msra.mxu0 %v5452_v32  ;;  %v3603_v22 = vpop.trf.xlu1 }
 0x105   : > { %5076 = vmatprep.subr.mxu1 %v5455_v33  ;;  %5081 = vmatprep.subr.mxu0 %v5460_v39 }
 0x106   : > { %5077 = vmatpush3.msra.mxu1 %v5455_v33  ;;  %5071 = vmatprep.mubr.msk.f32.mxu0 %vm680_vm0, %v3603_v22 }
 0x107   : > { %v3716_v24 = vpop.trf.xlu0  ;;  %5088 = vmatprep.subr.mxu1 %v5463_v40 }
 0x108   : > { %5078 = vmatprep.mubr.msk.f32.mxu1 %vm680_vm0, %v3716_v24  ;;  %v3604_v31 = vpop.trf.xlu1 }
 0x109   : > { %5072 = vmatmul.mubr.msk.f32.vlgmr.msra.gmra.mxu0 %vm680_vm0, %v3604_v31 }
 0x10a   : > { %5082 = vmatpush3.msra.mxu0 %v5460_v39 }
 0x10b   : > { %v3717_v29 = vpop.trf.xlu0  ;;  %5083 = vmatprep.subr.mxu0 %v5466_v41 }
 0x10c   : > { %5079 = vmatmul.mubr.msk.f32.vlgmr.msra.gmra.mxu1 %vm680_vm0, %v3717_v29  ;;  %5084 = vmatpush3.msra.mxu0 %v5466_v41 }
 0x10d   : > { %5089 = vmatpush3.msra.mxu1 %v5463_v40  ;;  %v3829_v32 = vpop.trf.xlu1  ;;  %5095 = vmatprep.subr.mxu0 %v5473_v35 }
 0x10e   : > { %5090 = vmatprep.subr.mxu1 %v5470_v45  ;;  %5085 = vmatprep.mubr.msk.f32.mxu0 %vm680_vm0, %v3829_v32 }
 0x10f   : > { %5091 = vmatpush3.msra.mxu1 %v5470_v45  ;;  %v3942_v33 = vpop.trf.xlu0 }
 0x110   : > { %5102 = vmatprep.subr.mxu1 %v5476_v46  ;;  %5092 = vmatprep.mubr.msk.f32.mxu1 %vm680_vm0, %v3942_v33 }
 0x111   : > { %v3830_v39 = vpop.trf.xlu1 }
 0x112   : > { %5086 = vmatmul.mubr.msk.f32.vlgmr.msra.gmra.mxu0 %vm680_vm0, %v3830_v39 }
 0x113   : > { %5096 = vmatpush3.msra.mxu0 %v5473_v35  ;;  %v3943_v40 = vpop.trf.xlu0 }
 0x114   : > { %5097 = vmatprep.subr.mxu0 %v5479_v47  ;;  %5093 = vmatmul.mubr.msk.f32.vlgmr.msra.gmra.mxu1 %vm680_vm0, %v3943_v40 }
 0x115   : > { %5098 = vmatpush3.msra.mxu0 %v5479_v47  ;;  %5103 = vmatpush3.msra.mxu1 %v5476_v46  ;;  %v4055_v41 = vpop.trf.xlu1  ;;  %v5670_v47 = vld [vmem:[%s424_s13] ss:$0 sm:$0xff] }
 0x116   : > { %5104 = vmatprep.subr.mxu1 %v5482_v48  ;;  %5099 = vmatprep.mubr.msk.f32.mxu0 %vm680_vm0, %v4055_v41 }
 0x117   : > { %5105 = vmatpush3.msra.mxu1 %v5482_v48  ;;  %v4168_v45 = vpop.trf.xlu0 }
 0x118   : > { %5106 = vmatprep.mubr.msk.f32.mxu1 %vm680_vm0, %v4168_v45 }
 0x119   : > { %v4056_v35 = vpop.trf.xlu1 }
 0x11a   : > { %5100 = vmatmul.mubr.msk.f32.vlgmr.msra.gmra.mxu0 %vm680_vm0, %v4056_v35 }
 0x11b   : > { %v4169_v7 = vpop.trf.xlu0 }
 0x11c   : > { %5107 = vmatmul.mubr.msk.f32.vlgmr.msra.gmra.mxu1 %vm680_vm0, %v4169_v7 }
 0x143   : > { %v5668_v46 = vpop.permute.xlu0 %4274 }
 0x14b   : > { %v5672_v13 = vpop.permute.xlu1 %4269 }
 0x156   : > { %v4891_v12 = vpop.f32.mrf.mxu0 }
 0x157   : > { %v4278_v48 = vmul.f32 %v4891_v12, %v5668_v46 }
 0x158   : > { %v753_v30 = vpop.f32.mrf.mxu0 }
 0x159   : > { %v4349_v14 = vmul.f32 %v5670_v47, %v4278_v48  ;;  %v4277_v18 = vmul.f32 %v5672_v13, %v753_v30 }
 0x15a   : > { %v4905_v19 = vpop.f32.mrf.mxu0 }
 0x15b   : > { %4413 = vst.msk [vmem:[%s5679_s16 + $0x8] sm:$0xff] %vm680_vm0, %v4349_v14  ;;  %v4348_v20 = vmul.f32 %v5670_v47, %v4277_v18  ;;  %v4282_v25 = vmul.f32 %v4905_v19, %v5668_v46 }
 0x15c   : > { %v979_v23 = vpop.f32.mrf.mxu0 }
 0x15d   : > { %4412 = vst.msk [vmem:[%s5679_s16] sm:$0xff] %vm680_vm0, %v4348_v20  ;;  %v4353_v26 = vmul.f32 %v5670_v47, %v4282_v25  ;;  %v4281_v27 = vmul.f32 %v5672_v13, %v979_v23 }
 0x15f   : > { %4417 = vst.msk [vmem:[%s5679_s16 + $0x28] sm:$0xff] %vm680_vm0, %v4353_v26  ;;  %v4352_v28 = vmul.f32 %v5670_v47, %v4281_v27 }
 0x161   : > { %4416 = vst.msk [vmem:[%s5679_s16 + $0x20] sm:$0xff] %vm680_vm0, %v4352_v28 }
 0x169   : > { %v4919_v34 = vpop.f32.mrf.mxu0 }
 0x16a   : > { %v4286_v38 = vmul.f32 %v4919_v34, %v5668_v46 }
 0x16b   : > { %v1205_v54 = vpop.f32.mrf.mxu0 }
 0x16c   : > { %v4357_v53 = vmul.f32 %v5670_v47, %v4286_v38  ;;  %v4285_v55 = vmul.f32 %v5672_v13, %v1205_v54 }
 0x16e   : > { %4421 = vst.msk [vmem:[%s5679_s16 + $0x48] sm:$0xff] %vm680_vm0, %v4357_v53  ;;  %v4356_v59 = vmul.f32 %v5670_v47, %v4285_v55 }
 0x170   : > { %4420 = vst.msk [vmem:[%s5679_s16 + $0x40] sm:$0xff] %vm680_vm0, %v4356_v59 }
 0x173   : > { %v4898_v61 = vpop.f32.mrf.mxu1 }
 0x174   : > { %v4280_v60 = vmul.f32 %v4898_v61, %v5668_v46 }
 0x175   : > { %v866_v62 = vpop.f32.mrf.mxu1 }
 0x176   : > { %v4351_v4 = vmul.f32 %v5670_v47, %v4280_v60  ;;  %v4279_v5 = vmul.f32 %v5672_v13, %v866_v62 }
 0x177   : > { %v4912_v63 = vpop.f32.mrf.mxu1 }
 0x178   : > { %4415 = vst.msk [vmem:[%s5679_s16 + $0x18] sm:$0xff] %vm680_vm0, %v4351_v4  ;;  %v4350_v8 = vmul.f32 %v5670_v47, %v4279_v5  ;;  %v4284_v6 = vmul.f32 %v4912_v63, %v5668_v46 }
 0x179   : > { %v1092_v0 = vpop.f32.mrf.mxu1  ;;  %v4933_v42 = vpop.f32.mrf.mxu0 }
 0x17a   : > { %4414 = vst.msk [vmem:[%s5679_s16 + $0x10] sm:$0xff] %vm680_vm0, %v4350_v8  ;;  %v4355_v36 = vmul.f32 %v5670_v47, %v4284_v6  ;;  %v4283_v37 = vmul.f32 %v5672_v13, %v1092_v0  ;;  %v4290_v43 = vmul.f32 %v4933_v42, %v5668_v46 }
 0x17b   : > { %v1431_v50 = vpop.f32.mrf.mxu0 }
 0x17c   : > { %4419 = vst.msk [vmem:[%s5679_s16 + $0x38] sm:$0xff] %vm680_vm0, %v4355_v36  ;;  %v4354_v44 = vmul.f32 %v5670_v47, %v4283_v37  ;;  %v4926_v49 = vpop.f32.mrf.mxu1  ;;  %v4361_v51 = vmul.f32 %v5670_v47, %v4290_v43  ;;  %v4289_v56 = vmul.f32 %v5672_v13, %v1431_v50 }
 0x17d   : > { %v4288_v52 = vmul.f32 %v4926_v49, %v5668_v46 }
 0x17e   : > { %4418 = vst.msk [vmem:[%s5679_s16 + $0x30] sm:$0xff] %vm680_vm0, %v4354_v44  ;;  %v1318_v57 = vpop.f32.mrf.mxu1  ;;  %4425 = vst.msk [vmem:[%s5679_s16 + $0x68] sm:$0xff] %vm680_vm0, %v4361_v51  ;;  %v4360_v1 = vmul.f32 %v5670_v47, %v4289_v56 }
 0x17f   : > { %v4359_v58 = vmul.f32 %v5670_v47, %v4288_v52  ;;  %v4287_v2 = vmul.f32 %v5672_v13, %v1318_v57 }
 0x180   : > { %v4940_v3 = vpop.f32.mrf.mxu1  ;;  %4424 = vst.msk [vmem:[%s5679_s16 + $0x60] sm:$0xff] %vm680_vm0, %v4360_v1 }
 0x181   : > { %4423 = vst.msk [vmem:[%s5679_s16 + $0x58] sm:$0xff] %vm680_vm0, %v4359_v58  ;;  %v4358_v9 = vmul.f32 %v5670_v47, %v4287_v2  ;;  %v4292_v10 = vmul.f32 %v4940_v3, %v5668_v46 }
 0x182   : > { %v1544_v11 = vpop.f32.mrf.mxu1  ;;  %v4947_v17 = vpop.f32.mrf.mxu0 }
 0x183   : > { %4422 = vst.msk [vmem:[%s5679_s16 + $0x50] sm:$0xff] %vm680_vm0, %v4358_v9  ;;  %v4363_v15 = vmul.f32 %v5670_v47, %v4292_v10  ;;  %v4291_v16 = vmul.f32 %v5672_v13, %v1544_v11  ;;  %v4294_v21 = vmul.f32 %v4947_v17, %v5668_v46 }
 0x184   : > { %v1657_v24 = vpop.f32.mrf.mxu0 }
 0x185   : > { %4427 = vst.msk [vmem:[%s5679_s16 + $0x78] sm:$0xff] %vm680_vm0, %v4363_v15  ;;  %v4362_v22 = vmul.f32 %v5670_v47, %v4291_v16  ;;  %v4954_v31 = vpop.f32.mrf.mxu1  ;;  %v4365_v29 = vmul.f32 %v5670_v47, %v4294_v21  ;;  %v4293_v32 = vmul.f32 %v5672_v13, %v1657_v24 }
 0x186   : > { %v4296_v33 = vmul.f32 %v4954_v31, %v5668_v46 }
 0x187   : > { %4426 = vst.msk [vmem:[%s5679_s16 + $0x70] sm:$0xff] %vm680_vm0, %v4362_v22  ;;  %v1770_v39 = vpop.f32.mrf.mxu1  ;;  %4429 = vst.msk [vmem:[%s5679_s16 + $0x88] sm:$0xff] %vm680_vm0, %v4365_v29  ;;  %v4364_v40 = vmul.f32 %v5670_v47, %v4293_v32 }
 0x188   : > { %v4367_v41 = vmul.f32 %v5670_v47, %v4296_v33  ;;  %v4295_v45 = vmul.f32 %v5672_v13, %v1770_v39 }
 0x189   : > { %4428 = vst.msk [vmem:[%s5679_s16 + $0x80] sm:$0xff] %vm680_vm0, %v4364_v40 }
 0x18a   : > { %4431 = vst.msk [vmem:[%s5679_s16 + $0x98] sm:$0xff] %vm680_vm0, %v4367_v41  ;;  %v4366_v35 = vmul.f32 %v5670_v47, %v4295_v45  ;;  %v4961_v7 = vpop.f32.mrf.mxu0 }
 0x18b   : > { %v4298_v12 = vmul.f32 %v4961_v7, %v5668_v46  ;;  %v4968_v48 = vpop.f32.mrf.mxu1 }
 0x18c   : > { %4430 = vst.msk [vmem:[%s5679_s16 + $0x90] sm:$0xff] %vm680_vm0, %v4366_v35  ;;  %v1883_v30 = vpop.f32.mrf.mxu0  ;;  %v4300_v14 = vmul.f32 %v4968_v48, %v5668_v46 }
 0x18d   : > { %v4369_v18 = vmul.f32 %v5670_v47, %v4298_v12  ;;  %v4297_v19 = vmul.f32 %v5672_v13, %v1883_v30  ;;  %v1996_v20 = vpop.f32.mrf.mxu1 }
 0x18e   : > { %v4371_v25 = vmul.f32 %v5670_v47, %v4300_v14  ;;  %v4299_v23 = vmul.f32 %v5672_v13, %v1996_v20 }
 0x18f   : > { %4433 = vst.msk [vmem:[%s5679_s16 + $0xa8] sm:$0xff] %vm680_vm0, %v4369_v18  ;;  %v4368_v26 = vmul.f32 %v5670_v47, %v4297_v19 }
 0x190   : > { %4435 = vst.msk [vmem:[%s5679_s16 + $0xb8] sm:$0xff] %vm680_vm0, %v4371_v25  ;;  %v4370_v27 = vmul.f32 %v5670_v47, %v4299_v23 }
 0x191   : > { %4432 = vst.msk [vmem:[%s5679_s16 + $0xa0] sm:$0xff] %vm680_vm0, %v4368_v26  ;;  %v4975_v28 = vpop.f32.mrf.mxu0 }
 0x192   : > { %4434 = vst.msk [vmem:[%s5679_s16 + $0xb0] sm:$0xff] %vm680_vm0, %v4370_v27  ;;  %v4302_v34 = vmul.f32 %v4975_v28, %v5668_v46 }
 0x193   : > { %v4982_v38 = vpop.f32.mrf.mxu1  ;;  %v2109_v54 = vpop.f32.mrf.mxu0 }
 0x194   : > { %v4304_v53 = vmul.f32 %v4982_v38, %v5668_v46  ;;  %v4373_v55 = vmul.f32 %v5670_v47, %v4302_v34  ;;  %v4301_v59 = vmul.f32 %v5672_v13, %v2109_v54 }
 0x195   : > { %v2222_v61 = vpop.f32.mrf.mxu1 }
 0x196   : > { %v4375_v60 = vmul.f32 %v5670_v47, %v4304_v53  ;;  %v4303_v62 = vmul.f32 %v5672_v13, %v2222_v61  ;;  %4437 = vst.msk [vmem:[%s5679_s16 + $0xc8] sm:$0xff] %vm680_vm0, %v4373_v55  ;;  %v4372_v4 = vmul.f32 %v5670_v47, %v4301_v59 }
 0x198   : > { %4439 = vst.msk [vmem:[%s5679_s16 + $0xd8] sm:$0xff] %vm680_vm0, %v4375_v60  ;;  %v4374_v5 = vmul.f32 %v5670_v47, %v4303_v62  ;;  %4436 = vst.msk [vmem:[%s5679_s16 + $0xc0] sm:$0xff] %vm680_vm0, %v4372_v4 }
 0x199   : > { %v4989_v63 = vpop.f32.mrf.mxu0 }
 0x19a   : > { %4438 = vst.msk [vmem:[%s5679_s16 + $0xd0] sm:$0xff] %vm680_vm0, %v4374_v5  ;;  %v4306_v8 = vmul.f32 %v4989_v63, %v5668_v46 }
 0x19b   : > { %v4996_v6 = vpop.f32.mrf.mxu1  ;;  %v2335_v0 = vpop.f32.mrf.mxu0 }
 0x19c   : > { %v4308_v36 = vmul.f32 %v4996_v6, %v5668_v46  ;;  %v4377_v37 = vmul.f32 %v5670_v47, %v4306_v8  ;;  %v4305_v42 = vmul.f32 %v5672_v13, %v2335_v0 }
 0x19d   : > { %v2448_v43 = vpop.f32.mrf.mxu1 }
 0x19e   : > { %v4379_v44 = vmul.f32 %v5670_v47, %v4308_v36  ;;  %v4307_v49 = vmul.f32 %v5672_v13, %v2448_v43  ;;  %4441 = vst.msk [vmem:[%s5679_s16 + $0xe8] sm:$0xff] %vm680_vm0, %v4377_v37  ;;  %v4376_v50 = vmul.f32 %v5670_v47, %v4305_v42 }
 0x1a0   : > { %4443 = vst.msk [vmem:[%s5679_s16 + $0xf8] sm:$0xff] %vm680_vm0, %v4379_v44  ;;  %v4378_v51 = vmul.f32 %v5670_v47, %v4307_v49  ;;  %4440 = vst.msk [vmem:[%s5679_s16 + $0xe0] sm:$0xff] %vm680_vm0, %v4376_v50 }
 0x1a1   : > { %v5003_v52 = vpop.f32.mrf.mxu0 }
 0x1a2   : > { %4442 = vst.msk [vmem:[%s5679_s16 + $0xf0] sm:$0xff] %vm680_vm0, %v4378_v51  ;;  %v4310_v56 = vmul.f32 %v5003_v52, %v5668_v46 }
 0x1a3   : > { %v5010_v57 = vpop.f32.mrf.mxu1  ;;  %v2561_v58 = vpop.f32.mrf.mxu0 }
 0x1a4   : > { %v4312_v1 = vmul.f32 %v5010_v57, %v5668_v46  ;;  %v4381_v2 = vmul.f32 %v5670_v47, %v4310_v56  ;;  %v4309_v3 = vmul.f32 %v5672_v13, %v2561_v58 }
 0x1a5   : > { %v2674_v9 = vpop.f32.mrf.mxu1 }
 0x1a6   : > { %v4383_v10 = vmul.f32 %v5670_v47, %v4312_v1  ;;  %v4311_v11 = vmul.f32 %v5672_v13, %v2674_v9  ;;  %4445 = vst.msk [vmem:[%s5679_s16 + $0x108] sm:$0xff] %vm680_vm0, %v4381_v2  ;;  %v4380_v15 = vmul.f32 %v5670_v47, %v4309_v3 }
 0x1a8   : > { %4447 = vst.msk [vmem:[%s5679_s16 + $0x118] sm:$0xff] %vm680_vm0, %v4383_v10  ;;  %v4382_v16 = vmul.f32 %v5670_v47, %v4311_v11  ;;  %4444 = vst.msk [vmem:[%s5679_s16 + $0x100] sm:$0xff] %vm680_vm0, %v4380_v15 }
 0x1a9   : > { %v5017_v17 = vpop.f32.mrf.mxu0 }
 0x1aa   : > { %4446 = vst.msk [vmem:[%s5679_s16 + $0x110] sm:$0xff] %vm680_vm0, %v4382_v16  ;;  %v4314_v21 = vmul.f32 %v5017_v17, %v5668_v46 }
 0x1ab   : > { %v5024_v22 = vpop.f32.mrf.mxu1  ;;  %v2787_v24 = vpop.f32.mrf.mxu0 }
 0x1ac   : > { %v4316_v31 = vmul.f32 %v5024_v22, %v5668_v46  ;;  %v4385_v29 = vmul.f32 %v5670_v47, %v4314_v21  ;;  %v4313_v32 = vmul.f32 %v5672_v13, %v2787_v24 }
 0x1ad   : > { %v2900_v33 = vpop.f32.mrf.mxu1 }
 0x1ae   : > { %v4387_v39 = vmul.f32 %v5670_v47, %v4316_v31  ;;  %v4315_v40 = vmul.f32 %v5672_v13, %v2900_v33  ;;  %4449 = vst.msk [vmem:[%s5679_s16 + $0x128] sm:$0xff] %vm680_vm0, %v4385_v29  ;;  %v4384_v41 = vmul.f32 %v5670_v47, %v4313_v32 }
 0x1b0   : > { %4451 = vst.msk [vmem:[%s5679_s16 + $0x138] sm:$0xff] %vm680_vm0, %v4387_v39  ;;  %v4386_v45 = vmul.f32 %v5670_v47, %v4315_v40  ;;  %4448 = vst.msk [vmem:[%s5679_s16 + $0x120] sm:$0xff] %vm680_vm0, %v4384_v41 }
 0x1b1   : > { %v5031_v35 = vpop.f32.mrf.mxu0 }
 0x1b2   : > { %4450 = vst.msk [vmem:[%s5679_s16 + $0x130] sm:$0xff] %vm680_vm0, %v4386_v45  ;;  %v4318_v7 = vmul.f32 %v5031_v35, %v5668_v46 }
 0x1b3   : > { %v5038_v12 = vpop.f32.mrf.mxu1  ;;  %v3013_v48 = vpop.f32.mrf.mxu0 }
 0x1b4   : > { %v4320_v30 = vmul.f32 %v5038_v12, %v5668_v46  ;;  %v4389_v14 = vmul.f32 %v5670_v47, %v4318_v7  ;;  %v4317_v18 = vmul.f32 %v5672_v13, %v3013_v48 }
 0x1b5   : > { %v3126_v19 = vpop.f32.mrf.mxu1 }
 0x1b6   : > { %v4391_v20 = vmul.f32 %v5670_v47, %v4320_v30  ;;  %v4319_v25 = vmul.f32 %v5672_v13, %v3126_v19  ;;  %4453 = vst.msk [vmem:[%s5679_s16 + $0x148] sm:$0xff] %vm680_vm0, %v4389_v14  ;;  %v4388_v23 = vmul.f32 %v5670_v47, %v4317_v18 }
 0x1b8   : > { %4455 = vst.msk [vmem:[%s5679_s16 + $0x158] sm:$0xff] %vm680_vm0, %v4391_v20  ;;  %v4390_v26 = vmul.f32 %v5670_v47, %v4319_v25  ;;  %4452 = vst.msk [vmem:[%s5679_s16 + $0x140] sm:$0xff] %vm680_vm0, %v4388_v23 }
 0x1b9   : > { %v5045_v27 = vpop.f32.mrf.mxu0 }
 0x1ba   : > { %4454 = vst.msk [vmem:[%s5679_s16 + $0x150] sm:$0xff] %vm680_vm0, %v4390_v26  ;;  %v4322_v28 = vmul.f32 %v5045_v27, %v5668_v46 }
 0x1bb   : > { %v5052_v34 = vpop.f32.mrf.mxu1  ;;  %v3239_v38 = vpop.f32.mrf.mxu0 }
 0x1bc   : > { %v4324_v54 = vmul.f32 %v5052_v34, %v5668_v46  ;;  %v4393_v53 = vmul.f32 %v5670_v47, %v4322_v28  ;;  %v4321_v55 = vmul.f32 %v5672_v13, %v3239_v38 }
 0x1bd   : > { %v3352_v59 = vpop.f32.mrf.mxu1 }
 0x1be   : > { %v4395_v61 = vmul.f32 %v5670_v47, %v4324_v54  ;;  %v4323_v60 = vmul.f32 %v5672_v13, %v3352_v59  ;;  %4457 = vst.msk [vmem:[%s5679_s16 + $0x168] sm:$0xff] %vm680_vm0, %v4393_v53  ;;  %v4392_v62 = vmul.f32 %v5670_v47, %v4321_v55 }
 0x1c0   : > { %4459 = vst.msk [vmem:[%s5679_s16 + $0x178] sm:$0xff] %vm680_vm0, %v4395_v61  ;;  %v4394_v4 = vmul.f32 %v5670_v47, %v4323_v60  ;;  %4456 = vst.msk [vmem:[%s5679_s16 + $0x160] sm:$0xff] %vm680_vm0, %v4392_v62 }
 0x1c1   : > { %v5059_v5 = vpop.f32.mrf.mxu0 }
 0x1c2   : > { %4458 = vst.msk [vmem:[%s5679_s16 + $0x170] sm:$0xff] %vm680_vm0, %v4394_v4  ;;  %v4326_v63 = vmul.f32 %v5059_v5, %v5668_v46 }
 0x1c3   : > { %v5066_v8 = vpop.f32.mrf.mxu1  ;;  %v3465_v6 = vpop.f32.mrf.mxu0 }
 0x1c4   : > { %v4328_v0 = vmul.f32 %v5066_v8, %v5668_v46  ;;  %v4397_v36 = vmul.f32 %v5670_v47, %v4326_v63  ;;  %v4325_v37 = vmul.f32 %v5672_v13, %v3465_v6 }
 0x1c5   : > { %v3578_v42 = vpop.f32.mrf.mxu1 }
 0x1c6   : > { %v4399_v43 = vmul.f32 %v5670_v47, %v4328_v0  ;;  %v4327_v44 = vmul.f32 %v5672_v13, %v3578_v42  ;;  %4461 = vst.msk [vmem:[%s5679_s16 + $0x188] sm:$0xff] %vm680_vm0, %v4397_v36  ;;  %v4396_v49 = vmul.f32 %v5670_v47, %v4325_v37 }
 0x1c8   : > { %4463 = vst.msk [vmem:[%s5679_s16 + $0x198] sm:$0xff] %vm680_vm0, %v4399_v43  ;;  %v4398_v50 = vmul.f32 %v5670_v47, %v4327_v44  ;;  %4460 = vst.msk [vmem:[%s5679_s16 + $0x180] sm:$0xff] %vm680_vm0, %v4396_v49 }
 0x1c9   : > { %v5073_v51 = vpop.f32.mrf.mxu0 }
 0x1ca   : > { %4462 = vst.msk [vmem:[%s5679_s16 + $0x190] sm:$0xff] %vm680_vm0, %v4398_v50  ;;  %v4330_v52 = vmul.f32 %v5073_v51, %v5668_v46 }
 0x1cb   : > { %v3691_v56 = vpop.f32.mrf.mxu0 }
 0x1cc   : > { %v5080_v57 = vpop.f32.mrf.mxu1  ;;  %v4401_v58 = vmul.f32 %v5670_v47, %v4330_v52  ;;  %v4329_v1 = vmul.f32 %v5672_v13, %v3691_v56 }
 0x1cd   : > { %v4332_v2 = vmul.f32 %v5080_v57, %v5668_v46 }
 0x1ce   : > { %v3804_v3 = vpop.f32.mrf.mxu1  ;;  %4465 = vst.msk [vmem:[%s5679_s16 + $0x1a8] sm:$0xff] %vm680_vm0, %v4401_v58  ;;  %v4400_v9 = vmul.f32 %v5670_v47, %v4329_v1 }
 0x1cf   : > { %v4403_v10 = vmul.f32 %v5670_v47, %v4332_v2  ;;  %v4331_v11 = vmul.f32 %v5672_v13, %v3804_v3 }
 0x1d0   : > { %4464 = vst.msk [vmem:[%s5679_s16 + $0x1a0] sm:$0xff] %vm680_vm0, %v4400_v9 }
 0x1d1   : > { %4467 = vst.msk [vmem:[%s5679_s16 + $0x1b8] sm:$0xff] %vm680_vm0, %v4403_v10  ;;  %v4402_v15 = vmul.f32 %v5670_v47, %v4331_v11 }
 0x1d2   : > { %v5087_v16 = vpop.f32.mrf.mxu0 }
 0x1d3   : > { %4466 = vst.msk [vmem:[%s5679_s16 + $0x1b0] sm:$0xff] %vm680_vm0, %v4402_v15  ;;  %v4334_v17 = vmul.f32 %v5087_v16, %v5668_v46 }
 0x1d4   : > { %v3917_v21 = vpop.f32.mrf.mxu0  ;;  %v5094_v22 = vpop.f32.mrf.mxu1 }
 0x1d5   : > { %v4405_v24 = vmul.f32 %v5670_v47, %v4334_v17  ;;  %v4333_v31 = vmul.f32 %v5672_v13, %v3917_v21  ;;  %v4336_v29 = vmul.f32 %v5094_v22, %v5668_v46 }
 0x1d6   : > { %v4030_v32 = vpop.f32.mrf.mxu1 }
 0x1d7   : > { %4469 = vst.msk [vmem:[%s5679_s16 + $0x1c8] sm:$0xff] %vm680_vm0, %v4405_v24  ;;  %v4404_v33 = vmul.f32 %v5670_v47, %v4333_v31  ;;  %v4407_v39 = vmul.f32 %v5670_v47, %v4336_v29  ;;  %v4335_v40 = vmul.f32 %v5672_v13, %v4030_v32 }
 0x1d9   : > { %4468 = vst.msk [vmem:[%s5679_s16 + $0x1c0] sm:$0xff] %vm680_vm0, %v4404_v33  ;;  %4471 = vst.msk [vmem:[%s5679_s16 + $0x1d8] sm:$0xff] %vm680_vm0, %v4407_v39  ;;  %v4406_v41 = vmul.f32 %v5670_v47, %v4335_v40 }
 0x1da   : > { %v5101_v45 = vpop.f32.mrf.mxu0 }
 0x1db   : > { %4470 = vst.msk [vmem:[%s5679_s16 + $0x1d0] sm:$0xff] %vm680_vm0, %v4406_v41  ;;  %v4338_v35 = vmul.f32 %v5101_v45, %v5668_v46 }
 0x1dc   : > { %v4143_v7 = vpop.f32.mrf.mxu0  ;;  %v5108_v12 = vpop.f32.mrf.mxu1 }
 0x1dd   : > { %v4409_v48 = vmul.f32 %v5670_v47, %v4338_v35  ;;  %v4337_v30 = vmul.f32 %v5672_v13, %v4143_v7  ;;  %v4340_v14 = vmul.f32 %v5108_v12, %v5668_v46 }
 0x1de   : > { %v4256_v18 = vpop.f32.mrf.mxu1 }
 0x1df   : > { %4473 = vst.msk [vmem:[%s5679_s16 + $0x1e8] sm:$0xff] %vm680_vm0, %v4409_v48  ;;  %v4408_v19 = vmul.f32 %v5670_v47, %v4337_v30  ;;  %v4411_v20 = vmul.f32 %v5670_v47, %v4340_v14  ;;  %v4339_v25 = vmul.f32 %v5672_v13, %v4256_v18 }
 0x1e1   : > { %4472 = vst.msk [vmem:[%s5679_s16 + $0x1e0] sm:$0xff] %vm680_vm0, %v4408_v19  ;;  %4475 = vst.msk [vmem:[%s5679_s16 + $0x1f8] sm:$0xff] %vm680_vm0, %v4411_v20  ;;  %v4410_v23 = vmul.f32 %v5670_v47, %v4339_v25 }
 0x1e3   : > { %4474 = vst.msk [vmem:[%s5679_s16 + $0x1f0] sm:$0xff] %vm680_vm0, %v4410_v23 }
 0x1e4 PF: > { %s15_s20 = sadd.s32 1, %s5159_s20   ;;  %s5951_s18 = smov %s5155_s19 }
 0x1e5   : > { %p12_p5 = scmp.ge.s32.totalorder %s15_s20, 4   ;;  %s5952_s19 = smov %s5954_s21 }
 0x1e7   :  { %14 = sbr.rel (!%p12_p5) target bundleno = 2 (0x2), region = 82 }

</bundles_post_ra>
